<compile_context>
chip_gen: v7x
topology: tpu7x:2x2x1
jax: 0.10.0
libtpu: 0.0.40
codegen_flags: <defaults>
</compile_context>

<pallas_src>
import functools
import math

import jax
import jax.numpy as jnp
from jax.experimental import pallas as pl
from jax.experimental.pallas import tpu as pltpu


# ----------------------------- small helpers --------------------------------

def _swap01(t):
    """(A, B, C) -> (B, A, C) as a single layout-aware major-dim transpose."""
    es = getattr(pltpu, "einshape", None)
    if es is not None:
        return es("abc->bac", t)
    return jnp.swapaxes(t, 0, 1)


def _split_heads(t, num_heads, d_k, dtype):
    """(N, H*d_k) -> (H, N, d_k): one relayout, no per-head lane slices."""
    n = t.shape[0]
    return _swap01(t.astype(dtype).reshape(n, num_heads, d_k))


def _combine_heads(t, n, d_model):
    """(H, N, d_k) -> (N, H*d_k)."""
    return _swap01(t).reshape(n, d_model)


def _layer_norm(x, gamma, beta, eps=1e-5):
    # x: (N, D) f32; gamma/beta: (1, D). Matches torch.nn.LayerNorm (biased var).
    mean = jnp.mean(x, axis=-1, keepdims=True)
    var = jnp.mean((x - mean) ** 2, axis=-1, keepdims=True)
    inv = jax.lax.rsqrt(var + eps)
    return (x - mean) * inv * gamma + beta


# --------------------------------- kernel -----------------------------------

def encoder_layer_kernel(
    xq_ref, xkv_ref, bias_ref,
    wq_ref, bq_ref, wkv_ref, bkv_ref, wo_ref, bo_ref,
    g1_ref, be1_ref, w1_ref, bf1_ref, w2_ref, bf2_ref, g2_ref, be2_ref,
    out_ref,
    k_scr, v_scr,
    *, num_heads,
):
    H = num_heads
    Tq, D = xq_ref.shape[1], xq_ref.shape[2]
    S = xkv_ref.shape[1]
    d_k = D // H
    cdt = wq_ref.dtype                          # MXU compute dtype (bf16 or f32)

    # --- K/V: projected ONCE per batch element (qi == 0) into VMEM scratch ---
    @pl.when(pl.program_id(1) == 0)
    def _():
        xkv = xkv_ref[0].astype(cdt)                                    # (S, D)
        kv = jnp.dot(xkv, wkv_ref[...], preferred_element_type=jnp.float32)
        kv = kv + bkv_ref[...]                                          # (S, 2D)
        k_scr[...] = _split_heads(kv[:, :D], H, d_k, k_scr.dtype)       # (H,S,dk)
        v_scr[...] = _split_heads(kv[:, D:], H, d_k, v_scr.dtype)

    x_q = xq_ref[0].astype(jnp.float32)                                  # (Tq, D)

    # --- Q projection (1/sqrt(d_k) already folded into wq/bq) ---
    q = jnp.dot(x_q.astype(cdt), wq_ref[...], preferred_element_type=jnp.float32)
    q = q + bq_ref[...]
    q3 = _split_heads(q, H, d_k, cdt)                                    # (H,Tq,dk)

    # --- head-batched attention, additive mask bias, f32 softmax stats ---
    scores = jnp.einsum("hqd,hkd->hqk", q3, k_scr[...],
                        preferred_element_type=jnp.float32)              # (H,Tq,S)
    scores = scores + bias_ref[...][None, :, :]

    m = jnp.max(scores, axis=-1, keepdims=True)
    e = jnp.exp(scores - m)
    denom = jnp.sum(e, axis=-1, keepdims=True)
    probs = e * pl.reciprocal(denom, approx=True)        # EUP slot, not a divide

    ctx = jnp.einsum("hqk,hkd->hqd", probs.astype(cdt), v_scr[...],
                     preferred_element_type=jnp.float32)                 # (H,Tq,dk)
    attn = _combine_heads(ctx, Tq, D)                                    # (Tq, D)

    # --- output projection + residual + LayerNorm 1 ---
    attn = jnp.dot(attn.astype(cdt), wo_ref[...],
                   preferred_element_type=jnp.float32) + bo_ref[...]
    x1 = _layer_norm(x_q + attn, g1_ref[...], be1_ref[...])

    # --- position-wise feed forward + residual + LayerNorm 2 ---
    h1 = jnp.dot(x1.astype(cdt), w1_ref[...],
                 preferred_element_type=jnp.float32) + bf1_ref[...]
    h1 = jnp.maximum(h1, 0.0)                                            # ReLU
    ff = jnp.dot(h1.astype(cdt), w2_ref[...],
                 preferred_element_type=jnp.float32) + bf2_ref[...]
    x2 = _layer_norm(x1 + ff, g2_ref[...], be2_ref[...])

    out_ref[0] = x2.astype(out_ref.dtype)


# ------------------------------ host wrappers --------------------------------

def pack_params(p, num_heads, compute_dtype=jnp.bfloat16):
    """One-time packing: fuse Wk/Wv into (D, 2D), fold 1/sqrt(d_k) into Wq/bq,
    cast matmul weights to the MXU compute dtype.  Biases/LayerNorm stay f32."""
    d_model = p["wq"].shape[0]
    d_k = d_model // num_heads
    scale = 1.0 / math.sqrt(d_k)
    cdt, f32 = compute_dtype, jnp.float32
    return {
        "wq": (p["wq"] * scale).astype(cdt), "bq": (p["bq"] * scale).astype(f32),
        "wkv": jnp.concatenate([p["wk"], p["wv"]], axis=1).astype(cdt),
        "bkv": jnp.concatenate([p["bk"], p["bv"]], axis=1).astype(f32),
        "wo": p["wo"].astype(cdt), "bo": p["bo"].astype(f32),
        "g1": p["g1"].astype(f32), "be1": p["be1"].astype(f32),
        "w1": p["w1"].astype(cdt), "bf1": p["bf1"].astype(f32),
        "w2": p["w2"].astype(cdt), "bf2": p["bf2"].astype(f32),
        "g2": p["g2"].astype(f32), "be2": p["be2"].astype(f32),
    }


def _vmem_capacity_bytes():
    try:
        return int(pltpu.get_tpu_info().vmem_capacity_bytes)
    except Exception:
        return 64 * 2**20       # conservative: v7x per-TensorCore VMEM


def _vmem_limit_bytes(*, S, Tq, D, d_ff, H, packed):
    f32 = 4
    wbytes = sum(int(v.size) * v.dtype.itemsize for v in packed.values())
    cbytes = packed["wq"].dtype.itemsize
    d_k = D // H
    blocks = 2 * (Tq * D * f32 + S * D * f32 + Tq * S * f32 + Tq * D * f32)
    scratch = 2 * H * S * d_k * cbytes                    # K and V head caches
    inter = (2 * S * D * f32                              # fused K/V proj temp
             + 3 * Tq * D * f32                           # q / attn / residual
             + 3 * H * Tq * S * f32                       # scores, exp, probs
             + H * Tq * d_k * f32                         # ctx
             + 2 * Tq * d_ff * f32                        # FFN hidden + ReLU
             + 4 * Tq * D * f32)                          # x1, ff, LN temps
    need = wbytes + blocks + scratch + inter
    cap = _vmem_capacity_bytes()
    return int(min(max(int(need * 1.5), 32 * 2**20), int(cap * 0.85)))


def encoder_layer(x, mask, packed, *, num_heads, q_block=None,
                  resident_consts=True):
    """x: (B, S, D) f32; mask: (S, S) f32 (1 keep, 0 masked); packed: pack_params()."""
    B, S, D = x.shape
    d_ff = packed["w1"].shape[1]
    assert D % num_heads == 0
    if q_block is None:
        q_block = S if S <= 128 else 128
    assert S % q_block == 0 and (q_block == S or q_block % 8 == 0), \
        "q_block must divide S and be a multiple of 8"
    nq = S // q_block

    # Additive mask bias precomputed once outside the kernel (no per-step
    # compare/select, no float-equality on the mask encoding inside the kernel).
    mask_bias = jnp.where(mask == 0, jnp.float32(-1.0e9), jnp.float32(0.0))

    const_names = ("wq", "bq", "wkv", "bkv", "wo", "bo", "g1", "be1",
                   "w1", "bf1", "w2", "bf2", "g2", "be2")
    consts = [packed[k] for k in const_names]

    def const_spec(arr):
        if resident_consts:
            # Whole array resident in VMEM: single buffer, DMA'd once.
            return pl.BlockSpec(memory_space=pltpu.MemorySpace.VMEM)
        # Fallback: blocked full-array spec (double-buffered by the pipeliner).
        return pl.BlockSpec(arr.shape, lambda b, qi, _n=arr.ndim: (0,) * _n)

    in_specs = [
        pl.BlockSpec((1, q_block, D), lambda b, qi: (b, qi, 0)),  # x (q tile)
        pl.BlockSpec((1, S, D), lambda b, qi: (b, 0, 0)),         # x (full, K/V)
        pl.BlockSpec((q_block, S), lambda b, qi: (qi, 0)),        # mask bias tile
    ] + [const_spec(a) for a in consts]
    out_spec = pl.BlockSpec((1, q_block, D), lambda b, qi: (b, qi, 0))

    cdt = packed["wq"].dtype
    d_k = D // num_heads
    scratch_shapes = [pltpu.VMEM((num_heads, S, d_k), cdt),   # K heads
                      pltpu.VMEM((num_heads, S, d_k), cdt)]   # V heads

    vmem_limit = _vmem_limit_bytes(S=S, Tq=q_block, D=D, d_ff=d_ff,
                                   H=num_heads, packed=packed)

    kernel = functools.partial(encoder_layer_kernel, num_heads=num_heads)
    return pl.pallas_call(
        kernel,
        out_shape=jax.ShapeDtypeStruct((B, S, D), x.dtype),
        grid_spec=pltpu.PrefetchScalarGridSpec(
            num_scalar_prefetch=0,
            grid=(B, nq),
            in_specs=in_specs,
            out_specs=out_spec,
            scratch_shapes=scratch_shapes,
        ),
        compiler_params=pltpu.CompilerParams(
            # batch is megacore-parallel; q-tiles are sequential per batch so the
            # K/V scratch computed at qi == 0 can be reused by later tiles.
            dimension_semantics=("parallel", "arbitrary"),
            vmem_limit_bytes=vmem_limit,
        ),
    )(x, x, mask_bias, *consts)


# ----------------------------- reference / demo ------------------------------

def init_params(key, d_model, d_ff):
    ks = jax.random.split(key, 12)
    s = 1.0 / math.sqrt(d_model)
    sf = 1.0 / math.sqrt(d_ff)
    u = jax.random.uniform
    return {
        "wq": u(ks[0], (d_model, d_model), jnp.float32, -s, s),
        "bq": u(ks[1], (1, d_model), jnp.float32, -s, s),
        "wk": u(ks[2], (d_model, d_model), jnp.float32, -s, s),
        "bk": u(ks[3], (1, d_model), jnp.float32, -s, s),
        "wv": u(ks[4], (d_model, d_model), jnp.float32, -s, s),
        "bv": u(ks[5], (1, d_model), jnp.float32, -s, s),
        "wo": u(ks[6], (d_model, d_model), jnp.float32, -s, s),
        "bo": u(ks[7], (1, d_model), jnp.float32, -s, s),
        "g1": jnp.ones((1, d_model), jnp.float32),
        "be1": jnp.zeros((1, d_model), jnp.float32),
        "w1": u(ks[8], (d_model, d_ff), jnp.float32, -s, s),
        "bf1": u(ks[9], (1, d_ff), jnp.float32, -s, s),
        "w2": u(ks[10], (d_ff, d_model), jnp.float32, -sf, sf),
        "bf2": u(ks[11], (1, d_model), jnp.float32, -sf, sf),
        "g2": jnp.ones((1, d_model), jnp.float32),
        "be2": jnp.zeros((1, d_model), jnp.float32),
    }


def _reference(x, mask, p, num_heads):
    # Pure-JAX f32 reference mirroring the PyTorch module exactly.
    B, S, D = x.shape
    d_k = D // num_heads

    def split(t):  # (B,S,D) -> (B,H,S,dk)
        return t.reshape(B, S, num_heads, d_k).transpose(0, 2, 1, 3)

    q = split(x @ p["wq"] + p["bq"])
    k = split(x @ p["wk"] + p["bk"])
    v = split(x @ p["wv"] + p["bv"])
    scores = jnp.einsum("bhqd,bhkd->bhqk", q, k) / math.sqrt(d_k)
    scores = jnp.where(mask[None, None] == 0, -1.0e9, scores)
    probs = jax.nn.softmax(scores, axis=-1)
    attn = jnp.einsum("bhqk,bhkd->bhqd", probs, v)
    attn = attn.transpose(0, 2, 1, 3).reshape(B, S, D) @ p["wo"] + p["bo"]

    def ln(t, g, b):
        mu = jnp.mean(t, -1, keepdims=True)
        var = jnp.mean((t - mu) ** 2, -1, keepdims=True)
        return (t - mu) * jax.lax.rsqrt(var + 1e-5) * g + b

    x1 = ln(x + attn, p["g1"], p["be1"])
    ff = jnp.maximum(x1 @ p["w1"] + p["bf1"], 0.0) @ p["w2"] + p["bf2"]
    return ln(x1 + ff, p["g2"], p["be2"])


if __name__ == "__main__":
    # Small but tiling-friendly shapes: D / d_ff multiples of 128 (lane-dense
    # stores), d_k = 128, S a multiple of the q-tile so the multi-tile +
    # K/V-scratch-reuse path is exercised (nq = 2).
    B, S, D, H, FF, TQ = 2, 32, 256, 2, 512, 16

    key = jax.random.PRNGKey(0)
    kx, kp = jax.random.split(key, 2)
    x = jax.random.normal(kx, (B, S, D), jnp.float32)
    mask = jnp.tril(jnp.ones((S, S), jnp.float32))   # causal: 1 keep, 0 masked
    params = init_params(kp, D, FF)
    ref = _reference(x, mask, params, H)

    def run(compute_dtype):
        packed = pack_params(params, H, compute_dtype=compute_dtype)
        try:
            return jax.block_until_ready(
                encoder_layer(x, mask, packed, num_heads=H, q_block=TQ))
        except Exception:
            # Fallback for Pallas versions without memory-space-only VMEM
            # input specs: blocked (double-buffered) constant operands.
            return jax.block_until_ready(
                encoder_layer(x, mask, packed, num_heads=H, q_block=TQ,
                              resident_consts=False))

    # f32 compute path — tight check (approx-reciprocal is the only divergence).
    out_f32 = run(jnp.float32)
    assert out_f32.shape == (B, S, D)
    err32 = float(jnp.max(jnp.abs(out_f32 - ref)))
    assert jnp.allclose(out_f32, ref, atol=3e-2, rtol=3e-2), err32

    # bf16 MXU path (perf configuration) — looser tolerance.
    out_bf16 = run(jnp.bfloat16)
    assert out_bf16.shape == (B, S, D)
    err16 = float(jnp.max(jnp.abs(out_bf16 - ref)))
    assert jnp.allclose(out_bf16, ref, atol=1.5e-1, rtol=1.5e-1), err16

    print("KERNEL_OK")
</pallas_src>

<mosaic_0001>
module attributes {stable_mosaic.version = 11 : i64} {
  func.func @encoder_layer_kernel(%arg0: i32, %arg1: i32, %arg2: memref<1x16x256xf32, #tpu.memory_space<vmem>>, %arg3: memref<1x32x256xf32, #tpu.memory_space<vmem>>, %arg4: memref<16x32xf32, #tpu.memory_space<vmem>>, %arg5: memref<256x256xf32, #tpu.memory_space<vmem>>, %arg6: memref<1x256xf32, #tpu.memory_space<vmem>>, %arg7: memref<256x512xf32, #tpu.memory_space<vmem>>, %arg8: memref<1x512xf32, #tpu.memory_space<vmem>>, %arg9: memref<256x256xf32, #tpu.memory_space<vmem>>, %arg10: memref<1x256xf32, #tpu.memory_space<vmem>>, %arg11: memref<1x256xf32, #tpu.memory_space<vmem>>, %arg12: memref<1x256xf32, #tpu.memory_space<vmem>>, %arg13: memref<256x512xf32, #tpu.memory_space<vmem>>, %arg14: memref<1x512xf32, #tpu.memory_space<vmem>>, %arg15: memref<512x256xf32, #tpu.memory_space<vmem>>, %arg16: memref<1x256xf32, #tpu.memory_space<vmem>>, %arg17: memref<1x256xf32, #tpu.memory_space<vmem>>, %arg18: memref<1x256xf32, #tpu.memory_space<vmem>>, %arg19: memref<1x16x256xf32, #tpu.memory_space<vmem>>, %arg20: memref<2x32x128xf32, #tpu.memory_space<vmem>>, %arg21: memref<2x32x128xf32, #tpu.memory_space<vmem>>) attributes {dimension_semantics = [#tpu.dimension_semantics<parallel>, #tpu.dimension_semantics<arbitrary>], iteration_bounds = array<i64: 2, 2>, scalar_prefetch = 0 : i64, scratch_operands = 2 : i64, tpu.core_type = #tpu.core_type<tc>, window_params = [{transform_indices = @transform_0, window_bounds = array<i64: 1, 16, 256>}, {transform_indices = @transform_1, window_bounds = array<i64: 1, 32, 256>}, {transform_indices = @transform_2, window_bounds = array<i64: 16, 32>}, {pipeline_mode = #tpu.pipeline_mode<synchronous>, transform_indices = @transform_3, window_bounds = array<i64: 256, 256>}, {pipeline_mode = #tpu.pipeline_mode<synchronous>, transform_indices = @transform_4, window_bounds = array<i64: 1, 256>}, {pipeline_mode = #tpu.pipeline_mode<synchronous>, transform_indices = @transform_5, window_bounds = array<i64: 256, 512>}, {pipeline_mode = #tpu.pipeline_mode<synchronous>, transform_indices = @transform_6, window_bounds = array<i64: 1, 512>}, {pipeline_mode = #tpu.pipeline_mode<synchronous>, transform_indices = @transform_7, window_bounds = array<i64: 256, 256>}, {pipeline_mode = #tpu.pipeline_mode<synchronous>, transform_indices = @transform_8, window_bounds = array<i64: 1, 256>}, {pipeline_mode = #tpu.pipeline_mode<synchronous>, transform_indices = @transform_9, window_bounds = array<i64: 1, 256>}, {pipeline_mode = #tpu.pipeline_mode<synchronous>, transform_indices = @transform_10, window_bounds = array<i64: 1, 256>}, {pipeline_mode = #tpu.pipeline_mode<synchronous>, transform_indices = @transform_11, window_bounds = array<i64: 256, 512>}, {pipeline_mode = #tpu.pipeline_mode<synchronous>, transform_indices = @transform_12, window_bounds = array<i64: 1, 512>}, {pipeline_mode = #tpu.pipeline_mode<synchronous>, transform_indices = @transform_13, window_bounds = array<i64: 512, 256>}, {pipeline_mode = #tpu.pipeline_mode<synchronous>, transform_indices = @transform_14, window_bounds = array<i64: 1, 256>}, {pipeline_mode = #tpu.pipeline_mode<synchronous>, transform_indices = @transform_15, window_bounds = array<i64: 1, 256>}, {pipeline_mode = #tpu.pipeline_mode<synchronous>, transform_indices = @transform_16, window_bounds = array<i64: 1, 256>}, {transform_indices = @transform_17, window_bounds = array<i64: 1, 16, 256>}]} {
    %c0_i32 = arith.constant 0 : i32
    %0 = arith.cmpi eq, %arg1, %c0_i32 : i32
    %1 = arith.extui %0 : i1 to i32
    %c0_i32_0 = arith.constant 0 : i32
    %2 = arith.cmpi ne, %1, %c0_i32_0 : i32
    scf.if %2 {
      %c0_56 = arith.constant 0 : index
      %c0_57 = arith.constant 0 : index
      %c0_58 = arith.constant 0 : index
      %102 = vector.load %arg3[%c0_56, %c0_57, %c0_58] : memref<1x32x256xf32, #tpu.memory_space<vmem>>, vector<1x32x256xf32>
      %103 = vector.shape_cast %102 : vector<1x32x256xf32> to vector<32x256xf32>
      %c0_59 = arith.constant 0 : index
      %c0_60 = arith.constant 0 : index
      %104 = vector.load %arg7[%c0_59, %c0_60] : memref<256x512xf32, #tpu.memory_space<vmem>>, vector<256x512xf32>
      %cst_61 = arith.constant dense<0.000000e+00> : vector<32x512xf32>
      %105 = tpu.matmul %103, %104, %cst_61 {dimension_numbers = #tpu.dot_dimension_numbers<[1], [0], [0], [1], [0, 0, 1, 1], [], []>} : vector<32x256xf32>, vector<256x512xf32>, vector<32x512xf32> -> vector<32x512xf32>
      %c0_62 = arith.constant 0 : index
      %c0_63 = arith.constant 0 : index
      %106 = vector.load %arg8[%c0_62, %c0_63] : memref<1x512xf32, #tpu.memory_space<vmem>>, vector<1x512xf32>
      %107 = vector.broadcast %106 : vector<1x512xf32> to vector<32x512xf32>
      %108 = arith.addf %105, %107 : vector<32x512xf32>
      %109 = vector.extract_strided_slice %108 {offsets = [0, 0], sizes = [32, 256], strides = [1, 1]} : vector<32x512xf32> to vector<32x256xf32>
      %110 = vector.shape_cast %109 : vector<32x256xf32> to vector<32x2x128xf32>
      %111 = tpu.transpose %110, [1, 0, 2] : vector<32x2x128xf32> -> vector<2x32x128xf32>
      %c0_64 = arith.constant 0 : index
      %c0_65 = arith.constant 0 : index
      %c0_66 = arith.constant 0 : index
      %112 = vector.load %arg20[%c0_64, %c0_65, %c0_66] : memref<2x32x128xf32, #tpu.memory_space<vmem>>, vector<2x32x128xf32>
      tpu.vector_store %arg20[%c0_64, %c0_65, %c0_66], %111 {strides = array<i32>} : memref<2x32x128xf32, #tpu.memory_space<vmem>>, vector<2x32x128xf32>,
      %113 = vector.extract_strided_slice %108 {offsets = [0, 256], sizes = [32, 256], strides = [1, 1]} : vector<32x512xf32> to vector<32x256xf32>
      %114 = vector.shape_cast %113 : vector<32x256xf32> to vector<32x2x128xf32>
      %115 = tpu.transpose %114, [1, 0, 2] : vector<32x2x128xf32> -> vector<2x32x128xf32>
      %c0_67 = arith.constant 0 : index
      %c0_68 = arith.constant 0 : index
      %c0_69 = arith.constant 0 : index
      %116 = vector.load %arg21[%c0_67, %c0_68, %c0_69] : memref<2x32x128xf32, #tpu.memory_space<vmem>>, vector<2x32x128xf32>
      tpu.vector_store %arg21[%c0_67, %c0_68, %c0_69], %115 {strides = array<i32>} : memref<2x32x128xf32, #tpu.memory_space<vmem>>, vector<2x32x128xf32>,
    } else {
    }
    %c0 = arith.constant 0 : index
    %c0_1 = arith.constant 0 : index
    %c0_2 = arith.constant 0 : index
    %3 = vector.load %arg2[%c0, %c0_1, %c0_2] : memref<1x16x256xf32, #tpu.memory_space<vmem>>, vector<1x16x256xf32>
    %4 = vector.shape_cast %3 : vector<1x16x256xf32> to vector<16x256xf32>
    %c0_3 = arith.constant 0 : index
    %c0_4 = arith.constant 0 : index
    %5 = vector.load %arg5[%c0_3, %c0_4] : memref<256x256xf32, #tpu.memory_space<vmem>>, vector<256x256xf32>
    %cst = arith.constant dense<0.000000e+00> : vector<16x256xf32>
    %6 = tpu.matmul %4, %5, %cst {dimension_numbers = #tpu.dot_dimension_numbers<[1], [0], [0], [1], [0, 0, 1, 1], [], []>} : vector<16x256xf32>, vector<256x256xf32>, vector<16x256xf32> -> vector<16x256xf32>
    %c0_5 = arith.constant 0 : index
    %c0_6 = arith.constant 0 : index
    %7 = vector.load %arg6[%c0_5, %c0_6] : memref<1x256xf32, #tpu.memory_space<vmem>>, vector<1x256xf32>
    %8 = vector.broadcast %7 : vector<1x256xf32> to vector<16x256xf32>
    %9 = arith.addf %6, %8 : vector<16x256xf32>
    %10 = vector.shape_cast %9 : vector<16x256xf32> to vector<16x2x128xf32>
    %11 = tpu.transpose %10, [1, 0, 2] : vector<16x2x128xf32> -> vector<2x16x128xf32>
    %c0_7 = arith.constant 0 : index
    %c0_8 = arith.constant 0 : index
    %c0_9 = arith.constant 0 : index
    %12 = vector.load %arg20[%c0_7, %c0_8, %c0_9] : memref<2x32x128xf32, #tpu.memory_space<vmem>>, vector<2x32x128xf32>
    "tpu.trace_start"() <{level = 10 : i32, message = "hqd,hkd->hqk"}> : () -> ()
    %cst_10 = arith.constant dense<0.000000e+00> : vector<2x16x32xf32>
    %13 = tpu.matmul %11, %12, %cst_10 {dimension_numbers = #tpu.dot_dimension_numbers<[2], [2], [1], [1], [0, 0, 0, 1, 1, 1], [0], [0]>} : vector<2x16x128xf32>, vector<2x32x128xf32>, vector<2x16x32xf32> -> vector<2x16x32xf32>
    "tpu.trace_stop"() : () -> ()
    %c0_11 = arith.constant 0 : index
    %c0_12 = arith.constant 0 : index
    %14 = vector.load %arg4[%c0_11, %c0_12] : memref<16x32xf32, #tpu.memory_space<vmem>>, vector<16x32xf32>
    %15 = vector.shape_cast %14 : vector<16x32xf32> to vector<1x16x32xf32>
    %16 = vector.broadcast %15 : vector<1x16x32xf32> to vector<2x16x32xf32>
    %17 = arith.addf %13, %16 : vector<2x16x32xf32>
    %cst_13 = arith.constant dense<0xFF800000> : vector<2x16xf32>
    %18 = vector.multi_reduction <maximumf>, %17, %cst_13 [2] : vector<2x16x32xf32> to vector<2x16xf32>
    %19 = vector.shape_cast %18 : vector<2x16xf32> to vector<2x16x1xf32>
    %20 = vector.broadcast %19 : vector<2x16x1xf32> to vector<2x16x32xf32>
    %21 = arith.subf %17, %20 : vector<2x16x32xf32>
    %22 = math.exp %21 : vector<2x16x32xf32>
    %cst_14 = arith.constant dense<0.000000e+00> : vector<2x16xf32>
    %23 = vector.multi_reduction <add>, %22, %cst_14 [2] : vector<2x16x32xf32> to vector<2x16xf32>
    %24 = vector.shape_cast %23 : vector<2x16xf32> to vector<2x16x1xf32>
    %25 = tpu.reciprocal %24 {approx = true} : vector<2x16x1xf32> -> vector<2x16x1xf32>
    %26 = vector.broadcast %25 : vector<2x16x1xf32> to vector<2x16x32xf32>
    %27 = arith.mulf %22, %26 : vector<2x16x32xf32>
    %c0_15 = arith.constant 0 : index
    %c0_16 = arith.constant 0 : index
    %c0_17 = arith.constant 0 : index
    %28 = vector.load %arg21[%c0_15, %c0_16, %c0_17] : memref<2x32x128xf32, #tpu.memory_space<vmem>>, vector<2x32x128xf32>
    "tpu.trace_start"() <{level = 10 : i32, message = "hqk,hkd->hqd"}> : () -> ()
    %cst_18 = arith.constant dense<0.000000e+00> : vector<2x16x128xf32>
    %29 = tpu.matmul %27, %28, %cst_18 {dimension_numbers = #tpu.dot_dimension_numbers<[2], [1], [1], [2], [0, 0, 0, 1, 1, 2], [0], [0]>} : vector<2x16x32xf32>, vector<2x32x128xf32>, vector<2x16x128xf32> -> vector<2x16x128xf32>
    "tpu.trace_stop"() : () -> ()
    %30 = tpu.transpose %29, [1, 0, 2] : vector<2x16x128xf32> -> vector<16x2x128xf32>
    %31 = vector.shape_cast %30 : vector<16x2x128xf32> to vector<16x256xf32>
    %c0_19 = arith.constant 0 : index
    %c0_20 = arith.constant 0 : index
    %32 = vector.load %arg9[%c0_19, %c0_20] : memref<256x256xf32, #tpu.memory_space<vmem>>, vector<256x256xf32>
    %cst_21 = arith.constant dense<0.000000e+00> : vector<16x256xf32>
    %33 = tpu.matmul %31, %32, %cst_21 {dimension_numbers = #tpu.dot_dimension_numbers<[1], [0], [0], [1], [0, 0, 1, 1], [], []>} : vector<16x256xf32>, vector<256x256xf32>, vector<16x256xf32> -> vector<16x256xf32>
    %c0_22 = arith.constant 0 : index
    %c0_23 = arith.constant 0 : index
    %34 = vector.load %arg10[%c0_22, %c0_23] : memref<1x256xf32, #tpu.memory_space<vmem>>, vector<1x256xf32>
    %35 = vector.broadcast %34 : vector<1x256xf32> to vector<16x256xf32>
    %36 = arith.addf %33, %35 : vector<16x256xf32>
    %37 = arith.addf %4, %36 : vector<16x256xf32>
    %c0_24 = arith.constant 0 : index
    %c0_25 = arith.constant 0 : index
    %38 = vector.load %arg11[%c0_24, %c0_25] : memref<1x256xf32, #tpu.memory_space<vmem>>, vector<1x256xf32>
    %c0_26 = arith.constant 0 : index
    %c0_27 = arith.constant 0 : index
    %39 = vector.load %arg12[%c0_26, %c0_27] : memref<1x256xf32, #tpu.memory_space<vmem>>, vector<1x256xf32>
    %cst_28 = arith.constant dense<0.000000e+00> : vector<16xf32>
    %40 = vector.multi_reduction <add>, %37, %cst_28 [1] : vector<16x256xf32> to vector<16xf32>
    %41 = vector.shape_cast %40 : vector<16xf32> to vector<16x1xf32>
    %cst_29 = arith.constant 2.560000e+02 : f32
    %42 = vector.broadcast %cst_29 : f32 to vector<16x1xf32>
    %43 = arith.divf %41, %42 : vector<16x1xf32>
    %44 = vector.broadcast %43 : vector<16x1xf32> to vector<16x256xf32>
    %45 = arith.subf %37, %44 : vector<16x256xf32>
    %46 = arith.mulf %45, %45 : vector<16x256xf32>
    %cst_30 = arith.constant dense<0.000000e+00> : vector<16xf32>
    %47 = vector.multi_reduction <add>, %46, %cst_30 [1] : vector<16x256xf32> to vector<16xf32>
    %48 = vector.shape_cast %47 : vector<16xf32> to vector<16x1xf32>
    %cst_31 = arith.constant 2.560000e+02 : f32
    %49 = vector.broadcast %cst_31 : f32 to vector<16x1xf32>
    %50 = arith.divf %48, %49 : vector<16x1xf32>
    %cst_32 = arith.constant 9.99999974E-6 : f32
    %51 = vector.broadcast %cst_32 : f32 to vector<16x1xf32>
    %52 = arith.addf %50, %51 : vector<16x1xf32>
    %53 = math.rsqrt %52 : vector<16x1xf32>
    %54 = vector.broadcast %43 : vector<16x1xf32> to vector<16x256xf32>
    %55 = arith.subf %37, %54 : vector<16x256xf32>
    %56 = vector.broadcast %53 : vector<16x1xf32> to vector<16x256xf32>
    %57 = arith.mulf %55, %56 : vector<16x256xf32>
    %58 = vector.broadcast %38 : vector<1x256xf32> to vector<16x256xf32>
    %59 = arith.mulf %57, %58 : vector<16x256xf32>
    %60 = vector.broadcast %39 : vector<1x256xf32> to vector<16x256xf32>
    %61 = arith.addf %59, %60 : vector<16x256xf32>
    %c0_33 = arith.constant 0 : index
    %c0_34 = arith.constant 0 : index
    %62 = vector.load %arg13[%c0_33, %c0_34] : memref<256x512xf32, #tpu.memory_space<vmem>>, vector<256x512xf32>
    %cst_35 = arith.constant dense<0.000000e+00> : vector<16x512xf32>
    %63 = tpu.matmul %61, %62, %cst_35 {dimension_numbers = #tpu.dot_dimension_numbers<[1], [0], [0], [1], [0, 0, 1, 1], [], []>} : vector<16x256xf32>, vector<256x512xf32>, vector<16x512xf32> -> vector<16x512xf32>
    %c0_36 = arith.constant 0 : index
    %c0_37 = arith.constant 0 : index
    %64 = vector.load %arg14[%c0_36, %c0_37] : memref<1x512xf32, #tpu.memory_space<vmem>>, vector<1x512xf32>
    %65 = vector.broadcast %64 : vector<1x512xf32> to vector<16x512xf32>
    %66 = arith.addf %63, %65 : vector<16x512xf32>
    %cst_38 = arith.constant 0.000000e+00 : f32
    %67 = vector.broadcast %cst_38 : f32 to vector<16x512xf32>
    %68 = arith.maximumf %66, %67 : vector<16x512xf32>
    %c0_39 = arith.constant 0 : index
    %c0_40 = arith.constant 0 : index
    %69 = vector.load %arg15[%c0_39, %c0_40] : memref<512x256xf32, #tpu.memory_space<vmem>>, vector<512x256xf32>
    %cst_41 = arith.constant dense<0.000000e+00> : vector<16x256xf32>
    %70 = tpu.matmul %68, %69, %cst_41 {dimension_numbers = #tpu.dot_dimension_numbers<[1], [0], [0], [1], [0, 0, 1, 1], [], []>} : vector<16x512xf32>, vector<512x256xf32>, vector<16x256xf32> -> vector<16x256xf32>
    %c0_42 = arith.constant 0 : index
    %c0_43 = arith.constant 0 : index
    %71 = vector.load %arg16[%c0_42, %c0_43] : memref<1x256xf32, #tpu.memory_space<vmem>>, vector<1x256xf32>
    %72 = vector.broadcast %71 : vector<1x256xf32> to vector<16x256xf32>
    %73 = arith.addf %70, %72 : vector<16x256xf32>
    %74 = arith.addf %61, %73 : vector<16x256xf32>
    %c0_44 = arith.constant 0 : index
    %c0_45 = arith.constant 0 : index
    %75 = vector.load %arg17[%c0_44, %c0_45] : memref<1x256xf32, #tpu.memory_space<vmem>>, vector<1x256xf32>
    %c0_46 = arith.constant 0 : index
    %c0_47 = arith.constant 0 : index
    %76 = vector.load %arg18[%c0_46, %c0_47] : memref<1x256xf32, #tpu.memory_space<vmem>>, vector<1x256xf32>
    %cst_48 = arith.constant dense<0.000000e+00> : vector<16xf32>
    %77 = vector.multi_reduction <add>, %74, %cst_48 [1] : vector<16x256xf32> to vector<16xf32>
    %78 = vector.shape_cast %77 : vector<16xf32> to vector<16x1xf32>
    %cst_49 = arith.constant 2.560000e+02 : f32
    %79 = vector.broadcast %cst_49 : f32 to vector<16x1xf32>
    %80 = arith.divf %78, %79 : vector<16x1xf32>
    %81 = vector.broadcast %80 : vector<16x1xf32> to vector<16x256xf32>
    %82 = arith.subf %74, %81 : vector<16x256xf32>
    %83 = arith.mulf %82, %82 : vector<16x256xf32>
    %cst_50 = arith.constant dense<0.000000e+00> : vector<16xf32>
    %84 = vector.multi_reduction <add>, %83, %cst_50 [1] : vector<16x256xf32> to vector<16xf32>
    %85 = vector.shape_cast %84 : vector<16xf32> to vector<16x1xf32>
    %cst_51 = arith.constant 2.560000e+02 : f32
    %86 = vector.broadcast %cst_51 : f32 to vector<16x1xf32>
    %87 = arith.divf %85, %86 : vector<16x1xf32>
    %cst_52 = arith.constant 9.99999974E-6 : f32
    %88 = vector.broadcast %cst_52 : f32 to vector<16x1xf32>
    %89 = arith.addf %87, %88 : vector<16x1xf32>
    %90 = math.rsqrt %89 : vector<16x1xf32>
    %91 = vector.broadcast %80 : vector<16x1xf32> to vector<16x256xf32>
    %92 = arith.subf %74, %91 : vector<16x256xf32>
    %93 = vector.broadcast %90 : vector<16x1xf32> to vector<16x256xf32>
    %94 = arith.mulf %92, %93 : vector<16x256xf32>
    %95 = vector.broadcast %75 : vector<1x256xf32> to vector<16x256xf32>
    %96 = arith.mulf %94, %95 : vector<16x256xf32>
    %97 = vector.broadcast %76 : vector<1x256xf32> to vector<16x256xf32>
    %98 = arith.addf %96, %97 : vector<16x256xf32>
    %c0_53 = arith.constant 0 : index
    %c0_54 = arith.constant 0 : index
    %c0_55 = arith.constant 0 : index
    %99 = vector.load %arg19[%c0_53, %c0_54, %c0_55] : memref<1x16x256xf32, #tpu.memory_space<vmem>>, vector<1x16x256xf32>
    %100 = vector.shape_cast %99 : vector<1x16x256xf32> to vector<16x256xf32>
    %101 = vector.shape_cast %98 : vector<16x256xf32> to vector<1x16x256xf32>
    tpu.vector_store %arg19[%c0_53, %c0_54, %c0_55], %101 {strides = array<i32>} : memref<1x16x256xf32, #tpu.memory_space<vmem>>, vector<1x16x256xf32>,
    return
  }
  func.func @transform_0(%arg0: i32, %arg1: i32) -> (i32, i32, i32) {
    %c0_i32 = arith.constant 0 : i32
    %c0_i32_0 = arith.constant 0 : i32
    return %arg0, %arg1, %c0_i32 : i32, i32, i32
  }
  func.func @transform_1(%arg0: i32, %arg1: i32) -> (i32, i32, i32) {
    %c0_i32 = arith.constant 0 : i32
    %c0_i32_0 = arith.constant 0 : i32
    %c0_i32_1 = arith.constant 0 : i32
    return %arg0, %c0_i32, %c0_i32_0 : i32, i32, i32
  }
  func.func @transform_2(%arg0: i32, %arg1: i32) -> (i32, i32) {
    %c0_i32 = arith.constant 0 : i32
    %c0_i32_0 = arith.constant 0 : i32
    return %arg1, %c0_i32 : i32, i32
  }
  func.func @transform_3(%arg0: i32, %arg1: i32) -> (i32, i32) {
    %c0_i32 = arith.constant 0 : i32
    %c0_i32_0 = arith.constant 0 : i32
    %c0_i32_1 = arith.constant 0 : i32
    return %c0_i32, %c0_i32_0 : i32, i32
  }
  func.func @transform_4(%arg0: i32, %arg1: i32) -> (i32, i32) {
    %c0_i32 = arith.constant 0 : i32
    %c0_i32_0 = arith.constant 0 : i32
    %c0_i32_1 = arith.constant 0 : i32
    return %c0_i32, %c0_i32_0 : i32, i32
  }
  func.func @transform_5(%arg0: i32, %arg1: i32) -> (i32, i32) {
    %c0_i32 = arith.constant 0 : i32
    %c0_i32_0 = arith.constant 0 : i32
    %c0_i32_1 = arith.constant 0 : i32
    return %c0_i32, %c0_i32_0 : i32, i32
  }
  func.func @transform_6(%arg0: i32, %arg1: i32) -> (i32, i32) {
    %c0_i32 = arith.constant 0 : i32
    %c0_i32_0 = arith.constant 0 : i32
    %c0_i32_1 = arith.constant 0 : i32
    return %c0_i32, %c0_i32_0 : i32, i32
  }
  func.func @transform_7(%arg0: i32, %arg1: i32) -> (i32, i32) {
    %c0_i32 = arith.constant 0 : i32
    %c0_i32_0 = arith.constant 0 : i32
    %c0_i32_1 = arith.constant 0 : i32
    return %c0_i32, %c0_i32_0 : i32, i32
  }
  func.func @transform_8(%arg0: i32, %arg1: i32) -> (i32, i32) {
    %c0_i32 = arith.constant 0 : i32
    %c0_i32_0 = arith.constant 0 : i32
    %c0_i32_1 = arith.constant 0 : i32
    return %c0_i32, %c0_i32_0 : i32, i32
  }
  func.func @transform_9(%arg0: i32, %arg1: i32) -> (i32, i32) {
    %c0_i32 = arith.constant 0 : i32
    %c0_i32_0 = arith.constant 0 : i32
    %c0_i32_1 = arith.constant 0 : i32
    return %c0_i32, %c0_i32_0 : i32, i32
  }
  func.func @transform_10(%arg0: i32, %arg1: i32) -> (i32, i32) {
    %c0_i32 = arith.constant 0 : i32
    %c0_i32_0 = arith.constant 0 : i32
    %c0_i32_1 = arith.constant 0 : i32
    return %c0_i32, %c0_i32_0 : i32, i32
  }
  func.func @transform_11(%arg0: i32, %arg1: i32) -> (i32, i32) {
    %c0_i32 = arith.constant 0 : i32
    %c0_i32_0 = arith.constant 0 : i32
    %c0_i32_1 = arith.constant 0 : i32
    return %c0_i32, %c0_i32_0 : i32, i32
  }
  func.func @transform_12(%arg0: i32, %arg1: i32) -> (i32, i32) {
    %c0_i32 = arith.constant 0 : i32
    %c0_i32_0 = arith.constant 0 : i32
    %c0_i32_1 = arith.constant 0 : i32
    return %c0_i32, %c0_i32_0 : i32, i32
  }
  func.func @transform_13(%arg0: i32, %arg1: i32) -> (i32, i32) {
    %c0_i32 = arith.constant 0 : i32
    %c0_i32_0 = arith.constant 0 : i32
    %c0_i32_1 = arith.constant 0 : i32
    return %c0_i32, %c0_i32_0 : i32, i32
  }
  func.func @transform_14(%arg0: i32, %arg1: i32) -> (i32, i32) {
    %c0_i32 = arith.constant 0 : i32
    %c0_i32_0 = arith.constant 0 : i32
    %c0_i32_1 = arith.constant 0 : i32
    return %c0_i32, %c0_i32_0 : i32, i32
  }
  func.func @transform_15(%arg0: i32, %arg1: i32) -> (i32, i32) {
    %c0_i32 = arith.constant 0 : i32
    %c0_i32_0 = arith.constant 0 : i32
    %c0_i32_1 = arith.constant 0 : i32
    return %c0_i32, %c0_i32_0 : i32, i32
  }
  func.func @transform_16(%arg0: i32, %arg1: i32) -> (i32, i32) {
    %c0_i32 = arith.constant 0 : i32
    %c0_i32_0 = arith.constant 0 : i32
    %c0_i32_1 = arith.constant 0 : i32
    return %c0_i32, %c0_i32_0 : i32, i32
  }
  func.func @transform_17(%arg0: i32, %arg1: i32) -> (i32, i32, i32) {
    %c0_i32 = arith.constant 0 : i32
    %c0_i32_0 = arith.constant 0 : i32
    return %arg0, %arg1, %c0_i32 : i32, i32, i32
  }
}

module attributes {stable_mosaic.version = 11 : i64} {
  func.func @encoder_layer_kernel(%arg0: i32, %arg1: i32, %arg2: memref<1x16x256xf32, #tpu.memory_space<vmem>>, %arg3: memref<1x32x256xf32, #tpu.memory_space<vmem>>, %arg4: memref<16x32xf32, #tpu.memory_space<vmem>>, %arg5: memref<256x256xf32, #tpu.memory_space<vmem>>, %arg6: memref<1x256xf32, #tpu.memory_space<vmem>>, %arg7: memref<256x512xf32, #tpu.memory_space<vmem>>, %arg8: memref<1x512xf32, #tpu.memory_space<vmem>>, %arg9: memref<256x256xf32, #tpu.memory_space<vmem>>, %arg10: memref<1x256xf32, #tpu.memory_space<vmem>>, %arg11: memref<1x256xf32, #tpu.memory_space<vmem>>, %arg12: memref<1x256xf32, #tpu.memory_space<vmem>>, %arg13: memref<256x512xf32, #tpu.memory_space<vmem>>, %arg14: memref<1x512xf32, #tpu.memory_space<vmem>>, %arg15: memref<512x256xf32, #tpu.memory_space<vmem>>, %arg16: memref<1x256xf32, #tpu.memory_space<vmem>>, %arg17: memref<1x256xf32, #tpu.memory_space<vmem>>, %arg18: memref<1x256xf32, #tpu.memory_space<vmem>>, %arg19: memref<1x16x256xf32, #tpu.memory_space<vmem>>, %arg20: memref<2x32x128xf32, #tpu.memory_space<vmem>>, %arg21: memref<2x32x128xf32, #tpu.memory_space<vmem>>) attributes {dimension_semantics = [#tpu.dimension_semantics<parallel>, #tpu.dimension_semantics<arbitrary>], iteration_bounds = array<i64: 2, 2>, scalar_prefetch = 0 : i64, scratch_operands = 2 : i64, tpu.core_type = #tpu.core_type<tc>, window_params = [{transform_indices = @transform_0, window_bounds = array<i64: 1, 16, 256>}, {transform_indices = @transform_1, window_bounds = array<i64: 1, 32, 256>}, {transform_indices = @transform_2, window_bounds = array<i64: 16, 32>}, {pipeline_mode = #tpu.pipeline_mode<synchronous>, transform_indices = @transform_3, window_bounds = array<i64: 256, 256>}, {pipeline_mode = #tpu.pipeline_mode<synchronous>, transform_indices = @transform_4, window_bounds = array<i64: 1, 256>}, {pipeline_mode = #tpu.pipeline_mode<synchronous>, transform_indices = @transform_5, window_bounds = array<i64: 256, 512>}, {pipeline_mode = #tpu.pipeline_mode<synchronous>, transform_indices = @transform_6, window_bounds = array<i64: 1, 512>}, {pipeline_mode = #tpu.pipeline_mode<synchronous>, transform_indices = @transform_7, window_bounds = array<i64: 256, 256>}, {pipeline_mode = #tpu.pipeline_mode<synchronous>, transform_indices = @transform_8, window_bounds = array<i64: 1, 256>}, {pipeline_mode = #tpu.pipeline_mode<synchronous>, transform_indices = @transform_9, window_bounds = array<i64: 1, 256>}, {pipeline_mode = #tpu.pipeline_mode<synchronous>, transform_indices = @transform_10, window_bounds = array<i64: 1, 256>}, {pipeline_mode = #tpu.pipeline_mode<synchronous>, transform_indices = @transform_11, window_bounds = array<i64: 256, 512>}, {pipeline_mode = #tpu.pipeline_mode<synchronous>, transform_indices = @transform_12, window_bounds = array<i64: 1, 512>}, {pipeline_mode = #tpu.pipeline_mode<synchronous>, transform_indices = @transform_13, window_bounds = array<i64: 512, 256>}, {pipeline_mode = #tpu.pipeline_mode<synchronous>, transform_indices = @transform_14, window_bounds = array<i64: 1, 256>}, {pipeline_mode = #tpu.pipeline_mode<synchronous>, transform_indices = @transform_15, window_bounds = array<i64: 1, 256>}, {pipeline_mode = #tpu.pipeline_mode<synchronous>, transform_indices = @transform_16, window_bounds = array<i64: 1, 256>}, {transform_indices = @transform_17, window_bounds = array<i64: 1, 16, 256>}]} {
    %c0_i32 = arith.constant 0 : i32
    %0 = arith.cmpi eq, %arg1, %c0_i32 : i32
    %1 = arith.extui %0 : i1 to i32
    %c0_i32_0 = arith.constant 0 : i32
    %2 = arith.cmpi ne, %1, %c0_i32_0 : i32
    scf.if %2 {
      %c0_56 = arith.constant 0 : index
      %c0_57 = arith.constant 0 : index
      %c0_58 = arith.constant 0 : index
      %102 = vector.load %arg3[%c0_56, %c0_57, %c0_58] : memref<1x32x256xf32, #tpu.memory_space<vmem>>, vector<1x32x256xf32>
      %103 = vector.shape_cast %102 : vector<1x32x256xf32> to vector<32x256xf32>
      %c0_59 = arith.constant 0 : index
      %c0_60 = arith.constant 0 : index
      %104 = vector.load %arg7[%c0_59, %c0_60] : memref<256x512xf32, #tpu.memory_space<vmem>>, vector<256x512xf32>
      %cst_61 = arith.constant dense<0.000000e+00> : vector<32x512xf32>
      %105 = tpu.matmul %103, %104, %cst_61 {dimension_numbers = #tpu.dot_dimension_numbers<[1], [0], [0], [1], [0, 0, 1, 1], [], []>} : vector<32x256xf32>, vector<256x512xf32>, vector<32x512xf32> -> vector<32x512xf32>
      %c0_62 = arith.constant 0 : index
      %c0_63 = arith.constant 0 : index
      %106 = vector.load %arg8[%c0_62, %c0_63] : memref<1x512xf32, #tpu.memory_space<vmem>>, vector<1x512xf32>
      %107 = vector.broadcast %106 : vector<1x512xf32> to vector<32x512xf32>
      %108 = arith.addf %105, %107 : vector<32x512xf32>
      %109 = vector.extract_strided_slice %108 {offsets = [0, 0], sizes = [32, 256], strides = [1, 1]} : vector<32x512xf32> to vector<32x256xf32>
      %110 = vector.shape_cast %109 : vector<32x256xf32> to vector<32x2x128xf32>
      %111 = tpu.transpose %110, [1, 0, 2] : vector<32x2x128xf32> -> vector<2x32x128xf32>
      %c0_64 = arith.constant 0 : index
      %c0_65 = arith.constant 0 : index
      %c0_66 = arith.constant 0 : index
      %112 = vector.load %arg20[%c0_64, %c0_65, %c0_66] : memref<2x32x128xf32, #tpu.memory_space<vmem>>, vector<2x32x128xf32>
      tpu.vector_store %arg20[%c0_64, %c0_65, %c0_66], %111 {strides = array<i32>} : memref<2x32x128xf32, #tpu.memory_space<vmem>>, vector<2x32x128xf32>,
      %113 = vector.extract_strided_slice %108 {offsets = [0, 256], sizes = [32, 256], strides = [1, 1]} : vector<32x512xf32> to vector<32x256xf32>
      %114 = vector.shape_cast %113 : vector<32x256xf32> to vector<32x2x128xf32>
      %115 = tpu.transpose %114, [1, 0, 2] : vector<32x2x128xf32> -> vector<2x32x128xf32>
      %c0_67 = arith.constant 0 : index
      %c0_68 = arith.constant 0 : index
      %c0_69 = arith.constant 0 : index
      %116 = vector.load %arg21[%c0_67, %c0_68, %c0_69] : memref<2x32x128xf32, #tpu.memory_space<vmem>>, vector<2x32x128xf32>
      tpu.vector_store %arg21[%c0_67, %c0_68, %c0_69], %115 {strides = array<i32>} : memref<2x32x128xf32, #tpu.memory_space<vmem>>, vector<2x32x128xf32>,
    } else {
    }
    %c0 = arith.constant 0 : index
    %c0_1 = arith.constant 0 : index
    %c0_2 = arith.constant 0 : index
    %3 = vector.load %arg2[%c0, %c0_1, %c0_2] : memref<1x16x256xf32, #tpu.memory_space<vmem>>, vector<1x16x256xf32>
    %4 = vector.shape_cast %3 : vector<1x16x256xf32> to vector<16x256xf32>
    %c0_3 = arith.constant 0 : index
    %c0_4 = arith.constant 0 : index
    %5 = vector.load %arg5[%c0_3, %c0_4] : memref<256x256xf32, #tpu.memory_space<vmem>>, vector<256x256xf32>
    %cst = arith.constant dense<0.000000e+00> : vector<16x256xf32>
    %6 = tpu.matmul %4, %5, %cst {dimension_numbers = #tpu.dot_dimension_numbers<[1], [0], [0], [1], [0, 0, 1, 1], [], []>} : vector<16x256xf32>, vector<256x256xf32>, vector<16x256xf32> -> vector<16x256xf32>
    %c0_5 = arith.constant 0 : index
    %c0_6 = arith.constant 0 : index
    %7 = vector.load %arg6[%c0_5, %c0_6] : memref<1x256xf32, #tpu.memory_space<vmem>>, vector<1x256xf32>
    %8 = vector.broadcast %7 : vector<1x256xf32> to vector<16x256xf32>
    %9 = arith.addf %6, %8 : vector<16x256xf32>
    %10 = vector.shape_cast %9 : vector<16x256xf32> to vector<16x2x128xf32>
    %11 = tpu.transpose %10, [1, 0, 2] : vector<16x2x128xf32> -> vector<2x16x128xf32>
    %c0_7 = arith.constant 0 : index
    %c0_8 = arith.constant 0 : index
    %c0_9 = arith.constant 0 : index
    %12 = vector.load %arg20[%c0_7, %c0_8, %c0_9] : memref<2x32x128xf32, #tpu.memory_space<vmem>>, vector<2x32x128xf32>
    "tpu.trace_start"() <{level = 10 : i32, message = "hqd,hkd->hqk"}> : () -> ()
    %cst_10 = arith.constant dense<0.000000e+00> : vector<2x16x32xf32>
    %13 = tpu.matmul %11, %12, %cst_10 {dimension_numbers = #tpu.dot_dimension_numbers<[2], [2], [1], [1], [0, 0, 0, 1, 1, 1], [0], [0]>} : vector<2x16x128xf32>, vector<2x32x128xf32>, vector<2x16x32xf32> -> vector<2x16x32xf32>
    "tpu.trace_stop"() : () -> ()
    %c0_11 = arith.constant 0 : index
    %c0_12 = arith.constant 0 : index
    %14 = vector.load %arg4[%c0_11, %c0_12] : memref<16x32xf32, #tpu.memory_space<vmem>>, vector<16x32xf32>
    %15 = vector.shape_cast %14 : vector<16x32xf32> to vector<1x16x32xf32>
    %16 = vector.broadcast %15 : vector<1x16x32xf32> to vector<2x16x32xf32>
    %17 = arith.addf %13, %16 : vector<2x16x32xf32>
    %cst_13 = arith.constant dense<0xFF800000> : vector<2x16xf32>
    %18 = vector.multi_reduction <maximumf>, %17, %cst_13 [2] : vector<2x16x32xf32> to vector<2x16xf32>
    %19 = vector.shape_cast %18 : vector<2x16xf32> to vector<2x16x1xf32>
    %20 = vector.broadcast %19 : vector<2x16x1xf32> to vector<2x16x32xf32>
    %21 = arith.subf %17, %20 : vector<2x16x32xf32>
    %22 = math.exp %21 : vector<2x16x32xf32>
    %cst_14 = arith.constant dense<0.000000e+00> : vector<2x16xf32>
    %23 = vector.multi_reduction <add>, %22, %cst_14 [2] : vector<2x16x32xf32> to vector<2x16xf32>
    %24 = vector.shape_cast %23 : vector<2x16xf32> to vector<2x16x1xf32>
    %25 = tpu.reciprocal %24 {approx = true} : vector<2x16x1xf32> -> vector<2x16x1xf32>
    %26 = vector.broadcast %25 : vector<2x16x1xf32> to vector<2x16x32xf32>
    %27 = arith.mulf %22, %26 : vector<2x16x32xf32>
    %c0_15 = arith.constant 0 : index
    %c0_16 = arith.constant 0 : index
    %c0_17 = arith.constant 0 : index
    %28 = vector.load %arg21[%c0_15, %c0_16, %c0_17] : memref<2x32x128xf32, #tpu.memory_space<vmem>>, vector<2x32x128xf32>
    "tpu.trace_start"() <{level = 10 : i32, message = "hqk,hkd->hqd"}> : () -> ()
    %cst_18 = arith.constant dense<0.000000e+00> : vector<2x16x128xf32>
    %29 = tpu.matmul %27, %28, %cst_18 {dimension_numbers = #tpu.dot_dimension_numbers<[2], [1], [1], [2], [0, 0, 0, 1, 1, 2], [0], [0]>} : vector<2x16x32xf32>, vector<2x32x128xf32>, vector<2x16x128xf32> -> vector<2x16x128xf32>
    "tpu.trace_stop"() : () -> ()
    %30 = tpu.transpose %29, [1, 0, 2] : vector<2x16x128xf32> -> vector<16x2x128xf32>
    %31 = vector.shape_cast %30 : vector<16x2x128xf32> to vector<16x256xf32>
    %c0_19 = arith.constant 0 : index
    %c0_20 = arith.constant 0 : index
    %32 = vector.load %arg9[%c0_19, %c0_20] : memref<256x256xf32, #tpu.memory_space<vmem>>, vector<256x256xf32>
    %cst_21 = arith.constant dense<0.000000e+00> : vector<16x256xf32>
    %33 = tpu.matmul %31, %32, %cst_21 {dimension_numbers = #tpu.dot_dimension_numbers<[1], [0], [0], [1], [0, 0, 1, 1], [], []>} : vector<16x256xf32>, vector<256x256xf32>, vector<16x256xf32> -> vector<16x256xf32>
    %c0_22 = arith.constant 0 : index
    %c0_23 = arith.constant 0 : index
    %34 = vector.load %arg10[%c0_22, %c0_23] : memref<1x256xf32, #tpu.memory_space<vmem>>, vector<1x256xf32>
    %35 = vector.broadcast %34 : vector<1x256xf32> to vector<16x256xf32>
    %36 = arith.addf %33, %35 : vector<16x256xf32>
    %37 = arith.addf %4, %36 : vector<16x256xf32>
    %c0_24 = arith.constant 0 : index
    %c0_25 = arith.constant 0 : index
    %38 = vector.load %arg11[%c0_24, %c0_25] : memref<1x256xf32, #tpu.memory_space<vmem>>, vector<1x256xf32>
    %c0_26 = arith.constant 0 : index
    %c0_27 = arith.constant 0 : index
    %39 = vector.load %arg12[%c0_26, %c0_27] : memref<1x256xf32, #tpu.memory_space<vmem>>, vector<1x256xf32>
    %cst_28 = arith.constant dense<0.000000e+00> : vector<16xf32>
    %40 = vector.multi_reduction <add>, %37, %cst_28 [1] : vector<16x256xf32> to vector<16xf32>
    %41 = vector.shape_cast %40 : vector<16xf32> to vector<16x1xf32>
    %cst_29 = arith.constant 2.560000e+02 : f32
    %42 = vector.broadcast %cst_29 : f32 to vector<16x1xf32>
    %43 = arith.divf %41, %42 : vector<16x1xf32>
    %44 = vector.broadcast %43 : vector<16x1xf32> to vector<16x256xf32>
    %45 = arith.subf %37, %44 : vector<16x256xf32>
    %46 = arith.mulf %45, %45 : vector<16x256xf32>
    %cst_30 = arith.constant dense<0.000000e+00> : vector<16xf32>
    %47 = vector.multi_reduction <add>, %46, %cst_30 [1] : vector<16x256xf32> to vector<16xf32>
    %48 = vector.shape_cast %47 : vector<16xf32> to vector<16x1xf32>
    %cst_31 = arith.constant 2.560000e+02 : f32
    %49 = vector.broadcast %cst_31 : f32 to vector<16x1xf32>
    %50 = arith.divf %48, %49 : vector<16x1xf32>
    %cst_32 = arith.constant 9.99999974E-6 : f32
    %51 = vector.broadcast %cst_32 : f32 to vector<16x1xf32>
    %52 = arith.addf %50, %51 : vector<16x1xf32>
    %53 = math.rsqrt %52 : vector<16x1xf32>
    %54 = vector.broadcast %43 : vector<16x1xf32> to vector<16x256xf32>
    %55 = arith.subf %37, %54 : vector<16x256xf32>
    %56 = vector.broadcast %53 : vector<16x1xf32> to vector<16x256xf32>
    %57 = arith.mulf %55, %56 : vector<16x256xf32>
    %58 = vector.broadcast %38 : vector<1x256xf32> to vector<16x256xf32>
    %59 = arith.mulf %57, %58 : vector<16x256xf32>
    %60 = vector.broadcast %39 : vector<1x256xf32> to vector<16x256xf32>
    %61 = arith.addf %59, %60 : vector<16x256xf32>
    %c0_33 = arith.constant 0 : index
    %c0_34 = arith.constant 0 : index
    %62 = vector.load %arg13[%c0_33, %c0_34] : memref<256x512xf32, #tpu.memory_space<vmem>>, vector<256x512xf32>
    %cst_35 = arith.constant dense<0.000000e+00> : vector<16x512xf32>
    %63 = tpu.matmul %61, %62, %cst_35 {dimension_numbers = #tpu.dot_dimension_numbers<[1], [0], [0], [1], [0, 0, 1, 1], [], []>} : vector<16x256xf32>, vector<256x512xf32>, vector<16x512xf32> -> vector<16x512xf32>
    %c0_36 = arith.constant 0 : index
    %c0_37 = arith.constant 0 : index
    %64 = vector.load %arg14[%c0_36, %c0_37] : memref<1x512xf32, #tpu.memory_space<vmem>>, vector<1x512xf32>
    %65 = vector.broadcast %64 : vector<1x512xf32> to vector<16x512xf32>
    %66 = arith.addf %63, %65 : vector<16x512xf32>
    %cst_38 = arith.constant 0.000000e+00 : f32
    %67 = vector.broadcast %cst_38 : f32 to vector<16x512xf32>
    %68 = arith.maximumf %66, %67 : vector<16x512xf32>
    %c0_39 = arith.constant 0 : index
    %c0_40 = arith.constant 0 : index
    %69 = vector.load %arg15[%c0_39, %c0_40] : memref<512x256xf32, #tpu.memory_space<vmem>>, vector<512x256xf32>
    %cst_41 = arith.constant dense<0.000000e+00> : vector<16x256xf32>
    %70 = tpu.matmul %68, %69, %cst_41 {dimension_numbers = #tpu.dot_dimension_numbers<[1], [0], [0], [1], [0, 0, 1, 1], [], []>} : vector<16x512xf32>, vector<512x256xf32>, vector<16x256xf32> -> vector<16x256xf32>
    %c0_42 = arith.constant 0 : index
    %c0_43 = arith.constant 0 : index
    %71 = vector.load %arg16[%c0_42, %c0_43] : memref<1x256xf32, #tpu.memory_space<vmem>>, vector<1x256xf32>
    %72 = vector.broadcast %71 : vector<1x256xf32> to vector<16x256xf32>
    %73 = arith.addf %70, %72 : vector<16x256xf32>
    %74 = arith.addf %61, %73 : vector<16x256xf32>
    %c0_44 = arith.constant 0 : index
    %c0_45 = arith.constant 0 : index
    %75 = vector.load %arg17[%c0_44, %c0_45] : memref<1x256xf32, #tpu.memory_space<vmem>>, vector<1x256xf32>
    %c0_46 = arith.constant 0 : index
    %c0_47 = arith.constant 0 : index
    %76 = vector.load %arg18[%c0_46, %c0_47] : memref<1x256xf32, #tpu.memory_space<vmem>>, vector<1x256xf32>
    %cst_48 = arith.constant dense<0.000000e+00> : vector<16xf32>
    %77 = vector.multi_reduction <add>, %74, %cst_48 [1] : vector<16x256xf32> to vector<16xf32>
    %78 = vector.shape_cast %77 : vector<16xf32> to vector<16x1xf32>
    %cst_49 = arith.constant 2.560000e+02 : f32
    %79 = vector.broadcast %cst_49 : f32 to vector<16x1xf32>
    %80 = arith.divf %78, %79 : vector<16x1xf32>
    %81 = vector.broadcast %80 : vector<16x1xf32> to vector<16x256xf32>
    %82 = arith.subf %74, %81 : vector<16x256xf32>
    %83 = arith.mulf %82, %82 : vector<16x256xf32>
    %cst_50 = arith.constant dense<0.000000e+00> : vector<16xf32>
    %84 = vector.multi_reduction <add>, %83, %cst_50 [1] : vector<16x256xf32> to vector<16xf32>
    %85 = vector.shape_cast %84 : vector<16xf32> to vector<16x1xf32>
    %cst_51 = arith.constant 2.560000e+02 : f32
    %86 = vector.broadcast %cst_51 : f32 to vector<16x1xf32>
    %87 = arith.divf %85, %86 : vector<16x1xf32>
    %cst_52 = arith.constant 9.99999974E-6 : f32
    %88 = vector.broadcast %cst_52 : f32 to vector<16x1xf32>
    %89 = arith.addf %87, %88 : vector<16x1xf32>
    %90 = math.rsqrt %89 : vector<16x1xf32>
    %91 = vector.broadcast %80 : vector<16x1xf32> to vector<16x256xf32>
    %92 = arith.subf %74, %91 : vector<16x256xf32>
    %93 = vector.broadcast %90 : vector<16x1xf32> to vector<16x256xf32>
    %94 = arith.mulf %92, %93 : vector<16x256xf32>
    %95 = vector.broadcast %75 : vector<1x256xf32> to vector<16x256xf32>
    %96 = arith.mulf %94, %95 : vector<16x256xf32>
    %97 = vector.broadcast %76 : vector<1x256xf32> to vector<16x256xf32>
    %98 = arith.addf %96, %97 : vector<16x256xf32>
    %c0_53 = arith.constant 0 : index
    %c0_54 = arith.constant 0 : index
    %c0_55 = arith.constant 0 : index
    %99 = vector.load %arg19[%c0_53, %c0_54, %c0_55] : memref<1x16x256xf32, #tpu.memory_space<vmem>>, vector<1x16x256xf32>
    %100 = vector.shape_cast %99 : vector<1x16x256xf32> to vector<16x256xf32>
    %101 = vector.shape_cast %98 : vector<16x256xf32> to vector<1x16x256xf32>
    tpu.vector_store %arg19[%c0_53, %c0_54, %c0_55], %101 {strides = array<i32>} : memref<1x16x256xf32, #tpu.memory_space<vmem>>, vector<1x16x256xf32>,
    return
  }
  func.func @transform_0(%arg0: i32, %arg1: i32) -> (i32, i32, i32) {
    %c0_i32 = arith.constant 0 : i32
    %c0_i32_0 = arith.constant 0 : i32
    return %arg0, %arg1, %c0_i32 : i32, i32, i32
  }
  func.func @transform_1(%arg0: i32, %arg1: i32) -> (i32, i32, i32) {
    %c0_i32 = arith.constant 0 : i32
    %c0_i32_0 = arith.constant 0 : i32
    %c0_i32_1 = arith.constant 0 : i32
    return %arg0, %c0_i32, %c0_i32_0 : i32, i32, i32
  }
  func.func @transform_2(%arg0: i32, %arg1: i32) -> (i32, i32) {
    %c0_i32 = arith.constant 0 : i32
    %c0_i32_0 = arith.constant 0 : i32
    return %arg1, %c0_i32 : i32, i32
  }
  func.func @transform_3(%arg0: i32, %arg1: i32) -> (i32, i32) {
    %c0_i32 = arith.constant 0 : i32
    %c0_i32_0 = arith.constant 0 : i32
    %c0_i32_1 = arith.constant 0 : i32
    return %c0_i32, %c0_i32_0 : i32, i32
  }
  func.func @transform_4(%arg0: i32, %arg1: i32) -> (i32, i32) {
    %c0_i32 = arith.constant 0 : i32
    %c0_i32_0 = arith.constant 0 : i32
    %c0_i32_1 = arith.constant 0 : i32
    return %c0_i32, %c0_i32_0 : i32, i32
  }
  func.func @transform_5(%arg0: i32, %arg1: i32) -> (i32, i32) {
    %c0_i32 = arith.constant 0 : i32
    %c0_i32_0 = arith.constant 0 : i32
    %c0_i32_1 = arith.constant 0 : i32
    return %c0_i32, %c0_i32_0 : i32, i32
  }
  func.func @transform_6(%arg0: i32, %arg1: i32) -> (i32, i32) {
    %c0_i32 = arith.constant 0 : i32
    %c0_i32_0 = arith.constant 0 : i32
    %c0_i32_1 = arith.constant 0 : i32
    return %c0_i32, %c0_i32_0 : i32, i32
  }
  func.func @transform_7(%arg0: i32, %arg1: i32) -> (i32, i32) {
    %c0_i32 = arith.constant 0 : i32
    %c0_i32_0 = arith.constant 0 : i32
    %c0_i32_1 = arith.constant 0 : i32
    return %c0_i32, %c0_i32_0 : i32, i32
  }
  func.func @transform_8(%arg0: i32, %arg1: i32) -> (i32, i32) {
    %c0_i32 = arith.constant 0 : i32
    %c0_i32_0 = arith.constant 0 : i32
    %c0_i32_1 = arith.constant 0 : i32
    return %c0_i32, %c0_i32_0 : i32, i32
  }
  func.func @transform_9(%arg0: i32, %arg1: i32) -> (i32, i32) {
    %c0_i32 = arith.constant 0 : i32
    %c0_i32_0 = arith.constant 0 : i32
    %c0_i32_1 = arith.constant 0 : i32
    return %c0_i32, %c0_i32_0 : i32, i32
  }
  func.func @transform_10(%arg0: i32, %arg1: i32) -> (i32, i32) {
    %c0_i32 = arith.constant 0 : i32
    %c0_i32_0 = arith.constant 0 : i32
    %c0_i32_1 = arith.constant 0 : i32
    return %c0_i32, %c0_i32_0 : i32, i32
  }
  func.func @transform_11(%arg0: i32, %arg1: i32) -> (i32, i32) {
    %c0_i32 = arith.constant 0 : i32
    %c0_i32_0 = arith.constant 0 : i32
    %c0_i32_1 = arith.constant 0 : i32
    return %c0_i32, %c0_i32_0 : i32, i32
  }
  func.func @transform_12(%arg0: i32, %arg1: i32) -> (i32, i32) {
    %c0_i32 = arith.constant 0 : i32
    %c0_i32_0 = arith.constant 0 : i32
    %c0_i32_1 = arith.constant 0 : i32
    return %c0_i32, %c0_i32_0 : i32, i32
  }
  func.func @transform_13(%arg0: i32, %arg1: i32) -> (i32, i32) {
    %c0_i32 = arith.constant 0 : i32
    %c0_i32_0 = arith.constant 0 : i32
    %c0_i32_1 = arith.constant 0 : i32
    return %c0_i32, %c0_i32_0 : i32, i32
  }
  func.func @transform_14(%arg0: i32, %arg1: i32) -> (i32, i32) {
    %c0_i32 = arith.constant 0 : i32
    %c0_i32_0 = arith.constant 0 : i32
    %c0_i32_1 = arith.constant 0 : i32
    return %c0_i32, %c0_i32_0 : i32, i32
  }
  func.func @transform_15(%arg0: i32, %arg1: i32) -> (i32, i32) {
    %c0_i32 = arith.constant 0 : i32
    %c0_i32_0 = arith.constant 0 : i32
    %c0_i32_1 = arith.constant 0 : i32
    return %c0_i32, %c0_i32_0 : i32, i32
  }
  func.func @transform_16(%arg0: i32, %arg1: i32) -> (i32, i32) {
    %c0_i32 = arith.constant 0 : i32
    %c0_i32_0 = arith.constant 0 : i32
    %c0_i32_1 = arith.constant 0 : i32
    return %c0_i32, %c0_i32_0 : i32, i32
  }
  func.func @transform_17(%arg0: i32, %arg1: i32) -> (i32, i32, i32) {
    %c0_i32 = arith.constant 0 : i32
    %c0_i32_0 = arith.constant 0 : i32
    return %arg0, %arg1, %c0_i32 : i32, i32, i32
  }
}

</mosaic_0001>

<bundles_post_ra>
// kernel: tpu_custom_call.1
= control target key start
LH: loop header
LB: loop body
LE: loop exit
PB: predicated region body
PF: predicated region fallthrough
CT: control target
= control target key end

     0   :  { %s6531_s0 = inlined_call_operand.hbm [shape: f32[2,32,256], index: 0, kind: input, shape index: {}]   ;;  %s6532_s1 = inlined_call_operand.hbm [shape: f32[2,32,256], index: 1, kind: input, shape index: {}]   ;;  %s6533_s2 = inlined_call_operand.hbm [shape: f32[32,32], index: 2, kind: input, shape index: {}]   ;;  %s6534_s3 = inlined_call_operand.hbm [shape: f32[256,256], index: 3, kind: input, shape index: {}]   ;;  %s6535_s4 = inlined_call_operand.vmem [shape: f32[1,256], index: 4, kind: input, shape index: {}]   ;;  %s6536_s5 = inlined_call_operand.hbm [shape: f32[256,512], index: 5, kind: input, shape index: {}]   ;;  %s6537_s6 = inlined_call_operand.vmem [shape: f32[1,512], index: 6, kind: input, shape index: {}]   ;;  %s6538_s7 = inlined_call_operand.hbm [shape: f32[256,256], index: 7, kind: input, shape index: {}]   ;;  %s6539_s8 = inlined_call_operand.vmem [shape: f32[1,256], index: 8, kind: input, shape index: {}]   ;;  %s6540_s9 = inlined_call_operand.vmem [shape: f32[1,256], index: 9, kind: input, shape index: {}]   ;;  %s6541_s10 = inlined_call_operand.vmem [shape: f32[1,256], index: 10, kind: input, shape index: {}]   ;;  %s6542_s11 = inlined_call_operand.hbm [shape: f32[256,512], index: 11, kind: input, shape index: {}]   ;;  %s6543_s12 = inlined_call_operand.vmem [shape: f32[1,512], index: 12, kind: input, shape index: {}]   ;;  %s6544_s13 = inlined_call_operand.hbm [shape: f32[512,256], index: 13, kind: input, shape index: {}]   ;;  %s6545_s14 = inlined_call_operand.vmem [shape: f32[1,256], index: 14, kind: input, shape index: {}]   ;;  %s6546_s15 = inlined_call_operand.vmem [shape: f32[1,256], index: 15, kind: input, shape index: {}]   ;;  %s6547_s16 = inlined_call_operand.vmem [shape: f32[1,256], index: 16, kind: input, shape index: {}]   ;;  %s6548_s17 = inlined_call_operand.hbm [shape: f32[2,32,256], index: 17, kind: output, shape index: {}]  }
   0x1   :  { %6575 = sst [smem:[#allocation36_spill]] %s6531_s0 }
   0x2   :  { %6576 = sst [smem:[#allocation37_spill]] %s6532_s1 }
   0x3   :  { %6577 = sst [smem:[#allocation38_spill]] %s6533_s2 }
   0x4   :  { %6578 = sst [smem:[#allocation39_spill]] %s6534_s3 }
   0x5   :  { %6579 = sst [smem:[#allocation40_spill]] %s6535_s4 }
   0x6   :  { %6580 = sst [smem:[#allocation41_spill]] %s6536_s5 }
   0x7   :  { %6581 = sst [smem:[#allocation42_spill]] %s6537_s6 }
   0x8   :  { %6582 = sst [smem:[#allocation43_spill]] %s6538_s7 }
   0x9   :  { %6583 = sst [smem:[#allocation44_spill]] %s6539_s8 }
   0xa   :  { %6584 = sst [smem:[#allocation45_spill]] %s6540_s9 }
   0xb   :  { %6585 = sst [smem:[#allocation46_spill]] %s6541_s10 }
   0xc   :  { %6586 = sst [smem:[#allocation47_spill]] %s6542_s11 }
   0xd   :  { %6587 = sst [smem:[#allocation48_spill]] %s6543_s12 }
   0xe   :  { %6588 = sst [smem:[#allocation49_spill]] %s6544_s13 }
   0xf   :  { %6589 = sst [smem:[#allocation50_spill]] %s6545_s14 }
  0x10   :  { %6590 = sst [smem:[#allocation51_spill]] %s6546_s15 }
  0x11   :  { %6591 = sst [smem:[#allocation52_spill]] %s6547_s16 }
  0x12   :  { %6592 = sst [smem:[#allocation53_spill]] %s6548_s17 }
  0x13   :  { %22 = vsyncpa [#allocation5], 0 }
  0x14   :  { %24 = vsyncpa [#allocation5 + $0x1], 0 }
  0x15   :  { %25 = vsyncpa [#allocation8], 0 }
  0x16   :  { %27 = vsyncpa [#allocation8 + $0x1], 0 }
  0x17   :  { %28 = vsyncpa [#allocation11], 0 }
  0x18   :  { %29 = vsyncpa [#allocation14], 0 }
  0x19   :  { %30 = vsyncpa [#allocation17], 0 }
  0x1a   :  { %31 = vsyncpa [#allocation6], 0 }
  0x1b   :  { %33 = vsyncpa [#allocation6 + $0x1], 0  ;;  %s5543_s24 = smov 0   ;;  %s5545_s25 = smov 0  }
  0x1c   :  { %s5547_s26 = smov 0   ;;  %s5549_s27 = smov 0  }
  0x1d   :  { %s5551_s28 = smov 0   ;;  %s5553_s29 = smov 0  }
  0x1e   :  { %s5555_s0 = smov 0   ;;  %s5557_s30 = smov 0  }
  0x1f   :  { %s5559_s18 = smov 0   ;;  %s5561_s19 = smov 0  }
  0x20   :  { %s5563_s1 = smov 0   ;;  %s5565_s20 = smov 0  }
  0x21   :  { %s5567_s21 = smov 0   ;;  %s5569_s22 = smov 0  }
  0x22 LB: > { %6593 = sst [smem:[#allocation26_spill]] %s5376_s24  ;;  %s5614_s23 = sadd.s32 4294967295, %s5428_s22   ;;  %s5428_s22 = sphi %s5569_s22, %s39_s22   ;;  %s5424_s21 = sphi %s5567_s21, %s6683_s21   ;;  %s5420_s20 = sphi %s5565_s20, %s6682_s20   ;;  %s5416_s1 = sphi %s5563_s1, %s6681_s1   ;;  %s5412_s19 = sphi %s5561_s19, %s6680_s19   ;;  %s5408_s18 = sphi %s5559_s18, %s6679_s18   ;;  %s5404_s30 = sphi %s5557_s30, %s6678_s30   ;;  %s5400_s0 = sphi %s5555_s0, %s6677_s0   ;;  %s5396_s29 = sphi %s5553_s29, %s6676_s29   ;;  %s5392_s28 = sphi %s5551_s28, %s6675_s28   ;;  %s5388_s27 = sphi %s5549_s27, %s6669_s27   ;;  %s5384_s26 = sphi %s5547_s26, %s6674_s26   ;;  %s5380_s25 = sphi %s5545_s25, %s6673_s25   ;;  %s5376_s24 = sphi %s5543_s24, %s6668_s24  }
  0x23   : > { %6594 = sst [smem:[#allocation27_spill]] %s5380_s25  ;;  %p4119_p0 = scmp.ge.s32.totalorder %s5428_s22, 1 }
  0x24   : > { %6595 = sst [smem:[#allocation28_spill]] %s5392_s28  ;;  %p6552_p1 = scmp.eq.s32.totalorder %s5614_s23, 0 }
  0x25   : > { %6596 = sst [smem:[#allocation29_spill]] %s5412_s19  ;;  %p458_p2 = scmp.lt.s32.totalorder %s5428_s22, 5 }
  0x26   : > { %6597 = sst [smem:[#allocation30_spill]] %s5416_s1  ;;  %s5430_s16 = smov [#allocation10]  }
  0x27   : > { %p5619_p3 = pnand %p4119_p0, %p458_p2  ;;  %s470_s15 = sshll.u32 %s5430_s16, 4  ;;  %s471_s15 = int_to_ptr.vmem [resolvable:$true] %s470_s15 }
  0x28   : > { %s5431_s14 = smov [#allocation13]   ;;  %s6601_s3 = sld [smem:[#allocation39_spill]] }
  0x29   : > { %s6598_s17 = scalar_select %p5619_p3, 1, 0 }
  0x2a   : > { %p4835_p4 = pneg %p5619_p3  ;;  %s502_s12 = sshll.u32 %s5431_s14, 4  ;;  %s5631_s12 = int_to_ptr.vmem [resolvable:$true] %s502_s12 }
  0x2b   : > { %6599 = sst [smem:[#allocation31_spill]] %s6598_s17 }
  0x2c   : > { %p5627_p5 = pnand %p4835_p4, %p6552_p1 }
  0x2e   : > { %s6600_s1 = scalar_select %p5627_p5, 1, 0 }
  0x2f   : > { %s5032_s8 = scalar_lea.hbm %s6601_s3, 8192  ;;  %p5641_p7 = pneg %p5627_p5 }
  0x30   : > { %p5033_p6 = scmp.ne.s32.totalorder %s6601_s3, %s5032_s8  ;;  %p5039_p10 = scmp.lt.u32.totalorder %s5032_s8, %s6601_s3 }
  0x32   : > { %p5035_p8 = pnand %p5641_p7, %p5033_p6 }
  0x34   : > { %p5036_p9 = pneg %p5035_p8 }
  0x36   : > { %p5041_p11 = pnand %p5039_p10, %p5036_p9 }
  0x38   : > { %5044 = shalt.err (!%p5041_p11)
}
  0x39   : > { %s5045_s9 = scalar_lea.vmem %s471_s15, 8192  ;;  %p5053_p2 = scmp.lt.s32.totalorder %s471_s15, %s471_s15 }
  0x3a   : > { %p5046_p12 = scmp.ne.s32.totalorder %s471_s15, %s5045_s9  ;;  %p5054_p4 = scmp.lt.s32.totalorder %s5045_s9, %s5045_s9 }
  0x3c   : > { %p5048_p13 = pnand %p5046_p12, %p5641_p7  ;;  %p5055_p1 = por %p5054_p4, %p5053_p2 }
  0x3e   : > { %p5049_p0 = pneg %p5048_p13 }
  0x40   : > { %p5056_p3 = pnand %p5055_p1, %p5049_p0 }
  0x42   : > { %5059 = shalt.err (!%p5056_p3)
}
  0x43   : > { %s6557_s4 = smov 256   ;;  %s6559_s6 = smov 16  }
  0x44   : > { %4838 = dma.hbm_to_vmem [thread:$0]  (!%p5627_p5), %s6601_s3, 8192, %s471_s15, [#allocation11], %s6557_s4, %s6557_s4, %s6559_s6  }
  0x45   : > { %s6603_s7 = sld [smem:[#allocation43_spill]] }
  0x4b   : > { %s5060_s17 = scalar_lea.hbm %s6603_s7, 8192 }
  0x4c   : > { %p5061_p1 = scmp.ne.s32.totalorder %s6603_s7, %s5060_s17  ;;  %p5067_p8 = scmp.lt.u32.totalorder %s5060_s17, %s6603_s7 }
  0x4e   : > { %p5063_p3 = pnand %p5061_p1, %p5641_p7 }
  0x50   : > { %p5064_p6 = pneg %p5063_p3 }
  0x52   : > { %p5069_p9 = pnand %p5067_p8, %p5064_p6 }
  0x54   : > { %5072 = shalt.err (!%p5069_p9)
}
  0x55   : > { %s5073_s15 = scalar_lea.vmem %s5631_s12, 8192  ;;  %p5081_p13 = scmp.lt.s32.totalorder %s5631_s12, %s5631_s12 }
  0x56   : > { %p5074_p10 = scmp.ne.s32.totalorder %s5631_s12, %s5073_s15  ;;  %p5082_p0 = scmp.lt.s32.totalorder %s5073_s15, %s5073_s15 }
  0x58   : > { %p5076_p11 = pnand %p5074_p10, %p5641_p7  ;;  %p5083_p2 = por %p5082_p0, %p5081_p13 }
  0x5a   : > { %p5077_p12 = pneg %p5076_p11 }
  0x5c   : > { %p5084_p4 = pnand %p5083_p2, %p5077_p12 }
  0x5e   : > { %5087 = shalt.err (!%p5084_p4)
}
  0x5f   : > { %4844 = dma.hbm_to_vmem [thread:$0]  (!%p5627_p5), %s6603_s7, 8192, %s5631_s12, [#allocation14], %s6557_s4, %s6557_s4, %s6559_s6  }
  0x60   : > { %p6562_p1 = scmp.eq.s32.totalorder %s5428_s22, 0  ;;  %p93_p3 = scmp.ne.s32.totalorder %s5396_s29, %s5392_s28 }
  0x61   : > { %p99_p6 = scmp.ne.s32.totalorder %s5392_s28, %s5388_s27  ;;  %p6561_p8 = scmp.lt.s32.totalorder %s5428_s22, 4 }
  0x62   : > { %p95_p9 = por %p93_p3, %p6562_p1  ;;  %s587_s8 = sand.u32 1, %s5428_s22  }
  0x63   : > { %p6604_p10 = scmp.eq.s32.totalorder %s5614_s23, 0  ;;  %s589_s19 = sand.u32 1, %s5396_s29  }
  0x64   : > { %s4184_s14 = sshll.u32 %s5424_s21, 10  ;;  %s4131_s9 = sshll.u32 %s589_s19, 6 }
  0x65   : > { %p5699_p11 = por %p99_p6, %p6604_p10  ;;  %s6607_s12 = sld [smem:[#allocation37_spill]] }
  0x66   : > { %p5712_p12 = pnand %p6561_p8, %p95_p9  ;;  %s591_s25 = scalar_lea.vmem [#allocation7], %s4131_s9 }
  0x67   : > { %s6605_s10 = scalar_select %p5699_p11, 1, 0 }
  0x68   : > { %s598_s24 = sshll.u32 %s591_s25, 4  ;;  %s5718_s19 = scalar_lea.sflag [#allocation8], %s587_s8  ;;  %s5716_s24 = int_to_ptr.vmem [resolvable:$true] %s598_s24 }
  0x69   : > { %6606 = sst [smem:[#allocation32_spill]] %s6605_s10  ;;  %p5090_p0 = pneg %p5712_p12 }
  0x6b   : > { %s5708_s17 = scalar_lea.hbm %s6607_s12, %s4184_s14  ;;  %s5093_s4 = scalar_lea.hbm %s6607_s12, 2048 }
  0x6c   : > { %s5088_s15 = scalar_lea.hbm %s5708_s17, 1024  ;;  %p5094_p3 = scmp.lt.u32.totalorder %s5708_s17, %s6607_s12 }
  0x6d   : > { %p5089_p13 = scmp.ne.s32.totalorder %s5708_s17, %s5088_s15  ;;  %p5095_p6 = scmp.lt.u32.totalorder %s5093_s4, %s5088_s15 }
  0x6e   : > { %p5097_p10 = scmp.lt.u32.totalorder %s5088_s15, %s5708_s17 }
  0x6f   : > { %p5091_p2 = pnand %p5090_p0, %p5089_p13  ;;  %p5096_p9 = por %p5095_p6, %p5094_p3 }
  0x71   : > { %p5092_p4 = pneg %p5091_p2  ;;  %p5098_p8 = por %p5097_p10, %p5096_p9 }
  0x73   : > { %p5099_p1 = pnand %p5098_p8, %p5092_p4 }
  0x75   : > { %5102 = shalt.err (!%p5099_p1)
}
  0x76   : > { %s5103_s25 = scalar_lea.vmem %s5716_s24, 1024  ;;  %s5434_s8 = smov [#allocation7]  }
  0x77   : > { %p5104_p13 = scmp.ne.s32.totalorder %s5716_s24, %s5103_s25  ;;  %s5108_s9 = sshll.u32 %s5434_s8, 4  ;;  %s5109_s9 = int_to_ptr.vmem [resolvable:$false] %s5108_s9 }
  0x78   : > { %s5110_s3 = scalar_lea.vmem %s5109_s9, 2048  ;;  %p5111_p5 = scmp.lt.s32.totalorder %s5716_s24, %s5109_s9 }
  0x79   : > { %p5106_p2 = pnand %p5104_p13, %p5090_p0  ;;  %p5112_p3 = scmp.lt.s32.totalorder %s5110_s3, %s5103_s25 }
  0x7b   : > { %p5107_p11 = pneg %p5106_p2  ;;  %p5113_p6 = por %p5112_p3, %p5111_p5 }
  0x7d   : > { %p5114_p9 = pnand %p5113_p6, %p5107_p11 }
  0x7f   : > { %5117 = shalt.err (!%p5114_p9)
}
  0x80   : > { %s6609_s4 = smov 16   ;;  %s6610_s6 = smov 256  }
  0x81   : > { %4857 = dma.hbm_to_vmem [thread:$0]  (!%p5712_p12), %s5708_s17, 1024, %s5716_s24, %s5718_s19, %s6610_s6, %s6610_s6, %s6609_s4  }
  0x82   : > { %s5435_s15 = smov [#allocation12]   ;;  %s6611_s5 = sld [smem:[#allocation41_spill]] }
  0x83   : > { %s486_s14 = sshll.u32 %s5435_s15, 4  ;;  %s487_s14 = int_to_ptr.vmem [resolvable:$true] %s486_s14 }
  0x88   : > { %s5118_s25 = scalar_lea.hbm %s6611_s5, 16384 }
  0x89   : > { %p5119_p5 = scmp.ne.s32.totalorder %s6611_s5, %s5118_s25  ;;  %p5125_p11 = scmp.lt.u32.totalorder %s5118_s25, %s6611_s5 }
  0x8b   : > { %p5121_p1 = pnand %p5119_p5, %p5641_p7 }
  0x8d   : > { %p5122_p8 = pneg %p5121_p1 }
  0x8f   : > { %p5127_p0 = pnand %p5125_p11, %p5122_p8 }
  0x91   : > { %5130 = shalt.err (!%p5127_p0)
}
  0x92   : > { %s5131_s24 = scalar_lea.vmem %s487_s14, 16384  ;;  %p5139_p13 = scmp.lt.s32.totalorder %s487_s14, %s487_s14 }
  0x93   : > { %p5132_p12 = scmp.ne.s32.totalorder %s487_s14, %s5131_s24  ;;  %p5140_p2 = scmp.lt.s32.totalorder %s5131_s24, %s5131_s24 }
  0x95   : > { %p5134_p4 = pnand %p5132_p12, %p5641_p7  ;;  %p5141_p3 = por %p5140_p2, %p5139_p13 }
  0x97   : > { %p5135_p10 = pneg %p5134_p4 }
  0x99   : > { %p5142_p6 = pnand %p5141_p3, %p5135_p10 }
  0x9b   : > { %5145 = shalt.err (!%p5142_p6)
}
  0x9c   : > { %s5436_s17 = smov 512   ;;  %s5437_s15 = smov 32  }
  0x9d   : > { %p6612_p9 = scmp.ne.s32.totalorder %s6600_s1, 0  ;;  %s5438_s8 = smov [#allocation15]  }
  0x9e   : > { %s524_s25 = sshll.u32 %s5438_s8, 4  ;;  %s5439_s9 = smov [#allocation16]   ;;  %s525_s25 = int_to_ptr.vmem [resolvable:$true] %s524_s25 }
  0x9f   : > { %4841 = dma.hbm_to_vmem [thread:$0]  (!%p6612_p9), %s6611_s5, 16384, %s487_s14, [#allocation11], %s5436_s17, %s5436_s17, %s5437_s15  }
  0xa0   : > { %s540_s3 = sshll.u32 %s5439_s9, 4  ;;  %s6613_s11 = sld [smem:[#allocation47_spill]]  ;;  %s5767_s3 = int_to_ptr.vmem [resolvable:$true] %s540_s3 }
  0xa6   : > { %s5146_s12 = scalar_lea.hbm %s6613_s11, 16384 }
  0xa7   : > { %p5147_p5 = scmp.ne.s32.totalorder %s6613_s11, %s5146_s12  ;;  %p5153_p11 = scmp.lt.u32.totalorder %s5146_s12, %s6613_s11 }
  0xa9   : > { %p5149_p1 = pnand %p5147_p5, %p5641_p7 }
  0xab   : > { %p5150_p8 = pneg %p5149_p1 }
  0xad   : > { %p5155_p0 = pnand %p5153_p11, %p5150_p8 }
  0xaf   : > { %5158 = shalt.err (!%p5155_p0)
}
  0xb0   : > { %s5159_s2 = scalar_lea.vmem %s525_s25, 16384  ;;  %p5167_p13 = scmp.lt.s32.totalorder %s525_s25, %s525_s25 }
  0xb1   : > { %p5160_p12 = scmp.ne.s32.totalorder %s525_s25, %s5159_s2  ;;  %p5168_p2 = scmp.lt.s32.totalorder %s5159_s2, %s5159_s2 }
  0xb3   : > { %p5162_p4 = pnand %p5160_p12, %p5641_p7  ;;  %p5169_p3 = por %p5168_p2, %p5167_p13 }
  0xb5   : > { %p5163_p10 = pneg %p5162_p4 }
  0xb7   : > { %p5170_p6 = pnand %p5169_p3, %p5163_p10 }
  0xb9   : > { %5173 = shalt.err (!%p5170_p6)
}
  0xba   : > { %4847 = dma.hbm_to_vmem [thread:$0]  (!%p6612_p9), %s6613_s11, 16384, %s525_s25, [#allocation14], %s5436_s17, %s5436_s17, %s5437_s15  }
  0xbb   : > { %s6614_s13 = sld [smem:[#allocation49_spill]] }
  0xc1   : > { %s5174_s9 = scalar_lea.hbm %s6614_s13, 16384 }
  0xc2   : > { %p5175_p5 = scmp.ne.s32.totalorder %s6614_s13, %s5174_s9  ;;  %p5181_p11 = scmp.lt.u32.totalorder %s5174_s9, %s6614_s13 }
  0xc4   : > { %p5177_p1 = pnand %p5175_p5, %p5641_p7 }
  0xc6   : > { %p5178_p8 = pneg %p5177_p1 }
  0xc8   : > { %p5183_p0 = pnand %p5181_p11, %p5178_p8 }
  0xca   : > { %5186 = shalt.err (!%p5183_p0)
}
  0xcb   : > { %s5187_s17 = scalar_lea.vmem %s5767_s3, 16384  ;;  %p5195_p13 = scmp.lt.s32.totalorder %s5767_s3, %s5767_s3 }
  0xcc   : > { %p5188_p12 = scmp.ne.s32.totalorder %s5767_s3, %s5187_s17  ;;  %p5196_p2 = scmp.lt.s32.totalorder %s5187_s17, %s5187_s17 }
  0xce   : > { %p5190_p4 = pnand %p5188_p12, %p5641_p7  ;;  %p5197_p3 = por %p5196_p2, %p5195_p13 }
  0xd0   : > { %p5191_p10 = pneg %p5190_p4 }
  0xd2   : > { %p5198_p6 = pnand %p5197_p3, %p5191_p10 }
  0xd4   : > { %5201 = shalt.err (!%p5198_p6)
}
  0xd5   : > { %4850 = dma.hbm_to_vmem [thread:$0]  (!%p6612_p9), %s6614_s13, 16384, %s5767_s3, [#allocation17], %s6610_s6, %s6610_s6, %s6609_s4  }
  0xd6   : > { %s4118_s1 = sadd.s32 4294967294, %s5428_s22   ;;  %s48_s16 = sadd.s32 1, %s5420_s20 }
  0xd7   : > { %p49_p7 = scmp.ge.s32.totalorder %s48_s16, 2  ;;  %s60_s2 = sadd.s32 1, %s5408_s18 }
  0xd8   : > { %p67_p5 = scmp.ne.s32.totalorder %s5408_s18, %s5404_s30  ;;  %p73_p1 = scmp.ne.s32.totalorder %s5404_s30, %s5400_s0 }
  0xd9   : > { %s6685_s16 = smov (%p49_p7, %s48_s16), 0  ;;  %s6616_s28 = sadd.s32 1, %s5424_s21 }
  0xda   : > { %6615 = sst [smem:[#allocation33_spill]] %s6685_s16  ;;  %s6687_s28 = smov (!%p49_p7, %s6616_s28), %s5424_s21 }
  0xdb   : > { %s5827_s10 = ssub.s32 %s5420_s20, %s6685_s16  ;;  %p6617_p9 = scmp.eq.s32.totalorder %s5428_s22, 0 }
  0xdc   : > { %p53_p11 = scmp.ge.s32.totalorder %s6687_s28, 2  ;;  %p6619_p0 = scmp.eq.s32.totalorder %s5614_s23, 0 }
  0xdd   : > { %p5831_p8 = por %p6617_p9, %p67_p5  ;;  %p445_p10 = scmp.eq.s32.totalorder %s5614_s23, 3 }
  0xde   : > { %p5840_p12 = por %p6619_p0, %p73_p1  ;;  %s6689_s28 = smov (%p53_p11, %s6687_s28), 0 }
  0xdf   : > { %6621 = sst [smem:[#allocation34_spill]] %s6689_s28  ;;  %p5848_p13 = por %p445_p10, %p67_p5 }
  0xe0   : > { %p451_p2 = scmp.eq.s32.totalorder %s4118_s1, 3  ;;  %s55_s9 = ssub.s32 %s5424_s21, %s6689_s28 }
  0xe1   : > { %s6622_s8 = scalar_select %p5848_p13, 1, 0 }
  0xe2   : > { %s563_s27 = sand.u32 1, %s5408_s18   ;;  %s57_s24 = sor.u32 %s5827_s10, %s55_s9 }
  0xe3   : > { %p84_p3 = scmp.eq.s32.totalorder %s55_s9, 0  ;;  %p58_p6 = scmp.eq.s32.totalorder %s57_s24, 0 }
  0xe4   : > { %p5859_p7 = por %p451_p2, %p73_p1  ;;  %s6624_s14 = sadd.s32 1, %s5396_s29 }
  0xe5   : > { %s5866_s17 = scalar_select %p84_p3, %s5396_s29, %s6624_s14  }
  0xe6   : > { %s6623_s7 = scalar_select %p5859_p7, 1, 0 }
  0xe7   : > { %6625 = sst [smem:[#allocation35_spill]] %s5866_s17  ;;  %s4126_s25 = sshll.u32 %s563_s27, 5 }
  0xe8   : > { %s5869_s15 = scalar_select %p58_p6, %s5408_s18, %s60_s2  }
  0xe9   : > { %s4183_s5 = sshll.u32 %s5420_s20, 2  ;;  %s4129_s1 = sshll.u32 %s5424_s21, 3 }
  0xea   : > { %s567_s11 = scalar_lea.vmem [#allocation4], %s4126_s25  ;;  %s574_s28 = sadd.s32 %s4183_s5, %s4129_s1 }
  0xeb   : > { %s577_s13 = sshll.u32 %s567_s11, 4  ;;  %s4130_s9 = sshll.u32 %s574_s28, 7  ;;  %s5873_s13 = int_to_ptr.vmem [resolvable:$true] %s577_s13 }
  0xec   : > { %p6626_p5 = scmp.lt.s32.totalorder %s5428_s22, 4  ;;  %s6628_s17 = sld [smem:[#allocation36_spill]] }
  0xed   : > { %s5888_s5 = scalar_lea.sflag [#allocation5], %s563_s27 }
  0xee   : > { %p5879_p1 = pnand %p6626_p5, %p5831_p8 }
  0xf0   : > { %p5204_p8 = pneg %p5879_p1 }
  0xf2   : > { %s5886_s2 = scalar_lea.hbm %s6628_s17, %s4130_s9  ;;  %s5207_s3 = scalar_lea.hbm %s6628_s17, 2048 }
  0xf3   : > { %s5202_s11 = scalar_lea.hbm %s5886_s2, 512  ;;  %p5208_p10 = scmp.lt.u32.totalorder %s5886_s2, %s6628_s17 }
  0xf4   : > { %p5203_p9 = scmp.ne.s32.totalorder %s5886_s2, %s5202_s11  ;;  %p5209_p2 = scmp.lt.u32.totalorder %s5207_s3, %s5202_s11 }
  0xf5   : > { %p5211_p6 = scmp.lt.u32.totalorder %s5202_s11, %s5886_s2 }
  0xf6   : > { %p5205_p11 = pnand %p5204_p8, %p5203_p9  ;;  %p5210_p3 = por %p5209_p2, %p5208_p10 }
  0xf8   : > { %p5206_p0 = pneg %p5205_p11  ;;  %p5212_p5 = por %p5211_p6, %p5210_p3 }
  0xfa   : > { %p5213_p4 = pnand %p5212_p5, %p5206_p0 }
  0xfc   : > { %5216 = shalt.err (!%p5213_p4)
}
  0xfd   : > { %s5217_s27 = scalar_lea.vmem %s5873_s13, 512  ;;  %s5440_s9 = smov [#allocation4]  }
  0xfe   : > { %p5218_p9 = scmp.ne.s32.totalorder %s5873_s13, %s5217_s27  ;;  %s5222_s14 = sshll.u32 %s5440_s9, 4  ;;  %s5223_s14 = int_to_ptr.vmem [resolvable:$false] %s5222_s14 }
  0xff   : > { %s5224_s28 = scalar_lea.vmem %s5223_s14, 1024  ;;  %p5225_p13 = scmp.lt.s32.totalorder %s5873_s13, %s5223_s14 }
 0x100   : > { %p5220_p11 = pnand %p5218_p9, %p5204_p8  ;;  %p5226_p10 = scmp.lt.s32.totalorder %s5224_s28, %s5217_s27 }
 0x102   : > { %p5221_p7 = pneg %p5220_p11  ;;  %p5227_p2 = por %p5226_p10, %p5225_p13 }
 0x104   : > { %p5228_p3 = pnand %p5227_p2, %p5221_p7 }
 0x106   : > { %5231 = shalt.err (!%p5228_p3)
}
 0x107   : > { %s6629_s11 = sld [smem:[#allocation27_spill]]  ;;  %s6630_s16 = sld [smem:[#allocation26_spill]] }
 0x108   : > { %4854 = dma.hbm_to_vmem [thread:$0]  (!%p5879_p1), %s5886_s2, 512, %s5873_s13, %s5888_s5, %s6610_s6, %s6610_s6, %s6609_s4  }
 0x109   : > { %s112_s24 = sadd.s32 1, %s5384_s26  ;;  %p6631_p13 = scmp.eq.s32.totalorder %s5827_s10, 0 }
 0x10a   : > { %p6632_p7 = scmp.eq.s32.totalorder %s5428_s22, 0  ;;  %s610_s25 = sand.u32 1, %s5384_s26  }
 0x10b   : > { %s5925_s3 = scalar_select %p6631_p13, %s5384_s26, %s112_s24  }
 0x10c   : > { %s4185_s1 = sshll.u32 %s5420_s20, 8  ;;  %p6633_p6 = scmp.eq.s32.totalorder %s5614_s23, 0 }
 0x10d   : > { %p119_p4 = scmp.ne.s32.totalorder %s5384_s26, %s6629_s11  ;;  %p125_p0 = scmp.ne.s32.totalorder %s6629_s11, %s6630_s16 }
 0x10e   : > { %s4134_s9 = sshll.u32 %s610_s25, 4  ;;  %s6635_s17 = sld [smem:[#allocation38_spill]] }
 0x10f   : > { %p121_p8 = por %p119_p4, %p6632_p7  ;;  %p5935_p5 = por %p125_p0, %p6633_p6 }
 0x110   : > { %s612_s4 = scalar_lea.vmem [#allocation9], %s4134_s9  ;;  %p6636_p1 = scmp.lt.s32.totalorder %s5428_s22, 4 }
 0x111   : > { %s6634_s27 = scalar_select %p5935_p5, 1, 0 }
 0x112   : > { %s619_s6 = sshll.u32 %s612_s4, 4  ;;  %p5946_p9 = pnand %p6636_p1, %p121_p8  ;;  %s5950_s6 = int_to_ptr.vmem [resolvable:$true] %s619_s6 }
 0x114   : > { %s5942_s13 = scalar_lea.hbm %s6635_s17, %s4185_s1  ;;  %p5234_p10 = pneg %p5946_p9 }
 0x115   : > { %s5232_s2 = scalar_lea.hbm %s5942_s13, 256  ;;  %s5237_s16 = scalar_lea.hbm %s6635_s17, 512 }
 0x116   : > { %p5233_p11 = scmp.ne.s32.totalorder %s5942_s13, %s5232_s2  ;;  %p5238_p4 = scmp.lt.u32.totalorder %s5942_s13, %s6635_s17 }
 0x117   : > { %p5239_p13 = scmp.lt.u32.totalorder %s5237_s16, %s5232_s2  ;;  %p5241_p8 = scmp.lt.u32.totalorder %s5232_s2, %s5942_s13 }
 0x118   : > { %p5235_p2 = pnand %p5234_p10, %p5233_p11 }
 0x119   : > { %p5240_p7 = por %p5239_p13, %p5238_p4 }
 0x11a   : > { %p5236_p3 = pneg %p5235_p2 }
 0x11b   : > { %p5242_p0 = por %p5241_p8, %p5240_p7 }
 0x11d   : > { %p5243_p6 = pnand %p5242_p0, %p5236_p3 }
 0x11f   : > { %5246 = shalt.err (!%p5243_p6)
}
 0x120   : > { %s5247_s1 = scalar_lea.vmem %s5950_s6, 256  ;;  %s5441_s9 = smov [#allocation9]  }
 0x121   : > { %p5248_p1 = scmp.ne.s32.totalorder %s5950_s6, %s5247_s1  ;;  %s5252_s14 = sshll.u32 %s5441_s9, 4  ;;  %s5253_s14 = int_to_ptr.vmem [resolvable:$false] %s5252_s14 }
 0x122   : > { %s5254_s28 = scalar_lea.vmem %s5253_s14, 512  ;;  %p5255_p5 = scmp.lt.s32.totalorder %s5950_s6, %s5253_s14 }
 0x123   : > { %p5250_p11 = pnand %p5248_p1, %p5234_p10  ;;  %p5256_p4 = scmp.lt.s32.totalorder %s5254_s28, %s5247_s1 }
 0x125   : > { %p5251_p2 = pneg %p5250_p11  ;;  %p5257_p13 = por %p5256_p4, %p5255_p5 }
 0x127   : > { %p5258_p7 = pnand %p5257_p13, %p5251_p2 }
 0x129   : > { %5261 = shalt.err (!%p5258_p7)
}
 0x12a   : > { %s5442_s4 = smov 128   ;;  %s5443_s2 = smov 8  }
 0x12b   : > { %4860 = dma.hbm_to_vmem [thread:$0]  (!%p5946_p9), %s5942_s13, 256, %s5950_s6, %s5718_s19, %s5442_s4, %s5442_s4, %s5443_s2  }
 0x12c   : > { %s6638_s5 = sld [smem:[#allocation31_spill]] }
 0x132   : > { %p6639_p10 = scmp.ne.s32.totalorder %s6638_s5, 0 }
 0x133   : > { %s5981_s11 = sand.u32 (!%p6639_p10), 1, %s5404_s30  }
 0x134   : > { %631 = sbr.rel (%p6639_p10) target bundleno = 3142 (0xc46), region = 88  ;;  %s4138_s16 = sshll.u32 (!%p6639_p10), %s5981_s11, 5 }
 0x135   : > { %s634_s24 = scalar_lea.sflag (!%p6639_p10), [#allocation5], %s5981_s11  ;;  %s5985_s25 = scalar_lea.vmem (!%p6639_p10), [#allocation4], %s4138_s16 }
 0x13b   : > { %5347 = dma.done.wait (%p5840_p12), %s634_s24, 512  }
 0x13c   : > { %5349 = vsyncadd (%p5840_p12), %s634_s24, 4294966784  ;;  %s6640_s19 = sld [smem:[#allocation28_spill]]  ;;  %s642_s6 = sand.u32 1, %s5614_s23  }
 0x13d   : > { %s6641_s13 = sld [smem:[#allocation32_spill]]  ;;  %s643_s9 = scalar_lea.sflag [#allocation8], %s642_s6 }
 0x142   : > { %s644_s10 = sand.u32 1, %s6640_s19  }
 0x143   : > { %s4139_s1 = sshll.u32 %s644_s10, 6  ;;  %p6642_p5 = scmp.ne.s32.totalorder %s6641_s13, 0 }
 0x144   : > { %s5993_s14 = scalar_lea.vmem [#allocation7], %s4139_s1 }
 0x145   : > { %5351 = dma.done.wait (%p6642_p5), %s643_s9, 1024  }
 0x146   : > { %5353 = vsyncadd (%p6642_p5), %s643_s9, 4294966272  ;;  %s6643_s28 = sld [smem:[#allocation27_spill]]  ;;  %p6644_p12 = scmp.ne.s32.totalorder %s6634_s27, 0 }
 0x14c   : > { %s653_s4 = sand.u32 1, %s6643_s28  }
 0x14d   : > { %s6000_s2 = sshll.u32 %s653_s4, 4 }
 0x14e   : > { %s655_s12 = scalar_lea.vmem [#allocation9], %s6000_s2 }
 0x14f   : > { %5355 = dma.done.wait (%p6644_p12), %s643_s9, 256  }
 0x150   : > { %5357 = vsyncadd (%p6644_p12), %s643_s9, 4294967040  ;;  %p6645_p9 = scmp.eq.s32.totalorder %s5614_s23, 0 }
 0x152   : > { %5359 = dma.done.wait (%p6645_p9), [#allocation11], 24576   ;;  %p6646_p3 = pmov %p6645_p9 }
 0x154   : > { %5361 = vsyncadd (%p6646_p3), [#allocation11], 4294942720  ;;  %p6647_p8 = pmov %p6646_p3 }
 0x155   : > { %p6648_p0 = pmov %p6646_p3 }
 0x156   : > { %5363 = dma.done.wait (%p6647_p8), [#allocation14], 24576  }
 0x157   : > { %5365 = vsyncadd (%p6648_p0), [#allocation14], 4294942720  ;;  %p6649_p6 = pmov %p6648_p0 }
 0x158   : > { %p6650_p1 = pmov %p6648_p0 }
 0x159   : > { %5367 = dma.done.wait (%p6649_p6), [#allocation17], 16384  }
 0x15a   : > { %5369 = vsyncadd (%p6650_p1), [#allocation17], 4294950912  ;;  %s6019_s27 = scalar_lea.vmem [#allocation18], %s4138_s16  ;;  %s6651_s5 = sld [smem:[#allocation29_spill]] }
 0x160   : > { %p4147_p11 = scmp.ne.s32.totalorder %s6651_s5, 0 }
 0x161   : > { %v752_v0 = vld [vmem:[#allocation12 + $0x8] sm:$0xff] (!%p4147_p11)  ;;  %v754_v2 = vld [vmem:[#allocation12 + $0x18] sm:$0xff] (!%p4147_p11)  ;;  %v751_v5 = vld [vmem:[#allocation12] sm:$0xff] (!%p4147_p11)  ;;  %s6652_s24 = sld [smem:[#allocation42_spill]] (!%p4147_p11) }
 0x162   : > { %742 = sbr.rel (%p4147_p11) target bundleno = 702 (0x2be), region = 124  ;;  %v756_v1 = vld [vmem:[#allocation12 + $0x28] sm:$0xff] (!%p4147_p11)  ;;  %v758_v4 = vld [vmem:[#allocation12 + $0x38] sm:$0xff] (!%p4147_p11)  ;;  %v755_v6 = vld [vmem:[#allocation12 + $0x20] sm:$0xff] (!%p4147_p11) }
 0x163   : > { %v4255_v3 = vpack.c.bf16 (!%p4147_p11), %v756_v1, %v752_v0  ;;  %v4319_v7 = vpack.c.bf16 (!%p4147_p11), %v758_v4, %v754_v2  ;;  %v4257_v8 = vpack.c.bf16 (!%p4147_p11), %v755_v6, %v751_v5  ;;  %v753_v9 = vld [vmem:[#allocation12 + $0x10] sm:$0xff] (!%p4147_p11)  ;;  %v760_v11 = vld [vmem:[#allocation12 + $0x48] sm:$0xff] (!%p4147_p11)  ;;  %v762_v14 = vld [vmem:[#allocation12 + $0x58] sm:$0xff] (!%p4147_p11) }
 0x164   : > { %v757_v10 = vld [vmem:[#allocation12 + $0x30] sm:$0xff] (!%p4147_p11)  ;;  %v764_v13 = vld [vmem:[#allocation12 + $0x68] sm:$0xff] (!%p4147_p11)  ;;  %v766_v15 = vld [vmem:[#allocation12 + $0x78] sm:$0xff] (!%p4147_p11) }
 0x165   : > { %4256 = vmatprep.subr.bf16.mxu0 (!%p4147_p11), %v4255_v3  ;;  %v4321_v12 = vpack.c.bf16 (!%p4147_p11), %v757_v10, %v753_v9  ;;  %4320 = vmatprep.subr.bf16.mxu1 (!%p4147_p11), %v4319_v7  ;;  %v4259_v16 = vpack.c.bf16 (!%p4147_p11), %v764_v13, %v760_v11  ;;  %v4323_v17 = vpack.c.bf16 (!%p4147_p11), %v766_v15, %v762_v14  ;;  %v759_v18 = vld [vmem:[#allocation12 + $0x40] sm:$0xff] (!%p4147_p11)  ;;  %v761_v20 = vld [vmem:[#allocation12 + $0x50] sm:$0xff] (!%p4147_p11)  ;;  %v768_v23 = vld [vmem:[#allocation12 + $0x88] sm:$0xff] (!%p4147_p11) }
 0x166   : > { %4258 = vmatpush1.bf16.msra.mxu0 (!%p4147_p11), %v4257_v8  ;;  %v763_v19 = vld [vmem:[#allocation12 + $0x60] sm:$0xff] (!%p4147_p11)  ;;  %v765_v22 = vld [vmem:[#allocation12 + $0x70] sm:$0xff] (!%p4147_p11)  ;;  %v772_v24 = vld [vmem:[#allocation12 + $0xa8] sm:$0xff] (!%p4147_p11) }
 0x167   : > { %4322 = vmatpush1.bf16.msra.mxu1 (!%p4147_p11), %v4321_v12  ;;  %v4261_v21 = vpack.c.bf16 (!%p4147_p11), %v763_v19, %v759_v18  ;;  %4260 = vmatprep.subr.bf16.mxu0 (!%p4147_p11), %v4259_v16  ;;  %v4325_v25 = vpack.c.bf16 (!%p4147_p11), %v765_v22, %v761_v20  ;;  %v4263_v26 = vpack.c.bf16 (!%p4147_p11), %v772_v24, %v768_v23  ;;  %v770_v27 = vld [vmem:[#allocation12 + $0x98] sm:$0xff] (!%p4147_p11)  ;;  %v767_v29 = vld [vmem:[#allocation12 + $0x80] sm:$0xff] (!%p4147_p11)  ;;  %v769_v32 = vld [vmem:[#allocation12 + $0x90] sm:$0xff] (!%p4147_p11) }
 0x168   : > { %4324 = vmatprep.subr.bf16.mxu1 (!%p4147_p11), %v4323_v17  ;;  %v774_v28 = vld [vmem:[#allocation12 + $0xb8] sm:$0xff] (!%p4147_p11)  ;;  %v771_v31 = vld [vmem:[#allocation12 + $0xa0] sm:$0xff] (!%p4147_p11)  ;;  %v773_v33 = vld [vmem:[#allocation12 + $0xb0] sm:$0xff] (!%p4147_p11) }
 0x169   : > { %v4327_v30 = vpack.c.bf16 %v774_v28, %v770_v27  ;;  %v4265_v34 = vpack.c.bf16 %v771_v31, %v767_v29  ;;  %v776_v35 = vld [vmem:[#allocation12 + $0xc8] sm:$0xff]  ;;  %v778_v37 = vld [vmem:[#allocation12 + $0xd8] sm:$0xff]  ;;  %v4329_v38 = vpack.c.bf16 %v773_v33, %v769_v32  ;;  %v775_v41 = vld [vmem:[#allocation12 + $0xc0] sm:$0xff] }
 0x16a   : > { %4262 = vmatpush1.bf16.msra.mxu0 %v4261_v21  ;;  %v780_v36 = vld [vmem:[#allocation12 + $0xe8] sm:$0xff]  ;;  %v782_v40 = vld [vmem:[#allocation12 + $0xf8] sm:$0xff]  ;;  %v779_v42 = vld [vmem:[#allocation12 + $0xe0] sm:$0xff] }
 0x16b   : > { %4326 = vmatpush1.bf16.msra.mxu1 %v4325_v25  ;;  %4264 = vmatprep.subr.bf16.mxu0 %v4263_v26  ;;  %v4267_v39 = vpack.c.bf16 %v780_v36, %v776_v35  ;;  %v4331_v43 = vpack.c.bf16 %v782_v40, %v778_v37  ;;  %v777_v44 = vld [vmem:[#allocation12 + $0xd0] sm:$0xff]  ;;  %v784_v46 = vld [vmem:[#allocation12 + $0x108] sm:$0xff]  ;;  %v786_v48 = vld [vmem:[#allocation12 + $0x118] sm:$0xff]  ;;  %v4269_v50 = vpack.c.bf16 %v779_v42, %v775_v41 }
 0x16c   : > { %4328 = vmatprep.subr.bf16.mxu1 %v4327_v30  ;;  %v781_v45 = vld [vmem:[#allocation12 + $0xf0] sm:$0xff]  ;;  %v788_v47 = vld [vmem:[#allocation12 + $0x128] sm:$0xff]  ;;  %v790_v49 = vld [vmem:[#allocation12 + $0x138] sm:$0xff] }
 0x16d   : > { %v4333_v51 = vpack.c.bf16 %v781_v45, %v777_v44  ;;  %v4271_v52 = vpack.c.bf16 %v788_v47, %v784_v46  ;;  %v783_v53 = vld [vmem:[#allocation12 + $0x100] sm:$0xff]  ;;  %v785_v55 = vld [vmem:[#allocation12 + $0x110] sm:$0xff]  ;;  %v4335_v56 = vpack.c.bf16 %v790_v49, %v786_v48  ;;  %v792_v58 = vld [vmem:[#allocation12 + $0x148] sm:$0xff] }
 0x16e   : > { %4266 = vmatpush1.bf16.msra.mxu0 %v4265_v34  ;;  %v787_v54 = vld [vmem:[#allocation12 + $0x120] sm:$0xff]  ;;  %v789_v57 = vld [vmem:[#allocation12 + $0x130] sm:$0xff]  ;;  %v796_v59 = vld [vmem:[#allocation12 + $0x168] sm:$0xff] }
 0x16f   : > { %4330 = vmatpush1.bf16.msra.mxu1 %v4329_v38  ;;  %4268 = vmatprep.subr.bf16.mxu0 %v4267_v39  ;;  %v794_v60 = vld [vmem:[#allocation12 + $0x158] sm:$0xff]  ;;  %v4273_v62 = vpack.c.bf16 %v787_v54, %v783_v53  ;;  %v4337_v63 = vpack.c.bf16 %v789_v57, %v785_v55  ;;  %v4275_v0 = vpack.c.bf16 %v796_v59, %v792_v58  ;;  %v791_v1 = vld [vmem:[#allocation12 + $0x140] sm:$0xff]  ;;  %v793_v3 = vld [vmem:[#allocation12 + $0x150] sm:$0xff] }
 0x170   : > { %4332 = vmatprep.subr.bf16.mxu1 %v4331_v43  ;;  %v798_v61 = vld [vmem:[#allocation12 + $0x178] sm:$0xff]  ;;  %v795_v2 = vld [vmem:[#allocation12 + $0x160] sm:$0xff]  ;;  %v797_v5 = vld [vmem:[#allocation12 + $0x170] sm:$0xff] }
 0x171   : > { %v4339_v4 = vpack.c.bf16 %v798_v61, %v794_v60  ;;  %v800_v6 = vld [vmem:[#allocation12 + $0x188] sm:$0xff]  ;;  %v802_v8 = vld [vmem:[#allocation12 + $0x198] sm:$0xff]  ;;  %v4277_v10 = vpack.c.bf16 %v795_v2, %v791_v1  ;;  %v4341_v11 = vpack.c.bf16 %v797_v5, %v793_v3  ;;  %v799_v13 = vld [vmem:[#allocation12 + $0x180] sm:$0xff] }
 0x172   : > { %4270 = vmatpush1.bf16.msra.mxu0 %v4269_v50  ;;  %v804_v7 = vld [vmem:[#allocation12 + $0x1a8] sm:$0xff]  ;;  %v806_v9 = vld [vmem:[#allocation12 + $0x1b8] sm:$0xff]  ;;  %v803_v14 = vld [vmem:[#allocation12 + $0x1a0] sm:$0xff] }
 0x173   : > { %4334 = vmatpush1.bf16.msra.mxu1 %v4333_v51  ;;  %4272 = vmatprep.subr.bf16.mxu0 %v4271_v52  ;;  %v4279_v12 = vpack.c.bf16 %v804_v7, %v800_v6  ;;  %v801_v15 = vld [vmem:[#allocation12 + $0x190] sm:$0xff]  ;;  %v4343_v16 = vpack.c.bf16 %v806_v9, %v802_v8  ;;  %v808_v18 = vld [vmem:[#allocation12 + $0x1c8] sm:$0xff]  ;;  %v810_v20 = vld [vmem:[#allocation12 + $0x1d8] sm:$0xff]  ;;  %v4281_v22 = vpack.c.bf16 %v803_v14, %v799_v13 }
 0x174   : > { %4336 = vmatprep.subr.bf16.mxu1 %v4335_v56  ;;  %v805_v17 = vld [vmem:[#allocation12 + $0x1b0] sm:$0xff]  ;;  %v812_v19 = vld [vmem:[#allocation12 + $0x1e8] sm:$0xff]  ;;  %v814_v21 = vld [vmem:[#allocation12 + $0x1f8] sm:$0xff] }
 0x175   : > { %v4345_v23 = vpack.c.bf16 %v805_v17, %v801_v15  ;;  %v4283_v24 = vpack.c.bf16 %v812_v19, %v808_v18  ;;  %v807_v25 = vld [vmem:[#allocation12 + $0x1c0] sm:$0xff]  ;;  %v809_v27 = vld [vmem:[#allocation12 + $0x1d0] sm:$0xff]  ;;  %v4347_v28 = vpack.c.bf16 %v814_v21, %v810_v20  ;;  %v816_v30 = vld [vmem:[#allocation12 + $0x208] sm:$0xff] }
 0x176   : > { %4274 = vmatpush1.bf16.msra.mxu0 %v4273_v62  ;;  %v811_v26 = vld [vmem:[#allocation12 + $0x1e0] sm:$0xff]  ;;  %v813_v29 = vld [vmem:[#allocation12 + $0x1f0] sm:$0xff]  ;;  %v820_v31 = vld [vmem:[#allocation12 + $0x228] sm:$0xff] }
 0x177   : > { %4338 = vmatpush1.bf16.msra.mxu1 %v4337_v63  ;;  %4276 = vmatprep.subr.bf16.mxu0 %v4275_v0  ;;  %v818_v32 = vld [vmem:[#allocation12 + $0x218] sm:$0xff]  ;;  %v4285_v34 = vpack.c.bf16 %v811_v26, %v807_v25  ;;  %v4349_v35 = vpack.c.bf16 %v813_v29, %v809_v27  ;;  %v4287_v36 = vpack.c.bf16 %v820_v31, %v816_v30  ;;  %v815_v37 = vld [vmem:[#allocation12 + $0x200] sm:$0xff]  ;;  %v817_v39 = vld [vmem:[#allocation12 + $0x210] sm:$0xff] }
 0x178   : > { %4340 = vmatprep.subr.bf16.mxu1 %v4339_v4  ;;  %v822_v33 = vld [vmem:[#allocation12 + $0x238] sm:$0xff]  ;;  %v819_v38 = vld [vmem:[#allocation12 + $0x220] sm:$0xff]  ;;  %v821_v41 = vld [vmem:[#allocation12 + $0x230] sm:$0xff] }
 0x179   : > { %v4351_v40 = vpack.c.bf16 %v822_v33, %v818_v32  ;;  %v824_v42 = vld [vmem:[#allocation12 + $0x248] sm:$0xff]  ;;  %v826_v44 = vld [vmem:[#allocation12 + $0x258] sm:$0xff]  ;;  %v4289_v46 = vpack.c.bf16 %v819_v38, %v815_v37  ;;  %v4353_v47 = vpack.c.bf16 %v821_v41, %v817_v39  ;;  %v823_v49 = vld [vmem:[#allocation12 + $0x240] sm:$0xff] }
 0x17a   : > { %4278 = vmatpush1.bf16.msra.mxu0 %v4277_v10  ;;  %v828_v43 = vld [vmem:[#allocation12 + $0x268] sm:$0xff]  ;;  %v830_v45 = vld [vmem:[#allocation12 + $0x278] sm:$0xff]  ;;  %v827_v50 = vld [vmem:[#allocation12 + $0x260] sm:$0xff] }
 0x17b   : > { %4342 = vmatpush1.bf16.msra.mxu1 %v4341_v11  ;;  %4280 = vmatprep.subr.bf16.mxu0 %v4279_v12  ;;  %v4291_v48 = vpack.c.bf16 %v828_v43, %v824_v42  ;;  %v825_v51 = vld [vmem:[#allocation12 + $0x250] sm:$0xff]  ;;  %v4355_v52 = vpack.c.bf16 %v830_v45, %v826_v44  ;;  %v832_v54 = vld [vmem:[#allocation12 + $0x288] sm:$0xff]  ;;  %v834_v56 = vld [vmem:[#allocation12 + $0x298] sm:$0xff]  ;;  %v4293_v58 = vpack.c.bf16 %v827_v50, %v823_v49 }
 0x17c   : > { %4344 = vmatprep.subr.bf16.mxu1 %v4343_v16  ;;  %v829_v53 = vld [vmem:[#allocation12 + $0x270] sm:$0xff]  ;;  %v836_v55 = vld [vmem:[#allocation12 + $0x2a8] sm:$0xff]  ;;  %v838_v57 = vld [vmem:[#allocation12 + $0x2b8] sm:$0xff] }
 0x17d   : > { %v4357_v59 = vpack.c.bf16 %v829_v53, %v825_v51  ;;  %v4295_v60 = vpack.c.bf16 %v836_v55, %v832_v54  ;;  %v831_v61 = vld [vmem:[#allocation12 + $0x280] sm:$0xff]  ;;  %v833_v63 = vld [vmem:[#allocation12 + $0x290] sm:$0xff]  ;;  %v4359_v0 = vpack.c.bf16 %v838_v57, %v834_v56  ;;  %v840_v2 = vld [vmem:[#allocation12 + $0x2c8] sm:$0xff] }
 0x17e   : > { %4282 = vmatpush1.bf16.msra.mxu0 %v4281_v22  ;;  %v835_v62 = vld [vmem:[#allocation12 + $0x2a0] sm:$0xff]  ;;  %v837_v1 = vld [vmem:[#allocation12 + $0x2b0] sm:$0xff]  ;;  %v844_v3 = vld [vmem:[#allocation12 + $0x2e8] sm:$0xff] }
 0x17f   : > { %4346 = vmatpush1.bf16.msra.mxu1 %v4345_v23  ;;  %4284 = vmatprep.subr.bf16.mxu0 %v4283_v24  ;;  %v842_v4 = vld [vmem:[#allocation12 + $0x2d8] sm:$0xff]  ;;  %v4297_v6 = vpack.c.bf16 %v835_v62, %v831_v61  ;;  %v839_v7 = vld [vmem:[#allocation12 + $0x2c0] sm:$0xff]  ;;  %v4361_v8 = vpack.c.bf16 %v837_v1, %v833_v63  ;;  %v4299_v9 = vpack.c.bf16 %v844_v3, %v840_v2  ;;  %v841_v11 = vld [vmem:[#allocation12 + $0x2d0] sm:$0xff] }
 0x180   : > { %4348 = vmatprep.subr.bf16.mxu1 %v4347_v28  ;;  %v846_v5 = vld [vmem:[#allocation12 + $0x2f8] sm:$0xff]  ;;  %v843_v10 = vld [vmem:[#allocation12 + $0x2e0] sm:$0xff]  ;;  %v845_v12 = vld [vmem:[#allocation12 + $0x2f0] sm:$0xff] }
 0x181   : > { %v4363_v13 = vpack.c.bf16 %v846_v5, %v842_v4  ;;  %v848_v14 = vld [vmem:[#allocation12 + $0x308] sm:$0xff]  ;;  %v850_v17 = vld [vmem:[#allocation12 + $0x318] sm:$0xff]  ;;  %v4301_v19 = vpack.c.bf16 %v843_v10, %v839_v7  ;;  %v4365_v20 = vpack.c.bf16 %v845_v12, %v841_v11  ;;  %v847_v22 = vld [vmem:[#allocation12 + $0x300] sm:$0xff]  ;;  %v5444_v10 = vmov 1983009808  }
 0x182   : > { %4286 = vmatpush1.bf16.msra.mxu0 %v4285_v34  ;;  %v852_v15 = vld [vmem:[#allocation12 + $0x328] sm:$0xff]  ;;  %v854_v18 = vld [vmem:[#allocation12 + $0x338] sm:$0xff]  ;;  %v851_v23 = vld [vmem:[#allocation12 + $0x320] sm:$0xff]  ;;  %v1081_v11 = vunpack.c.l.s4 %v5444_v10 }
 0x183   : > { %4350 = vmatpush1.bf16.msra.mxu1 %v4349_v35  ;;  %4288 = vmatprep.subr.bf16.mxu0 %v4287_v36  ;;  %v744_v16 = vld [vmem:[%s5993_s14 + $0x8] sm:$0xff]  ;;  %v4303_v21 = vpack.c.bf16 %v852_v15, %v848_v14  ;;  %v849_v24 = vld [vmem:[#allocation12 + $0x310] sm:$0xff]  ;;  %v4367_v25 = vpack.c.bf16 %v854_v18, %v850_v17  ;;  %v858_v29 = vld [vmem:[#allocation12 + $0x358] sm:$0xff]  ;;  %v4305_v31 = vpack.c.bf16 %v851_v23, %v847_v22  ;;  %v5445_v17 = vmov 1934713408  }
 0x184   : > { %4352 = vmatprep.subr.bf16.mxu1 %v4351_v40  ;;  %965 = vmatprep.mubr.f32.mxu0 %v744_v16  ;;  %v853_v26 = vld [vmem:[#allocation12 + $0x330] sm:$0xff]  ;;  %v856_v27 = vld [vmem:[#allocation12 + $0x348] sm:$0xff]  ;;  %v862_v30 = vld [vmem:[#allocation12 + $0x378] sm:$0xff]  ;;  %v1112_v18 = vunpack.c.l.s4 %v5445_v17 }
 0x185   : > { %1054 = vmatprep.mubr.f32.mxu1 %v744_v16  ;;  %v860_v28 = vld [vmem:[#allocation12 + $0x368] sm:$0xff]  ;;  %v4369_v32 = vpack.c.bf16 %v853_v26, %v849_v24  ;;  %v855_v34 = vld [vmem:[#allocation12 + $0x340] sm:$0xff]  ;;  %v857_v36 = vld [vmem:[#allocation12 + $0x350] sm:$0xff]  ;;  %v4371_v37 = vpack.c.bf16 %v862_v30, %v858_v29  ;;  %v1082_v16 = vunpack.c.0.s8 %v1081_v11 }
 0x186   : > { %4290 = vmatpush1.bf16.msra.mxu0 %v4289_v46  ;;  %v4307_v33 = vpack.c.bf16 %v860_v28, %v856_v27  ;;  %v859_v35 = vld [vmem:[#allocation12 + $0x360] sm:$0xff]  ;;  %v861_v38 = vld [vmem:[#allocation12 + $0x370] sm:$0xff]  ;;  %v864_v39 = vld [vmem:[#allocation12 + $0x388] sm:$0xff]  ;;  %v1113_v24 = vunpack.c.0.s8 %v1112_v18 }
 0x187   : > { %4354 = vmatpush1.bf16.msra.mxu1 %v4353_v47  ;;  %4292 = vmatprep.subr.bf16.mxu0 %v4291_v48  ;;  %v868_v40 = vld [vmem:[#allocation12 + $0x3a8] sm:$0xff]  ;;  %v866_v41 = vld [vmem:[#allocation12 + $0x398] sm:$0xff]  ;;  %v4309_v43 = vpack.c.bf16 %v859_v35, %v855_v34  ;;  %v4373_v44 = vpack.c.bf16 %v861_v38, %v857_v36  ;;  %v863_v46 = vld [vmem:[#allocation12 + $0x380] sm:$0xff] }
 0x188   : > { %4356 = vmatprep.subr.bf16.mxu1 %v4355_v52  ;;  %v870_v42 = vld [vmem:[#allocation12 + $0x3b8] sm:$0xff]  ;;  %v4311_v45 = vpack.c.bf16 %v868_v40, %v864_v39  ;;  %v867_v47 = vld [vmem:[#allocation12 + $0x3a0] sm:$0xff]  ;;  %v865_v48 = vld [vmem:[#allocation12 + $0x390] sm:$0xff] }
 0x189   : > { %v4375_v49 = vpack.c.bf16 %v870_v42, %v866_v41  ;;  %v869_v50 = vld [vmem:[#allocation12 + $0x3b0] sm:$0xff]  ;;  %v872_v51 = vld [vmem:[#allocation12 + $0x3c8] sm:$0xff]  ;;  %v874_v53 = vld [vmem:[#allocation12 + $0x3d8] sm:$0xff]  ;;  %v4313_v55 = vpack.c.bf16 %v867_v47, %v863_v46 }
 0x18a   : > { %4294 = vmatpush1.bf16.msra.mxu0 %v4293_v58  ;;  %v876_v52 = vld [vmem:[#allocation12 + $0x3e8] sm:$0xff]  ;;  %v878_v54 = vld [vmem:[#allocation12 + $0x3f8] sm:$0xff]  ;;  %v4377_v56 = vpack.c.bf16 %v869_v50, %v865_v48  ;;  %v871_v58 = vld [vmem:[#allocation12 + $0x3c0] sm:$0xff] }
 0x18b   : > { %4358 = vmatpush1.bf16.msra.mxu1 %v4357_v59  ;;  %4296 = vmatprep.subr.bf16.mxu0 %v4295_v60  ;;  %v4315_v57 = vpack.c.bf16 %v876_v52, %v872_v51  ;;  %v875_v59 = vld [vmem:[#allocation12 + $0x3e0] sm:$0xff]  ;;  %v4379_v60 = vpack.c.bf16 %v878_v54, %v874_v53  ;;  %v873_v61 = vld [vmem:[#allocation12 + $0x3d0] sm:$0xff]  ;;  %v746_v2 = vld [vmem:[%s5993_s14 + $0x18] sm:$0xff] }
 0x18c   : > { %4360 = vmatprep.subr.bf16.mxu1 %v4359_v0  ;;  %v877_v62 = vld [vmem:[#allocation12 + $0x3f0] sm:$0xff]  ;;  %v4317_v63 = vpack.c.bf16 %v875_v59, %v871_v58  ;;  %v743_v1 = vld [vmem:[%s5993_s14] sm:$0xff]  ;;  %v748_v4 = vld [vmem:[%s5993_s14 + $0x28] sm:$0xff] }
 0x18d   : > { %v4381_v0 = vpack.c.bf16 %v877_v62, %v873_v61  ;;  %v745_v3 = vld [vmem:[%s5993_s14 + $0x10] sm:$0xff]  ;;  %v747_v5 = vld [vmem:[%s5993_s14 + $0x20] sm:$0xff] }
 0x18e   : > { %4298 = vmatpush1.bf16.msra.mxu0 %v4297_v6  ;;  %v750_v6 = vld [vmem:[%s5993_s14 + $0x38] sm:$0xff]  ;;  %v749_v7 = vld [vmem:[%s5993_s14 + $0x30] sm:$0xff] }
 0x18f   : > { %4362 = vmatpush1.bf16.msra.mxu1 %v4361_v8  ;;  %4300 = vmatprep.subr.bf16.mxu0 %v4299_v9  ;;  %v881_v8 = vlaneseq }
 0x190   : > { %4364 = vmatprep.subr.bf16.mxu1 %v4363_v13  ;;  %v879_v13 = vld [vmem:[%s6652_s24] sm:$0xf] }
 0x191   : > { %v882_v9 = vshrl.u32 %v881_v8, 7 }
 0x192   : > { %4302 = vmatpush1.bf16.msra.mxu0 %v4301_v19 }
 0x193   : > { %4366 = vmatpush1.bf16.msra.mxu1 %v4365_v20  ;;  %4304 = vmatprep.subr.bf16.mxu0 %v4303_v21  ;;  %v883_v12 = vsub.s32 0, %v882_v9  ;;  %v891_v14 = vsub.s32 2, %v882_v9  ;;  %v887_v15 = vsub.s32 1, %v882_v9  ;;  %v895_v19 = vsub.s32 3, %v882_v9 }
 0x194   : > { %4368 = vmatprep.subr.bf16.mxu1 %v4367_v25  ;;  %v6039_v23 = vsub.s32 %v1082_v16, %v882_v9  ;;  %v6048_v36 = vsub.s32 %v1113_v24, %v882_v9 }
 0x195   : > { %v6033_v20 = vrot.slane %v879_v13, %v883_v12  ;;  %v6035_v21 = vrot.slane %v879_v13, %v891_v14  ;;  %v6037_v22 = vrot.slane %v879_v13, %v887_v15  ;;  %v6041_v25 = vrot.slane %v879_v13, %v895_v19 }
 0x196   : > { %4306 = vmatpush1.bf16.msra.mxu0 %v4305_v31 }
 0x197   : > { %4370 = vmatpush1.bf16.msra.mxu1 %v4369_v32  ;;  %4308 = vmatprep.subr.bf16.mxu0 %v4307_v33  ;;  %v5446_v33 = vmov 0.0  }
 0x198   : > { %4372 = vmatprep.subr.bf16.mxu1 %v4371_v37 }
 0x19a   : > { %4310 = vmatpush1.bf16.msra.mxu0 %v4309_v43 }
 0x19b   : > { %4374 = vmatpush1.bf16.msra.mxu1 %v4373_v44  ;;  %4312 = vmatprep.subr.bf16.mxu0 %v4311_v45 }
 0x19c   : > { %4376 = vmatprep.subr.bf16.mxu1 %v4375_v49 }
 0x19e   : > { %4314 = vmatpush1.bf16.msra.mxu0 %v4313_v55 }
 0x19f   : > { %4378 = vmatpush1.bf16.msra.mxu1 %v4377_v56  ;;  %4316 = vmatprep.subr.bf16.mxu0 %v4315_v57 }
 0x1a0   : > { %4380 = vmatprep.subr.bf16.mxu1 %v4379_v60 }
 0x1a2   : > { %4318 = vmatpush1.bf16.msra.mxu0 %v4317_v63 }
 0x1a3   : > { %4382 = vmatpush1.bf16.msra.mxu1 %v4381_v0 }
 0x1a5   : > { %966 = vmatmul.mubr.f32.vlgmr.msra.gmra.mrb[0].mxu0 %v743_v1 }
 0x1a6   : > { %1055 = vmatmul.mubr.f32.vlgmr.msra.gmra.mrb[0].mxu1 %v743_v1  ;;  %971 = vmatprep.mubr.f32.mxu0 %v746_v2 }
 0x1a7   : > { %1060 = vmatprep.mubr.f32.mxu1 %v746_v2 }
 0x1a9   : > { %972 = vmatmul.mubr.f32.gmra.mrb[2].mxu0 %v745_v3 }
 0x1aa   : > { %1061 = vmatmul.mubr.f32.gmra.mrb[2].mxu1 %v745_v3  ;;  %977 = vmatprep.mubr.f32.mxu0 %v748_v4 }
 0x1ab   : > { %1066 = vmatprep.mubr.f32.mxu1 %v748_v4 }
 0x1ad   : > { %978 = vmatmul.mubr.f32.gmra.mrb[4].mxu0 %v747_v5 }
 0x1ae   : > { %1067 = vmatmul.mubr.f32.gmra.mrb[4].mxu1 %v747_v5  ;;  %983 = vmatprep.mubr.f32.mxu0 %v750_v6 }
 0x1af   : > { %1072 = vmatprep.mubr.f32.mxu1 %v750_v6 }
 0x1b1   : > { %984 = vmatmul.mubr.f32.gmra.mrb[6].mxu0 %v749_v7 }
 0x1b2   : > { %1073 = vmatmul.mubr.f32.gmra.mrb[6].mxu1 %v749_v7 }
 0x278   : > { %v967_v26 = vpop.f32.mrb[0].mxu0 }
 0x279   : > { %v968_v27 = vadd.f32 %v967_v26, %v6033_v20  ;;  %v1056_v28 = vpop.f32.mrb[0].mxu1  ;;  %v969_v29 = vpop.f32.mrb[1].mxu0 }
 0x27a   : > { %v1057_v30 = vadd.f32 %v1056_v28, %v6035_v21  ;;  %v970_v31 = vadd.f32 %v969_v29, %v6037_v22  ;;  %v1058_v32 = vpop.f32.mrb[1].mxu1 }
 0x27b   : > { %v1079_v34 = vcombine.high %v968_v27, %v5446_v33  ;;  %v1086_v35 = vrot.slane %v968_v27, %v6039_v23  ;;  %v1059_v37 = vadd.f32 %v1058_v32, %v6041_v25 }
 0x27c   : > { %v1551_v38 = vcombine.high %v1057_v30, %v5446_v33  ;;  %v1558_v39 = vrot.slane %v1057_v30, %v6039_v23  ;;  %v1094_v40 = vcombine.high %v970_v31, %v5446_v33  ;;  %v1101_v41 = vrot.slane %v970_v31, %v6039_v23  ;;  %v973_v42 = vpop.f32.mrb[2].mxu0 }
 0x27d   : > { %v1093_v43 = vrot.slane %v1079_v34, %v6039_v23  ;;  %v1566_v44 = vcombine.high %v1059_v37, %v5446_v33  ;;  %v1573_v45 = vrot.slane %v1059_v37, %v6039_v23  ;;  %v974_v46 = vadd.f32 %v973_v42, %v6033_v20  ;;  %v1062_v47 = vpop.f32.mrb[2].mxu1  ;;  %v975_v48 = vpop.f32.mrb[3].mxu0 }
 0x27e   : > { %v1565_v49 = vrot.slane %v1551_v38, %v6039_v23  ;;  %v1108_v50 = vrot.slane %v1094_v40, %v6039_v23  ;;  %v1109_v51 = vcombine.low %v1086_v35, %v1101_v41  ;;  %v1110_v52 = vcombine.high %v1086_v35, %v1101_v41  ;;  %v1064_v53 = vpop.f32.mrb[3].mxu1 }
 0x27f   : > { %v1580_v54 = vrot.slane %v1566_v44, %v6039_v23  ;;  %v1581_v55 = vcombine.low %v1558_v39, %v1573_v45  ;;  %v1582_v56 = vcombine.high %v1558_v39, %v1573_v45  ;;  %v1145_v57 = vcombine.high %v974_v46, %v5446_v33 }
 0x280   : > { %v1117_v58 = vrot.slane %v1109_v51, %v6048_v36  ;;  %v1124_v59 = vrot.slane %v1110_v52, %v6048_v36  ;;  %v1125_v60 = vcombine.low %v1093_v43, %v1108_v50  ;;  %v1126_v61 = vcombine.high %v1093_v43, %v1108_v50  ;;  %v979_v62 = vpop.f32.mrb[4].mxu0 }
 0x281   : > { %v1589_v63 = vrot.slane %v1581_v55, %v6048_v36  ;;  %v1596_v0 = vrot.slane %v1582_v56, %v6048_v36  ;;  %v1597_v1 = vcombine.low %v1565_v49, %v1580_v54  ;;  %v1598_v2 = vcombine.high %v1565_v49, %v1580_v54  ;;  %v6067_v3 = vpop.f32.mrb[4].mxu1  ;;  %v6069_v4 = vpop.f32.mrb[5].mxu0 }
 0x282   : > { %v1133_v5 = vrot.slane %v1125_v60, %v6048_v36  ;;  %v1140_v6 = vrot.slane %v1126_v61, %v6048_v36  ;;  %v1343_v7 = vcombine.low %v1117_v58, %v1124_v59  ;;  %v4148_v8 = vcombine.high %v1117_v58, %v1124_v59  ;;  %v6073_v9 = vpop.f32.mrb[5].mxu1 }
 0x283   : > { %v1605_v10 = vrot.slane %v1597_v1, %v6048_v36  ;;  %v1612_v11 = vrot.slane %v1598_v2, %v6048_v36  ;;  %v1815_v12 = vcombine.low %v1589_v63, %v1596_v0  ;;  %v4156_v13 = vcombine.high %v1589_v63, %v1596_v0 }
 0x284   : > { %v1350_v14 = vrot.slane %v1343_v7, %v6039_v23  ;;  %v1358_v15 = vrot.slane %v4148_v8, %v6039_v23  ;;  %v1359_v16 = vcombine.low %v1133_v5, %v1140_v6  ;;  %v4149_v17 = vcombine.high %v1133_v5, %v1140_v6  ;;  %v6079_v18 = vpop.f32.mrb[6].mxu0 }
 0x285   : > { %v1822_v19 = vrot.slane %v1815_v12, %v6039_v23  ;;  %v1830_v24 = vrot.slane %v4156_v13, %v6039_v23  ;;  %v1831_v26 = vcombine.low %v1605_v10, %v1612_v11  ;;  %v4157_v27 = vcombine.high %v1605_v10, %v1612_v11  ;;  %v6083_v28 = vpop.f32.mrb[6].mxu1  ;;  %v6085_v29 = vpop.f32.mrb[7].mxu0 }
 0x286   : > { %v1366_v30 = vrot.slane %v1359_v16, %v6039_v23  ;;  %v1374_v31 = vrot.slane %v4149_v17, %v6039_v23  ;;  %v1375_v32 = vcombine.low %v1350_v14, %v1358_v15  ;;  %v1152_v34 = vrot.slane %v974_v46, %v6039_v23  ;;  %v6090_v35 = vpop.f32.mrb[7].mxu1 }
 0x287   : > { %v1838_v37 = vrot.slane %v1831_v26, %v6039_v23  ;;  %v1846_v38 = vrot.slane %v4157_v27, %v6039_v23  ;;  %v1847_v39 = vcombine.low %v1822_v19, %v1830_v24  ;;  %v1159_v40 = vrot.slane %v1145_v57, %v6039_v23 }
 0x288   : > { %v1382_v41 = vrot.slane %v1375_v32, %v6048_v36  ;;  %v1383_v42 = vcombine.low %v1366_v30, %v1374_v31  ;;  %v1063_v43 = vadd.f32 %v1062_v47, %v6035_v21  ;;  %v976_v44 = vadd.f32 %v975_v48, %v6037_v22 }
 0x289   : > { %v1854_v45 = vrot.slane %v1847_v39, %v6048_v36  ;;  %v1855_v49 = vcombine.low %v1838_v37, %v1846_v38  ;;  %v1065_v46 = vadd.f32 %v1064_v53, %v6041_v25  ;;  %v980_v50 = vadd.f32 %v979_v62, %v6033_v20 }
 0x28a   : > { %v1390_v51 = vrot.slane %v1383_v42, %v6048_v36  ;;  %v1617_v52 = vcombine.high %v1063_v43, %v5446_v33  ;;  %v1624_v54 = vrot.slane %v1063_v43, %v6039_v23  ;;  %v1160_v55 = vcombine.high %v976_v44, %v5446_v33 }
 0x28b   : > { %v1862_v56 = vrot.slane %v1855_v49, %v6048_v36  ;;  %v1167_v47 = vrot.slane %v976_v44, %v6039_v23  ;;  %v1632_v48 = vcombine.high %v1065_v46, %v5446_v33  ;;  %v1639_v57 = vrot.slane %v1065_v46, %v6039_v23 }
 0x28c   : > { %v1391_v58 = vcombine.low %v1382_v41, %v1390_v51  ;;  %v1392_v53 = vcombine.high %v1382_v41, %v1390_v51  ;;  %v1631_v59 = vrot.slane %v1617_v52, %v6039_v23  ;;  %v1174_v60 = vrot.slane %v1160_v55, %v6039_v23 }
 0x28d   : > { %v1863_v61 = vcombine.low %v1854_v45, %v1862_v56  ;;  %v1864_v62 = vcombine.high %v1854_v45, %v1862_v56  ;;  %v1175_v63 = vcombine.low %v1152_v34, %v1167_v47  ;;  %v1176_v0 = vcombine.high %v1152_v34, %v1167_v47 }
 0x28e   : > { %1543 = vst [vmem:[#allocation2] sm:$0xff] %v1391_v58  ;;  %1547 = vst [vmem:[#allocation2 + $0x20] sm:$0xff] %v1392_v53  ;;  %v1191_v1 = vcombine.low %v1159_v40, %v1174_v60  ;;  %v1192_v2 = vcombine.high %v1159_v40, %v1174_v60  ;;  %v1646_v5 = vrot.slane %v1632_v48, %v6039_v23 }
 0x28f   : > { %v1647_v6 = vcombine.low %v1624_v54, %v1639_v57  ;;  %2015 = vst [vmem:[#allocation3] sm:$0xff] %v1863_v61  ;;  %2019 = vst [vmem:[#allocation3 + $0x20] sm:$0xff] %v1864_v62  ;;  %v1183_v7 = vrot.slane %v1175_v63, %v6048_v36  ;;  %v1190_v8 = vrot.slane %v1176_v0, %v6048_v36 }
 0x290   : > { %v1648_v10 = vcombine.high %v1624_v54, %v1639_v57  ;;  %v1211_v11 = vcombine.high %v980_v50, %v5446_v33  ;;  %v1199_v12 = vrot.slane %v1191_v1, %v6048_v36  ;;  %v1206_v13 = vrot.slane %v1192_v2, %v6048_v36 }
 0x291   : > { %v1655_v14 = vrot.slane %v1647_v6, %v6048_v36  ;;  %v1663_v15 = vcombine.low %v1631_v59, %v1646_v5  ;;  %v1393_v16 = vcombine.low %v1183_v7, %v1190_v8  ;;  %v4150_v17 = vcombine.high %v1183_v7, %v1190_v8 }
 0x292   : > { %v1662_v19 = vrot.slane %v1648_v10, %v6048_v36  ;;  %v1664_v24 = vcombine.high %v1631_v59, %v1646_v5  ;;  %v1409_v26 = vcombine.low %v1199_v12, %v1206_v13  ;;  %v4151_v27 = vcombine.high %v1199_v12, %v1206_v13 }
 0x293   : > { %v1671_v30 = vrot.slane %v1663_v15, %v6048_v36  ;;  %v1218_v31 = vrot.slane %v980_v50, %v6039_v23  ;;  %v1400_v32 = vrot.slane %v1393_v16, %v6039_v23  ;;  %v1408_v34 = vrot.slane %v4150_v17, %v6039_v23 }
 0x294   : > { %v1678_v37 = vrot.slane %v1664_v24, %v6048_v36  ;;  %v1865_v38 = vcombine.low %v1655_v14, %v1662_v19  ;;  %v1416_v39 = vrot.slane %v1409_v26, %v6039_v23  ;;  %v1424_v40 = vrot.slane %v4151_v27, %v6039_v23 }
 0x295   : > { %v4158_v41 = vcombine.high %v1655_v14, %v1662_v19  ;;  %v1225_v42 = vrot.slane %v1211_v11, %v6039_v23  ;;  %v1425_v43 = vcombine.low %v1400_v32, %v1408_v34  ;;  %v1069_v51 = vadd.f32 %v6067_v3, %v6035_v21 }
 0x296   : > { %v1872_v44 = vrot.slane %v1865_v38, %v6039_v23  ;;  %v1881_v45 = vcombine.low %v1671_v30, %v1678_v37  ;;  %v4159_v49 = vcombine.high %v1671_v30, %v1678_v37  ;;  %v1433_v46 = vcombine.low %v1416_v39, %v1424_v40 }
 0x297   : > { %v1880_v50 = vrot.slane %v4158_v41, %v6039_v23  ;;  %v982_v52 = vadd.f32 %v6069_v4, %v6037_v22  ;;  %v1432_v54 = vrot.slane %v1425_v43, %v6048_v36  ;;  %v1071_v47 = vadd.f32 %v6073_v9, %v6041_v25 }
 0x298   : > { %v1888_v55 = vrot.slane %v1881_v45, %v6039_v23  ;;  %v1896_v56 = vrot.slane %v4159_v49, %v6039_v23  ;;  %v1440_v48 = vrot.slane %v1433_v46, %v6048_v36  ;;  %v1683_v58 = vcombine.high %v1069_v51, %v5446_v33 }
 0x299   : > { %v1897_v57 = vcombine.low %v1872_v44, %v1880_v50  ;;  %v1690_v53 = vrot.slane %v1069_v51, %v6039_v23  ;;  %v1226_v59 = vcombine.high %v982_v52, %v5446_v33  ;;  %v1233_v4 = vrot.slane %v982_v52, %v6039_v23 }
 0x29a   : > { %v1905_v3 = vcombine.low %v1888_v55, %v1896_v56  ;;  %v1698_v60 = vcombine.high %v1071_v47, %v5446_v33  ;;  %v1441_v61 = vcombine.low %v1432_v54, %v1440_v48  ;;  %v1442_v62 = vcombine.high %v1432_v54, %v1440_v48 }
 0x29b   : > { %v1904_v63 = vrot.slane %v1897_v57, %v6048_v36  ;;  %v1697_v9 = vrot.slane %v1683_v58, %v6039_v23  ;;  %v1240_v1 = vrot.slane %v1226_v59, %v6039_v23  ;;  %v1241_v2 = vcombine.low %v1218_v31, %v1233_v4 }
 0x29c   : > { %v1912_v0 = vrot.slane %v1905_v3, %v6048_v36  ;;  %v1242_v5 = vcombine.high %v1218_v31, %v1233_v4  ;;  %1544 = vst [vmem:[#allocation2 + $0x8] sm:$0xff] %v1441_v61  ;;  %1548 = vst [vmem:[#allocation2 + $0x28] sm:$0xff] %v1442_v62  ;;  %v1705_v6 = vrot.slane %v1071_v47, %v6039_v23 }
 0x29d   : > { %v1712_v7 = vrot.slane %v1698_v60, %v6039_v23  ;;  %v986_v8 = vadd.f32 %v6079_v18, %v6033_v20  ;;  %v1075_v10 = vadd.f32 %v6083_v28, %v6035_v21  ;;  %v1249_v13 = vrot.slane %v1241_v2, %v6048_v36 }
 0x29e   : > { %v1913_v11 = vcombine.low %v1904_v63, %v1912_v0  ;;  %v1914_v12 = vcombine.high %v1904_v63, %v1912_v0  ;;  %v1256_v14 = vrot.slane %v1242_v5, %v6048_v36  ;;  %v1257_v15 = vcombine.low %v1225_v42, %v1240_v1 }
 0x29f   : > { %v1258_v16 = vcombine.high %v1225_v42, %v1240_v1  ;;  %v1713_v17 = vcombine.low %v1690_v53, %v1705_v6  ;;  %v1714_v19 = vcombine.high %v1690_v53, %v1705_v6  ;;  %v1729_v27 = vcombine.low %v1697_v9, %v1712_v7 }
 0x2a0   : > { %2016 = vst [vmem:[#allocation3 + $0x8] sm:$0xff] %v1913_v11  ;;  %2020 = vst [vmem:[#allocation3 + $0x28] sm:$0xff] %v1914_v12  ;;  %v1443_v24 = vcombine.low %v1249_v13, %v1256_v14  ;;  %v4152_v26 = vcombine.high %v1249_v13, %v1256_v14  ;;  %v1730_v30 = vcombine.high %v1697_v9, %v1712_v7 }
 0x2a1   : > { %v1265_v20 = vrot.slane %v1257_v15, %v6048_v36  ;;  %v1272_v21 = vrot.slane %v1258_v16, %v6048_v36  ;;  %v1721_v18 = vrot.slane %v1713_v17, %v6048_v36  ;;  %v1728_v28 = vrot.slane %v1714_v19, %v6048_v36 }
 0x2a2   : > { %v1450_v31 = vrot.slane %v1443_v24, %v6039_v23  ;;  %v1458_v32 = vrot.slane %v4152_v26, %v6039_v23  ;;  %v1737_v34 = vrot.slane %v1729_v27, %v6048_v36  ;;  %v1744_v37 = vrot.slane %v1730_v30, %v6048_v36 }
 0x2a3   : > { %v1459_v38 = vcombine.low %v1265_v20, %v1272_v21  ;;  %v4153_v39 = vcombine.high %v1265_v20, %v1272_v21  ;;  %v1915_v40 = vcombine.low %v1721_v18, %v1728_v28  ;;  %v4160_v41 = vcombine.high %v1721_v18, %v1728_v28 }
 0x2a4   : > { %v1475_v42 = vcombine.low %v1450_v31, %v1458_v32  ;;  %v1931_v43 = vcombine.low %v1737_v34, %v1744_v37  ;;  %v4161_v44 = vcombine.high %v1737_v34, %v1744_v37  ;;  %v1277_v45 = vcombine.high %v986_v8, %v5446_v33 }
 0x2a5   : > { %v1466_v49 = vrot.slane %v1459_v38, %v6039_v23  ;;  %v1474_v46 = vrot.slane %v4153_v39, %v6039_v23  ;;  %v1922_v50 = vrot.slane %v1915_v40, %v6039_v23  ;;  %v1930_v51 = vrot.slane %v4160_v41, %v6039_v23 }
 0x2a6   : > { %v1938_v52 = vrot.slane %v1931_v43, %v6039_v23  ;;  %v1946_v54 = vrot.slane %v4161_v44, %v6039_v23  ;;  %v1482_v55 = vrot.slane %v1475_v42, %v6048_v36  ;;  %v1749_v48 = vcombine.high %v1075_v10, %v5446_v33 }
 0x2a7   : > { %v1483_v56 = vcombine.low %v1466_v49, %v1474_v46  ;;  %v1947_v47 = vcombine.low %v1922_v50, %v1930_v51  ;;  %v1284_v58 = vrot.slane %v986_v8, %v6039_v23  ;;  %v988_v53 = vadd.f32 %v6085_v29, %v6037_v22 }
 0x2a8   : > { %v1955_v57 = vcombine.low %v1938_v52, %v1946_v54  ;;  %v1077_v3 = vadd.f32 %v6090_v35, %v6041_v25  ;;  %v1291_v60 = vrot.slane %v1277_v45, %v6039_v23  ;;  %v1756_v61 = vrot.slane %v1075_v10, %v6039_v23 }
 0x2a9   : > { %v1490_v59 = vrot.slane %v1483_v56, %v6048_v36  ;;  %v1954_v4 = vrot.slane %v1947_v47, %v6048_v36  ;;  %v1292_v63 = vcombine.high %v988_v53, %v5446_v33  ;;  %v1299_v9 = vrot.slane %v988_v53, %v6039_v23 }
 0x2aa   : > { %v1962_v62 = vrot.slane %v1955_v57, %v6048_v36  ;;  %v1764_v0 = vcombine.high %v1077_v3, %v5446_v33  ;;  %v1763_v25 = vrot.slane %v1749_v48, %v6039_v23  ;;  %v1771_v35 = vrot.slane %v1077_v3, %v6039_v23 }
 0x2ab   : > { %v1491_v22 = vcombine.low %v1482_v55, %v1490_v59  ;;  %v1492_v29 = vcombine.high %v1482_v55, %v1490_v59  ;;  %v1306_v5 = vrot.slane %v1292_v63, %v6039_v23  ;;  %v1307_v6 = vcombine.low %v1284_v58, %v1299_v9 }
 0x2ac   : > { %v1963_v1 = vcombine.low %v1954_v4, %v1962_v62  ;;  %v1964_v2 = vcombine.high %v1954_v4, %v1962_v62  ;;  %v1308_v7 = vcombine.high %v1284_v58, %v1299_v9  ;;  %v1778_v8 = vrot.slane %v1764_v0, %v6039_v23 }
 0x2ad   : > { %1545 = vst [vmem:[#allocation2 + $0x10] sm:$0xff] %v1491_v22  ;;  %1549 = vst [vmem:[#allocation2 + $0x30] sm:$0xff] %v1492_v29  ;;  %v1779_v10 = vcombine.low %v1756_v61, %v1771_v35  ;;  %v1780_v11 = vcombine.high %v1756_v61, %v1771_v35  ;;  %v1315_v33 = vrot.slane %v1307_v6, %v6048_v36 }
 0x2ae   : > { %2017 = vst [vmem:[#allocation3 + $0x10] sm:$0xff] %v1963_v1  ;;  %2021 = vst [vmem:[#allocation3 + $0x30] sm:$0xff] %v1964_v2  ;;  %v1323_v12 = vcombine.low %v1291_v60, %v1306_v5  ;;  %v1324_v13 = vcombine.high %v1291_v60, %v1306_v5  ;;  %v1322_v14 = vrot.slane %v1308_v7, %v6048_v36 }
 0x2af   : > { %v1787_v15 = vrot.slane %v1779_v10, %v6048_v36  ;;  %v1794_v16 = vrot.slane %v1780_v11, %v6048_v36  ;;  %v1795_v17 = vcombine.low %v1763_v25, %v1778_v8  ;;  %v1796_v26 = vcombine.high %v1763_v25, %v1778_v8 }
 0x2b0   : > { %v1331_v19 = vrot.slane %v1323_v12, %v6048_v36  ;;  %v1338_v24 = vrot.slane %v1324_v13, %v6048_v36  ;;  %v1493_v27 = vcombine.low %v1315_v33, %v1322_v14  ;;  %v4154_v30 = vcombine.high %v1315_v33, %v1322_v14 }
 0x2b1   : > { %v1803_v20 = vrot.slane %v1795_v17, %v6048_v36  ;;  %v1965_v21 = vcombine.low %v1787_v15, %v1794_v16  ;;  %v1810_v31 = vrot.slane %v1796_v26, %v6048_v36  ;;  %v4162_v32 = vcombine.high %v1787_v15, %v1794_v16 }
 0x2b2   : > { %v1509_v18 = vcombine.low %v1331_v19, %v1338_v24  ;;  %v4155_v28 = vcombine.high %v1331_v19, %v1338_v24  ;;  %v1500_v34 = vrot.slane %v1493_v27, %v6039_v23  ;;  %v1508_v37 = vrot.slane %v4154_v30, %v6039_v23 }
 0x2b3   : > { %v1972_v38 = vrot.slane %v1965_v21, %v6039_v23  ;;  %v1980_v41 = vrot.slane %v4162_v32, %v6039_v23  ;;  %v1981_v42 = vcombine.low %v1803_v20, %v1810_v31  ;;  %v4163_v44 = vcombine.high %v1803_v20, %v1810_v31 }
 0x2b4   : > { %v1516_v39 = vrot.slane %v1509_v18, %v6039_v23  ;;  %v1524_v40 = vrot.slane %v4155_v28, %v6039_v23  ;;  %v1525_v43 = vcombine.low %v1500_v34, %v1508_v37 }
 0x2b5   : > { %v1988_v49 = vrot.slane %v1981_v42, %v6039_v23  ;;  %v1997_v46 = vcombine.low %v1972_v38, %v1980_v41  ;;  %v1996_v50 = vrot.slane %v4163_v44, %v6039_v23 }
 0x2b6   : > { %v1533_v45 = vcombine.low %v1516_v39, %v1524_v40  ;;  %v1532_v51 = vrot.slane %v1525_v43, %v6048_v36 }
 0x2b7   : > { %v2005_v54 = vcombine.low %v1988_v49, %v1996_v50  ;;  %v2004_v47 = vrot.slane %v1997_v46, %v6048_v36 }
 0x2b8   : > { %v1540_v52 = vrot.slane %v1533_v45, %v6048_v36 }
 0x2b9   : > { %v2012_v48 = vrot.slane %v2005_v54, %v6048_v36 }
 0x2ba   : > { %v1541_v55 = vcombine.low %v1532_v51, %v1540_v52  ;;  %v1542_v56 = vcombine.high %v1532_v51, %v1540_v52 }
 0x2bb   : > { %v2013_v57 = vcombine.low %v2004_v47, %v2012_v48  ;;  %v2014_v58 = vcombine.high %v2004_v47, %v2012_v48 }
 0x2bc   : > { %1546 = vst [vmem:[#allocation2 + $0x18] sm:$0xff] %v1541_v55  ;;  %1550 = vst [vmem:[#allocation2 + $0x38] sm:$0xff] %v1542_v56 }
 0x2bd   : > { %2018 = vst [vmem:[#allocation3 + $0x18] sm:$0xff] %v2013_v57  ;;  %2022 = vst [vmem:[#allocation3 + $0x38] sm:$0xff] %v2014_v58 }
 0x2be PF: > { %v2028_v53 = vld [vmem:[#allocation10 + $0x8] sm:$0xff]  ;;  %v2030_v23 = vld [vmem:[#allocation10 + $0x18] sm:$0xff]  ;;  %v2027_v3 = vld [vmem:[#allocation10] sm:$0xff]  ;;  %s6653_s13 = sld [smem:[#allocation40_spill]]  ;;  %vm2572_vm0 = vcmask 261120   ;;  %s6654_s1 = sld [smem:[#allocation44_spill]] }
 0x2bf   : > { %v4383_v59 = vpack.c.bf16 %v2030_v23, %v2028_v53  ;;  %v2029_v4 = vld [vmem:[#allocation10 + $0x10] sm:$0xff]  ;;  %v2032_v60 = vld [vmem:[#allocation10 + $0x28] sm:$0xff]  ;;  %v2034_v61 = vld [vmem:[#allocation10 + $0x38] sm:$0xff]  ;;  %s6655_s28 = sld [smem:[#allocation45_spill]]  ;;  %s6657_s16 = sld [smem:[#allocation48_spill]] }
 0x2c0   : > { %v4385_v62 = vpack.c.bf16 %v2029_v4, %v2027_v3  ;;  %v4387_v63 = vpack.c.bf16 %v2034_v61, %v2032_v60  ;;  %v2031_v9 = vld [vmem:[#allocation10 + $0x20] sm:$0xff]  ;;  %v2033_v0 = vld [vmem:[#allocation10 + $0x30] sm:$0xff]  ;;  %v2036_v22 = vld [vmem:[#allocation10 + $0x48] sm:$0xff]  ;;  %s6658_s19 = sld [smem:[#allocation50_spill]]  ;;  %s6660_s6 = sld [smem:[#allocation30_spill]] }
 0x2c1   : > { %4384 = vmatprep.subr.bf16.mxu1 %v4383_v59  ;;  %v2038_v36 = vld [vmem:[#allocation10 + $0x58] sm:$0xff]  ;;  %v4389_v29 = vpack.c.bf16 %v2033_v0, %v2031_v9  ;;  %v2035_v35 = vld [vmem:[#allocation10 + $0x40] sm:$0xff]  ;;  %v2037_v1 = vld [vmem:[#allocation10 + $0x50] sm:$0xff]  ;;  %s6661_s9 = sld [smem:[#allocation51_spill]]  ;;  %s6662_s4 = sld [smem:[#allocation52_spill]] }
 0x2c2   : > { %4386 = vmatpush1.bf16.msra.mxu1 %v4385_v62  ;;  %v4391_v25 = vpack.c.bf16 %v2038_v36, %v2036_v22  ;;  %v2040_v2 = vld [vmem:[#allocation10 + $0x68] sm:$0xff]  ;;  %v2042_v5 = vld [vmem:[#allocation10 + $0x78] sm:$0xff]  ;;  %v4393_v6 = vpack.c.bf16 %v2037_v1, %v2035_v35  ;;  %v2039_v8 = vld [vmem:[#allocation10 + $0x60] sm:$0xff]  ;;  %s3920_s10 = scalar_lea.sflag [#allocation6], %s5981_s11  ;;  %p6665_p4 = scmp.ne.s32.totalorder %s6622_s8, 0 }
 0x2c3   : > { %4388 = vmatprep.subr.bf16.mxu1 %v4387_v63  ;;  %v4395_v7 = vpack.c.bf16 %v2042_v5, %v2040_v2  ;;  %v2041_v10 = vld [vmem:[#allocation10 + $0x70] sm:$0xff]  ;;  %v2044_v11 = vld [vmem:[#allocation10 + $0x88] sm:$0xff]  ;;  %v2046_v33 = vld [vmem:[#allocation10 + $0x98] sm:$0xff] }
 0x2c4   : > { %v4397_v12 = vpack.c.bf16 %v2041_v10, %v2039_v8  ;;  %v4399_v13 = vpack.c.bf16 %v2046_v33, %v2044_v11  ;;  %v2043_v14 = vld [vmem:[#allocation10 + $0x80] sm:$0xff]  ;;  %v2045_v15 = vld [vmem:[#allocation10 + $0x90] sm:$0xff]  ;;  %v2048_v16 = vld [vmem:[#allocation10 + $0xa8] sm:$0xff] }
 0x2c5   : > { %v2050_v17 = vld [vmem:[#allocation10 + $0xb8] sm:$0xff]  ;;  %v4401_v19 = vpack.c.bf16 %v2045_v15, %v2043_v14  ;;  %v2047_v26 = vld [vmem:[#allocation10 + $0xa0] sm:$0xff]  ;;  %v2049_v27 = vld [vmem:[#allocation10 + $0xb0] sm:$0xff] }
 0x2c6   : > { %4390 = vmatpush1.bf16.msra.mxu1 %v4389_v29  ;;  %v4403_v24 = vpack.c.bf16 %v2050_v17, %v2048_v16  ;;  %v2052_v30 = vld [vmem:[#allocation10 + $0xc8] sm:$0xff]  ;;  %v2054_v20 = vld [vmem:[#allocation10 + $0xd8] sm:$0xff]  ;;  %v4405_v21 = vpack.c.bf16 %v2049_v27, %v2047_v26  ;;  %v2051_v28 = vld [vmem:[#allocation10 + $0xc0] sm:$0xff] }
 0x2c7   : > { %4392 = vmatprep.subr.bf16.mxu1 %v4391_v25  ;;  %v4407_v18 = vpack.c.bf16 %v2054_v20, %v2052_v30  ;;  %v2053_v31 = vld [vmem:[#allocation10 + $0xd0] sm:$0xff]  ;;  %v6211_v32 = vld [vmem:[%s5985_s25 + $0x8] sm:$0xff]  ;;  %v2058_v37 = vld [vmem:[#allocation10 + $0xf8] sm:$0xff] }
 0x2c8   : > { %v2056_v34 = vld [vmem:[#allocation10 + $0xe8] sm:$0xff]  ;;  %2167 = vmatprep.mubr.f32.mxu1 %v6211_v32  ;;  %v4409_v38 = vpack.c.bf16 %v2053_v31, %v2051_v28  ;;  %v2055_v40 = vld [vmem:[#allocation10 + $0xe0] sm:$0xff]  ;;  %v2057_v41 = vld [vmem:[#allocation10 + $0xf0] sm:$0xff] }
 0x2c9   : > { %v4411_v39 = vpack.c.bf16 %v2058_v37, %v2056_v34  ;;  %v2060_v42 = vld [vmem:[#allocation10 + $0x108] sm:$0xff]  ;;  %v2062_v43 = vld [vmem:[#allocation10 + $0x118] sm:$0xff]  ;;  %v4413_v44 = vpack.c.bf16 %v2057_v41, %v2055_v40  ;;  %v2059_v49 = vld [vmem:[#allocation10 + $0x100] sm:$0xff] }
 0x2ca   : > { %4394 = vmatpush1.bf16.msra.mxu1 %v4393_v6  ;;  %v4415_v45 = vpack.c.bf16 %v2062_v43, %v2060_v42  ;;  %v2061_v46 = vld [vmem:[#allocation10 + $0x110] sm:$0xff]  ;;  %v2064_v50 = vld [vmem:[#allocation10 + $0x128] sm:$0xff]  ;;  %v2066_v51 = vld [vmem:[#allocation10 + $0x138] sm:$0xff]  ;;  %v2093_v43 = vlaneseq }
 0x2cb   : > { %4396 = vmatprep.subr.bf16.mxu1 %v4395_v7  ;;  %v4417_v52 = vpack.c.bf16 %v2061_v46, %v2059_v49  ;;  %v4419_v54 = vpack.c.bf16 %v2066_v51, %v2064_v50  ;;  %v2063_v55 = vld [vmem:[#allocation10 + $0x120] sm:$0xff]  ;;  %v2065_v56 = vld [vmem:[#allocation10 + $0x130] sm:$0xff]  ;;  %v2068_v47 = vld [vmem:[#allocation10 + $0x148] sm:$0xff] }
 0x2cc   : > { %v2070_v48 = vld [vmem:[#allocation10 + $0x158] sm:$0xff]  ;;  %v4421_v57 = vpack.c.bf16 %v2065_v56, %v2063_v55  ;;  %v2067_v53 = vld [vmem:[#allocation10 + $0x140] sm:$0xff]  ;;  %v2069_v23 = vld [vmem:[#allocation10 + $0x150] sm:$0xff] }
 0x2cd   : > { %v4423_v58 = vpack.c.bf16 %v2070_v48, %v2068_v47  ;;  %v2072_v3 = vld [vmem:[#allocation10 + $0x168] sm:$0xff]  ;;  %v2074_v59 = vld [vmem:[#allocation10 + $0x178] sm:$0xff]  ;;  %v4425_v4 = vpack.c.bf16 %v2069_v23, %v2067_v53  ;;  %v2071_v61 = vld [vmem:[#allocation10 + $0x160] sm:$0xff] }
 0x2ce   : > { %4398 = vmatpush1.bf16.msra.mxu1 %v4397_v12  ;;  %v4427_v60 = vpack.c.bf16 %v2074_v59, %v2072_v3  ;;  %v2073_v62 = vld [vmem:[#allocation10 + $0x170] sm:$0xff]  ;;  %v2076_v63 = vld [vmem:[#allocation10 + $0x188] sm:$0xff]  ;;  %v2078_v9 = vld [vmem:[#allocation10 + $0x198] sm:$0xff]  ;;  %v5449_v59 = vmov 0.0  }
 0x2cf   : > { %4400 = vmatprep.subr.bf16.mxu1 %v4399_v13  ;;  %v4429_v0 = vpack.c.bf16 %v2073_v62, %v2071_v61  ;;  %v4431_v22 = vpack.c.bf16 %v2078_v9, %v2076_v63  ;;  %v2075_v36 = vld [vmem:[#allocation10 + $0x180] sm:$0xff]  ;;  %v2077_v29 = vld [vmem:[#allocation10 + $0x190] sm:$0xff]  ;;  %v2080_v25 = vld [vmem:[#allocation10 + $0x1a8] sm:$0xff] }
 0x2d0   : > { %v2082_v35 = vld [vmem:[#allocation10 + $0x1b8] sm:$0xff]  ;;  %v4433_v1 = vpack.c.bf16 %v2077_v29, %v2075_v36  ;;  %v2079_v5 = vld [vmem:[#allocation10 + $0x1a0] sm:$0xff]  ;;  %v2081_v6 = vld [vmem:[#allocation10 + $0x1b0] sm:$0xff] }
 0x2d1   : > { %v4435_v2 = vpack.c.bf16 %v2082_v35, %v2080_v25  ;;  %v2084_v7 = vld [vmem:[#allocation10 + $0x1c8] sm:$0xff]  ;;  %v2086_v8 = vld [vmem:[#allocation10 + $0x1d8] sm:$0xff]  ;;  %v4437_v10 = vpack.c.bf16 %v2081_v6, %v2079_v5  ;;  %v2083_v33 = vld [vmem:[#allocation10 + $0x1c0] sm:$0xff] }
 0x2d2   : > { %4402 = vmatpush1.bf16.msra.mxu1 %v4401_v19  ;;  %v4439_v11 = vpack.c.bf16 %v2086_v8, %v2084_v7  ;;  %v2085_v12 = vld [vmem:[#allocation10 + $0x1d0] sm:$0xff]  ;;  %v2088_v13 = vld [vmem:[#allocation10 + $0x1e8] sm:$0xff]  ;;  %v2090_v14 = vld [vmem:[#allocation10 + $0x1f8] sm:$0xff] }
 0x2d3   : > { %4404 = vmatprep.subr.bf16.mxu1 %v4403_v24  ;;  %v4441_v15 = vpack.c.bf16 %v2085_v12, %v2083_v33  ;;  %v4443_v16 = vpack.c.bf16 %v2090_v14, %v2088_v13  ;;  %v2087_v17 = vld [vmem:[#allocation10 + $0x1e0] sm:$0xff]  ;;  %v2089_v19 = vld [vmem:[#allocation10 + $0x1f0] sm:$0xff]  ;;  %v6218_v27 = vld [vmem:[%s5985_s25 + $0x18] sm:$0xff] }
 0x2d4   : > { %v4445_v24 = vpack.c.bf16 %v2089_v19, %v2087_v17  ;;  %v6215_v26 = vld [vmem:[%s5985_s25] sm:$0xff]  ;;  %v6223_v30 = vld [vmem:[%s5985_s25 + $0x10] sm:$0xff]  ;;  %v2417_v31 = vld [vmem:[#allocation2 + $0x28] sm:$0xff] }
 0x2d5   : > { %v2412_v20 = vld [vmem:[#allocation2] sm:$0xff]  ;;  %v2414_v37 = vld [vmem:[#allocation2 + $0x10] sm:$0xff]  ;;  %v2419_v41 = vld [vmem:[#allocation2 + $0x38] sm:$0xff] }
 0x2d6   : > { %4406 = vmatpush1.bf16.msra.mxu1 %v4405_v21  ;;  %v2413_v21 = vld [vmem:[#allocation2 + $0x8] sm:$0xff]  ;;  %v2091_v50 = vld [vmem:[%s6653_s13] sm:$0x3]  ;;  %s6659_s13 = sld [smem:[#allocation29_spill]] }
 0x2d7   : > { %4408 = vmatprep.subr.bf16.mxu1 %v4407_v18  ;;  %v2416_v18 = vld [vmem:[#allocation2 + $0x20] sm:$0xff]  ;;  %v4447_v28 = vpack.c.bf16 %v2413_v21, %v2412_v20 }
 0x2d8   : > { %v4455_v34 = vpack.c.bf16 %v2417_v31, %v2416_v18 }
 0x2d9   : > { %4448 = vmatprep.subr.bf16.mxu0 %v4447_v28 }
 0x2da   : > { %4410 = vmatpush1.bf16.msra.mxu1 %v4409_v38  ;;  %4450 = vmatpush3.bf16.xpose.msra.mxu0 %v4447_v28  ;;  %v2415_v38 = vld [vmem:[#allocation2 + $0x18] sm:$0xff] }
 0x2db   : > { %4412 = vmatprep.subr.bf16.mxu1 %v4411_v39  ;;  %v2418_v39 = vld [vmem:[#allocation2 + $0x30] sm:$0xff]  ;;  %v4451_v40 = vpack.c.bf16 %v2415_v38, %v2414_v37 }
 0x2dc   : > { %v4459_v42 = vpack.c.bf16 %v2419_v41, %v2418_v39  ;;  %s4186_s2 = sshll.u32 %s6659_s13, 2 }
 0x2dd   : > { %4452 = vmatprep.subr.bf16.mxu0 %v4451_v40 }
 0x2de   : > { %4414 = vmatpush1.bf16.msra.mxu1 %v4413_v44  ;;  %v6226_v44 = vshrl.u32 %v2093_v43, 7 }
 0x2df   : > { %4416 = vmatprep.subr.bf16.mxu1 %v4415_v45  ;;  %v5447_v45 = vmov 1983009808  }
 0x2e0   : > { %v2182_v49 = vunpack.c.l.s4 %v5447_v45  ;;  %v6229_v46 = vsub.s32 0, %v6226_v44  ;;  %v6235_v51 = vsub.s32 1, %v6226_v44 }
 0x2e2   : > { %4418 = vmatpush1.bf16.msra.mxu1 %v4417_v52  ;;  %4454 = vmatpush3.bf16.xpose.msra.mxu0 %v4451_v40  ;;  %v2183_v52 = vunpack.c.0.s8 %v2182_v49  ;;  %v2096_v56 = vrot.slane %v2091_v50, %v6229_v46  ;;  %v2100_v47 = vrot.slane %v2091_v50, %v6235_v51 }
 0x2e3   : > { %4420 = vmatprep.subr.bf16.mxu1 %v4419_v54  ;;  %v5448_v54 = vmov 1934713408  }
 0x2e4   : > { %v2213_v55 = vunpack.c.l.s4 %v5448_v54  ;;  %v6240_v48 = vsub.s32 %v2183_v52, %v6226_v44 }
 0x2e6   : > { %4422 = vmatpush1.bf16.msra.mxu1 %v4421_v57 }
 0x2e7   : > { %4424 = vmatprep.subr.bf16.mxu1 %v4423_v58  ;;  %v2214_v58 = vunpack.c.0.s8 %v2213_v55 }
 0x2e9   : > { %v6245_v61 = vsub.s32 %v2214_v58, %v6226_v44 }
 0x2ea   : > { %4426 = vmatpush1.bf16.msra.mxu1 %v4425_v4 }
 0x2eb   : > { %4428 = vmatprep.subr.bf16.mxu1 %v4427_v60 }
 0x2ee   : > { %4430 = vmatpush1.bf16.msra.mxu1 %v4429_v0 }
 0x2ef   : > { %4432 = vmatprep.subr.bf16.mxu1 %v4431_v22 }
 0x2f2   : > { %4434 = vmatpush1.bf16.msra.mxu1 %v4433_v1 }
 0x2f3   : > { %4436 = vmatprep.subr.bf16.mxu1 %v4435_v2 }
 0x2f6   : > { %4438 = vmatpush1.bf16.msra.mxu1 %v4437_v10 }
 0x2f7   : > { %4440 = vmatprep.subr.bf16.mxu1 %v4439_v11 }
 0x2fa   : > { %4442 = vmatpush1.bf16.msra.mxu1 %v4441_v15 }
 0x2fb   : > { %4444 = vmatprep.subr.bf16.mxu1 %v4443_v16 }
 0x2fe   : > { %4446 = vmatpush1.bf16.msra.mxu1 %v4445_v24 }
 0x2ff   : > { %4456 = vmatprep.subr.bf16.mxu1 %v4455_v34 }
 0x301   : > { %2168 = vmatmul.mubr.f32.vlgmr.msra.gmra.mrb[0].mxu1 %v6215_v26 }
 0x302   : > { %2173 = vmatprep.mubr.f32.mxu1 %v6218_v27 }
 0x305   : > { %2174 = vmatmul.mubr.f32.gmra.mrb[2].mxu1 %v6223_v30 }
 0x307   : > { %4458 = vmatpush3.bf16.xpose.msra.mxu1 %v4455_v34 }
 0x308   : > { %4460 = vmatprep.subr.bf16.mxu1 %v4459_v42 }
 0x30f   : > { %4462 = vmatpush3.bf16.xpose.msra.mxu1 %v4459_v42 }
 0x3d4   : > { %v2169_v57 = vpop.f32.mrb[0].mxu1 }
 0x3d5   : > { %v2170_v53 = vadd.f32 %v2169_v57, %v2096_v56  ;;  %v2171_v23 = vpop.f32.mrb[1].mxu1 }
 0x3d6   : > { %v2172_v3 = vadd.f32 %v2171_v23, %v2100_v47 }
 0x3d7   : > { %v2180_v4 = vcombine.high %v2170_v53, %v5449_v59  ;;  %v2187_v60 = vrot.slane %v2170_v53, %v6240_v48 }
 0x3d8   : > { %v2195_v62 = vcombine.high %v2172_v3, %v5449_v59  ;;  %v2202_v63 = vrot.slane %v2172_v3, %v6240_v48  ;;  %v2175_v9 = vpop.f32.mrb[2].mxu1 }
 0x3d9   : > { %v2194_v0 = vrot.slane %v2180_v4, %v6240_v48  ;;  %v2176_v22 = vadd.f32 %v2175_v9, %v2096_v56  ;;  %v2177_v36 = vpop.f32.mrb[3].mxu1 }
 0x3da   : > { %v2209_v29 = vrot.slane %v2195_v62, %v6240_v48  ;;  %v2210_v25 = vcombine.low %v2187_v60, %v2202_v63  ;;  %v2211_v35 = vcombine.high %v2187_v60, %v2202_v63  ;;  %v2178_v1 = vadd.f32 %v2177_v36, %v2100_v47  ;;  %v2420_v36 = vld [vmem:[%s655_s12] sm:$0xff] }
 0x3db   : > { %v2246_v2 = vcombine.high %v2176_v22, %v5449_v59  ;;  %v2253_v5 = vrot.slane %v2176_v22, %v6240_v48  ;;  %v2421_v22 = vld [vmem:[%s655_s12 + $0x8] sm:$0xff]  ;;  %s6656_s12 = sld [smem:[#allocation46_spill]] }
 0x3dc   : > { %v2218_v6 = vrot.slane %v2210_v25, %v6245_v61  ;;  %v2225_v7 = vrot.slane %v2211_v35, %v6245_v61  ;;  %v2226_v8 = vcombine.low %v2194_v0, %v2209_v29  ;;  %v2227_v10 = vcombine.high %v2194_v0, %v2209_v29 }
 0x3dd   : > { %v2260_v11 = vrot.slane %v2246_v2, %v6240_v48  ;;  %v2261_v33 = vcombine.high %v2178_v1, %v5449_v59  ;;  %v2268_v12 = vrot.slane %v2178_v1, %v6240_v48 }
 0x3de   : > { %v2234_v13 = vrot.slane %v2226_v8, %v6245_v61  ;;  %v2241_v14 = vrot.slane %v2227_v10, %v6245_v61  ;;  %v2312_v15 = vcombine.low %v2218_v6, %v2225_v7  ;;  %v4164_v16 = vcombine.high %v2218_v6, %v2225_v7 }
 0x3df   : > { %v2275_v17 = vrot.slane %v2261_v33, %v6240_v48  ;;  %v2276_v19 = vcombine.low %v2253_v5, %v2268_v12  ;;  %v2277_v24 = vcombine.high %v2253_v5, %v2268_v12 }
 0x3e0   : > { %v2319_v20 = vrot.slane %v2312_v15, %v6240_v48  ;;  %v2327_v21 = vrot.slane %v4164_v16, %v6240_v48  ;;  %v2328_v18 = vcombine.low %v2234_v13, %v2241_v14  ;;  %v4165_v28 = vcombine.high %v2234_v13, %v2241_v14 }
 0x3e1   : > { %v2284_v31 = vrot.slane %v2276_v19, %v6245_v61  ;;  %v2291_v34 = vrot.slane %v2277_v24, %v6245_v61  ;;  %v2292_v37 = vcombine.low %v2260_v11, %v2275_v17  ;;  %v2293_v38 = vcombine.high %v2260_v11, %v2275_v17 }
 0x3e2   : > { %v2335_v39 = vrot.slane %v2328_v18, %v6240_v48  ;;  %v2343_v40 = vrot.slane %v4165_v28, %v6240_v48  ;;  %v2344_v41 = vcombine.low %v2319_v20, %v2327_v21 }
 0x3e3   : > { %v2300_v42 = vrot.slane %v2292_v37, %v6245_v61  ;;  %v2307_v43 = vrot.slane %v2293_v38, %v6245_v61  ;;  %v2362_v45 = vcombine.low %v2284_v31, %v2291_v34  ;;  %v4166_v49 = vcombine.high %v2284_v31, %v2291_v34 }
 0x3e4   : > { %v2352_v50 = vcombine.low %v2335_v39, %v2343_v40  ;;  %v2351_v47 = vrot.slane %v2344_v41, %v6245_v61 }
 0x3e5   : > { %v2378_v52 = vcombine.low %v2300_v42, %v2307_v43  ;;  %v4167_v54 = vcombine.high %v2300_v42, %v2307_v43  ;;  %v2369_v55 = vrot.slane %v2362_v45, %v6240_v48  ;;  %v2377_v56 = vrot.slane %v4166_v49, %v6240_v48  ;;  %v2617_v43 = vld [vmem:[#allocation3] sm:$0xff]  ;;  %v2618_v45 = vld [vmem:[#allocation3 + $0x8] sm:$0xff] }
 0x3e6   : > { %v2359_v57 = vrot.slane %v2352_v50, %v6245_v61  ;;  %v4463_v49 = vpack.c.bf16 %v2618_v45, %v2617_v43  ;;  %v2619_v50 = vld [vmem:[#allocation3 + $0x10] sm:$0xff]  ;;  %v3042_v43 = vld [vmem:[#allocation13 + $0xb8] sm:$0xff] }
 0x3e7   : > { %v2385_v58 = vrot.slane %v2378_v52, %v6240_v48  ;;  %v2393_v53 = vrot.slane %v4167_v54, %v6240_v48  ;;  %v2394_v23 = vcombine.low %v2369_v55, %v2377_v56  ;;  %v2620_v52 = vld [vmem:[#allocation3 + $0x18] sm:$0xff]  ;;  %v2621_v54 = vld [vmem:[#allocation3 + $0x20] sm:$0xff]  ;;  %v2622_v56 = vld [vmem:[#allocation3 + $0x28] sm:$0xff] }
 0x3e8   : > { %v2360_v3 = vcombine.low %v2351_v47, %v2359_v57  ;;  %v2361_v4 = vcombine.high %v2351_v47, %v2359_v57  ;;  %4464 = vmatprep.subr.bf16.mxu0 %v4463_v49  ;;  %v4467_v55 = vpack.c.bf16 %v2620_v52, %v2619_v50  ;;  %v4471_v47 = vpack.c.bf16 %v2622_v56, %v2621_v54  ;;  %v2623_v57 = vld [vmem:[#allocation3 + $0x30] sm:$0xff]  ;;  %v3039_v50 = vld [vmem:[#allocation13 + $0xa0] sm:$0xff]  ;;  %v3044_v54 = vld [vmem:[#allocation13 + $0xc8] sm:$0xff] }
 0x3e9   : > { %v2402_v60 = vcombine.low %v2385_v58, %v2393_v53  ;;  %v2401_v62 = vrot.slane %v2394_v23, %v6245_v61  ;;  %v2624_v58 = vld [vmem:[#allocation3 + $0x38] sm:$0xff]  ;;  %v3020_v23 = vld [vmem:[#allocation13 + $0x8] sm:$0xff]  ;;  %v3041_v52 = vld [vmem:[#allocation13 + $0xb0] sm:$0xff] }
 0x3ea   : > { %4219 = vmatprep.mubr.f32.mxu0 %v2360_v3  ;;  %4230 = vmatprep.mubr.f32.mxu1 %v2361_v4  ;;  %v4475_v53 = vpack.c.bf16 %v2624_v58, %v2623_v57  ;;  %v3022_v3 = vld [vmem:[#allocation13 + $0x18] sm:$0xff]  ;;  %v4501_v56 = vpack.c.bf16 %v3041_v52, %v3039_v50  ;;  %v3043_v57 = vld [vmem:[#allocation13 + $0xc0] sm:$0xff]  ;;  %v3045_v58 = vld [vmem:[#allocation13 + $0xd0] sm:$0xff] }
 0x3eb   : > { %v2409_v63 = vrot.slane %v2402_v60, %v6245_v61  ;;  %4472 = vmatprep.subr.bf16.mxu1 %v4471_v47  ;;  %v4479_v4 = vpack.c.bf16 %v3022_v3, %v3020_v23  ;;  %v3050_v23 = vld [vmem:[#allocation13 + $0xf8] sm:$0xff]  ;;  %v4505_v3 = vpack.c.bf16 %v3045_v58, %v3043_v57  ;;  %v3077_v52 = vld [vmem:[#allocation13 + $0x1d0] sm:$0xff]  ;;  %v3079_v57 = vld [vmem:[#allocation13 + $0x1e0] sm:$0xff] }
 0x3ec   : > { %v3081_v58 = vld [vmem:[#allocation13 + $0x1f0] sm:$0xff] }
 0x3ed   : > { %v2410_v9 = vcombine.low %v2401_v62, %v2409_v63  ;;  %v2411_v0 = vcombine.high %v2401_v62, %v2409_v63 }
 0x3ef   : > { %4220 = vmatmul.mubr.f32.vlgmr.msra.gmra.mrb[0].mxu0 %v2410_v9  ;;  %4231 = vmatmul.mubr.f32.vlgmr.msra.gmra.mrb[4].mxu1 %v2411_v0 }
 0x3f0   : > { %4466 = vmatpush3.bf16.msra.mxu0 %v4463_v49  ;;  %4474 = vmatpush3.bf16.msra.mxu1 %v4471_v47 }
 0x3f1   : > { %4468 = vmatprep.subr.bf16.mxu0 %v4467_v55  ;;  %4476 = vmatprep.subr.bf16.mxu1 %v4475_v53 }
 0x3f4   : > { %4470 = vmatpush3.bf16.msra.mxu0 %v4467_v55  ;;  %4478 = vmatpush3.bf16.msra.mxu1 %v4475_v53  ;;  %v3046_v55 = vld [vmem:[#allocation13 + $0xd8] sm:$0xff]  ;;  %v3048_v53 = vld [vmem:[#allocation13 + $0xe8] sm:$0xff] }
 0x3f5   : > { %4480 = vmatprep.subr.bf16.mxu1 %v4479_v4  ;;  %v4503_v47 = vpack.c.bf16 %v3046_v55, %v3044_v54  ;;  %v4507_v4 = vpack.c.bf16 %v3050_v23, %v3048_v53  ;;  %v3080_v54 = vld [vmem:[#allocation13 + $0x1e8] sm:$0xff]  ;;  %v3082_v55 = vld [vmem:[#allocation13 + $0x1f8] sm:$0xff]  ;;  %v4541_v53 = vpack.c.bf16 %v3081_v58, %v3079_v57 }
 0x4c2   : > { %v4221_v29 = vpop.f32.mrb[0].mxu0  ;;  %v4232_v25 = vpop.f32.mrb[4].mxu1 }
 0x4c3   : > { %v2494_v35 = vadd.f32 %v4221_v29, %v2421_v22  ;;  %v2488_v1 = vpop.f32.mrb[1].mxu0  ;;  %v2563_v2 = vpop.f32.mrb[5].mxu1  ;;  %v2569_v6 = vadd.f32 %v4232_v25, %v2421_v22 }
 0x4c4   : > { %v2489_v5 = vadd.f32 %v2488_v1, %v2420_v36  ;;  %v2564_v8 = vadd.f32 %v2563_v2, %v2420_v36  ;;  %v3021_v1 = vld [vmem:[#allocation13 + $0x10] sm:$0xff] }
 0x4c5   : > { %v2576_v7 = vsel %vm2572_vm0, %v2494_v35, -inf  ;;  %v2582_v11 = vsel %vm2572_vm0, %v2569_v6, -inf }
 0x4c6   : > { %2577 = vmax.xlane.f32.xlu1 %v2576_v7  ;;  %v2573_v10 = vsel %vm2572_vm0, %v2489_v5, -inf  ;;  %v2579_v33 = vsel %vm2572_vm0, %v2564_v8, -inf }
 0x4c7   : > { %2574 = vmax.xlane.f32.xlu0 %v2573_v10 }
 0x4ca   : > { %2583 = vmax.xlane.f32.xlu1 %v2582_v11 }
 0x4cb   : > { %2580 = vmax.xlane.f32.xlu0 %v2579_v33  ;;  %v3023_v33 = vld [vmem:[#allocation13 + $0x20] sm:$0xff] }
 0x553   : > { %v2578_v12 = vpop.xlane.xlu1 %2577 }
 0x554   : > { %v2586_v13 = vsub.f32 %v2494_v35, %v2578_v12  ;;  %v2575_v14 = vpop.xlane.xlu0 %2574  ;;  %v3019_v35 = vld [vmem:[#allocation13] sm:$0xff]  ;;  %v3025_v12 = vld [vmem:[#allocation13 + $0x30] sm:$0xff] }
 0x555   : > { %v2585_v15 = vsub.f32 %v2489_v5, %v2575_v14  ;;  %v3024_v5 = vld [vmem:[#allocation13 + $0x28] sm:$0xff]  ;;  %v3030_v14 = vld [vmem:[#allocation13 + $0x58] sm:$0xff] }
 0x556   : > { %v2591_v16 = vmul.f32 1.442695, %v2586_v13  ;;  %v3028_v13 = vld [vmem:[#allocation13 + $0x48] sm:$0xff] }
 0x557   : > { %v2589_v17 = vmul.f32 1.442695, %v2585_v15  ;;  %v2584_v19 = vpop.xlane.xlu1 %2583  ;;  %v4485_v15 = vpack.c.bf16 %v3025_v12, %v3023_v33  ;;  %v3059_v33 = vld [vmem:[#allocation13 + $0x140] sm:$0xff]  ;;  %v3061_v12 = vld [vmem:[#allocation13 + $0x150] sm:$0xff] }
 0x558   : > { %v2588_v24 = vsub.f32 %v2569_v6, %v2584_v19  ;;  %v2581_v20 = vpop.xlane.xlu0 %2580  ;;  %v3026_v6 = vld [vmem:[#allocation13 + $0x38] sm:$0xff]  ;;  %v3029_v19 = vld [vmem:[#allocation13 + $0x50] sm:$0xff] }
 0x559   : > { %5008 = vpow2.f32 %v2589_v17  ;;  %v2587_v21 = vsub.f32 %v2564_v8, %v2581_v20  ;;  %v4481_v8 = vpack.c.bf16 %v3021_v1, %v3019_v35  ;;  %v4483_v11 = vpack.c.bf16 %v3026_v6, %v3024_v5  ;;  %v3027_v17 = vld [vmem:[#allocation13 + $0x40] sm:$0xff]  ;;  %v3034_v20 = vld [vmem:[#allocation13 + $0x78] sm:$0xff]  ;;  %v3057_v6 = vld [vmem:[#allocation13 + $0x130] sm:$0xff] }
 0x55a   : > { %5010 = vpow2.f32 %v2591_v16  ;;  %v2595_v18 = vmul.f32 1.442695, %v2588_v24  ;;  %v4487_v16 = vpack.c.bf16 %v3030_v14, %v3028_v13  ;;  %v3032_v24 = vld [vmem:[#allocation13 + $0x68] sm:$0xff]  ;;  %v3058_v35 = vld [vmem:[#allocation13 + $0x138] sm:$0xff]  ;;  %v3055_v5 = vld [vmem:[#allocation13 + $0x120] sm:$0xff]  ;;  %v4521_v13 = vpack.c.bf16 %v3061_v12, %v3059_v33 }
 0x55b   : > { %v2593_v28 = vmul.f32 1.442695, %v2587_v21  ;;  %v4489_v21 = vpack.c.bf16 %v3029_v19, %v3027_v17  ;;  %v3064_v14 = vld [vmem:[#allocation13 + $0x168] sm:$0xff]  ;;  %v3063_v17 = vld [vmem:[#allocation13 + $0x160] sm:$0xff]  ;;  %v3065_v19 = vld [vmem:[#allocation13 + $0x170] sm:$0xff] }
 0x55d   : > { %5012 = vpow2.f32 %v2593_v28  ;;  %v3031_v28 = vld [vmem:[#allocation13 + $0x60] sm:$0xff] }
 0x55e   : > { %5014 = vpow2.f32 %v2595_v18  ;;  %v4491_v18 = vpack.c.bf16 %v3034_v20, %v3032_v24  ;;  %v4525_v24 = vpack.c.bf16 %v3065_v19, %v3063_v17  ;;  %v3068_v20 = vld [vmem:[#allocation13 + $0x188] sm:$0xff] }
 0x563   : > { %v5009_v31 = vpop.eup %5008 }
 0x564   : > { %v2597_v34 = vsel %vm2572_vm0, %v5009_v31, 0.0  ;;  %v5011_v37 = vpop.eup %5010 }
 0x565   : > { %2598 = vadd.xlane.f32.xlu0 %v2597_v34  ;;  %v2600_v39 = vsel %vm2572_vm0, %v5011_v37, 0.0  ;;  %v3036_v34 = vld [vmem:[#allocation13 + $0x88] sm:$0xff] }
 0x567   : > { %v5013_v38 = vpop.eup %5012 }
 0x568   : > { %v2603_v40 = vsel %vm2572_vm0, %v5013_v38, 0.0  ;;  %v5015_v41 = vpop.eup %5014 }
 0x569   : > { %2601 = vadd.xlane.f32.xlu0 %v2600_v39  ;;  %2604 = vadd.xlane.f32.xlu1 %v2603_v40  ;;  %v2606_v42 = vsel %vm2572_vm0, %v5015_v41, 0.0  ;;  %v3035_v40 = vld [vmem:[#allocation13 + $0x80] sm:$0xff] }
 0x56d   : > { %2607 = vadd.xlane.f32.xlu1 %v2606_v42  ;;  %v3040_v42 = vld [vmem:[#allocation13 + $0xa8] sm:$0xff] }
 0x56e   : > { %v4499_v49 = vpack.c.bf16 %v3042_v43, %v3040_v42  ;;  %v3076_v43 = vld [vmem:[#allocation13 + $0x1c8] sm:$0xff] }
 0x5f2   : > { %v2599_v60 = vpop.xlane.xlu0 %2598 }
 0x5f3   : > { %5016 = vrcp.f32 %v2599_v60  ;;  %v3047_v60 = vld [vmem:[#allocation13 + $0xe0] sm:$0xff] }
 0x5f6   : > { %v2605_v62 = vpop.xlane.xlu1 %2604  ;;  %v2602_v63 = vpop.xlane.xlu0 %2601 }
 0x5f7   : > { %5018 = vrcp.f32 %v2605_v62  ;;  %v3049_v62 = vld [vmem:[#allocation13 + $0xf0] sm:$0xff] }
 0x5f8   : > { %5020 = vrcp.f32 %v2602_v63  ;;  %v3052_v63 = vld [vmem:[#allocation13 + $0x108] sm:$0xff] }
 0x5fa   : > { %v2608_v9 = vpop.xlane.xlu1 %2607 }
 0x5fb   : > { %5022 = vrcp.f32 %v2608_v9  ;;  %v3054_v9 = vld [vmem:[#allocation13 + $0x118] sm:$0xff] }
 0x5fd   : > { %v5017_v0 = vpop.eup %5016 }
 0x5fe   : > { %v2613_v22 = vmul.f32 %v5017_v0, %v5009_v31  ;;  %v3033_v31 = vld [vmem:[#allocation13 + $0x70] sm:$0xff]  ;;  %v4509_v0 = vpack.c.bf16 %v3049_v62, %v3047_v60 }
 0x600   : > { %4241 = vmatprep.mubr.msk.f32.mxu0 %vm2572_vm0, %v2613_v22  ;;  %v4511_v22 = vpack.c.bf16 %v3054_v9, %v3052_v63 }
 0x601   : > { %v5019_v36 = vpop.eup %5018 }
 0x602   : > { %v5021_v29 = vpop.eup %5020  ;;  %v2615_v25 = vmul.f32 %v5019_v36, %v5013_v38  ;;  %v4493_v38 = vpack.c.bf16 %v3033_v31, %v3031_v28  ;;  %v3051_v36 = vld [vmem:[#allocation13 + $0x100] sm:$0xff]  ;;  %v3069_v31 = vld [vmem:[#allocation13 + $0x190] sm:$0xff] }
 0x603   : > { %v2614_v2 = vmul.f32 %v5021_v29, %v5011_v37  ;;  %v3038_v37 = vld [vmem:[#allocation13 + $0x98] sm:$0xff]  ;;  %v3053_v29 = vld [vmem:[#allocation13 + $0x110] sm:$0xff]  ;;  %v3067_v28 = vld [vmem:[#allocation13 + $0x180] sm:$0xff] }
 0x604   : > { %4252 = vmatprep.mubr.msk.f32.mxu1 %vm2572_vm0, %v2615_v25  ;;  %v4495_v39 = vpack.c.bf16 %v3038_v37, %v3036_v34  ;;  %v3056_v25 = vld [vmem:[#allocation13 + $0x128] sm:$0xff]  ;;  %v4513_v1 = vpack.c.bf16 %v3053_v29, %v3051_v36  ;;  %v4529_v34 = vpack.c.bf16 %v3069_v31, %v3067_v28 }
 0x605   : > { %v5023_v7 = vpop.eup %5022  ;;  %4242 = vmatmul.mubr.msk.f32.vlgmr.msra.gmra.mrb[2].mxu0 %vm2572_vm0, %v2614_v2  ;;  %v4515_v2 = vpack.c.bf16 %v3058_v35, %v3056_v25  ;;  %v3072_v37 = vld [vmem:[#allocation13 + $0x1a8] sm:$0xff] }
 0x606   : > { %v2616_v10 = vmul.f32 %v5023_v7, %v5015_v41  ;;  %v3037_v41 = vld [vmem:[#allocation13 + $0x90] sm:$0xff]  ;;  %v4517_v7 = vpack.c.bf16 %v3057_v6, %v3055_v5 }
 0x607   : > { %v4497_v45 = vpack.c.bf16 %v3037_v41, %v3035_v40  ;;  %v3071_v40 = vld [vmem:[#allocation13 + $0x1a0] sm:$0xff]  ;;  %v3073_v41 = vld [vmem:[#allocation13 + $0x1b0] sm:$0xff] }
 0x608   : > { %4253 = vmatmul.mubr.msk.f32.vlgmr.msra.gmra.mrb[6].mxu1 %vm2572_vm0, %v2616_v10  ;;  %v3062_v10 = vld [vmem:[#allocation13 + $0x158] sm:$0xff]  ;;  %v4533_v42 = vpack.c.bf16 %v3073_v41, %v3071_v40 }
 0x609   : > { %4482 = vmatpush1.bf16.msra.mxu1 %v4481_v8  ;;  %v3060_v8 = vld [vmem:[#allocation13 + $0x148] sm:$0xff] }
 0x60a   : > { %4484 = vmatprep.subr.bf16.mxu1 %v4483_v11  ;;  %v4519_v11 = vpack.c.bf16 %v3062_v10, %v3060_v8 }
 0x60d   : > { %4486 = vmatpush1.bf16.msra.mxu1 %v4485_v15  ;;  %v3066_v15 = vld [vmem:[#allocation13 + $0x178] sm:$0xff] }
 0x60e   : > { %4488 = vmatprep.subr.bf16.mxu1 %v4487_v16  ;;  %v4523_v16 = vpack.c.bf16 %v3066_v15, %v3064_v14 }
 0x611   : > { %4490 = vmatpush1.bf16.msra.mxu1 %v4489_v21  ;;  %v3070_v21 = vld [vmem:[#allocation13 + $0x198] sm:$0xff] }
 0x612   : > { %4492 = vmatprep.subr.bf16.mxu1 %v4491_v18  ;;  %v4527_v18 = vpack.c.bf16 %v3070_v21, %v3068_v20 }
 0x615   : > { %4494 = vmatpush1.bf16.msra.mxu1 %v4493_v38  ;;  %v3074_v38 = vld [vmem:[#allocation13 + $0x1b8] sm:$0xff] }
 0x616   : > { %4496 = vmatprep.subr.bf16.mxu1 %v4495_v39  ;;  %v4531_v39 = vpack.c.bf16 %v3074_v38, %v3072_v37 }
 0x619   : > { %4498 = vmatpush1.bf16.msra.mxu1 %v4497_v45  ;;  %v3078_v45 = vld [vmem:[#allocation13 + $0x1d8] sm:$0xff] }
 0x61a   : > { %4500 = vmatprep.subr.bf16.mxu1 %v4499_v49  ;;  %v3075_v49 = vld [vmem:[#allocation13 + $0x1c0] sm:$0xff]  ;;  %v4535_v50 = vpack.c.bf16 %v3078_v45, %v3076_v43 }
 0x61d   : > { %4502 = vmatpush1.bf16.msra.mxu1 %v4501_v56  ;;  %v4537_v56 = vpack.c.bf16 %v3077_v52, %v3075_v49 }
 0x61e   : > { %4504 = vmatprep.subr.bf16.mxu1 %v4503_v47  ;;  %v4539_v47 = vpack.c.bf16 %v3082_v55, %v3080_v54 }
 0x621   : > { %4506 = vmatpush1.bf16.msra.mxu1 %v4505_v3 }
 0x622   : > { %4508 = vmatprep.subr.bf16.mxu1 %v4507_v4 }
 0x625   : > { %4510 = vmatpush1.bf16.msra.mxu1 %v4509_v0 }
 0x626   : > { %4512 = vmatprep.subr.bf16.mxu1 %v4511_v22 }
 0x629   : > { %4514 = vmatpush1.bf16.msra.mxu1 %v4513_v1 }
 0x62a   : > { %4516 = vmatprep.subr.bf16.mxu1 %v4515_v2 }
 0x62d   : > { %4518 = vmatpush1.bf16.msra.mxu1 %v4517_v7 }
 0x62e   : > { %4520 = vmatprep.subr.bf16.mxu1 %v4519_v11 }
 0x631   : > { %4522 = vmatpush1.bf16.msra.mxu1 %v4521_v13 }
 0x632   : > { %4524 = vmatprep.subr.bf16.mxu1 %v4523_v16 }
 0x635   : > { %4526 = vmatpush1.bf16.msra.mxu1 %v4525_v24 }
 0x636   : > { %4528 = vmatprep.subr.bf16.mxu1 %v4527_v18 }
 0x639   : > { %4530 = vmatpush1.bf16.msra.mxu1 %v4529_v34 }
 0x63a   : > { %4532 = vmatprep.subr.bf16.mxu1 %v4531_v39 }
 0x63d   : > { %4534 = vmatpush1.bf16.msra.mxu1 %v4533_v42 }
 0x63e   : > { %4536 = vmatprep.subr.bf16.mxu1 %v4535_v50 }
 0x641   : > { %4538 = vmatpush1.bf16.msra.mxu1 %v4537_v56 }
 0x642   : > { %4540 = vmatprep.subr.bf16.mxu1 %v4539_v47 }
 0x645   : > { %4542 = vmatpush1.bf16.msra.mxu1 %v4541_v53 }
 0x6d8   : > { %v4243_v23 = vpop.f32.mrb[2].mxu0 }
 0x6d9   : > { %v2697_v3 = vpop.f32.mrb[3].mxu0  ;;  %v2853_v4 = vcombine.high %v4243_v23, %v5449_v59  ;;  %v2860_v63 = vrot.slane %v4243_v23, %v6240_v48 }
 0x6da   : > { %v2787_v60 = vcombine.high %v2697_v3, %v5449_v59  ;;  %v2794_v36 = vrot.slane %v2697_v3, %v6240_v48 }
 0x6db   : > { %v4254_v62 = vpop.f32.mrb[6].mxu1  ;;  %v2867_v35 = vrot.slane %v2853_v4, %v6240_v48 }
 0x6dc   : > { %v2868_v9 = vcombine.high %v4254_v62, %v5449_v59  ;;  %v2875_v0 = vrot.slane %v4254_v62, %v6240_v48  ;;  %v2778_v22 = vpop.f32.mrb[7].mxu1  ;;  %v2801_v6 = vrot.slane %v2787_v60, %v6240_v48 }
 0x6dd   : > { %v2802_v29 = vcombine.high %v2778_v22, %v5449_v59  ;;  %v2809_v25 = vrot.slane %v2778_v22, %v6240_v48 }
 0x6de   : > { %v2882_v1 = vrot.slane %v2868_v9, %v6240_v48  ;;  %v2883_v2 = vcombine.low %v2860_v63, %v2875_v0  ;;  %v2884_v5 = vcombine.high %v2860_v63, %v2875_v0 }
 0x6df   : > { %v2816_v7 = vrot.slane %v2802_v29, %v6240_v48  ;;  %v2817_v8 = vcombine.low %v2794_v36, %v2809_v25  ;;  %v2818_v10 = vcombine.high %v2794_v36, %v2809_v25 }
 0x6e0   : > { %v2891_v11 = vrot.slane %v2883_v2, %v6245_v61  ;;  %v2898_v33 = vrot.slane %v2884_v5, %v6245_v61  ;;  %v2899_v12 = vcombine.low %v2867_v35, %v2882_v1  ;;  %v2900_v59 = vcombine.high %v2867_v35, %v2882_v1 }
 0x6e1   : > { %v2825_v13 = vrot.slane %v2817_v8, %v6245_v61  ;;  %v2832_v14 = vrot.slane %v2818_v10, %v6245_v61  ;;  %v2833_v15 = vcombine.low %v2801_v6, %v2816_v7  ;;  %v2834_v16 = vcombine.high %v2801_v6, %v2816_v7  ;;  %v3246_v10 = vld [vmem:[#allocation15 + $0x28] sm:$0xff] }
 0x6e2   : > { %v2907_v17 = vrot.slane %v2899_v12, %v6245_v61  ;;  %v2914_v19 = vrot.slane %v2900_v59, %v6245_v61  ;;  %v2969_v24 = vcombine.low %v2891_v11, %v2898_v33  ;;  %v4174_v20 = vcombine.high %v2891_v11, %v2898_v33  ;;  %v3244_v11 = vld [vmem:[#allocation15 + $0x18] sm:$0xff]  ;;  %v3241_v59 = vld [vmem:[#allocation15] sm:$0xff] }
 0x6e3   : > { %v2841_v21 = vrot.slane %v2833_v15, %v6245_v61  ;;  %v2848_v18 = vrot.slane %v2834_v16, %v6245_v61  ;;  %v2919_v28 = vcombine.low %v2825_v13, %v2832_v14  ;;  %v4172_v31 = vcombine.high %v2825_v13, %v2832_v14  ;;  %v3248_v12 = vld [vmem:[#allocation15 + $0x38] sm:$0xff]  ;;  %v3245_v13 = vld [vmem:[#allocation15 + $0x20] sm:$0xff]  ;;  %v3243_v16 = vld [vmem:[#allocation15 + $0x10] sm:$0xff] }
 0x6e4   : > { %v2976_v34 = vrot.slane %v2969_v24, %v6240_v48  ;;  %v2984_v37 = vrot.slane %v4174_v20, %v6240_v48  ;;  %v2985_v38 = vcombine.low %v2907_v17, %v2914_v19  ;;  %v4175_v39 = vcombine.high %v2907_v17, %v2914_v19  ;;  %v3250_v17 = vld [vmem:[#allocation15 + $0x48] sm:$0xff]  ;;  %v3252_v24 = vld [vmem:[#allocation15 + $0x58] sm:$0xff] }
 0x6e5   : > { %v2926_v40 = vrot.slane %v2919_v28, %v6240_v48  ;;  %v2934_v41 = vrot.slane %v4172_v31, %v6240_v48  ;;  %v2935_v42 = vcombine.low %v2841_v21, %v2848_v18  ;;  %v4173_v43 = vcombine.high %v2841_v21, %v2848_v18  ;;  %v3254_v19 = vld [vmem:[#allocation15 + $0x68] sm:$0xff]  ;;  %v3256_v20 = vld [vmem:[#allocation15 + $0x78] sm:$0xff]  ;;  %v3249_v28 = vld [vmem:[#allocation15 + $0x40] sm:$0xff] }
 0x6e6   : > { %v2992_v45 = vrot.slane %v2985_v38, %v6240_v48  ;;  %v3000_v49 = vrot.slane %v4175_v39, %v6240_v48  ;;  %v3001_v50 = vcombine.low %v2976_v34, %v2984_v37  ;;  %v4607_v14 = vpack.c.bf16 %v3248_v12, %v3244_v11  ;;  %v3253_v31 = vld [vmem:[#allocation15 + $0x60] sm:$0xff]  ;;  %v3251_v34 = vld [vmem:[#allocation15 + $0x50] sm:$0xff]  ;;  %v3258_v39 = vld [vmem:[#allocation15 + $0x88] sm:$0xff] }
 0x6e7   : > { %v2942_v52 = vrot.slane %v2935_v42, %v6240_v48  ;;  %v2950_v54 = vrot.slane %v4173_v43, %v6240_v48  ;;  %v2951_v55 = vcombine.low %v2926_v40, %v2934_v41  ;;  %v3083_v48 = vld [vmem:[%s6654_s1] sm:$0x3]  ;;  %v4545_v15 = vpack.c.bf16 %v3245_v13, %v3241_v59  ;;  %v3255_v38 = vld [vmem:[#allocation15 + $0x70] sm:$0xff]  ;;  %v3262_v40 = vld [vmem:[#allocation15 + $0xa8] sm:$0xff] }
 0x6e8   : > { %v3009_v56 = vcombine.low %v2992_v45, %v3000_v49  ;;  %v3008_v57 = vrot.slane %v3001_v50, %v6245_v61  ;;  %v3088_v63 = vrot.slane %v3083_v48, %v6229_v46  ;;  %v3092_v9 = vrot.slane %v3083_v48, %v6235_v51  ;;  %4608 = vmatprep.subr.bf16.mxu1 %v4607_v14  ;;  %v3260_v43 = vld [vmem:[#allocation15 + $0x98] sm:$0xff]  ;;  %v3257_v49 = vld [vmem:[#allocation15 + $0x80] sm:$0xff]  ;;  %v3267_v48 = vld [vmem:[#allocation15 + $0xd0] sm:$0xff] }
 0x6e9   : > { %v2959_v47 = vcombine.low %v2942_v52, %v2950_v54  ;;  %v2958_v53 = vrot.slane %v2951_v55, %v6245_v61  ;;  %v4547_v21 = vpack.c.bf16 %v3254_v19, %v3250_v17  ;;  %v4611_v18 = vpack.c.bf16 %v3256_v20, %v3252_v24  ;;  %v3264_v45 = vld [vmem:[#allocation15 + $0xb8] sm:$0xff]  ;;  %v3261_v52 = vld [vmem:[#allocation15 + $0xa0] sm:$0xff]  ;;  %v3259_v54 = vld [vmem:[#allocation15 + $0x90] sm:$0xff] }
 0x6ea   : > { %v3016_v58 = vrot.slane %v3009_v56, %v6245_v61  ;;  %v4549_v37 = vpack.c.bf16 %v3253_v31, %v3249_v28  ;;  %v4613_v41 = vpack.c.bf16 %v3255_v38, %v3251_v34  ;;  %v4551_v42 = vpack.c.bf16 %v3262_v40, %v3258_v39  ;;  %v3263_v55 = vld [vmem:[#allocation15 + $0xb0] sm:$0xff]  ;;  %v3286_v11 = vld [vmem:[#allocation15 + $0x168] sm:$0xff]  ;;  %v3288_v12 = vld [vmem:[#allocation15 + $0x178] sm:$0xff] }
 0x6eb   : > { %v2966_v23 = vrot.slane %v2959_v47, %v6245_v61  ;;  %v4615_v50 = vpack.c.bf16 %v3264_v45, %v3260_v43  ;;  %v4553_v56 = vpack.c.bf16 %v3261_v52, %v3257_v49  ;;  %v3266_v47 = vld [vmem:[#allocation15 + $0xc8] sm:$0xff]  ;;  %v3292_v20 = vld [vmem:[#allocation15 + $0x198] sm:$0xff]  ;;  %v3289_v34 = vld [vmem:[#allocation15 + $0x180] sm:$0xff] }
 0x6ec   : > { %v3018_v3 = vcombine.high %v3008_v57, %v3016_v58  ;;  %v3017_v4 = vcombine.low %v3008_v57, %v3016_v58  ;;  %v3270_v57 = vld [vmem:[#allocation15 + $0xe8] sm:$0xff]  ;;  %v3268_v58 = vld [vmem:[#allocation15 + $0xd8] sm:$0xff]  ;;  %v3291_v38 = vld [vmem:[#allocation15 + $0x190] sm:$0xff] }
 0x6ed   : > { %v2968_v60 = vcombine.high %v2958_v53, %v2966_v23  ;;  %v2967_v62 = vcombine.low %v2958_v53, %v2966_v23  ;;  %v4617_v53 = vpack.c.bf16 %v3263_v55, %v3259_v54  ;;  %v4555_v23 = vpack.c.bf16 %v3270_v57, %v3266_v47  ;;  %v3290_v19 = vld [vmem:[#allocation15 + $0x188] sm:$0xff]  ;;  %v3295_v40 = vld [vmem:[#allocation15 + $0x1b0] sm:$0xff]  ;;  %v3300_v43 = vld [vmem:[#allocation15 + $0x1d8] sm:$0xff] }
 0x6ee   : > { %v3294_v24 = vld [vmem:[#allocation15 + $0x1a8] sm:$0xff]  ;;  %v3304_v45 = vld [vmem:[#allocation15 + $0x1f8] sm:$0xff]  ;;  %v3297_v54 = vld [vmem:[#allocation15 + $0x1c0] sm:$0xff] }
 0x6ef   : > { %3159 = vmatprep.mubr.f32.mxu1 %v2968_v60  ;;  %v3269_v60 = vld [vmem:[#allocation15 + $0xe0] sm:$0xff]  ;;  %v4567_v31 = vpack.c.bf16 %v3294_v24, %v3290_v19  ;;  %v4635_v47 = vpack.c.bf16 %v3304_v45, %v3300_v43  ;;  %v3303_v57 = vld [vmem:[#allocation15 + $0x1f0] sm:$0xff] }
 0x6f0   : > { %3160 = vmatmul.mubr.f32.vlgmr.msra.gmra.mrb[8].mxu1 %v2967_v62  ;;  %v3301_v55 = vld [vmem:[#allocation15 + $0x1e0] sm:$0xff]  ;;  %v3323_v24 = vld [vmem:[#allocation15 + $0x290] sm:$0xff] }
 0x6f1   : > { %3165 = vmatprep.mubr.f32.mxu1 %v3018_v3  ;;  %v3272_v3 = vld [vmem:[#allocation15 + $0xf8] sm:$0xff] }
 0x6f2   : > { %v4619_v62 = vpack.c.bf16 %v3272_v3, %v3268_v58  ;;  %v3306_v58 = vld [vmem:[#allocation15 + $0x208] sm:$0xff]  ;;  %v3312_v3 = vld [vmem:[#allocation15 + $0x238] sm:$0xff] }
 0x6f4   : > { %3166 = vmatmul.mubr.f32.gmra.mrb[10].mxu1 %v3017_v4  ;;  %v3265_v4 = vld [vmem:[#allocation15 + $0xc0] sm:$0xff] }
 0x7c3   : > { %v3161_v0 = vpop.f32.mrb[8].mxu1 }
 0x7c4   : > { %v3162_v22 = vadd.f32 %v3161_v0, %v3088_v63  ;;  %v3163_v36 = vpop.f32.mrb[9].mxu1  ;;  %v3278_v0 = vld [vmem:[#allocation15 + $0x128] sm:$0xff] }
 0x7c5   : > { %v3164_v61 = vadd.f32 %v3163_v36, %v3092_v9  ;;  %v3280_v36 = vld [vmem:[#allocation15 + $0x138] sm:$0xff] }
 0x7c6   : > { %v6331_v29 = vadd.f32 %v3162_v22, %v6215_v26  ;;  %v3276_v22 = vld [vmem:[#allocation15 + $0x118] sm:$0xff] }
 0x7c7   : > { %v6334_v25 = vadd.f32 %v3164_v61, %v6211_v32  ;;  %v3167_v35 = vpop.f32.mrb[10].mxu1  ;;  %v3242_v32 = vld [vmem:[#allocation15 + $0x8] sm:$0xff]  ;;  %v4557_v61 = vpack.c.bf16 %v3269_v60, %v3265_v4  ;;  %v4573_v4 = vpack.c.bf16 %v3301_v55, %v3297_v54  ;;  %v3332_v54 = vld [vmem:[#allocation15 + $0x2d8] sm:$0xff] }
 0x7c8   : > { %v3168_v1 = vadd.f32 %v3167_v35, %v3088_v63  ;;  %v3169_v2 = vpop.f32.mrb[11].mxu1  ;;  %v4543_v33 = vpack.c.bf16 %v3246_v10, %v3242_v32  ;;  %v3271_v63 = vld [vmem:[#allocation15 + $0xf0] sm:$0xff]  ;;  %v3282_v10 = vld [vmem:[#allocation15 + $0x148] sm:$0xff] }
 0x7c9   : > { %v3170_v5 = vadd.f32 %v3169_v2, %v3092_v9  ;;  %v3178_v6 = vadd.f32 %v6334_v25, %v6331_v29  ;;  %v3274_v9 = vld [vmem:[#allocation15 + $0x108] sm:$0xff]  ;;  %v4621_v35 = vpack.c.bf16 %v3271_v63, %v3267_v48  ;;  %v3273_v2 = vld [vmem:[#allocation15 + $0x100] sm:$0xff]  ;;  %v3279_v32 = vld [vmem:[#allocation15 + $0x130] sm:$0xff]  ;;  %v4563_v14 = vpack.c.bf16 %v3286_v11, %v3282_v10 }
 0x7ca   : > { %v6339_v7 = vadd.f32 %v3168_v1, %v6223_v30  ;;  %v3247_v30 = vld [vmem:[#allocation15 + $0x30] sm:$0xff]  ;;  %4544 = vmatprep.subr.bf16.mxu0 %v4543_v33  ;;  %v4559_v1 = vpack.c.bf16 %v3278_v0, %v3274_v9  ;;  %v3284_v33 = vld [vmem:[#allocation15 + $0x158] sm:$0xff]  ;;  %v3305_v48 = vld [vmem:[#allocation15 + $0x200] sm:$0xff] }
 0x7cb   : > { %v6342_v8 = vadd.f32 %v3170_v5, %v6218_v27  ;;  %3179 = vadd.xlane.f32.xlu0 %v3178_v6  ;;  %v4609_v27 = vpack.c.bf16 %v3247_v30, %v3243_v16  ;;  %4546 = vmatpush1.bf16.msra.mxu0 %v4545_v15  ;;  %v3277_v5 = vld [vmem:[#allocation15 + $0x120] sm:$0xff]  ;;  %v3275_v6 = vld [vmem:[#allocation15 + $0x110] sm:$0xff]  ;;  %v4627_v17 = vpack.c.bf16 %v3288_v12, %v3284_v33  ;;  %v3322_v12 = vld [vmem:[#allocation15 + $0x288] sm:$0xff] }
 0x7cc   : > { %4548 = vmatprep.subr.bf16.mxu0 %v4547_v21  ;;  %v4561_v59 = vpack.c.bf16 %v3277_v5, %v3273_v2  ;;  %v4625_v13 = vpack.c.bf16 %v3279_v32, %v3275_v6  ;;  %v3281_v15 = vld [vmem:[#allocation15 + $0x140] sm:$0xff]  ;;  %v3283_v30 = vld [vmem:[#allocation15 + $0x150] sm:$0xff]  ;;  %v3296_v21 = vld [vmem:[#allocation15 + $0x1b8] sm:$0xff] }
 0x7cd   : > { %v3181_v26 = vadd.f32 %v6342_v8, %v6339_v7  ;;  %4610 = vmatpush1.bf16.msra.mxu1 %v4609_v27  ;;  %v3285_v16 = vld [vmem:[#allocation15 + $0x160] sm:$0xff]  ;;  %v3287_v27 = vld [vmem:[#allocation15 + $0x170] sm:$0xff]  ;;  %v4631_v39 = vpack.c.bf16 %v3296_v21, %v3292_v20 }
 0x7ce   : > { %4612 = vmatprep.subr.bf16.mxu1 %v4611_v18  ;;  %v4565_v18 = vpack.c.bf16 %v3285_v16, %v3281_v15  ;;  %v4629_v28 = vpack.c.bf16 %v3287_v27, %v3283_v30  ;;  %v3309_v63 = vld [vmem:[#allocation15 + $0x220] sm:$0xff]  ;;  %v3307_v9 = vld [vmem:[#allocation15 + $0x210] sm:$0xff] }
 0x7cf   : > { %3182 = vadd.xlane.f32.xlu1 %v3181_v26  ;;  %4550 = vmatpush1.bf16.msra.mxu0 %v4549_v37  ;;  %v4623_v26 = vpack.c.bf16 %v3280_v36, %v3276_v22  ;;  %v3293_v37 = vld [vmem:[#allocation15 + $0x1a0] sm:$0xff]  ;;  %v3311_v22 = vld [vmem:[#allocation15 + $0x230] sm:$0xff]  ;;  %v3314_v36 = vld [vmem:[#allocation15 + $0x248] sm:$0xff]  ;;  %v4577_v2 = vpack.c.bf16 %v3309_v63, %v3305_v48 }
 0x7d0   : > { %4552 = vmatprep.subr.bf16.mxu0 %v4551_v42  ;;  %v3302_v42 = vld [vmem:[#allocation15 + $0x1e8] sm:$0xff]  ;;  %v4569_v49 = vpack.c.bf16 %v3293_v37, %v3289_v34  ;;  %v4641_v5 = vpack.c.bf16 %v3311_v22, %v3307_v9  ;;  %v3317_v32 = vld [vmem:[#allocation15 + $0x260] sm:$0xff]  ;;  %v3315_v10 = vld [vmem:[#allocation15 + $0x250] sm:$0xff] }
 0x7d1   : > { %4614 = vmatpush1.bf16.msra.mxu1 %v4613_v41  ;;  %v3298_v41 = vld [vmem:[#allocation15 + $0x1c8] sm:$0xff]  ;;  %v3319_v33 = vld [vmem:[#allocation15 + $0x270] sm:$0xff]  ;;  %v3325_v27 = vld [vmem:[#allocation15 + $0x2a0] sm:$0xff] }
 0x7d2   : > { %4616 = vmatprep.subr.bf16.mxu1 %v4615_v50  ;;  %v4633_v50 = vpack.c.bf16 %v3295_v40, %v3291_v38  ;;  %v4571_v52 = vpack.c.bf16 %v3302_v42, %v3298_v41  ;;  %v4645_v16 = vpack.c.bf16 %v3319_v33, %v3315_v10  ;;  %v3327_v20 = vld [vmem:[#allocation15 + $0x2b0] sm:$0xff]  ;;  %v3344_v48 = vld [vmem:[#allocation15 + $0x338] sm:$0xff]  ;;  %v3337_v63 = vld [vmem:[#allocation15 + $0x300] sm:$0xff] }
 0x7d3   : > { %4554 = vmatpush1.bf16.msra.mxu0 %v4553_v56  ;;  %v3299_v56 = vld [vmem:[#allocation15 + $0x1d0] sm:$0xff]  ;;  %v3341_v9 = vld [vmem:[#allocation15 + $0x320] sm:$0xff] }
 0x7d4   : > { %4556 = vmatprep.subr.bf16.mxu0 %v4555_v23  ;;  %v3308_v23 = vld [vmem:[#allocation15 + $0x218] sm:$0xff]  ;;  %v4637_v60 = vpack.c.bf16 %v3303_v57, %v3299_v56  ;;  %v4593_v22 = vpack.c.bf16 %v3341_v9, %v3337_v63  ;;  %v3349_v10 = vld [vmem:[#allocation15 + $0x360] sm:$0xff] }
 0x7d5   : > { %4618 = vmatpush1.bf16.msra.mxu1 %v4617_v53  ;;  %v3310_v53 = vld [vmem:[#allocation15 + $0x228] sm:$0xff]  ;;  %v4639_v0 = vpack.c.bf16 %v3312_v3, %v3308_v23  ;;  %v3336_v56 = vld [vmem:[#allocation15 + $0x2f8] sm:$0xff] }
 0x7d6   : > { %4620 = vmatprep.subr.bf16.mxu1 %v4619_v62  ;;  %v4575_v62 = vpack.c.bf16 %v3310_v53, %v3306_v58  ;;  %v4651_v57 = vpack.c.bf16 %v3336_v56, %v3332_v54  ;;  %v3331_v58 = vld [vmem:[#allocation15 + $0x2d0] sm:$0xff]  ;;  %v3338_v3 = vld [vmem:[#allocation15 + $0x308] sm:$0xff]  ;;  %v3556_v56 = vld [vmem:[#allocation16 + $0x18] sm:$0xff] }
 0x7d7   : > { %4558 = vmatpush1.bf16.msra.mxu0 %v4557_v61  ;;  %v3318_v61 = vld [vmem:[#allocation15 + $0x268] sm:$0xff]  ;;  %v3335_v53 = vld [vmem:[#allocation15 + $0x2f0] sm:$0xff] }
 0x7d8   : > { %4560 = vmatprep.subr.bf16.mxu0 %v4559_v1  ;;  %v3320_v1 = vld [vmem:[#allocation15 + $0x278] sm:$0xff]  ;;  %v4579_v6 = vpack.c.bf16 %v3318_v61, %v3314_v36  ;;  %v4653_v23 = vpack.c.bf16 %v3335_v53, %v3331_v58  ;;  %v3339_v36 = vld [vmem:[#allocation15 + $0x310] sm:$0xff] }
 0x7d9   : > { %4622 = vmatpush1.bf16.msra.mxu1 %v4621_v35  ;;  %v3316_v35 = vld [vmem:[#allocation15 + $0x258] sm:$0xff]  ;;  %v3343_v61 = vld [vmem:[#allocation15 + $0x330] sm:$0xff] }
 0x7da   : > { %4624 = vmatprep.subr.bf16.mxu1 %v4623_v26  ;;  %v3313_v26 = vld [vmem:[#allocation15 + $0x240] sm:$0xff]  ;;  %v4643_v11 = vpack.c.bf16 %v3320_v1, %v3316_v35  ;;  %v4657_v35 = vpack.c.bf16 %v3343_v61, %v3339_v36  ;;  %v3346_v1 = vld [vmem:[#allocation15 + $0x348] sm:$0xff]  ;;  %v3555_v61 = vld [vmem:[#allocation16 + $0x10] sm:$0xff] }
 0x7db   : > { %4562 = vmatpush1.bf16.msra.mxu0 %v4561_v59  ;;  %v3326_v59 = vld [vmem:[#allocation15 + $0x2a8] sm:$0xff]  ;;  %v4581_v15 = vpack.c.bf16 %v3317_v32, %v3313_v26  ;;  %v3352_v26 = vld [vmem:[#allocation15 + $0x378] sm:$0xff]  ;;  %v3345_v32 = vld [vmem:[#allocation15 + $0x340] sm:$0xff] }
 0x7dc   : > { %4564 = vmatprep.subr.bf16.mxu0 %v4563_v14  ;;  %v3328_v14 = vld [vmem:[#allocation15 + $0x2b8] sm:$0xff]  ;;  %v4583_v30 = vpack.c.bf16 %v3326_v59, %v3322_v12  ;;  %v4597_v33 = vpack.c.bf16 %v3349_v10, %v3345_v32  ;;  %v3347_v12 = vld [vmem:[#allocation15 + $0x350] sm:$0xff]  ;;  %v3553_v36 = vld [vmem:[#allocation16] sm:$0xff] }
 0x7dd   : > { %4626 = vmatpush1.bf16.msra.mxu1 %v4625_v13  ;;  %v3324_v13 = vld [vmem:[#allocation15 + $0x298] sm:$0xff]  ;;  %v3351_v59 = vld [vmem:[#allocation15 + $0x370] sm:$0xff] }
 0x7de   : > { %4628 = vmatprep.subr.bf16.mxu1 %v4627_v17  ;;  %v3321_v17 = vld [vmem:[#allocation15 + $0x280] sm:$0xff]  ;;  %v4647_v19 = vpack.c.bf16 %v3328_v14, %v3324_v13  ;;  %v3354_v13 = vld [vmem:[#allocation15 + $0x388] sm:$0xff]  ;;  %v4661_v14 = vpack.c.bf16 %v3351_v59, %v3347_v12  ;;  %v3559_v59 = vld [vmem:[#allocation16 + $0x30] sm:$0xff] }
 0x7df   : > { %4566 = vmatpush1.bf16.msra.mxu0 %v4565_v18  ;;  %v4585_v21 = vpack.c.bf16 %v3325_v27, %v3321_v17  ;;  %v4649_v18 = vpack.c.bf16 %v3327_v20, %v3323_v24  ;;  %v3357_v24 = vld [vmem:[#allocation15 + $0x3a0] sm:$0xff]  ;;  %v3355_v20 = vld [vmem:[#allocation15 + $0x390] sm:$0xff] }
 0x7e0   : > { %4568 = vmatprep.subr.bf16.mxu0 %v4567_v31  ;;  %v3557_v12 = vld [vmem:[#allocation16 + $0x20] sm:$0xff] }
 0x7e1   : > { %4630 = vmatpush1.bf16.msra.mxu1 %v4629_v28 }
 0x7e2   : > { %4632 = vmatprep.subr.bf16.mxu1 %v4631_v39 }
 0x7e3   : > { %4570 = vmatpush1.bf16.msra.mxu0 %v4569_v49 }
 0x7e4   : > { %4572 = vmatprep.subr.bf16.mxu0 %v4571_v52  ;;  %v3334_v52 = vld [vmem:[#allocation15 + $0x2e8] sm:$0xff] }
 0x7e5   : > { %4634 = vmatpush1.bf16.msra.mxu1 %v4633_v50  ;;  %v3330_v50 = vld [vmem:[#allocation15 + $0x2c8] sm:$0xff] }
 0x7e6   : > { %4636 = vmatprep.subr.bf16.mxu1 %v4635_v47  ;;  %v4587_v55 = vpack.c.bf16 %v3334_v52, %v3330_v50  ;;  %v3333_v47 = vld [vmem:[#allocation15 + $0x2e0] sm:$0xff]  ;;  %v3367_v50 = vld [vmem:[#allocation15 + $0x3f0] sm:$0xff] }
 0x7e7   : > { %4574 = vmatpush1.bf16.msra.mxu0 %v4573_v4  ;;  %v3342_v4 = vld [vmem:[#allocation15 + $0x328] sm:$0xff] }
 0x7e8   : > { %4576 = vmatprep.subr.bf16.mxu0 %v4575_v62  ;;  %v4591_v62 = vpack.c.bf16 %v3342_v4, %v3338_v3  ;;  %v3176_v3 = vld [vmem:[%s6655_s28] sm:$0x3] }
 0x7e9   : > { %4638 = vmatpush1.bf16.msra.mxu1 %v4637_v60  ;;  %v3340_v60 = vld [vmem:[#allocation15 + $0x318] sm:$0xff]  ;;  %v3177_v4 = vld [vmem:[%s6656_s12] sm:$0x3]  ;;  %s4179_s12 = sshll.u32 %s6660_s6, 3 }
 0x7ea   : > { %4640 = vmatprep.subr.bf16.mxu1 %v4639_v0  ;;  %v4655_v0 = vpack.c.bf16 %v3344_v48, %v3340_v60  ;;  %v3215_v60 = vrot.slane %v3176_v3, %v6229_v46  ;;  %v3230_v9 = vrot.slane %v3177_v4, %v6229_v46  ;;  %s3933_s5 = sadd.s32 %s4186_s2, %s4179_s12 }
 0x7eb   : > { %4578 = vmatpush1.bf16.msra.mxu0 %v4577_v2  ;;  %v3350_v2 = vld [vmem:[#allocation15 + $0x368] sm:$0xff]  ;;  %s4180_s23 = sshll.u32 %s3933_s5, 7 }
 0x7ec   : > { %4580 = vmatprep.subr.bf16.mxu0 %v4579_v6  ;;  %v4595_v6 = vpack.c.bf16 %v3350_v2, %v3346_v1  ;;  %v3558_v2 = vld [vmem:[#allocation16 + $0x28] sm:$0xff] }
 0x7ed   : > { %4642 = vmatpush1.bf16.msra.mxu1 %v4641_v5  ;;  %v3348_v5 = vld [vmem:[#allocation15 + $0x358] sm:$0xff] }
 0x7ee   : > { %4644 = vmatprep.subr.bf16.mxu1 %v4643_v11  ;;  %v4659_v11 = vpack.c.bf16 %v3352_v26, %v3348_v5  ;;  %v3560_v5 = vld [vmem:[#allocation16 + $0x38] sm:$0xff]  ;;  %v4673_v26 = vpack.c.bf16 %v3555_v61, %v3553_v36  ;;  %v3590_v36 = vld [vmem:[#allocation16 + $0x128] sm:$0xff] }
 0x7ef   : > { %4582 = vmatpush1.bf16.msra.mxu0 %v4581_v15  ;;  %v3358_v15 = vld [vmem:[#allocation15 + $0x3a8] sm:$0xff]  ;;  %v3592_v61 = vld [vmem:[#allocation16 + $0x138] sm:$0xff] }
 0x7f0   : > { %4584 = vmatprep.subr.bf16.mxu0 %v4583_v30  ;;  %v3360_v30 = vld [vmem:[#allocation15 + $0x3b8] sm:$0xff]  ;;  %v4599_v17 = vpack.c.bf16 %v3358_v15, %v3354_v13 }
 0x7f1   : > { %4646 = vmatpush1.bf16.msra.mxu1 %v4645_v16  ;;  %v3356_v16 = vld [vmem:[#allocation15 + $0x398] sm:$0xff] }
 0x7f2   : > { %4648 = vmatprep.subr.bf16.mxu1 %v4647_v19  ;;  %v4663_v27 = vpack.c.bf16 %v3360_v30, %v3356_v16  ;;  %v3353_v19 = vld [vmem:[#allocation15 + $0x380] sm:$0xff]  ;;  %v3564_v15 = vld [vmem:[#allocation16 + $0x58] sm:$0xff] }
 0x7f3   : > { %4586 = vmatpush1.bf16.msra.mxu0 %v4585_v21  ;;  %v4601_v21 = vpack.c.bf16 %v3357_v24, %v3353_v19  ;;  %v3566_v19 = vld [vmem:[#allocation16 + $0x68] sm:$0xff]  ;;  %v3568_v24 = vld [vmem:[#allocation16 + $0x78] sm:$0xff] }
 0x7f4   : > { %4588 = vmatprep.subr.bf16.mxu0 %v4587_v55  ;;  %v3554_v55 = vld [vmem:[#allocation16 + $0x8] sm:$0xff] }
 0x7f5   : > { %4650 = vmatpush1.bf16.msra.mxu1 %v4649_v18  ;;  %v3359_v18 = vld [vmem:[#allocation15 + $0x3b0] sm:$0xff] }
 0x7f6   : > { %4652 = vmatprep.subr.bf16.mxu1 %v4651_v57 }
 0x7f9   : > { %4654 = vmatpush1.bf16.msra.mxu1 %v4653_v23 }
 0x7fa   : > { %4656 = vmatprep.subr.bf16.mxu1 %v4655_v0  ;;  %v3234_v0 = vrot.slane %v3177_v4, %v6235_v51  ;;  %v3581_v4 = vld [vmem:[#allocation16 + $0xe0] sm:$0xff] }
 0x7fd   : > { %4658 = vmatpush1.bf16.msra.mxu1 %v4657_v35 }
 0x7fe   : > { %4660 = vmatprep.subr.bf16.mxu1 %v4659_v11 }
 0x801   : > { %4662 = vmatpush1.bf16.msra.mxu1 %v4661_v14  ;;  %v3562_v14 = vld [vmem:[#allocation16 + $0x48] sm:$0xff] }
 0x802   : > { %4664 = vmatprep.subr.bf16.mxu1 %v4663_v27  ;;  %v4679_v30 = vpack.c.bf16 %v3564_v15, %v3562_v14  ;;  %v3563_v27 = vld [vmem:[#allocation16 + $0x50] sm:$0xff]  ;;  %v3597_v15 = vld [vmem:[#allocation16 + $0x160] sm:$0xff] }
 0x858   : > { %v3180_v28 = vpop.xlane.xlu0 %3179 }
 0x859   : > { %v3185_v31 = vmul.f32 0.00390625, %v3180_v28  ;;  %v3362_v28 = vld [vmem:[#allocation15 + $0x3c8] sm:$0xff] }
 0x85b   : > { %v6347_v34 = vsub.f32 %v6331_v29, %v3185_v31  ;;  %v6350_v37 = vsub.f32 %v6334_v25, %v3185_v31  ;;  %v3366_v31 = vld [vmem:[#allocation15 + $0x3e8] sm:$0xff] }
 0x85c   : > { %v3183_v38 = vpop.xlane.xlu1 %3182 }
 0x85d   : > { %v3186_v39 = vmul.f32 0.00390625, %v3183_v38  ;;  %v3191_v40 = vmul.f32 %v6347_v34, %v6347_v34  ;;  %v3192_v41 = vmul.f32 %v6350_v37, %v6350_v37  ;;  %v4665_v38 = vpack.c.bf16 %v3359_v18, %v3355_v20  ;;  %v3565_v18 = vld [vmem:[#allocation16 + $0x60] sm:$0xff] }
 0x85f   : > { %v6357_v42 = vsub.f32 %v6339_v7, %v3186_v39  ;;  %v6360_v43 = vsub.f32 %v6342_v8, %v3186_v39  ;;  %v3195_v45 = vadd.f32 %v3192_v41, %v3191_v40  ;;  %v3329_v7 = vld [vmem:[#allocation15 + $0x2c0] sm:$0xff]  ;;  %v4603_v39 = vpack.c.bf16 %v3366_v31, %v3362_v28  ;;  %v3364_v40 = vld [vmem:[#allocation15 + $0x3d8] sm:$0xff]  ;;  %4666 = vmatpush1.bf16.msra.mxu1 %v4665_v38  ;;  %v3567_v28 = vld [vmem:[#allocation16 + $0x70] sm:$0xff] }
 0x860   : > { %v4589_v8 = vpack.c.bf16 %v3333_v47, %v3329_v7  ;;  %v3368_v41 = vld [vmem:[#allocation15 + $0x3f8] sm:$0xff]  ;;  %v4671_v7 = vpack.c.bf16 %v3556_v56, %v3554_v55  ;;  %v3570_v31 = vld [vmem:[#allocation16 + $0x88] sm:$0xff] }
 0x861   : > { %3196 = vadd.xlane.f32.xlu0 %v3195_v45  ;;  %v3193_v29 = vmul.f32 %v6357_v42, %v6357_v42  ;;  %v3194_v25 = vmul.f32 %v6360_v43, %v6360_v43  ;;  %v3361_v45 = vld [vmem:[#allocation15 + $0x3c0] sm:$0xff]  ;;  %v3572_v38 = vld [vmem:[#allocation16 + $0x98] sm:$0xff]  ;;  %v3578_v55 = vld [vmem:[#allocation16 + $0xc8] sm:$0xff] }
 0x862   : > { %4590 = vmatpush1.bf16.msra.mxu0 %v4589_v8  ;;  %v3580_v56 = vld [vmem:[#allocation16 + $0xd8] sm:$0xff] }
 0x863   : > { %v3198_v49 = vadd.f32 %v3194_v25, %v3193_v29  ;;  %4592 = vmatprep.subr.bf16.mxu0 %v4591_v62  ;;  %v4667_v29 = vpack.c.bf16 %v3368_v41, %v3364_v40  ;;  %v3365_v25 = vld [vmem:[#allocation15 + $0x3e0] sm:$0xff]  ;;  %v3219_v62 = vrot.slane %v3176_v3, %v6235_v51  ;;  %v4687_v40 = vpack.c.bf16 %v3572_v38, %v3570_v31 }
 0x864   : > { %v4605_v52 = vpack.c.bf16 %v3365_v25, %v3361_v45  ;;  %v3569_v41 = vld [vmem:[#allocation16 + $0x80] sm:$0xff]  ;;  %v3571_v45 = vld [vmem:[#allocation16 + $0x90] sm:$0xff]  ;;  %v3576_v25 = vld [vmem:[#allocation16 + $0xb8] sm:$0xff] }
 0x865   : > { %3199 = vadd.xlane.f32.xlu1 %v3198_v49  ;;  %v3363_v49 = vld [vmem:[#allocation15 + $0x3d0] sm:$0xff]  ;;  %4668 = vmatprep.subr.bf16.mxu1 %v4667_v29  ;;  %v3574_v29 = vld [vmem:[#allocation16 + $0xa8] sm:$0xff]  ;;  %v3605_v38 = vld [vmem:[#allocation16 + $0x1a0] sm:$0xff] }
 0x866   : > { %4594 = vmatpush1.bf16.msra.mxu0 %v4593_v22  ;;  %v4669_v54 = vpack.c.bf16 %v3367_v50, %v3363_v49  ;;  %v4689_v49 = vpack.c.bf16 %v3571_v45, %v3569_v41  ;;  %v4691_v50 = vpack.c.bf16 %v3576_v25, %v3574_v29  ;;  %v3612_v41 = vld [vmem:[#allocation16 + $0x1d8] sm:$0xff]  ;;  %v3609_v25 = vld [vmem:[#allocation16 + $0x1c0] sm:$0xff] }
 0x867   : > { %4596 = vmatprep.subr.bf16.mxu0 %v4595_v6 }
 0x868   : > { %4670 = vmatpush1.bf16.msra.mxu1 %v4669_v54  ;;  %v3575_v54 = vld [vmem:[#allocation16 + $0xb0] sm:$0xff] }
 0x86a   : > { %4598 = vmatpush1.bf16.msra.mxu0 %v4597_v33  ;;  %v4675_v33 = vpack.c.bf16 %v3560_v5, %v3558_v2  ;;  %v3589_v2 = vld [vmem:[#allocation16 + $0x120] sm:$0xff]  ;;  %v3591_v5 = vld [vmem:[#allocation16 + $0x130] sm:$0xff] }
 0x86b   : > { %4600 = vmatprep.subr.bf16.mxu0 %v4599_v17  ;;  %v3561_v17 = vld [vmem:[#allocation16 + $0x40] sm:$0xff] }
 0x86c   : > { %v4681_v20 = vpack.c.bf16 %v3563_v27, %v3561_v17  ;;  %v3604_v17 = vld [vmem:[#allocation16 + $0x198] sm:$0xff] }
 0x86e   : > { %4602 = vmatpush1.bf16.msra.mxu0 %v4601_v21  ;;  %v4683_v21 = vpack.c.bf16 %v3568_v24, %v3566_v19  ;;  %v3601_v24 = vld [vmem:[#allocation16 + $0x180] sm:$0xff] }
 0x86f   : > { %4604 = vmatprep.subr.bf16.mxu0 %v4603_v39  ;;  %v4685_v39 = vpack.c.bf16 %v3567_v28, %v3565_v18  ;;  %v3608_v18 = vld [vmem:[#allocation16 + $0x1b8] sm:$0xff] }
 0x872   : > { %4606 = vmatpush1.bf16.msra.mxu0 %v4605_v52  ;;  %v3573_v52 = vld [vmem:[#allocation16 + $0xa0] sm:$0xff] }
 0x873   : > { %4672 = vmatprep.subr.bf16.mxu0 %v4671_v7  ;;  %v4693_v7 = vpack.c.bf16 %v3575_v54, %v3573_v52  ;;  %v3614_v52 = vld [vmem:[#allocation16 + $0x1e8] sm:$0xff]  ;;  %v3616_v54 = vld [vmem:[#allocation16 + $0x1f8] sm:$0xff] }
 0x8ee   : > { %v3197_v47 = vpop.xlane.xlu0 %3196 }
 0x8ef   : > { %v3201_v57 = vmul.f32 0.00390625, %v3197_v47  ;;  %v4695_v47 = vpack.c.bf16 %v3580_v56, %v3578_v55  ;;  %v4731_v55 = vpack.c.bf16 %v3616_v54, %v3614_v52  ;;  %v3613_v56 = vld [vmem:[#allocation16 + $0x1e0] sm:$0xff]  ;;  %v3635_v52 = vld [vmem:[#allocation16 + $0x290] sm:$0xff]  ;;  %v3638_v54 = vld [vmem:[#allocation16 + $0x2a8] sm:$0xff] }
 0x8f1   : > { %v3203_v8 = vadd.f32 1e-05, %v3201_v57  ;;  %v3577_v57 = vld [vmem:[#allocation16 + $0xc0] sm:$0xff] }
 0x8f2   : > { %v3200_v58 = vpop.xlane.xlu1 %3199 }
 0x8f3   : > { %5024 = vrsqrt.f32 %v3203_v8  ;;  %v3202_v53 = vmul.f32 0.00390625, %v3200_v58  ;;  %v3579_v8 = vld [vmem:[#allocation16 + $0xd0] sm:$0xff]  ;;  %v3582_v58 = vld [vmem:[#allocation16 + $0xe8] sm:$0xff] }
 0x8f5   : > { %v3204_v23 = vadd.f32 1e-05, %v3202_v53  ;;  %v3584_v53 = vld [vmem:[#allocation16 + $0xf8] sm:$0xff] }
 0x8f6   : > { %v4699_v3 = vpack.c.bf16 %v3584_v53, %v3582_v58  ;;  %v6399_v53 = vld [vmem:[%s6657_s16] sm:$0xf]  ;;  %s3936_s16 = sshll.u32 %s6019_s27, 4  ;;  %s6451_s16 = int_to_ptr.vmem [resolvable:$true] %s3936_s16 }
 0x8f7   : > { %5026 = vrsqrt.f32 %v3204_v23  ;;  %v4697_v23 = vpack.c.bf16 %v3579_v8, %v3577_v57  ;;  %v3618_v57 = vld [vmem:[#allocation16 + $0x208] sm:$0xff]  ;;  %v3620_v8 = vld [vmem:[#allocation16 + $0x218] sm:$0xff]  ;;  %s5262_s1 = scalar_lea.vmem %s6451_s16, 512 }
 0x8f8   : > { %v4735_v58 = vpack.c.bf16 %v3620_v8, %v3618_v57  ;;  %v3639_v57 = vld [vmem:[#allocation16 + $0x2b0] sm:$0xff]  ;;  %v3642_v8 = vld [vmem:[#allocation16 + $0x2c8] sm:$0xff]  ;;  %p5263_p2 = scmp.ne.s32.totalorder %s6451_s16, %s5262_s1 }
 0x8fa   : > { %p5264_p13 = pnand %p5263_p2, %p6665_p4 }
 0x8fc   : > { %p5265_p7 = pneg %p5264_p13 }
 0x8fd   : > { %v5025_v48 = vpop.eup %5024 }
 0x8fe   : > { %v3208_v63 = vmul.f32 %v5025_v48, %v6350_v37  ;;  %v3207_v22 = vmul.f32 %v5025_v48, %v6347_v34  ;;  %v3588_v48 = vld [vmem:[#allocation16 + $0x118] sm:$0xff] }
 0x900   : > { %v3223_v35 = vmul.f32 %v3219_v62, %v3208_v63  ;;  %v3222_v1 = vmul.f32 %v3215_v60, %v3207_v22  ;;  %v3587_v22 = vld [vmem:[#allocation16 + $0x110] sm:$0xff] }
 0x901   : > { %v5027_v6 = vpop.eup %5026 }
 0x902   : > { %v6378_v32 = vadd.f32 %v3234_v0, %v3223_v35  ;;  %v6380_v10 = vadd.f32 %v3230_v9, %v3222_v1  ;;  %v3210_v37 = vmul.f32 %v5027_v6, %v6360_v43  ;;  %v3209_v11 = vmul.f32 %v5027_v6, %v6357_v42  ;;  %v3594_v6 = vld [vmem:[#allocation16 + $0x148] sm:$0xff] }
 0x903   : > { %v4677_v42 = vpack.c.bf16 %v3559_v59, %v3557_v12  ;;  %v4707_v1 = vpack.c.bf16 %v3592_v61, %v3590_v36  ;;  %v3595_v12 = vld [vmem:[#allocation16 + $0x150] sm:$0xff]  ;;  %v3598_v59 = vld [vmem:[#allocation16 + $0x168] sm:$0xff] }
 0x904   : > { %3455 = vmatprep.mubr.f32.mxu0 %v6378_v32  ;;  %3532 = vmatprep.mubr.f32.mxu1 %v6378_v32  ;;  %v3225_v34 = vmul.f32 %v3219_v62, %v3210_v37  ;;  %v3224_v13 = vmul.f32 %v3215_v60, %v3209_v11  ;;  %v3583_v60 = vld [vmem:[#allocation16 + $0xf0] sm:$0xff]  ;;  %v3586_v62 = vld [vmem:[#allocation16 + $0x108] sm:$0xff]  ;;  %v4709_v37 = vpack.c.bf16 %v3591_v5, %v3589_v2 }
 0x905   : > { %3456 = vmatmul.mubr.f32.vlgmr.msra.gmra.mrb[4].mxu0 %v6380_v10  ;;  %3533 = vmatmul.mubr.f32.vlgmr.msra.gmra.mrb[12].mxu1 %v6380_v10  ;;  %v4701_v63 = vpack.c.bf16 %v3583_v60, %v3581_v4  ;;  %v3385_v4 = vsub.s32 3, %v6226_v44 }
 0x906   : > { %v6388_v16 = vadd.f32 %v3234_v0, %v3225_v34  ;;  %v6390_v43 = vadd.f32 %v3230_v9, %v3224_v13  ;;  %4674 = vmatpush1.bf16.msra.mxu0 %v4673_v26  ;;  %v4703_v9 = vpack.c.bf16 %v3588_v48, %v3586_v62  ;;  %v3585_v0 = vld [vmem:[#allocation16 + $0x100] sm:$0xff]  ;;  %v3596_v26 = vld [vmem:[#allocation16 + $0x158] sm:$0xff] }
 0x907   : > { %4676 = vmatprep.subr.bf16.mxu0 %v4675_v33  ;;  %v4705_v35 = vpack.c.bf16 %v3587_v22, %v3585_v0  ;;  %v4711_v11 = vpack.c.bf16 %v3596_v26, %v3594_v6  ;;  %v3593_v33 = vld [vmem:[#allocation16 + $0x140] sm:$0xff]  ;;  %v3600_v34 = vld [vmem:[#allocation16 + $0x178] sm:$0xff]  ;;  %v3619_v22 = vld [vmem:[#allocation16 + $0x210] sm:$0xff]  ;;  %v6409_v61 = vrot.slane %v6399_v53, %v3385_v4 }
 0x908   : > { %3461 = vmatprep.mubr.f32.mxu0 %v6388_v16  ;;  %3538 = vmatprep.mubr.f32.mxu1 %v6388_v16  ;;  %v4713_v13 = vpack.c.bf16 %v3595_v12, %v3593_v33  ;;  %v4715_v14 = vpack.c.bf16 %v3600_v34, %v3598_v59  ;;  %v3617_v0 = vld [vmem:[#allocation16 + $0x200] sm:$0xff] }
 0x909   : > { %3462 = vmatmul.mubr.f32.gmra.mrb[6].mxu0 %v6390_v43  ;;  %3539 = vmatmul.mubr.f32.gmra.mrb[14].mxu1 %v6390_v43  ;;  %v4737_v26 = vpack.c.bf16 %v3619_v22, %v3617_v0  ;;  %v3621_v34 = vld [vmem:[#allocation16 + $0x220] sm:$0xff] }
 0x90a   : > { %4678 = vmatpush1.bf16.msra.mxu0 %v4677_v42  ;;  %v3599_v42 = vld [vmem:[#allocation16 + $0x170] sm:$0xff]  ;;  %v3641_v4 = vld [vmem:[#allocation16 + $0x2c0] sm:$0xff] }
 0x90b   : > { %4680 = vmatprep.subr.bf16.mxu0 %v4679_v30  ;;  %v3602_v30 = vld [vmem:[#allocation16 + $0x188] sm:$0xff]  ;;  %v4717_v27 = vpack.c.bf16 %v3599_v42, %v3597_v15  ;;  %v3645_v22 = vld [vmem:[#allocation16 + $0x2e0] sm:$0xff] }
 0x90c   : > { %v4719_v19 = vpack.c.bf16 %v3604_v17, %v3602_v30  ;;  %v3626_v42 = vld [vmem:[#allocation16 + $0x248] sm:$0xff]  ;;  %v3628_v30 = vld [vmem:[#allocation16 + $0x258] sm:$0xff] }
 0x90e   : > { %4682 = vmatpush1.bf16.msra.mxu0 %v4681_v20  ;;  %v3603_v20 = vld [vmem:[#allocation16 + $0x190] sm:$0xff] }
 0x90f   : > { %4684 = vmatprep.subr.bf16.mxu0 %v4683_v21  ;;  %v3606_v21 = vld [vmem:[#allocation16 + $0x1a8] sm:$0xff]  ;;  %v4721_v28 = vpack.c.bf16 %v3603_v20, %v3601_v24  ;;  %v4743_v24 = vpack.c.bf16 %v3628_v30, %v3626_v42  ;;  %v3625_v20 = vld [vmem:[#allocation16 + $0x240] sm:$0xff]  ;;  %v3660_v42 = vld [vmem:[#allocation16 + $0x358] sm:$0xff] }
 0x910   : > { %v4723_v31 = vpack.c.bf16 %v3608_v18, %v3606_v21  ;;  %v3627_v21 = vld [vmem:[#allocation16 + $0x250] sm:$0xff] }
 0x912   : > { %4686 = vmatpush1.bf16.msra.mxu0 %v4685_v39  ;;  %v3607_v39 = vld [vmem:[#allocation16 + $0x1b0] sm:$0xff] }
 0x913   : > { %4688 = vmatprep.subr.bf16.mxu0 %v4687_v40  ;;  %v3610_v40 = vld [vmem:[#allocation16 + $0x1c8] sm:$0xff]  ;;  %v4725_v45 = vpack.c.bf16 %v3607_v39, %v3605_v38  ;;  %v4745_v38 = vpack.c.bf16 %v3627_v21, %v3625_v20  ;;  %v3664_v20 = vld [vmem:[#allocation16 + $0x378] sm:$0xff] }
 0x914   : > { %v4727_v29 = vpack.c.bf16 %v3612_v41, %v3610_v40  ;;  %v3629_v40 = vld [vmem:[#allocation16 + $0x260] sm:$0xff]  ;;  %v3631_v41 = vld [vmem:[#allocation16 + $0x270] sm:$0xff] }
 0x916   : > { %4690 = vmatpush1.bf16.msra.mxu0 %v4689_v49  ;;  %v3611_v49 = vld [vmem:[#allocation16 + $0x1d0] sm:$0xff] }
 0x917   : > { %4692 = vmatprep.subr.bf16.mxu0 %v4691_v50  ;;  %v4729_v50 = vpack.c.bf16 %v3611_v49, %v3609_v25  ;;  %v4749_v25 = vpack.c.bf16 %v3631_v41, %v3629_v40 }
 0x91a   : > { %4694 = vmatpush1.bf16.msra.mxu0 %v4693_v7  ;;  %v3615_v7 = vld [vmem:[#allocation16 + $0x1f0] sm:$0xff] }
 0x91b   : > { %4696 = vmatprep.subr.bf16.mxu0 %v4695_v47  ;;  %v4733_v47 = vpack.c.bf16 %v3615_v7, %v3613_v56 }
 0x91e   : > { %4698 = vmatpush1.bf16.msra.mxu0 %v4697_v23  ;;  %v3374_v23 = vrot.slane %v6399_v53, %v6229_v46 }
 0x91f   : > { %4700 = vmatprep.subr.bf16.mxu0 %v4699_v3  ;;  %v3378_v3 = vrot.slane %v6399_v53, %v6235_v51 }
 0x922   : > { %4702 = vmatpush1.bf16.msra.mxu0 %v4701_v63 }
 0x923   : > { %4704 = vmatprep.subr.bf16.mxu0 %v4703_v9 }
 0x926   : > { %4706 = vmatpush1.bf16.msra.mxu0 %v4705_v35  ;;  %v3622_v35 = vld [vmem:[#allocation16 + $0x228] sm:$0xff] }
 0x927   : > { %4708 = vmatprep.subr.bf16.mxu0 %v4707_v1  ;;  %v3624_v1 = vld [vmem:[#allocation16 + $0x238] sm:$0xff] }
 0x928   : > { %v4739_v59 = vpack.c.bf16 %v3624_v1, %v3622_v35  ;;  %v3650_v35 = vld [vmem:[#allocation16 + $0x308] sm:$0xff]  ;;  %v3652_v1 = vld [vmem:[#allocation16 + $0x318] sm:$0xff] }
 0x92a   : > { %4710 = vmatpush1.bf16.msra.mxu0 %v4709_v37 }
 0x92b   : > { %4712 = vmatprep.subr.bf16.mxu0 %v4711_v11 }
 0x92e   : > { %4714 = vmatpush1.bf16.msra.mxu0 %v4713_v13  ;;  %v3623_v13 = vld [vmem:[#allocation16 + $0x230] sm:$0xff] }
 0x92f   : > { %4716 = vmatprep.subr.bf16.mxu0 %v4715_v14 }
 0x932   : > { %4718 = vmatpush1.bf16.msra.mxu0 %v4717_v27  ;;  %v4741_v27 = vpack.c.bf16 %v3623_v13, %v3621_v34  ;;  %v3653_v13 = vld [vmem:[#allocation16 + $0x320] sm:$0xff] }
 0x933   : > { %4720 = vmatprep.subr.bf16.mxu0 %v4719_v19 }
 0x936   : > { %4722 = vmatpush1.bf16.msra.mxu0 %v4721_v28  ;;  %v3630_v28 = vld [vmem:[#allocation16 + $0x268] sm:$0xff] }
 0x937   : > { %4724 = vmatprep.subr.bf16.mxu0 %v4723_v31  ;;  %v3632_v31 = vld [vmem:[#allocation16 + $0x278] sm:$0xff] }
 0x938   : > { %v4747_v39 = vpack.c.bf16 %v3632_v31, %v3630_v28  ;;  %v3661_v28 = vld [vmem:[#allocation16 + $0x360] sm:$0xff]  ;;  %v3663_v31 = vld [vmem:[#allocation16 + $0x370] sm:$0xff] }
 0x939   : > { %v4781_v40 = vpack.c.bf16 %v3663_v31, %v3661_v28 }
 0x93a   : > { %4726 = vmatpush1.bf16.msra.mxu0 %v4725_v45  ;;  %v3634_v45 = vld [vmem:[#allocation16 + $0x288] sm:$0xff] }
 0x93b   : > { %4728 = vmatprep.subr.bf16.mxu0 %v4727_v29  ;;  %v3636_v29 = vld [vmem:[#allocation16 + $0x298] sm:$0xff] }
 0x93c   : > { %v4751_v49 = vpack.c.bf16 %v3636_v29, %v3634_v45  ;;  %v3665_v45 = vld [vmem:[#allocation16 + $0x380] sm:$0xff]  ;;  %v3667_v29 = vld [vmem:[#allocation16 + $0x390] sm:$0xff] }
 0x93e   : > { %4730 = vmatpush1.bf16.msra.mxu0 %v4729_v50  ;;  %v3633_v50 = vld [vmem:[#allocation16 + $0x280] sm:$0xff] }
 0x93f   : > { %4732 = vmatprep.subr.bf16.mxu0 %v4731_v55  ;;  %v3640_v55 = vld [vmem:[#allocation16 + $0x2b8] sm:$0xff]  ;;  %v4753_v56 = vpack.c.bf16 %v3635_v52, %v3633_v50  ;;  %v4785_v50 = vpack.c.bf16 %v3667_v29, %v3665_v45 }
 0x940   : > { %v4755_v7 = vpack.c.bf16 %v3640_v55, %v3638_v54  ;;  %v3669_v54 = vld [vmem:[#allocation16 + $0x3a0] sm:$0xff]  ;;  %v3671_v55 = vld [vmem:[#allocation16 + $0x3b0] sm:$0xff] }
 0x942   : > { %4734 = vmatpush1.bf16.msra.mxu0 %v4733_v47  ;;  %v3637_v47 = vld [vmem:[#allocation16 + $0x2a0] sm:$0xff] }
 0x943   : > { %4736 = vmatprep.subr.bf16.mxu0 %v4735_v58  ;;  %v3644_v58 = vld [vmem:[#allocation16 + $0x2d8] sm:$0xff] }
 0x9d8   : > { %v3457_v60 = vpop.f32.mrb[4].mxu0  ;;  %v6406_v62 = vpop.f32.mrb[12].mxu1 }
 0x9d9   : > { %v3458_v48 = vadd.f32 %v3457_v60, %v3374_v23  ;;  %v3459_v63 = vpop.f32.mrb[5].mxu0  ;;  %v3536_v9 = vpop.f32.mrb[13].mxu1  ;;  %v3643_v60 = vld [vmem:[#allocation16 + $0x2d0] sm:$0xff] }
 0x9da   : > { %v3460_v36 = vadd.f32 %v3459_v63, %v3378_v3  ;;  %v3537_v14 = vadd.f32 %v3536_v9, %v6409_v61  ;;  %v3648_v63 = vld [vmem:[#allocation16 + $0x2f8] sm:$0xff]  ;;  %v4761_v9 = vpack.c.bf16 %v3643_v60, %v3641_v4 }
 0x9db   : > { %v3545_v37 = vmax.f32 %v3458_v48, 0.0  ;;  %v3646_v48 = vld [vmem:[#allocation16 + $0x2e8] sm:$0xff]  ;;  %v3680_v4 = vld [vmem:[#allocation16 + $0x3f8] sm:$0xff] }
 0x9dc   : > { %v3546_v2 = vmax.f32 %v3460_v36, 0.0  ;;  %v3463_v5 = vpop.f32.mrb[6].mxu0  ;;  %v6411_v6 = vpop.f32.mrb[14].mxu1  ;;  %v3548_v18 = vmax.f32 %v3537_v14, 0.0  ;;  %v4763_v0 = vpack.c.bf16 %v3648_v63, %v3646_v48  ;;  %v3647_v36 = vld [vmem:[#allocation16 + $0x2f0] sm:$0xff] }
 0x9dd   : > { %v3464_v11 = vadd.f32 %v3463_v5, %v3374_v23  ;;  %v3465_v33 = vpop.f32.mrb[7].mxu0  ;;  %v6413_v12 = vpop.f32.mrb[15].mxu1  ;;  %v4757_v23 = vpack.c.bf16 %v3639_v57, %v3637_v47  ;;  %v4767_v5 = vpack.c.bf16 %v3652_v1, %v3650_v35  ;;  %v3655_v14 = vld [vmem:[#allocation16 + $0x330] sm:$0xff]  ;;  %v4789_v47 = vpack.c.bf16 %v3671_v55, %v3669_v54 }
 0x9de   : > { %v3466_v15 = vadd.f32 %v3465_v33, %v3378_v3  ;;  %3757 = vmatprep.mubr.f32.mxu0 %v3546_v2  ;;  %v4759_v3 = vpack.c.bf16 %v3644_v58, %v3642_v8  ;;  %v4765_v2 = vpack.c.bf16 %v3647_v36, %v3645_v22  ;;  %v3656_v33 = vld [vmem:[#allocation16 + $0x338] sm:$0xff]  ;;  %v4773_v30 = vpack.c.bf16 %v3655_v14, %v3653_v13  ;;  %v3673_v58 = vld [vmem:[#allocation16 + $0x3c0] sm:$0xff] }
 0x9df   : > { %3758 = vmatmul.mubr.f32.vlgmr.msra.gmra.mrb[8].mxu0 %v3545_v37  ;;  %v3549_v19 = vmax.f32 %v3464_v11, 0.0  ;;  %v3651_v37 = vld [vmem:[#allocation16 + $0x310] sm:$0xff]  ;;  %v3654_v11 = vld [vmem:[#allocation16 + $0x328] sm:$0xff]  ;;  %v3381_v57 = vsub.s32 2, %v6226_v44  ;;  %v3543_v44 = vadd.f32 %v6413_v12, %v6409_v61 }
 0x9e0   : > { %v3550_v17 = vmax.f32 %v3466_v15, 0.0  ;;  %4738 = vmatpush1.bf16.msra.mxu0 %v4737_v26  ;;  %v3649_v26 = vld [vmem:[#allocation16 + $0x300] sm:$0xff]  ;;  %v4771_v34 = vpack.c.bf16 %v3656_v33, %v3654_v11  ;;  %v3658_v15 = vld [vmem:[#allocation16 + $0x348] sm:$0xff] }
 0x9e1   : > { %4740 = vmatprep.subr.bf16.mxu0 %v4739_v59  ;;  %v4769_v59 = vpack.c.bf16 %v3651_v37, %v3649_v26  ;;  %v3382_v48 = vrot.slane %v6399_v53, %v3381_v57 }
 0x9e2   : > { %3763 = vmatprep.mubr.f32.mxu0 %v3550_v17  ;;  %v4775_v17 = vpack.c.bf16 %v3660_v42, %v3658_v15 }
 0x9e3   : > { %3764 = vmatmul.mubr.f32.gmra.mrb[10].mxu0 %v3549_v19  ;;  %v3659_v19 = vld [vmem:[#allocation16 + $0x350] sm:$0xff]  ;;  %v3535_v36 = vadd.f32 %v6406_v62, %v3382_v48  ;;  %v3541_v1 = vadd.f32 %v6411_v6, %v3382_v48 }
 0x9e4   : > { %4742 = vmatpush1.bf16.msra.mxu0 %v4741_v27  ;;  %3834 = vmatprep.mubr.f32.mxu0 %v3548_v18  ;;  %v3657_v27 = vld [vmem:[#allocation16 + $0x340] sm:$0xff] }
 0x9e5   : > { %4744 = vmatprep.subr.bf16.mxu0 %v4743_v24  ;;  %v3662_v24 = vld [vmem:[#allocation16 + $0x368] sm:$0xff]  ;;  %v4777_v21 = vpack.c.bf16 %v3659_v19, %v3657_v27  ;;  %v3547_v35 = vmax.f32 %v3535_v36, 0.0  ;;  %v3551_v53 = vmax.f32 %v3541_v1, 0.0 }
 0x9e6   : > { %v4779_v18 = vpack.c.bf16 %v3664_v20, %v3662_v24 }
 0x9e8   : > { %4746 = vmatpush1.bf16.msra.mxu0 %v4745_v38  ;;  %v3666_v38 = vld [vmem:[#allocation16 + $0x388] sm:$0xff] }
 0x9e9   : > { %4748 = vmatprep.subr.bf16.mxu0 %v4747_v39  ;;  %v3668_v39 = vld [vmem:[#allocation16 + $0x398] sm:$0xff] }
 0x9ea   : > { %v4783_v41 = vpack.c.bf16 %v3668_v39, %v3666_v38 }
 0x9ec   : > { %4750 = vmatpush1.bf16.msra.mxu0 %v4749_v25  ;;  %v3670_v25 = vld [vmem:[#allocation16 + $0x3a8] sm:$0xff] }
 0x9ed   : > { %4752 = vmatprep.subr.bf16.mxu0 %v4751_v49  ;;  %v3672_v49 = vld [vmem:[#allocation16 + $0x3b8] sm:$0xff] }
 0x9ee   : > { %v4787_v52 = vpack.c.bf16 %v3672_v49, %v3670_v25 }
 0x9f0   : > { %4754 = vmatpush1.bf16.msra.mxu0 %v4753_v56  ;;  %v3674_v56 = vld [vmem:[#allocation16 + $0x3c8] sm:$0xff] }
 0x9f1   : > { %4756 = vmatprep.subr.bf16.mxu0 %v4755_v7  ;;  %v3676_v7 = vld [vmem:[#allocation16 + $0x3d8] sm:$0xff] }
 0x9f2   : > { %v4791_v8 = vpack.c.bf16 %v3676_v7, %v3674_v56 }
 0x9f4   : > { %4758 = vmatpush1.bf16.msra.mxu0 %v4757_v23  ;;  %v3675_v23 = vld [vmem:[#allocation16 + $0x3d0] sm:$0xff] }
 0x9f5   : > { %4760 = vmatprep.subr.bf16.mxu0 %v4759_v3  ;;  %v3678_v3 = vld [vmem:[#allocation16 + $0x3e8] sm:$0xff]  ;;  %v4793_v60 = vpack.c.bf16 %v3675_v23, %v3673_v58 }
 0x9f6   : > { %v4795_v63 = vpack.c.bf16 %v3680_v4, %v3678_v3 }
 0x9f8   : > { %4762 = vmatpush1.bf16.msra.mxu0 %v4761_v9  ;;  %v3677_v9 = vld [vmem:[#allocation16 + $0x3e0] sm:$0xff] }
 0x9f9   : > { %4764 = vmatprep.subr.bf16.mxu0 %v4763_v0  ;;  %v3679_v0 = vld [vmem:[#allocation16 + $0x3f0] sm:$0xff] }
 0x9fa   : > { %v4797_v22 = vpack.c.bf16 %v3679_v0, %v3677_v9 }
 0x9fc   : > { %4766 = vmatpush1.bf16.msra.mxu0 %v4765_v2  ;;  %v3552_v2 = vmax.f32 %v3543_v44, 0.0 }
 0x9fd   : > { %4768 = vmatprep.subr.bf16.mxu0 %v4767_v5  ;;  %v3681_v5 = vld [vmem:[%s6658_s19] sm:$0x3]  ;;  %s6663_s19 = sld [smem:[#allocation53_spill]] }
 0x9fe   : > { %v3686_v26 = vrot.slane %v3681_v5, %v6229_v46  ;;  %v3690_v62 = vrot.slane %v3681_v5, %v6235_v51 }
 0xa00   : > { %4770 = vmatpush1.bf16.msra.mxu0 %v4769_v59 }
 0xa01   : > { %4772 = vmatprep.subr.bf16.mxu0 %v4771_v34 }
 0xa03   : > { %s6664_s13 = smov %s6663_s19  ;;  %s6449_s6 = scalar_lea.hbm %s6663_s19, %s4180_s23 }
 0xa04   : > { %4774 = vmatpush1.bf16.msra.mxu0 %v4773_v30 }
 0xa05   : > { %4776 = vmatprep.subr.bf16.mxu0 %v4775_v17 }
 0xa08   : > { %4778 = vmatpush1.bf16.msra.mxu0 %v4777_v21 }
 0xa09   : > { %4780 = vmatprep.subr.bf16.mxu0 %v4779_v18 }
 0xa0c   : > { %4782 = vmatpush1.bf16.msra.mxu0 %v4781_v40 }
 0xa0d   : > { %4784 = vmatprep.subr.bf16.mxu0 %v4783_v41 }
 0xa10   : > { %4786 = vmatpush1.bf16.msra.mxu0 %v4785_v50  ;;  %v3851_v50 = vld [vmem:[%s6661_s9] sm:$0x3]  ;;  %s5450_s9 = smov [#allocation18]  }
 0xa11   : > { %4788 = vmatprep.subr.bf16.mxu0 %v4787_v52  ;;  %v3852_v52 = vld [vmem:[%s6662_s4] sm:$0x3]  ;;  %v3889_v54 = vrot.slane %v3851_v50, %v6229_v46  ;;  %v3893_v55 = vrot.slane %v3851_v50, %v6235_v51  ;;  %s5266_s14 = sshll.u32 %s5450_s9, 4  ;;  %s5267_s14 = int_to_ptr.vmem [resolvable:$false] %s5266_s14 }
 0xa12   : > { %v3904_v7 = vrot.slane %v3852_v52, %v6229_v46  ;;  %s5268_s28 = scalar_lea.vmem %s5267_s14, 1024  ;;  %p5269_p10 = scmp.lt.s32.totalorder %s6451_s16, %s5267_s14 }
 0xa13   : > { %p5270_p5 = scmp.lt.s32.totalorder %s5268_s28, %s5262_s1 }
 0xa14   : > { %4790 = vmatpush1.bf16.msra.mxu0 %v4789_v47  ;;  %v3908_v47 = vrot.slane %v3852_v52, %v6235_v51 }
 0xa15   : > { %4792 = vmatprep.subr.bf16.mxu0 %v4791_v8  ;;  %p5271_p12 = por %p5270_p5, %p5269_p10 }
 0xa17   : > { %p5272_p9 = pnand %p5271_p12, %p5265_p7 }
 0xa18   : > { %4794 = vmatpush1.bf16.msra.mxu0 %v4793_v60 }
 0xa19   : > { %4796 = vmatprep.subr.bf16.mxu0 %v4795_v63 }
 0xa1c   : > { %4798 = vmatpush1.bf16.msra.mxu0 %v4797_v22 }
 0xa1f   : > { %3835 = vmatmul.mubr.f32.vlgmr.msra.gmra.mrb[8].mxu0 %v3547_v35 }
 0xa20   : > { %3840 = vmatprep.mubr.f32.mxu0 %v3552_v2 }
 0xa23   : > { %3841 = vmatmul.mubr.f32.gmra.mrb[10].mxu0 %v3551_v53 }
 0xaf2   : > { %v3836_v37 = vpop.f32.mrb[8].mxu0 }
 0xaf3   : > { %v4799_v11 = vadd.f32 %v3836_v37, %v3686_v26  ;;  %v3838_v61 = vpop.f32.mrb[9].mxu0 }
 0xaf4   : > { %v4800_v12 = vadd.f32 %v3838_v61, %v3690_v62 }
 0xaf5   : > { %v3847_v33 = vadd.f32 %v4799_v11, %v6380_v10 }
 0xaf6   : > { %v3848_v6 = vadd.f32 %v4800_v12, %v6378_v32  ;;  %v3842_v59 = vpop.f32.mrb[10].mxu0 }
 0xaf7   : > { %v4801_v34 = vadd.f32 %v3842_v59, %v3686_v26  ;;  %v3844_v13 = vpop.f32.mrb[11].mxu0 }
 0xaf8   : > { %v4802_v14 = vadd.f32 %v3844_v13, %v3690_v62  ;;  %v3853_v15 = vadd.f32 %v3848_v6, %v3847_v33 }
 0xaf9   : > { %v3849_v42 = vadd.f32 %v4801_v34, %v6390_v43 }
 0xafa   : > { %v3850_v30 = vadd.f32 %v4802_v14, %v6388_v16  ;;  %3854 = vadd.xlane.f32.xlu0 %v3853_v15 }
 0xafc   : > { %v3856_v17 = vadd.f32 %v3850_v30, %v3849_v42 }
 0xafe   : > { %3857 = vadd.xlane.f32.xlu1 %v3856_v17 }
 0xb87   : > { %v3855_v27 = vpop.xlane.xlu0 %3854 }
 0xb88   : > { %v3859_v19 = vmul.f32 0.00390625, %v3855_v27 }
 0xb8a   : > { %v3861_v24 = vsub.f32 %v3847_v33, %v3859_v19  ;;  %v3862_v20 = vsub.f32 %v3848_v6, %v3859_v19 }
 0xb8b   : > { %v3858_v21 = vpop.xlane.xlu1 %3857 }
 0xb8c   : > { %v3860_v10 = vmul.f32 0.00390625, %v3858_v21  ;;  %v3865_v18 = vmul.f32 %v3861_v24, %v3861_v24  ;;  %v3866_v32 = vmul.f32 %v3862_v20, %v3862_v20 }
 0xb8e   : > { %v3863_v28 = vsub.f32 %v3849_v42, %v3860_v10  ;;  %v3864_v31 = vsub.f32 %v3850_v30, %v3860_v10  ;;  %v3869_v38 = vadd.f32 %v3866_v32, %v3865_v18 }
 0xb90   : > { %3870 = vadd.xlane.f32.xlu0 %v3869_v38  ;;  %v3867_v39 = vmul.f32 %v3863_v28, %v3863_v28  ;;  %v3868_v43 = vmul.f32 %v3864_v31, %v3864_v31 }
 0xb92   : > { %v3872_v16 = vadd.f32 %v3868_v43, %v3867_v39 }
 0xb94   : > { %3873 = vadd.xlane.f32.xlu1 %v3872_v16 }
 0xc1d   : > { %v3871_v40 = vpop.xlane.xlu0 %3870 }
 0xc1e   : > { %v3875_v41 = vmul.f32 0.00390625, %v3871_v40 }
 0xc20   : > { %v3877_v45 = vadd.f32 1e-05, %v3875_v41 }
 0xc21   : > { %v3874_v29 = vpop.xlane.xlu1 %3873 }
 0xc22   : > { %5028 = vrsqrt.f32 %v3877_v45  ;;  %v3876_v25 = vmul.f32 0.00390625, %v3874_v29 }
 0xc24   : > { %v3878_v49 = vadd.f32 1e-05, %v3876_v25 }
 0xc26   : > { %5030 = vrsqrt.f32 %v3878_v49 }
 0xc2c   : > { %v5029_v56 = vpop.eup %5028 }
 0xc2d   : > { %v3881_v57 = vmul.f32 %v5029_v56, %v3861_v24  ;;  %v3882_v8 = vmul.f32 %v5029_v56, %v3862_v20 }
 0xc2f   : > { %v3896_v58 = vmul.f32 %v3889_v54, %v3881_v57  ;;  %v3897_v23 = vmul.f32 %v3893_v55, %v3882_v8 }
 0xc30   : > { %v5031_v3 = vpop.eup %5030 }
 0xc31   : > { %v3911_v4 = vadd.f32 %v3904_v7, %v3896_v58  ;;  %v3912_v60 = vadd.f32 %v3908_v47, %v3897_v23  ;;  %v3883_v48 = vmul.f32 %v5031_v3, %v3863_v28  ;;  %v3884_v63 = vmul.f32 %v5031_v3, %v3864_v31 }
 0xc33   : > { %3915 = vst [vmem:[%s6019_s27] sm:$0xff] %v3911_v4  ;;  %3916 = vst [vmem:[%s6019_s27 + $0x8] sm:$0xff] %v3912_v60  ;;  %v3898_v46 = vmul.f32 %v3889_v54, %v3883_v48  ;;  %v3899_v51 = vmul.f32 %v3893_v55, %v3884_v63 }
 0xc35   : > { %v3913_v9 = vadd.f32 %v3904_v7, %v3898_v46  ;;  %v3914_v0 = vadd.f32 %v3908_v47, %v3899_v51 }
 0xc37   : > { %3917 = vst [vmem:[%s6019_s27 + $0x10] sm:$0xff] %v3913_v9  ;;  %3918 = vst [vmem:[%s6019_s27 + $0x18] sm:$0xff] %v3914_v0 }
 0xc38   : > { %5275 = shalt.err (!%p5272_p9)
}
 0xc39   : > { %s5276_s27 = scalar_lea.hbm %s6449_s6, 512  ;;  %s5280_s12 = scalar_lea.hbm %s6664_s13, 2048 }
 0xc3a   : > { %p5277_p3 = scmp.ne.s32.totalorder %s6449_s6, %s5276_s27  ;;  %p5281_p6 = scmp.lt.u32.totalorder %s6449_s6, %s6664_s13 }
 0xc3b   : > { %p5282_p1 = scmp.lt.u32.totalorder %s5280_s12, %s5276_s27  ;;  %p5284_p2 = scmp.lt.u32.totalorder %s5276_s27, %s6449_s6 }
 0xc3c   : > { %p5278_p8 = pnand %p5277_p3, %p6665_p4 }
 0xc3d   : > { %p5283_p11 = por %p5282_p1, %p5281_p6 }
 0xc3e   : > { %p5279_p0 = pneg %p5278_p8 }
 0xc3f   : > { %p5285_p13 = por %p5284_p2, %p5283_p11 }
 0xc41   : > { %p5286_p7 = pnand %p5285_p13, %p5279_p0 }
 0xc43   : > { %5289 = shalt.err (!%p5286_p7)
}
 0xc44   : > { %s5451_s24 = smov 256   ;;  %s5452_s25 = smov 16  }
 0xc45   : > { %4833 = dma.vmem_to_hbm [thread:$0]  (%p6665_p4), %s6451_s16, 512, %s6449_s6, %s3920_s10, %s5451_s24, %s5451_s24, %s5452_s25  }
 0xc46 PF: > { %p4876_p10 = scmp.ge.s32.totalorder %s5428_s22, 2  ;;  %s3951_s19 = sand.u32 1, %s5400_s0  }
 0xc47   : > { %p6666_p5 = scmp.ne.s32.totalorder %s6623_s7, 0  ;;  %s3952_s1 = scalar_lea.sflag [#allocation6], %s3951_s19 }
 0xc49   : > { %p4862_p12 = pnand %p4876_p10, %p6666_p5 }
 0xc4b   : > { %5371 = dma.done.wait (!%p4862_p12), %s3952_s1, 512  }
 0xc4c   : > { %5373 = vsyncadd (!%p4862_p12), %s3952_s1, 4294966784  ;;  %s39_s22 = sadd.s32 1, %s5428_s22   ;;  %s6668_s24 = sld [smem:[#allocation27_spill]] }
 0xc4d   : > { %p6484_p9 = scmp.ge.s32.totalorder %s39_s22, 6   ;;  %s6669_s27 = sld [smem:[#allocation28_spill]] }
 0xc4e   : > { %s6670_s8 = sld [smem:[#allocation35_spill]]  ;;  %s6671_s7 = sld [smem:[#allocation33_spill]] }
 0xc4f   : > { %s6672_s11 = sld [smem:[#allocation34_spill]]  ;;  %s6673_s25 = smov %s5384_s26 }
 0xc50   : > { %s6674_s26 = smov %s5925_s3  ;;  %s6675_s28 = smov %s5396_s29 }
 0xc51   : > { %s6677_s0 = smov %s5404_s30  ;;  %s6678_s30 = smov %s5408_s18 }
 0xc52   : > { %s6679_s18 = smov %s5869_s15  ;;  %s6680_s19 = smov %s5420_s20 }
 0xc53   : > { %s6681_s1 = smov %s5424_s21  ;;  %38 = sbr.rel (!%p6484_p9) target bundleno = 34 (0x22), region = 181 }
 0xc54   : > { %s6676_s29 = smov %s6670_s8  ;;  %s6682_s20 = smov %s6671_s7 }
 0xc55   : > { %s6683_s21 = smov %s6672_s11 }
 0xc5a   :  { %3957 = vsyncpa [#allocation5], 1 }
 0xc5b   :  { %3959 = vsyncpa [#allocation5 + $0x1], 1 }
 0xc5c   :  { %3960 = vsyncpa [#allocation8], 1 }
 0xc5d   :  { %3962 = vsyncpa [#allocation8 + $0x1], 1 }
 0xc5e   :  { %3963 = vsyncpa [#allocation11], 1 }
 0xc5f   :  { %3964 = vsyncpa [#allocation14], 1 }
 0xc60   :  { %3965 = vsyncpa [#allocation17], 1 }
 0xc61   :  { %3966 = vsyncpa [#allocation6], 1 }
 0xc62   :  { %3968 = vsyncpa [#allocation6 + $0x1], 1 }

// kernel: tpu_custom_call.1
= control target key start
LH: loop header
LB: loop body
LE: loop exit
PB: predicated region body
PF: predicated region fallthrough
CT: control target
= control target key end

     0   :  { %s6531_s0 = inlined_call_operand.hbm [shape: f32[2,32,256], index: 0, kind: input, shape index: {}]   ;;  %s6532_s1 = inlined_call_operand.hbm [shape: f32[2,32,256], index: 1, kind: input, shape index: {}]   ;;  %s6533_s2 = inlined_call_operand.hbm [shape: f32[32,32], index: 2, kind: input, shape index: {}]   ;;  %s6534_s3 = inlined_call_operand.hbm [shape: f32[256,256], index: 3, kind: input, shape index: {}]   ;;  %s6535_s4 = inlined_call_operand.vmem [shape: f32[1,256], index: 4, kind: input, shape index: {}]   ;;  %s6536_s5 = inlined_call_operand.hbm [shape: f32[256,512], index: 5, kind: input, shape index: {}]   ;;  %s6537_s6 = inlined_call_operand.vmem [shape: f32[1,512], index: 6, kind: input, shape index: {}]   ;;  %s6538_s7 = inlined_call_operand.hbm [shape: f32[256,256], index: 7, kind: input, shape index: {}]   ;;  %s6539_s8 = inlined_call_operand.vmem [shape: f32[1,256], index: 8, kind: input, shape index: {}]   ;;  %s6540_s9 = inlined_call_operand.vmem [shape: f32[1,256], index: 9, kind: input, shape index: {}]   ;;  %s6541_s10 = inlined_call_operand.vmem [shape: f32[1,256], index: 10, kind: input, shape index: {}]   ;;  %s6542_s11 = inlined_call_operand.hbm [shape: f32[256,512], index: 11, kind: input, shape index: {}]   ;;  %s6543_s12 = inlined_call_operand.vmem [shape: f32[1,512], index: 12, kind: input, shape index: {}]   ;;  %s6544_s13 = inlined_call_operand.hbm [shape: f32[512,256], index: 13, kind: input, shape index: {}]   ;;  %s6545_s14 = inlined_call_operand.vmem [shape: f32[1,256], index: 14, kind: input, shape index: {}]   ;;  %s6546_s15 = inlined_call_operand.vmem [shape: f32[1,256], index: 15, kind: input, shape index: {}]   ;;  %s6547_s16 = inlined_call_operand.vmem [shape: f32[1,256], index: 16, kind: input, shape index: {}]   ;;  %s6548_s17 = inlined_call_operand.hbm [shape: f32[2,32,256], index: 17, kind: output, shape index: {}]  }
   0x1   :  { %6575 = sst [smem:[#allocation36_spill]] %s6531_s0 }
   0x2   :  { %6576 = sst [smem:[#allocation37_spill]] %s6532_s1 }
   0x3   :  { %6577 = sst [smem:[#allocation38_spill]] %s6533_s2 }
   0x4   :  { %6578 = sst [smem:[#allocation39_spill]] %s6534_s3 }
   0x5   :  { %6579 = sst [smem:[#allocation40_spill]] %s6535_s4 }
   0x6   :  { %6580 = sst [smem:[#allocation41_spill]] %s6536_s5 }
   0x7   :  { %6581 = sst [smem:[#allocation42_spill]] %s6537_s6 }
   0x8   :  { %6582 = sst [smem:[#allocation43_spill]] %s6538_s7 }
   0x9   :  { %6583 = sst [smem:[#allocation44_spill]] %s6539_s8 }
   0xa   :  { %6584 = sst [smem:[#allocation45_spill]] %s6540_s9 }
   0xb   :  { %6585 = sst [smem:[#allocation46_spill]] %s6541_s10 }
   0xc   :  { %6586 = sst [smem:[#allocation47_spill]] %s6542_s11 }
   0xd   :  { %6587 = sst [smem:[#allocation48_spill]] %s6543_s12 }
   0xe   :  { %6588 = sst [smem:[#allocation49_spill]] %s6544_s13 }
   0xf   :  { %6589 = sst [smem:[#allocation50_spill]] %s6545_s14 }
  0x10   :  { %6590 = sst [smem:[#allocation51_spill]] %s6546_s15 }
  0x11   :  { %6591 = sst [smem:[#allocation52_spill]] %s6547_s16 }
  0x12   :  { %6592 = sst [smem:[#allocation53_spill]] %s6548_s17 }
  0x13   :  { %22 = vsyncpa [#allocation5], 0 }
  0x14   :  { %24 = vsyncpa [#allocation5 + $0x1], 0 }
  0x15   :  { %25 = vsyncpa [#allocation8], 0 }
  0x16   :  { %27 = vsyncpa [#allocation8 + $0x1], 0 }
  0x17   :  { %28 = vsyncpa [#allocation11], 0 }
  0x18   :  { %29 = vsyncpa [#allocation14], 0 }
  0x19   :  { %30 = vsyncpa [#allocation17], 0 }
  0x1a   :  { %31 = vsyncpa [#allocation6], 0 }
  0x1b   :  { %33 = vsyncpa [#allocation6 + $0x1], 0  ;;  %s5543_s24 = smov 0   ;;  %s5545_s25 = smov 0  }
  0x1c   :  { %s5547_s26 = smov 0   ;;  %s5549_s27 = smov 0  }
  0x1d   :  { %s5551_s28 = smov 0   ;;  %s5553_s29 = smov 0  }
  0x1e   :  { %s5555_s0 = smov 0   ;;  %s5557_s30 = smov 0  }
  0x1f   :  { %s5559_s18 = smov 0   ;;  %s5561_s19 = smov 0  }
  0x20   :  { %s5563_s1 = smov 0   ;;  %s5565_s20 = smov 0  }
  0x21   :  { %s5567_s21 = smov 0   ;;  %s5569_s22 = smov 0  }
  0x22 LB: > { %6593 = sst [smem:[#allocation26_spill]] %s5376_s24  ;;  %s5614_s23 = sadd.s32 4294967295, %s5428_s22   ;;  %s5428_s22 = sphi %s5569_s22, %s39_s22   ;;  %s5424_s21 = sphi %s5567_s21, %s6683_s21   ;;  %s5420_s20 = sphi %s5565_s20, %s6682_s20   ;;  %s5416_s1 = sphi %s5563_s1, %s6681_s1   ;;  %s5412_s19 = sphi %s5561_s19, %s6680_s19   ;;  %s5408_s18 = sphi %s5559_s18, %s6679_s18   ;;  %s5404_s30 = sphi %s5557_s30, %s6678_s30   ;;  %s5400_s0 = sphi %s5555_s0, %s6677_s0   ;;  %s5396_s29 = sphi %s5553_s29, %s6676_s29   ;;  %s5392_s28 = sphi %s5551_s28, %s6675_s28   ;;  %s5388_s27 = sphi %s5549_s27, %s6669_s27   ;;  %s5384_s26 = sphi %s5547_s26, %s6674_s26   ;;  %s5380_s25 = sphi %s5545_s25, %s6673_s25   ;;  %s5376_s24 = sphi %s5543_s24, %s6668_s24  }
  0x23   : > { %6594 = sst [smem:[#allocation27_spill]] %s5380_s25  ;;  %p4119_p0 = scmp.ge.s32.totalorder %s5428_s22, 1 }
  0x24   : > { %6595 = sst [smem:[#allocation28_spill]] %s5392_s28  ;;  %p6552_p1 = scmp.eq.s32.totalorder %s5614_s23, 0 }
  0x25   : > { %6596 = sst [smem:[#allocation29_spill]] %s5412_s19  ;;  %p458_p2 = scmp.lt.s32.totalorder %s5428_s22, 5 }
  0x26   : > { %6597 = sst [smem:[#allocation30_spill]] %s5416_s1  ;;  %s5430_s16 = smov [#allocation10]  }
  0x27   : > { %p5619_p3 = pnand %p4119_p0, %p458_p2  ;;  %s470_s15 = sshll.u32 %s5430_s16, 4  ;;  %s471_s15 = int_to_ptr.vmem [resolvable:$true] %s470_s15 }
  0x28   : > { %s5431_s14 = smov [#allocation13]   ;;  %s6601_s3 = sld [smem:[#allocation39_spill]] }
  0x29   : > { %s6598_s17 = scalar_select %p5619_p3, 1, 0 }
  0x2a   : > { %p4835_p4 = pneg %p5619_p3  ;;  %s502_s12 = sshll.u32 %s5431_s14, 4  ;;  %s5631_s12 = int_to_ptr.vmem [resolvable:$true] %s502_s12 }
  0x2b   : > { %6599 = sst [smem:[#allocation31_spill]] %s6598_s17 }
  0x2c   : > { %p5627_p5 = pnand %p4835_p4, %p6552_p1 }
  0x2e   : > { %s6600_s1 = scalar_select %p5627_p5, 1, 0 }
  0x2f   : > { %s5032_s8 = scalar_lea.hbm %s6601_s3, 8192  ;;  %p5641_p7 = pneg %p5627_p5 }
  0x30   : > { %p5033_p6 = scmp.ne.s32.totalorder %s6601_s3, %s5032_s8  ;;  %p5039_p10 = scmp.lt.u32.totalorder %s5032_s8, %s6601_s3 }
  0x32   : > { %p5035_p8 = pnand %p5641_p7, %p5033_p6 }
  0x34   : > { %p5036_p9 = pneg %p5035_p8 }
  0x36   : > { %p5041_p11 = pnand %p5039_p10, %p5036_p9 }
  0x38   : > { %5044 = shalt.err (!%p5041_p11)
}
  0x39   : > { %s5045_s9 = scalar_lea.vmem %s471_s15, 8192  ;;  %p5053_p2 = scmp.lt.s32.totalorder %s471_s15, %s471_s15 }
  0x3a   : > { %p5046_p12 = scmp.ne.s32.totalorder %s471_s15, %s5045_s9  ;;  %p5054_p4 = scmp.lt.s32.totalorder %s5045_s9, %s5045_s9 }
  0x3c   : > { %p5048_p13 = pnand %p5046_p12, %p5641_p7  ;;  %p5055_p1 = por %p5054_p4, %p5053_p2 }
  0x3e   : > { %p5049_p0 = pneg %p5048_p13 }
  0x40   : > { %p5056_p3 = pnand %p5055_p1, %p5049_p0 }
  0x42   : > { %5059 = shalt.err (!%p5056_p3)
}
  0x43   : > { %s6557_s4 = smov 256   ;;  %s6559_s6 = smov 16  }
  0x44   : > { %4838 = dma.hbm_to_vmem [thread:$0]  (!%p5627_p5), %s6601_s3, 8192, %s471_s15, [#allocation11], %s6557_s4, %s6557_s4, %s6559_s6  }
  0x45   : > { %s6603_s7 = sld [smem:[#allocation43_spill]] }
  0x4b   : > { %s5060_s17 = scalar_lea.hbm %s6603_s7, 8192 }
  0x4c   : > { %p5061_p1 = scmp.ne.s32.totalorder %s6603_s7, %s5060_s17  ;;  %p5067_p8 = scmp.lt.u32.totalorder %s5060_s17, %s6603_s7 }
  0x4e   : > { %p5063_p3 = pnand %p5061_p1, %p5641_p7 }
  0x50   : > { %p5064_p6 = pneg %p5063_p3 }
  0x52   : > { %p5069_p9 = pnand %p5067_p8, %p5064_p6 }
  0x54   : > { %5072 = shalt.err (!%p5069_p9)
}
  0x55   : > { %s5073_s15 = scalar_lea.vmem %s5631_s12, 8192  ;;  %p5081_p13 = scmp.lt.s32.totalorder %s5631_s12, %s5631_s12 }
  0x56   : > { %p5074_p10 = scmp.ne.s32.totalorder %s5631_s12, %s5073_s15  ;;  %p5082_p0 = scmp.lt.s32.totalorder %s5073_s15, %s5073_s15 }
  0x58   : > { %p5076_p11 = pnand %p5074_p10, %p5641_p7  ;;  %p5083_p2 = por %p5082_p0, %p5081_p13 }
  0x5a   : > { %p5077_p12 = pneg %p5076_p11 }
  0x5c   : > { %p5084_p4 = pnand %p5083_p2, %p5077_p12 }
  0x5e   : > { %5087 = shalt.err (!%p5084_p4)
}
  0x5f   : > { %4844 = dma.hbm_to_vmem [thread:$0]  (!%p5627_p5), %s6603_s7, 8192, %s5631_s12, [#allocation14], %s6557_s4, %s6557_s4, %s6559_s6  }
  0x60   : > { %p6562_p1 = scmp.eq.s32.totalorder %s5428_s22, 0  ;;  %p93_p3 = scmp.ne.s32.totalorder %s5396_s29, %s5392_s28 }
  0x61   : > { %p99_p6 = scmp.ne.s32.totalorder %s5392_s28, %s5388_s27  ;;  %p6561_p8 = scmp.lt.s32.totalorder %s5428_s22, 4 }
  0x62   : > { %p95_p9 = por %p93_p3, %p6562_p1  ;;  %s587_s8 = sand.u32 1, %s5428_s22  }
  0x63   : > { %p6604_p10 = scmp.eq.s32.totalorder %s5614_s23, 0  ;;  %s589_s19 = sand.u32 1, %s5396_s29  }
  0x64   : > { %s4184_s14 = sshll.u32 %s5424_s21, 10  ;;  %s4131_s9 = sshll.u32 %s589_s19, 6 }
  0x65   : > { %p5699_p11 = por %p99_p6, %p6604_p10  ;;  %s6607_s12 = sld [smem:[#allocation37_spill]] }
  0x66   : > { %p5712_p12 = pnand %p6561_p8, %p95_p9  ;;  %s591_s25 = scalar_lea.vmem [#allocation7], %s4131_s9 }
  0x67   : > { %s6605_s10 = scalar_select %p5699_p11, 1, 0 }
  0x68   : > { %s598_s24 = sshll.u32 %s591_s25, 4  ;;  %s5718_s19 = scalar_lea.sflag [#allocation8], %s587_s8  ;;  %s5716_s24 = int_to_ptr.vmem [resolvable:$true] %s598_s24 }
  0x69   : > { %6606 = sst [smem:[#allocation32_spill]] %s6605_s10  ;;  %p5090_p0 = pneg %p5712_p12 }
  0x6b   : > { %s5708_s17 = scalar_lea.hbm %s6607_s12, %s4184_s14  ;;  %s5093_s4 = scalar_lea.hbm %s6607_s12, 2048 }
  0x6c   : > { %s5088_s15 = scalar_lea.hbm %s5708_s17, 1024  ;;  %p5094_p3 = scmp.lt.u32.totalorder %s5708_s17, %s6607_s12 }
  0x6d   : > { %p5089_p13 = scmp.ne.s32.totalorder %s5708_s17, %s5088_s15  ;;  %p5095_p6 = scmp.lt.u32.totalorder %s5093_s4, %s5088_s15 }
  0x6e   : > { %p5097_p10 = scmp.lt.u32.totalorder %s5088_s15, %s5708_s17 }
  0x6f   : > { %p5091_p2 = pnand %p5090_p0, %p5089_p13  ;;  %p5096_p9 = por %p5095_p6, %p5094_p3 }
  0x71   : > { %p5092_p4 = pneg %p5091_p2  ;;  %p5098_p8 = por %p5097_p10, %p5096_p9 }
  0x73   : > { %p5099_p1 = pnand %p5098_p8, %p5092_p4 }
  0x75   : > { %5102 = shalt.err (!%p5099_p1)
}
  0x76   : > { %s5103_s25 = scalar_lea.vmem %s5716_s24, 1024  ;;  %s5434_s8 = smov [#allocation7]  }
  0x77   : > { %p5104_p13 = scmp.ne.s32.totalorder %s5716_s24, %s5103_s25  ;;  %s5108_s9 = sshll.u32 %s5434_s8, 4  ;;  %s5109_s9 = int_to_ptr.vmem [resolvable:$false] %s5108_s9 }
  0x78   : > { %s5110_s3 = scalar_lea.vmem %s5109_s9, 2048  ;;  %p5111_p5 = scmp.lt.s32.totalorder %s5716_s24, %s5109_s9 }
  0x79   : > { %p5106_p2 = pnand %p5104_p13, %p5090_p0  ;;  %p5112_p3 = scmp.lt.s32.totalorder %s5110_s3, %s5103_s25 }
  0x7b   : > { %p5107_p11 = pneg %p5106_p2  ;;  %p5113_p6 = por %p5112_p3, %p5111_p5 }
  0x7d   : > { %p5114_p9 = pnand %p5113_p6, %p5107_p11 }
  0x7f   : > { %5117 = shalt.err (!%p5114_p9)
}
  0x80   : > { %s6609_s4 = smov 16   ;;  %s6610_s6 = smov 256  }
  0x81   : > { %4857 = dma.hbm_to_vmem [thread:$0]  (!%p5712_p12), %s5708_s17, 1024, %s5716_s24, %s5718_s19, %s6610_s6, %s6610_s6, %s6609_s4  }
  0x82   : > { %s5435_s15 = smov [#allocation12]   ;;  %s6611_s5 = sld [smem:[#allocation41_spill]] }
  0x83   : > { %s486_s14 = sshll.u32 %s5435_s15, 4  ;;  %s487_s14 = int_to_ptr.vmem [resolvable:$true] %s486_s14 }
  0x88   : > { %s5118_s25 = scalar_lea.hbm %s6611_s5, 16384 }
  0x89   : > { %p5119_p5 = scmp.ne.s32.totalorder %s6611_s5, %s5118_s25  ;;  %p5125_p11 = scmp.lt.u32.totalorder %s5118_s25, %s6611_s5 }
  0x8b   : > { %p5121_p1 = pnand %p5119_p5, %p5641_p7 }
  0x8d   : > { %p5122_p8 = pneg %p5121_p1 }
  0x8f   : > { %p5127_p0 = pnand %p5125_p11, %p5122_p8 }
  0x91   : > { %5130 = shalt.err (!%p5127_p0)
}
  0x92   : > { %s5131_s24 = scalar_lea.vmem %s487_s14, 16384  ;;  %p5139_p13 = scmp.lt.s32.totalorder %s487_s14, %s487_s14 }
  0x93   : > { %p5132_p12 = scmp.ne.s32.totalorder %s487_s14, %s5131_s24  ;;  %p5140_p2 = scmp.lt.s32.totalorder %s5131_s24, %s5131_s24 }
  0x95   : > { %p5134_p4 = pnand %p5132_p12, %p5641_p7  ;;  %p5141_p3 = por %p5140_p2, %p5139_p13 }
  0x97   : > { %p5135_p10 = pneg %p5134_p4 }
  0x99   : > { %p5142_p6 = pnand %p5141_p3, %p5135_p10 }
  0x9b   : > { %5145 = shalt.err (!%p5142_p6)
}
  0x9c   : > { %s5436_s17 = smov 512   ;;  %s5437_s15 = smov 32  }
  0x9d   : > { %p6612_p9 = scmp.ne.s32.totalorder %s6600_s1, 0  ;;  %s5438_s8 = smov [#allocation15]  }
  0x9e   : > { %s524_s25 = sshll.u32 %s5438_s8, 4  ;;  %s5439_s9 = smov [#allocation16]   ;;  %s525_s25 = int_to_ptr.vmem [resolvable:$true] %s524_s25 }
  0x9f   : > { %4841 = dma.hbm_to_vmem [thread:$0]  (!%p6612_p9), %s6611_s5, 16384, %s487_s14, [#allocation11], %s5436_s17, %s5436_s17, %s5437_s15  }
  0xa0   : > { %s540_s3 = sshll.u32 %s5439_s9, 4  ;;  %s6613_s11 = sld [smem:[#allocation47_spill]]  ;;  %s5767_s3 = int_to_ptr.vmem [resolvable:$true] %s540_s3 }
  0xa6   : > { %s5146_s12 = scalar_lea.hbm %s6613_s11, 16384 }
  0xa7   : > { %p5147_p5 = scmp.ne.s32.totalorder %s6613_s11, %s5146_s12  ;;  %p5153_p11 = scmp.lt.u32.totalorder %s5146_s12, %s6613_s11 }
  0xa9   : > { %p5149_p1 = pnand %p5147_p5, %p5641_p7 }
  0xab   : > { %p5150_p8 = pneg %p5149_p1 }
  0xad   : > { %p5155_p0 = pnand %p5153_p11, %p5150_p8 }
  0xaf   : > { %5158 = shalt.err (!%p5155_p0)
}
  0xb0   : > { %s5159_s2 = scalar_lea.vmem %s525_s25, 16384  ;;  %p5167_p13 = scmp.lt.s32.totalorder %s525_s25, %s525_s25 }
  0xb1   : > { %p5160_p12 = scmp.ne.s32.totalorder %s525_s25, %s5159_s2  ;;  %p5168_p2 = scmp.lt.s32.totalorder %s5159_s2, %s5159_s2 }
  0xb3   : > { %p5162_p4 = pnand %p5160_p12, %p5641_p7  ;;  %p5169_p3 = por %p5168_p2, %p5167_p13 }
  0xb5   : > { %p5163_p10 = pneg %p5162_p4 }
  0xb7   : > { %p5170_p6 = pnand %p5169_p3, %p5163_p10 }
  0xb9   : > { %5173 = shalt.err (!%p5170_p6)
}
  0xba   : > { %4847 = dma.hbm_to_vmem [thread:$0]  (!%p6612_p9), %s6613_s11, 16384, %s525_s25, [#allocation14], %s5436_s17, %s5436_s17, %s5437_s15  }
  0xbb   : > { %s6614_s13 = sld [smem:[#allocation49_spill]] }
  0xc1   : > { %s5174_s9 = scalar_lea.hbm %s6614_s13, 16384 }
  0xc2   : > { %p5175_p5 = scmp.ne.s32.totalorder %s6614_s13, %s5174_s9  ;;  %p5181_p11 = scmp.lt.u32.totalorder %s5174_s9, %s6614_s13 }
  0xc4   : > { %p5177_p1 = pnand %p5175_p5, %p5641_p7 }
  0xc6   : > { %p5178_p8 = pneg %p5177_p1 }
  0xc8   : > { %p5183_p0 = pnand %p5181_p11, %p5178_p8 }
  0xca   : > { %5186 = shalt.err (!%p5183_p0)
}
  0xcb   : > { %s5187_s17 = scalar_lea.vmem %s5767_s3, 16384  ;;  %p5195_p13 = scmp.lt.s32.totalorder %s5767_s3, %s5767_s3 }
  0xcc   : > { %p5188_p12 = scmp.ne.s32.totalorder %s5767_s3, %s5187_s17  ;;  %p5196_p2 = scmp.lt.s32.totalorder %s5187_s17, %s5187_s17 }
  0xce   : > { %p5190_p4 = pnand %p5188_p12, %p5641_p7  ;;  %p5197_p3 = por %p5196_p2, %p5195_p13 }
  0xd0   : > { %p5191_p10 = pneg %p5190_p4 }
  0xd2   : > { %p5198_p6 = pnand %p5197_p3, %p5191_p10 }
  0xd4   : > { %5201 = shalt.err (!%p5198_p6)
}
  0xd5   : > { %4850 = dma.hbm_to_vmem [thread:$0]  (!%p6612_p9), %s6614_s13, 16384, %s5767_s3, [#allocation17], %s6610_s6, %s6610_s6, %s6609_s4  }
  0xd6   : > { %s4118_s1 = sadd.s32 4294967294, %s5428_s22   ;;  %s48_s16 = sadd.s32 1, %s5420_s20 }
  0xd7   : > { %p49_p7 = scmp.ge.s32.totalorder %s48_s16, 2  ;;  %s60_s2 = sadd.s32 1, %s5408_s18 }
  0xd8   : > { %p67_p5 = scmp.ne.s32.totalorder %s5408_s18, %s5404_s30  ;;  %p73_p1 = scmp.ne.s32.totalorder %s5404_s30, %s5400_s0 }
  0xd9   : > { %s6685_s16 = smov (%p49_p7, %s48_s16), 0  ;;  %s6616_s28 = sadd.s32 1, %s5424_s21 }
  0xda   : > { %6615 = sst [smem:[#allocation33_spill]] %s6685_s16  ;;  %s6687_s28 = smov (!%p49_p7, %s6616_s28), %s5424_s21 }
  0xdb   : > { %s5827_s10 = ssub.s32 %s5420_s20, %s6685_s16  ;;  %p6617_p9 = scmp.eq.s32.totalorder %s5428_s22, 0 }
  0xdc   : > { %p53_p11 = scmp.ge.s32.totalorder %s6687_s28, 2  ;;  %p6619_p0 = scmp.eq.s32.totalorder %s5614_s23, 0 }
  0xdd   : > { %p5831_p8 = por %p6617_p9, %p67_p5  ;;  %p445_p10 = scmp.eq.s32.totalorder %s5614_s23, 3 }
  0xde   : > { %p5840_p12 = por %p6619_p0, %p73_p1  ;;  %s6689_s28 = smov (%p53_p11, %s6687_s28), 0 }
  0xdf   : > { %6621 = sst [smem:[#allocation34_spill]] %s6689_s28  ;;  %p5848_p13 = por %p445_p10, %p67_p5 }
  0xe0   : > { %p451_p2 = scmp.eq.s32.totalorder %s4118_s1, 3  ;;  %s55_s9 = ssub.s32 %s5424_s21, %s6689_s28 }
  0xe1   : > { %s6622_s8 = scalar_select %p5848_p13, 1, 0 }
  0xe2   : > { %s563_s27 = sand.u32 1, %s5408_s18   ;;  %s57_s24 = sor.u32 %s5827_s10, %s55_s9 }
  0xe3   : > { %p84_p3 = scmp.eq.s32.totalorder %s55_s9, 0  ;;  %p58_p6 = scmp.eq.s32.totalorder %s57_s24, 0 }
  0xe4   : > { %p5859_p7 = por %p451_p2, %p73_p1  ;;  %s6624_s14 = sadd.s32 1, %s5396_s29 }
  0xe5   : > { %s5866_s17 = scalar_select %p84_p3, %s5396_s29, %s6624_s14  }
  0xe6   : > { %s6623_s7 = scalar_select %p5859_p7, 1, 0 }
  0xe7   : > { %6625 = sst [smem:[#allocation35_spill]] %s5866_s17  ;;  %s4126_s25 = sshll.u32 %s563_s27, 5 }
  0xe8   : > { %s5869_s15 = scalar_select %p58_p6, %s5408_s18, %s60_s2  }
  0xe9   : > { %s4183_s5 = sshll.u32 %s5420_s20, 2  ;;  %s4129_s1 = sshll.u32 %s5424_s21, 3 }
  0xea   : > { %s567_s11 = scalar_lea.vmem [#allocation4], %s4126_s25  ;;  %s574_s28 = sadd.s32 %s4183_s5, %s4129_s1 }
  0xeb   : > { %s577_s13 = sshll.u32 %s567_s11, 4  ;;  %s4130_s9 = sshll.u32 %s574_s28, 7  ;;  %s5873_s13 = int_to_ptr.vmem [resolvable:$true] %s577_s13 }
  0xec   : > { %p6626_p5 = scmp.lt.s32.totalorder %s5428_s22, 4  ;;  %s6628_s17 = sld [smem:[#allocation36_spill]] }
  0xed   : > { %s5888_s5 = scalar_lea.sflag [#allocation5], %s563_s27 }
  0xee   : > { %p5879_p1 = pnand %p6626_p5, %p5831_p8 }
  0xf0   : > { %p5204_p8 = pneg %p5879_p1 }
  0xf2   : > { %s5886_s2 = scalar_lea.hbm %s6628_s17, %s4130_s9  ;;  %s5207_s3 = scalar_lea.hbm %s6628_s17, 2048 }
  0xf3   : > { %s5202_s11 = scalar_lea.hbm %s5886_s2, 512  ;;  %p5208_p10 = scmp.lt.u32.totalorder %s5886_s2, %s6628_s17 }
  0xf4   : > { %p5203_p9 = scmp.ne.s32.totalorder %s5886_s2, %s5202_s11  ;;  %p5209_p2 = scmp.lt.u32.totalorder %s5207_s3, %s5202_s11 }
  0xf5   : > { %p5211_p6 = scmp.lt.u32.totalorder %s5202_s11, %s5886_s2 }
  0xf6   : > { %p5205_p11 = pnand %p5204_p8, %p5203_p9  ;;  %p5210_p3 = por %p5209_p2, %p5208_p10 }
  0xf8   : > { %p5206_p0 = pneg %p5205_p11  ;;  %p5212_p5 = por %p5211_p6, %p5210_p3 }
  0xfa   : > { %p5213_p4 = pnand %p5212_p5, %p5206_p0 }
  0xfc   : > { %5216 = shalt.err (!%p5213_p4)
}
  0xfd   : > { %s5217_s27 = scalar_lea.vmem %s5873_s13, 512  ;;  %s5440_s9 = smov [#allocation4]  }
  0xfe   : > { %p5218_p9 = scmp.ne.s32.totalorder %s5873_s13, %s5217_s27  ;;  %s5222_s14 = sshll.u32 %s5440_s9, 4  ;;  %s5223_s14 = int_to_ptr.vmem [resolvable:$false] %s5222_s14 }
  0xff   : > { %s5224_s28 = scalar_lea.vmem %s5223_s14, 1024  ;;  %p5225_p13 = scmp.lt.s32.totalorder %s5873_s13, %s5223_s14 }
 0x100   : > { %p5220_p11 = pnand %p5218_p9, %p5204_p8  ;;  %p5226_p10 = scmp.lt.s32.totalorder %s5224_s28, %s5217_s27 }
 0x102   : > { %p5221_p7 = pneg %p5220_p11  ;;  %p5227_p2 = por %p5226_p10, %p5225_p13 }
 0x104   : > { %p5228_p3 = pnand %p5227_p2, %p5221_p7 }
 0x106   : > { %5231 = shalt.err (!%p5228_p3)
}
 0x107   : > { %s6629_s11 = sld [smem:[#allocation27_spill]]  ;;  %s6630_s16 = sld [smem:[#allocation26_spill]] }
 0x108   : > { %4854 = dma.hbm_to_vmem [thread:$0]  (!%p5879_p1), %s5886_s2, 512, %s5873_s13, %s5888_s5, %s6610_s6, %s6610_s6, %s6609_s4  }
 0x109   : > { %s112_s24 = sadd.s32 1, %s5384_s26  ;;  %p6631_p13 = scmp.eq.s32.totalorder %s5827_s10, 0 }
 0x10a   : > { %p6632_p7 = scmp.eq.s32.totalorder %s5428_s22, 0  ;;  %s610_s25 = sand.u32 1, %s5384_s26  }
 0x10b   : > { %s5925_s3 = scalar_select %p6631_p13, %s5384_s26, %s112_s24  }
 0x10c   : > { %s4185_s1 = sshll.u32 %s5420_s20, 8  ;;  %p6633_p6 = scmp.eq.s32.totalorder %s5614_s23, 0 }
 0x10d   : > { %p119_p4 = scmp.ne.s32.totalorder %s5384_s26, %s6629_s11  ;;  %p125_p0 = scmp.ne.s32.totalorder %s6629_s11, %s6630_s16 }
 0x10e   : > { %s4134_s9 = sshll.u32 %s610_s25, 4  ;;  %s6635_s17 = sld [smem:[#allocation38_spill]] }
 0x10f   : > { %p121_p8 = por %p119_p4, %p6632_p7  ;;  %p5935_p5 = por %p125_p0, %p6633_p6 }
 0x110   : > { %s612_s4 = scalar_lea.vmem [#allocation9], %s4134_s9  ;;  %p6636_p1 = scmp.lt.s32.totalorder %s5428_s22, 4 }
 0x111   : > { %s6634_s27 = scalar_select %p5935_p5, 1, 0 }
 0x112   : > { %s619_s6 = sshll.u32 %s612_s4, 4  ;;  %p5946_p9 = pnand %p6636_p1, %p121_p8  ;;  %s5950_s6 = int_to_ptr.vmem [resolvable:$true] %s619_s6 }
 0x114   : > { %s5942_s13 = scalar_lea.hbm %s6635_s17, %s4185_s1  ;;  %p5234_p10 = pneg %p5946_p9 }
 0x115   : > { %s5232_s2 = scalar_lea.hbm %s5942_s13, 256  ;;  %s5237_s16 = scalar_lea.hbm %s6635_s17, 512 }
 0x116   : > { %p5233_p11 = scmp.ne.s32.totalorder %s5942_s13, %s5232_s2  ;;  %p5238_p4 = scmp.lt.u32.totalorder %s5942_s13, %s6635_s17 }
 0x117   : > { %p5239_p13 = scmp.lt.u32.totalorder %s5237_s16, %s5232_s2  ;;  %p5241_p8 = scmp.lt.u32.totalorder %s5232_s2, %s5942_s13 }
 0x118   : > { %p5235_p2 = pnand %p5234_p10, %p5233_p11 }
 0x119   : > { %p5240_p7 = por %p5239_p13, %p5238_p4 }
 0x11a   : > { %p5236_p3 = pneg %p5235_p2 }
 0x11b   : > { %p5242_p0 = por %p5241_p8, %p5240_p7 }
 0x11d   : > { %p5243_p6 = pnand %p5242_p0, %p5236_p3 }
 0x11f   : > { %5246 = shalt.err (!%p5243_p6)
}
 0x120   : > { %s5247_s1 = scalar_lea.vmem %s5950_s6, 256  ;;  %s5441_s9 = smov [#allocation9]  }
 0x121   : > { %p5248_p1 = scmp.ne.s32.totalorder %s5950_s6, %s5247_s1  ;;  %s5252_s14 = sshll.u32 %s5441_s9, 4  ;;  %s5253_s14 = int_to_ptr.vmem [resolvable:$false] %s5252_s14 }
 0x122   : > { %s5254_s28 = scalar_lea.vmem %s5253_s14, 512  ;;  %p5255_p5 = scmp.lt.s32.totalorder %s5950_s6, %s5253_s14 }
 0x123   : > { %p5250_p11 = pnand %p5248_p1, %p5234_p10  ;;  %p5256_p4 = scmp.lt.s32.totalorder %s5254_s28, %s5247_s1 }
 0x125   : > { %p5251_p2 = pneg %p5250_p11  ;;  %p5257_p13 = por %p5256_p4, %p5255_p5 }
 0x127   : > { %p5258_p7 = pnand %p5257_p13, %p5251_p2 }
 0x129   : > { %5261 = shalt.err (!%p5258_p7)
}
 0x12a   : > { %s5442_s4 = smov 128   ;;  %s5443_s2 = smov 8  }
 0x12b   : > { %4860 = dma.hbm_to_vmem [thread:$0]  (!%p5946_p9), %s5942_s13, 256, %s5950_s6, %s5718_s19, %s5442_s4, %s5442_s4, %s5443_s2  }
 0x12c   : > { %s6638_s5 = sld [smem:[#allocation31_spill]] }
 0x132   : > { %p6639_p10 = scmp.ne.s32.totalorder %s6638_s5, 0 }
 0x133   : > { %s5981_s11 = sand.u32 (!%p6639_p10), 1, %s5404_s30  }
 0x134   : > { %631 = sbr.rel (%p6639_p10) target bundleno = 3142 (0xc46), region = 88  ;;  %s4138_s16 = sshll.u32 (!%p6639_p10), %s5981_s11, 5 }
 0x135   : > { %s634_s24 = scalar_lea.sflag (!%p6639_p10), [#allocation5], %s5981_s11  ;;  %s5985_s25 = scalar_lea.vmem (!%p6639_p10), [#allocation4], %s4138_s16 }
 0x13b   : > { %5347 = dma.done.wait (%p5840_p12), %s634_s24, 512  }
 0x13c   : > { %5349 = vsyncadd (%p5840_p12), %s634_s24, 4294966784  ;;  %s6640_s19 = sld [smem:[#allocation28_spill]]  ;;  %s642_s6 = sand.u32 1, %s5614_s23  }
 0x13d   : > { %s6641_s13 = sld [smem:[#allocation32_spill]]  ;;  %s643_s9 = scalar_lea.sflag [#allocation8], %s642_s6 }
 0x142   : > { %s644_s10 = sand.u32 1, %s6640_s19  }
 0x143   : > { %s4139_s1 = sshll.u32 %s644_s10, 6  ;;  %p6642_p5 = scmp.ne.s32.totalorder %s6641_s13, 0 }
 0x144   : > { %s5993_s14 = scalar_lea.vmem [#allocation7], %s4139_s1 }
 0x145   : > { %5351 = dma.done.wait (%p6642_p5), %s643_s9, 1024  }
 0x146   : > { %5353 = vsyncadd (%p6642_p5), %s643_s9, 4294966272  ;;  %s6643_s28 = sld [smem:[#allocation27_spill]]  ;;  %p6644_p12 = scmp.ne.s32.totalorder %s6634_s27, 0 }
 0x14c   : > { %s653_s4 = sand.u32 1, %s6643_s28  }
 0x14d   : > { %s6000_s2 = sshll.u32 %s653_s4, 4 }
 0x14e   : > { %s655_s12 = scalar_lea.vmem [#allocation9], %s6000_s2 }
 0x14f   : > { %5355 = dma.done.wait (%p6644_p12), %s643_s9, 256  }
 0x150   : > { %5357 = vsyncadd (%p6644_p12), %s643_s9, 4294967040  ;;  %p6645_p9 = scmp.eq.s32.totalorder %s5614_s23, 0 }
 0x152   : > { %5359 = dma.done.wait (%p6645_p9), [#allocation11], 24576   ;;  %p6646_p3 = pmov %p6645_p9 }
 0x154   : > { %5361 = vsyncadd (%p6646_p3), [#allocation11], 4294942720  ;;  %p6647_p8 = pmov %p6646_p3 }
 0x155   : > { %p6648_p0 = pmov %p6646_p3 }
 0x156   : > { %5363 = dma.done.wait (%p6647_p8), [#allocation14], 24576  }
 0x157   : > { %5365 = vsyncadd (%p6648_p0), [#allocation14], 4294942720  ;;  %p6649_p6 = pmov %p6648_p0 }
 0x158   : > { %p6650_p1 = pmov %p6648_p0 }
 0x159   : > { %5367 = dma.done.wait (%p6649_p6), [#allocation17], 16384  }
 0x15a   : > { %5369 = vsyncadd (%p6650_p1), [#allocation17], 4294950912  ;;  %s6019_s27 = scalar_lea.vmem [#allocation18], %s4138_s16  ;;  %s6651_s5 = sld [smem:[#allocation29_spill]] }
 0x160   : > { %p4147_p11 = scmp.ne.s32.totalorder %s6651_s5, 0 }
 0x161   : > { %v752_v0 = vld [vmem:[#allocation12 + $0x8] sm:$0xff] (!%p4147_p11)  ;;  %v754_v2 = vld [vmem:[#allocation12 + $0x18] sm:$0xff] (!%p4147_p11)  ;;  %v751_v5 = vld [vmem:[#allocation12] sm:$0xff] (!%p4147_p11)  ;;  %s6652_s24 = sld [smem:[#allocation42_spill]] (!%p4147_p11) }
 0x162   : > { %742 = sbr.rel (%p4147_p11) target bundleno = 702 (0x2be), region = 124  ;;  %v756_v1 = vld [vmem:[#allocation12 + $0x28] sm:$0xff] (!%p4147_p11)  ;;  %v758_v4 = vld [vmem:[#allocation12 + $0x38] sm:$0xff] (!%p4147_p11)  ;;  %v755_v6 = vld [vmem:[#allocation12 + $0x20] sm:$0xff] (!%p4147_p11) }
 0x163   : > { %v4255_v3 = vpack.c.bf16 (!%p4147_p11), %v756_v1, %v752_v0  ;;  %v4319_v7 = vpack.c.bf16 (!%p4147_p11), %v758_v4, %v754_v2  ;;  %v4257_v8 = vpack.c.bf16 (!%p4147_p11), %v755_v6, %v751_v5  ;;  %v753_v9 = vld [vmem:[#allocation12 + $0x10] sm:$0xff] (!%p4147_p11)  ;;  %v760_v11 = vld [vmem:[#allocation12 + $0x48] sm:$0xff] (!%p4147_p11)  ;;  %v762_v14 = vld [vmem:[#allocation12 + $0x58] sm:$0xff] (!%p4147_p11) }
 0x164   : > { %v757_v10 = vld [vmem:[#allocation12 + $0x30] sm:$0xff] (!%p4147_p11)  ;;  %v764_v13 = vld [vmem:[#allocation12 + $0x68] sm:$0xff] (!%p4147_p11)  ;;  %v766_v15 = vld [vmem:[#allocation12 + $0x78] sm:$0xff] (!%p4147_p11) }
 0x165   : > { %4256 = vmatprep.subr.bf16.mxu0 (!%p4147_p11), %v4255_v3  ;;  %v4321_v12 = vpack.c.bf16 (!%p4147_p11), %v757_v10, %v753_v9  ;;  %4320 = vmatprep.subr.bf16.mxu1 (!%p4147_p11), %v4319_v7  ;;  %v4259_v16 = vpack.c.bf16 (!%p4147_p11), %v764_v13, %v760_v11  ;;  %v4323_v17 = vpack.c.bf16 (!%p4147_p11), %v766_v15, %v762_v14  ;;  %v759_v18 = vld [vmem:[#allocation12 + $0x40] sm:$0xff] (!%p4147_p11)  ;;  %v761_v20 = vld [vmem:[#allocation12 + $0x50] sm:$0xff] (!%p4147_p11)  ;;  %v768_v23 = vld [vmem:[#allocation12 + $0x88] sm:$0xff] (!%p4147_p11) }
 0x166   : > { %4258 = vmatpush1.bf16.msra.mxu0 (!%p4147_p11), %v4257_v8  ;;  %v763_v19 = vld [vmem:[#allocation12 + $0x60] sm:$0xff] (!%p4147_p11)  ;;  %v765_v22 = vld [vmem:[#allocation12 + $0x70] sm:$0xff] (!%p4147_p11)  ;;  %v772_v24 = vld [vmem:[#allocation12 + $0xa8] sm:$0xff] (!%p4147_p11) }
 0x167   : > { %4322 = vmatpush1.bf16.msra.mxu1 (!%p4147_p11), %v4321_v12  ;;  %v4261_v21 = vpack.c.bf16 (!%p4147_p11), %v763_v19, %v759_v18  ;;  %4260 = vmatprep.subr.bf16.mxu0 (!%p4147_p11), %v4259_v16  ;;  %v4325_v25 = vpack.c.bf16 (!%p4147_p11), %v765_v22, %v761_v20  ;;  %v4263_v26 = vpack.c.bf16 (!%p4147_p11), %v772_v24, %v768_v23  ;;  %v770_v27 = vld [vmem:[#allocation12 + $0x98] sm:$0xff] (!%p4147_p11)  ;;  %v767_v29 = vld [vmem:[#allocation12 + $0x80] sm:$0xff] (!%p4147_p11)  ;;  %v769_v32 = vld [vmem:[#allocation12 + $0x90] sm:$0xff] (!%p4147_p11) }
 0x168   : > { %4324 = vmatprep.subr.bf16.mxu1 (!%p4147_p11), %v4323_v17  ;;  %v774_v28 = vld [vmem:[#allocation12 + $0xb8] sm:$0xff] (!%p4147_p11)  ;;  %v771_v31 = vld [vmem:[#allocation12 + $0xa0] sm:$0xff] (!%p4147_p11)  ;;  %v773_v33 = vld [vmem:[#allocation12 + $0xb0] sm:$0xff] (!%p4147_p11) }
 0x169   : > { %v4327_v30 = vpack.c.bf16 %v774_v28, %v770_v27  ;;  %v4265_v34 = vpack.c.bf16 %v771_v31, %v767_v29  ;;  %v776_v35 = vld [vmem:[#allocation12 + $0xc8] sm:$0xff]  ;;  %v778_v37 = vld [vmem:[#allocation12 + $0xd8] sm:$0xff]  ;;  %v4329_v38 = vpack.c.bf16 %v773_v33, %v769_v32  ;;  %v775_v41 = vld [vmem:[#allocation12 + $0xc0] sm:$0xff] }
 0x16a   : > { %4262 = vmatpush1.bf16.msra.mxu0 %v4261_v21  ;;  %v780_v36 = vld [vmem:[#allocation12 + $0xe8] sm:$0xff]  ;;  %v782_v40 = vld [vmem:[#allocation12 + $0xf8] sm:$0xff]  ;;  %v779_v42 = vld [vmem:[#allocation12 + $0xe0] sm:$0xff] }
 0x16b   : > { %4326 = vmatpush1.bf16.msra.mxu1 %v4325_v25  ;;  %4264 = vmatprep.subr.bf16.mxu0 %v4263_v26  ;;  %v4267_v39 = vpack.c.bf16 %v780_v36, %v776_v35  ;;  %v4331_v43 = vpack.c.bf16 %v782_v40, %v778_v37  ;;  %v777_v44 = vld [vmem:[#allocation12 + $0xd0] sm:$0xff]  ;;  %v784_v46 = vld [vmem:[#allocation12 + $0x108] sm:$0xff]  ;;  %v786_v48 = vld [vmem:[#allocation12 + $0x118] sm:$0xff]  ;;  %v4269_v50 = vpack.c.bf16 %v779_v42, %v775_v41 }
 0x16c   : > { %4328 = vmatprep.subr.bf16.mxu1 %v4327_v30  ;;  %v781_v45 = vld [vmem:[#allocation12 + $0xf0] sm:$0xff]  ;;  %v788_v47 = vld [vmem:[#allocation12 + $0x128] sm:$0xff]  ;;  %v790_v49 = vld [vmem:[#allocation12 + $0x138] sm:$0xff] }
 0x16d   : > { %v4333_v51 = vpack.c.bf16 %v781_v45, %v777_v44  ;;  %v4271_v52 = vpack.c.bf16 %v788_v47, %v784_v46  ;;  %v783_v53 = vld [vmem:[#allocation12 + $0x100] sm:$0xff]  ;;  %v785_v55 = vld [vmem:[#allocation12 + $0x110] sm:$0xff]  ;;  %v4335_v56 = vpack.c.bf16 %v790_v49, %v786_v48  ;;  %v792_v58 = vld [vmem:[#allocation12 + $0x148] sm:$0xff] }
 0x16e   : > { %4266 = vmatpush1.bf16.msra.mxu0 %v4265_v34  ;;  %v787_v54 = vld [vmem:[#allocation12 + $0x120] sm:$0xff]  ;;  %v789_v57 = vld [vmem:[#allocation12 + $0x130] sm:$0xff]  ;;  %v796_v59 = vld [vmem:[#allocation12 + $0x168] sm:$0xff] }
 0x16f   : > { %4330 = vmatpush1.bf16.msra.mxu1 %v4329_v38  ;;  %4268 = vmatprep.subr.bf16.mxu0 %v4267_v39  ;;  %v794_v60 = vld [vmem:[#allocation12 + $0x158] sm:$0xff]  ;;  %v4273_v62 = vpack.c.bf16 %v787_v54, %v783_v53  ;;  %v4337_v63 = vpack.c.bf16 %v789_v57, %v785_v55  ;;  %v4275_v0 = vpack.c.bf16 %v796_v59, %v792_v58  ;;  %v791_v1 = vld [vmem:[#allocation12 + $0x140] sm:$0xff]  ;;  %v793_v3 = vld [vmem:[#allocation12 + $0x150] sm:$0xff] }
 0x170   : > { %4332 = vmatprep.subr.bf16.mxu1 %v4331_v43  ;;  %v798_v61 = vld [vmem:[#allocation12 + $0x178] sm:$0xff]  ;;  %v795_v2 = vld [vmem:[#allocation12 + $0x160] sm:$0xff]  ;;  %v797_v5 = vld [vmem:[#allocation12 + $0x170] sm:$0xff] }
 0x171   : > { %v4339_v4 = vpack.c.bf16 %v798_v61, %v794_v60  ;;  %v800_v6 = vld [vmem:[#allocation12 + $0x188] sm:$0xff]  ;;  %v802_v8 = vld [vmem:[#allocation12 + $0x198] sm:$0xff]  ;;  %v4277_v10 = vpack.c.bf16 %v795_v2, %v791_v1  ;;  %v4341_v11 = vpack.c.bf16 %v797_v5, %v793_v3  ;;  %v799_v13 = vld [vmem:[#allocation12 + $0x180] sm:$0xff] }
 0x172   : > { %4270 = vmatpush1.bf16.msra.mxu0 %v4269_v50  ;;  %v804_v7 = vld [vmem:[#allocation12 + $0x1a8] sm:$0xff]  ;;  %v806_v9 = vld [vmem:[#allocation12 + $0x1b8] sm:$0xff]  ;;  %v803_v14 = vld [vmem:[#allocation12 + $0x1a0] sm:$0xff] }
 0x173   : > { %4334 = vmatpush1.bf16.msra.mxu1 %v4333_v51  ;;  %4272 = vmatprep.subr.bf16.mxu0 %v4271_v52  ;;  %v4279_v12 = vpack.c.bf16 %v804_v7, %v800_v6  ;;  %v801_v15 = vld [vmem:[#allocation12 + $0x190] sm:$0xff]  ;;  %v4343_v16 = vpack.c.bf16 %v806_v9, %v802_v8  ;;  %v808_v18 = vld [vmem:[#allocation12 + $0x1c8] sm:$0xff]  ;;  %v810_v20 = vld [vmem:[#allocation12 + $0x1d8] sm:$0xff]  ;;  %v4281_v22 = vpack.c.bf16 %v803_v14, %v799_v13 }
 0x174   : > { %4336 = vmatprep.subr.bf16.mxu1 %v4335_v56  ;;  %v805_v17 = vld [vmem:[#allocation12 + $0x1b0] sm:$0xff]  ;;  %v812_v19 = vld [vmem:[#allocation12 + $0x1e8] sm:$0xff]  ;;  %v814_v21 = vld [vmem:[#allocation12 + $0x1f8] sm:$0xff] }
 0x175   : > { %v4345_v23 = vpack.c.bf16 %v805_v17, %v801_v15  ;;  %v4283_v24 = vpack.c.bf16 %v812_v19, %v808_v18  ;;  %v807_v25 = vld [vmem:[#allocation12 + $0x1c0] sm:$0xff]  ;;  %v809_v27 = vld [vmem:[#allocation12 + $0x1d0] sm:$0xff]  ;;  %v4347_v28 = vpack.c.bf16 %v814_v21, %v810_v20  ;;  %v816_v30 = vld [vmem:[#allocation12 + $0x208] sm:$0xff] }
 0x176   : > { %4274 = vmatpush1.bf16.msra.mxu0 %v4273_v62  ;;  %v811_v26 = vld [vmem:[#allocation12 + $0x1e0] sm:$0xff]  ;;  %v813_v29 = vld [vmem:[#allocation12 + $0x1f0] sm:$0xff]  ;;  %v820_v31 = vld [vmem:[#allocation12 + $0x228] sm:$0xff] }
 0x177   : > { %4338 = vmatpush1.bf16.msra.mxu1 %v4337_v63  ;;  %4276 = vmatprep.subr.bf16.mxu0 %v4275_v0  ;;  %v818_v32 = vld [vmem:[#allocation12 + $0x218] sm:$0xff]  ;;  %v4285_v34 = vpack.c.bf16 %v811_v26, %v807_v25  ;;  %v4349_v35 = vpack.c.bf16 %v813_v29, %v809_v27  ;;  %v4287_v36 = vpack.c.bf16 %v820_v31, %v816_v30  ;;  %v815_v37 = vld [vmem:[#allocation12 + $0x200] sm:$0xff]  ;;  %v817_v39 = vld [vmem:[#allocation12 + $0x210] sm:$0xff] }
 0x178   : > { %4340 = vmatprep.subr.bf16.mxu1 %v4339_v4  ;;  %v822_v33 = vld [vmem:[#allocation12 + $0x238] sm:$0xff]  ;;  %v819_v38 = vld [vmem:[#allocation12 + $0x220] sm:$0xff]  ;;  %v821_v41 = vld [vmem:[#allocation12 + $0x230] sm:$0xff] }
 0x179   : > { %v4351_v40 = vpack.c.bf16 %v822_v33, %v818_v32  ;;  %v824_v42 = vld [vmem:[#allocation12 + $0x248] sm:$0xff]  ;;  %v826_v44 = vld [vmem:[#allocation12 + $0x258] sm:$0xff]  ;;  %v4289_v46 = vpack.c.bf16 %v819_v38, %v815_v37  ;;  %v4353_v47 = vpack.c.bf16 %v821_v41, %v817_v39  ;;  %v823_v49 = vld [vmem:[#allocation12 + $0x240] sm:$0xff] }
 0x17a   : > { %4278 = vmatpush1.bf16.msra.mxu0 %v4277_v10  ;;  %v828_v43 = vld [vmem:[#allocation12 + $0x268] sm:$0xff]  ;;  %v830_v45 = vld [vmem:[#allocation12 + $0x278] sm:$0xff]  ;;  %v827_v50 = vld [vmem:[#allocation12 + $0x260] sm:$0xff] }
 0x17b   : > { %4342 = vmatpush1.bf16.msra.mxu1 %v4341_v11  ;;  %4280 = vmatprep.subr.bf16.mxu0 %v4279_v12  ;;  %v4291_v48 = vpack.c.bf16 %v828_v43, %v824_v42  ;;  %v825_v51 = vld [vmem:[#allocation12 + $0x250] sm:$0xff]  ;;  %v4355_v52 = vpack.c.bf16 %v830_v45, %v826_v44  ;;  %v832_v54 = vld [vmem:[#allocation12 + $0x288] sm:$0xff]  ;;  %v834_v56 = vld [vmem:[#allocation12 + $0x298] sm:$0xff]  ;;  %v4293_v58 = vpack.c.bf16 %v827_v50, %v823_v49 }
 0x17c   : > { %4344 = vmatprep.subr.bf16.mxu1 %v4343_v16  ;;  %v829_v53 = vld [vmem:[#allocation12 + $0x270] sm:$0xff]  ;;  %v836_v55 = vld [vmem:[#allocation12 + $0x2a8] sm:$0xff]  ;;  %v838_v57 = vld [vmem:[#allocation12 + $0x2b8] sm:$0xff] }
 0x17d   : > { %v4357_v59 = vpack.c.bf16 %v829_v53, %v825_v51  ;;  %v4295_v60 = vpack.c.bf16 %v836_v55, %v832_v54  ;;  %v831_v61 = vld [vmem:[#allocation12 + $0x280] sm:$0xff]  ;;  %v833_v63 = vld [vmem:[#allocation12 + $0x290] sm:$0xff]  ;;  %v4359_v0 = vpack.c.bf16 %v838_v57, %v834_v56  ;;  %v840_v2 = vld [vmem:[#allocation12 + $0x2c8] sm:$0xff] }
 0x17e   : > { %4282 = vmatpush1.bf16.msra.mxu0 %v4281_v22  ;;  %v835_v62 = vld [vmem:[#allocation12 + $0x2a0] sm:$0xff]  ;;  %v837_v1 = vld [vmem:[#allocation12 + $0x2b0] sm:$0xff]  ;;  %v844_v3 = vld [vmem:[#allocation12 + $0x2e8] sm:$0xff] }
 0x17f   : > { %4346 = vmatpush1.bf16.msra.mxu1 %v4345_v23  ;;  %4284 = vmatprep.subr.bf16.mxu0 %v4283_v24  ;;  %v842_v4 = vld [vmem:[#allocation12 + $0x2d8] sm:$0xff]  ;;  %v4297_v6 = vpack.c.bf16 %v835_v62, %v831_v61  ;;  %v839_v7 = vld [vmem:[#allocation12 + $0x2c0] sm:$0xff]  ;;  %v4361_v8 = vpack.c.bf16 %v837_v1, %v833_v63  ;;  %v4299_v9 = vpack.c.bf16 %v844_v3, %v840_v2  ;;  %v841_v11 = vld [vmem:[#allocation12 + $0x2d0] sm:$0xff] }
 0x180   : > { %4348 = vmatprep.subr.bf16.mxu1 %v4347_v28  ;;  %v846_v5 = vld [vmem:[#allocation12 + $0x2f8] sm:$0xff]  ;;  %v843_v10 = vld [vmem:[#allocation12 + $0x2e0] sm:$0xff]  ;;  %v845_v12 = vld [vmem:[#allocation12 + $0x2f0] sm:$0xff] }
 0x181   : > { %v4363_v13 = vpack.c.bf16 %v846_v5, %v842_v4  ;;  %v848_v14 = vld [vmem:[#allocation12 + $0x308] sm:$0xff]  ;;  %v850_v17 = vld [vmem:[#allocation12 + $0x318] sm:$0xff]  ;;  %v4301_v19 = vpack.c.bf16 %v843_v10, %v839_v7  ;;  %v4365_v20 = vpack.c.bf16 %v845_v12, %v841_v11  ;;  %v847_v22 = vld [vmem:[#allocation12 + $0x300] sm:$0xff]  ;;  %v5444_v10 = vmov 1983009808  }
 0x182   : > { %4286 = vmatpush1.bf16.msra.mxu0 %v4285_v34  ;;  %v852_v15 = vld [vmem:[#allocation12 + $0x328] sm:$0xff]  ;;  %v854_v18 = vld [vmem:[#allocation12 + $0x338] sm:$0xff]  ;;  %v851_v23 = vld [vmem:[#allocation12 + $0x320] sm:$0xff]  ;;  %v1081_v11 = vunpack.c.l.s4 %v5444_v10 }
 0x183   : > { %4350 = vmatpush1.bf16.msra.mxu1 %v4349_v35  ;;  %4288 = vmatprep.subr.bf16.mxu0 %v4287_v36  ;;  %v744_v16 = vld [vmem:[%s5993_s14 + $0x8] sm:$0xff]  ;;  %v4303_v21 = vpack.c.bf16 %v852_v15, %v848_v14  ;;  %v849_v24 = vld [vmem:[#allocation12 + $0x310] sm:$0xff]  ;;  %v4367_v25 = vpack.c.bf16 %v854_v18, %v850_v17  ;;  %v858_v29 = vld [vmem:[#allocation12 + $0x358] sm:$0xff]  ;;  %v4305_v31 = vpack.c.bf16 %v851_v23, %v847_v22  ;;  %v5445_v17 = vmov 1934713408  }
 0x184   : > { %4352 = vmatprep.subr.bf16.mxu1 %v4351_v40  ;;  %965 = vmatprep.mubr.f32.mxu0 %v744_v16  ;;  %v853_v26 = vld [vmem:[#allocation12 + $0x330] sm:$0xff]  ;;  %v856_v27 = vld [vmem:[#allocation12 + $0x348] sm:$0xff]  ;;  %v862_v30 = vld [vmem:[#allocation12 + $0x378] sm:$0xff]  ;;  %v1112_v18 = vunpack.c.l.s4 %v5445_v17 }
 0x185   : > { %1054 = vmatprep.mubr.f32.mxu1 %v744_v16  ;;  %v860_v28 = vld [vmem:[#allocation12 + $0x368] sm:$0xff]  ;;  %v4369_v32 = vpack.c.bf16 %v853_v26, %v849_v24  ;;  %v855_v34 = vld [vmem:[#allocation12 + $0x340] sm:$0xff]  ;;  %v857_v36 = vld [vmem:[#allocation12 + $0x350] sm:$0xff]  ;;  %v4371_v37 = vpack.c.bf16 %v862_v30, %v858_v29  ;;  %v1082_v16 = vunpack.c.0.s8 %v1081_v11 }
 0x186   : > { %4290 = vmatpush1.bf16.msra.mxu0 %v4289_v46  ;;  %v4307_v33 = vpack.c.bf16 %v860_v28, %v856_v27  ;;  %v859_v35 = vld [vmem:[#allocation12 + $0x360] sm:$0xff]  ;;  %v861_v38 = vld [vmem:[#allocation12 + $0x370] sm:$0xff]  ;;  %v864_v39 = vld [vmem:[#allocation12 + $0x388] sm:$0xff]  ;;  %v1113_v24 = vunpack.c.0.s8 %v1112_v18 }
 0x187   : > { %4354 = vmatpush1.bf16.msra.mxu1 %v4353_v47  ;;  %4292 = vmatprep.subr.bf16.mxu0 %v4291_v48  ;;  %v868_v40 = vld [vmem:[#allocation12 + $0x3a8] sm:$0xff]  ;;  %v866_v41 = vld [vmem:[#allocation12 + $0x398] sm:$0xff]  ;;  %v4309_v43 = vpack.c.bf16 %v859_v35, %v855_v34  ;;  %v4373_v44 = vpack.c.bf16 %v861_v38, %v857_v36  ;;  %v863_v46 = vld [vmem:[#allocation12 + $0x380] sm:$0xff] }
 0x188   : > { %4356 = vmatprep.subr.bf16.mxu1 %v4355_v52  ;;  %v870_v42 = vld [vmem:[#allocation12 + $0x3b8] sm:$0xff]  ;;  %v4311_v45 = vpack.c.bf16 %v868_v40, %v864_v39  ;;  %v867_v47 = vld [vmem:[#allocation12 + $0x3a0] sm:$0xff]  ;;  %v865_v48 = vld [vmem:[#allocation12 + $0x390] sm:$0xff] }
 0x189   : > { %v4375_v49 = vpack.c.bf16 %v870_v42, %v866_v41  ;;  %v869_v50 = vld [vmem:[#allocation12 + $0x3b0] sm:$0xff]  ;;  %v872_v51 = vld [vmem:[#allocation12 + $0x3c8] sm:$0xff]  ;;  %v874_v53 = vld [vmem:[#allocation12 + $0x3d8] sm:$0xff]  ;;  %v4313_v55 = vpack.c.bf16 %v867_v47, %v863_v46 }
 0x18a   : > { %4294 = vmatpush1.bf16.msra.mxu0 %v4293_v58  ;;  %v876_v52 = vld [vmem:[#allocation12 + $0x3e8] sm:$0xff]  ;;  %v878_v54 = vld [vmem:[#allocation12 + $0x3f8] sm:$0xff]  ;;  %v4377_v56 = vpack.c.bf16 %v869_v50, %v865_v48  ;;  %v871_v58 = vld [vmem:[#allocation12 + $0x3c0] sm:$0xff] }
 0x18b   : > { %4358 = vmatpush1.bf16.msra.mxu1 %v4357_v59  ;;  %4296 = vmatprep.subr.bf16.mxu0 %v4295_v60  ;;  %v4315_v57 = vpack.c.bf16 %v876_v52, %v872_v51  ;;  %v875_v59 = vld [vmem:[#allocation12 + $0x3e0] sm:$0xff]  ;;  %v4379_v60 = vpack.c.bf16 %v878_v54, %v874_v53  ;;  %v873_v61 = vld [vmem:[#allocation12 + $0x3d0] sm:$0xff]  ;;  %v746_v2 = vld [vmem:[%s5993_s14 + $0x18] sm:$0xff] }
 0x18c   : > { %4360 = vmatprep.subr.bf16.mxu1 %v4359_v0  ;;  %v877_v62 = vld [vmem:[#allocation12 + $0x3f0] sm:$0xff]  ;;  %v4317_v63 = vpack.c.bf16 %v875_v59, %v871_v58  ;;  %v743_v1 = vld [vmem:[%s5993_s14] sm:$0xff]  ;;  %v748_v4 = vld [vmem:[%s5993_s14 + $0x28] sm:$0xff] }
 0x18d   : > { %v4381_v0 = vpack.c.bf16 %v877_v62, %v873_v61  ;;  %v745_v3 = vld [vmem:[%s5993_s14 + $0x10] sm:$0xff]  ;;  %v747_v5 = vld [vmem:[%s5993_s14 + $0x20] sm:$0xff] }
 0x18e   : > { %4298 = vmatpush1.bf16.msra.mxu0 %v4297_v6  ;;  %v750_v6 = vld [vmem:[%s5993_s14 + $0x38] sm:$0xff]  ;;  %v749_v7 = vld [vmem:[%s5993_s14 + $0x30] sm:$0xff] }
 0x18f   : > { %4362 = vmatpush1.bf16.msra.mxu1 %v4361_v8  ;;  %4300 = vmatprep.subr.bf16.mxu0 %v4299_v9  ;;  %v881_v8 = vlaneseq }
 0x190   : > { %4364 = vmatprep.subr.bf16.mxu1 %v4363_v13  ;;  %v879_v13 = vld [vmem:[%s6652_s24] sm:$0xf] }
 0x191   : > { %v882_v9 = vshrl.u32 %v881_v8, 7 }
 0x192   : > { %4302 = vmatpush1.bf16.msra.mxu0 %v4301_v19 }
 0x193   : > { %4366 = vmatpush1.bf16.msra.mxu1 %v4365_v20  ;;  %4304 = vmatprep.subr.bf16.mxu0 %v4303_v21  ;;  %v883_v12 = vsub.s32 0, %v882_v9  ;;  %v891_v14 = vsub.s32 2, %v882_v9  ;;  %v887_v15 = vsub.s32 1, %v882_v9  ;;  %v895_v19 = vsub.s32 3, %v882_v9 }
 0x194   : > { %4368 = vmatprep.subr.bf16.mxu1 %v4367_v25  ;;  %v6039_v23 = vsub.s32 %v1082_v16, %v882_v9  ;;  %v6048_v36 = vsub.s32 %v1113_v24, %v882_v9 }
 0x195   : > { %v6033_v20 = vrot.slane %v879_v13, %v883_v12  ;;  %v6035_v21 = vrot.slane %v879_v13, %v891_v14  ;;  %v6037_v22 = vrot.slane %v879_v13, %v887_v15  ;;  %v6041_v25 = vrot.slane %v879_v13, %v895_v19 }
 0x196   : > { %4306 = vmatpush1.bf16.msra.mxu0 %v4305_v31 }
 0x197   : > { %4370 = vmatpush1.bf16.msra.mxu1 %v4369_v32  ;;  %4308 = vmatprep.subr.bf16.mxu0 %v4307_v33  ;;  %v5446_v33 = vmov 0.0  }
 0x198   : > { %4372 = vmatprep.subr.bf16.mxu1 %v4371_v37 }
 0x19a   : > { %4310 = vmatpush1.bf16.msra.mxu0 %v4309_v43 }
 0x19b   : > { %4374 = vmatpush1.bf16.msra.mxu1 %v4373_v44  ;;  %4312 = vmatprep.subr.bf16.mxu0 %v4311_v45 }
 0x19c   : > { %4376 = vmatprep.subr.bf16.mxu1 %v4375_v49 }
 0x19e   : > { %4314 = vmatpush1.bf16.msra.mxu0 %v4313_v55 }
 0x19f   : > { %4378 = vmatpush1.bf16.msra.mxu1 %v4377_v56  ;;  %4316 = vmatprep.subr.bf16.mxu0 %v4315_v57 }
 0x1a0   : > { %4380 = vmatprep.subr.bf16.mxu1 %v4379_v60 }
 0x1a2   : > { %4318 = vmatpush1.bf16.msra.mxu0 %v4317_v63 }
 0x1a3   : > { %4382 = vmatpush1.bf16.msra.mxu1 %v4381_v0 }
 0x1a5   : > { %966 = vmatmul.mubr.f32.vlgmr.msra.gmra.mrb[0].mxu0 %v743_v1 }
 0x1a6   : > { %1055 = vmatmul.mubr.f32.vlgmr.msra.gmra.mrb[0].mxu1 %v743_v1  ;;  %971 = vmatprep.mubr.f32.mxu0 %v746_v2 }
 0x1a7   : > { %1060 = vmatprep.mubr.f32.mxu1 %v746_v2 }
 0x1a9   : > { %972 = vmatmul.mubr.f32.gmra.mrb[2].mxu0 %v745_v3 }
 0x1aa   : > { %1061 = vmatmul.mubr.f32.gmra.mrb[2].mxu1 %v745_v3  ;;  %977 = vmatprep.mubr.f32.mxu0 %v748_v4 }
 0x1ab   : > { %1066 = vmatprep.mubr.f32.mxu1 %v748_v4 }
 0x1ad   : > { %978 = vmatmul.mubr.f32.gmra.mrb[4].mxu0 %v747_v5 }
 0x1ae   : > { %1067 = vmatmul.mubr.f32.gmra.mrb[4].mxu1 %v747_v5  ;;  %983 = vmatprep.mubr.f32.mxu0 %v750_v6 }
 0x1af   : > { %1072 = vmatprep.mubr.f32.mxu1 %v750_v6 }
 0x1b1   : > { %984 = vmatmul.mubr.f32.gmra.mrb[6].mxu0 %v749_v7 }
 0x1b2   : > { %1073 = vmatmul.mubr.f32.gmra.mrb[6].mxu1 %v749_v7 }
 0x278   : > { %v967_v26 = vpop.f32.mrb[0].mxu0 }
 0x279   : > { %v968_v27 = vadd.f32 %v967_v26, %v6033_v20  ;;  %v1056_v28 = vpop.f32.mrb[0].mxu1  ;;  %v969_v29 = vpop.f32.mrb[1].mxu0 }
 0x27a   : > { %v1057_v30 = vadd.f32 %v1056_v28, %v6035_v21  ;;  %v970_v31 = vadd.f32 %v969_v29, %v6037_v22  ;;  %v1058_v32 = vpop.f32.mrb[1].mxu1 }
 0x27b   : > { %v1079_v34 = vcombine.high %v968_v27, %v5446_v33  ;;  %v1086_v35 = vrot.slane %v968_v27, %v6039_v23  ;;  %v1059_v37 = vadd.f32 %v1058_v32, %v6041_v25 }
 0x27c   : > { %v1551_v38 = vcombine.high %v1057_v30, %v5446_v33  ;;  %v1558_v39 = vrot.slane %v1057_v30, %v6039_v23  ;;  %v1094_v40 = vcombine.high %v970_v31, %v5446_v33  ;;  %v1101_v41 = vrot.slane %v970_v31, %v6039_v23  ;;  %v973_v42 = vpop.f32.mrb[2].mxu0 }
 0x27d   : > { %v1093_v43 = vrot.slane %v1079_v34, %v6039_v23  ;;  %v1566_v44 = vcombine.high %v1059_v37, %v5446_v33  ;;  %v1573_v45 = vrot.slane %v1059_v37, %v6039_v23  ;;  %v974_v46 = vadd.f32 %v973_v42, %v6033_v20  ;;  %v1062_v47 = vpop.f32.mrb[2].mxu1  ;;  %v975_v48 = vpop.f32.mrb[3].mxu0 }
 0x27e   : > { %v1565_v49 = vrot.slane %v1551_v38, %v6039_v23  ;;  %v1108_v50 = vrot.slane %v1094_v40, %v6039_v23  ;;  %v1109_v51 = vcombine.low %v1086_v35, %v1101_v41  ;;  %v1110_v52 = vcombine.high %v1086_v35, %v1101_v41  ;;  %v1064_v53 = vpop.f32.mrb[3].mxu1 }
 0x27f   : > { %v1580_v54 = vrot.slane %v1566_v44, %v6039_v23  ;;  %v1581_v55 = vcombine.low %v1558_v39, %v1573_v45  ;;  %v1582_v56 = vcombine.high %v1558_v39, %v1573_v45  ;;  %v1145_v57 = vcombine.high %v974_v46, %v5446_v33 }
 0x280   : > { %v1117_v58 = vrot.slane %v1109_v51, %v6048_v36  ;;  %v1124_v59 = vrot.slane %v1110_v52, %v6048_v36  ;;  %v1125_v60 = vcombine.low %v1093_v43, %v1108_v50  ;;  %v1126_v61 = vcombine.high %v1093_v43, %v1108_v50  ;;  %v979_v62 = vpop.f32.mrb[4].mxu0 }
 0x281   : > { %v1589_v63 = vrot.slane %v1581_v55, %v6048_v36  ;;  %v1596_v0 = vrot.slane %v1582_v56, %v6048_v36  ;;  %v1597_v1 = vcombine.low %v1565_v49, %v1580_v54  ;;  %v1598_v2 = vcombine.high %v1565_v49, %v1580_v54  ;;  %v6067_v3 = vpop.f32.mrb[4].mxu1  ;;  %v6069_v4 = vpop.f32.mrb[5].mxu0 }
 0x282   : > { %v1133_v5 = vrot.slane %v1125_v60, %v6048_v36  ;;  %v1140_v6 = vrot.slane %v1126_v61, %v6048_v36  ;;  %v1343_v7 = vcombine.low %v1117_v58, %v1124_v59  ;;  %v4148_v8 = vcombine.high %v1117_v58, %v1124_v59  ;;  %v6073_v9 = vpop.f32.mrb[5].mxu1 }
 0x283   : > { %v1605_v10 = vrot.slane %v1597_v1, %v6048_v36  ;;  %v1612_v11 = vrot.slane %v1598_v2, %v6048_v36  ;;  %v1815_v12 = vcombine.low %v1589_v63, %v1596_v0  ;;  %v4156_v13 = vcombine.high %v1589_v63, %v1596_v0 }
 0x284   : > { %v1350_v14 = vrot.slane %v1343_v7, %v6039_v23  ;;  %v1358_v15 = vrot.slane %v4148_v8, %v6039_v23  ;;  %v1359_v16 = vcombine.low %v1133_v5, %v1140_v6  ;;  %v4149_v17 = vcombine.high %v1133_v5, %v1140_v6  ;;  %v6079_v18 = vpop.f32.mrb[6].mxu0 }
 0x285   : > { %v1822_v19 = vrot.slane %v1815_v12, %v6039_v23  ;;  %v1830_v24 = vrot.slane %v4156_v13, %v6039_v23  ;;  %v1831_v26 = vcombine.low %v1605_v10, %v1612_v11  ;;  %v4157_v27 = vcombine.high %v1605_v10, %v1612_v11  ;;  %v6083_v28 = vpop.f32.mrb[6].mxu1  ;;  %v6085_v29 = vpop.f32.mrb[7].mxu0 }
 0x286   : > { %v1366_v30 = vrot.slane %v1359_v16, %v6039_v23  ;;  %v1374_v31 = vrot.slane %v4149_v17, %v6039_v23  ;;  %v1375_v32 = vcombine.low %v1350_v14, %v1358_v15  ;;  %v1152_v34 = vrot.slane %v974_v46, %v6039_v23  ;;  %v6090_v35 = vpop.f32.mrb[7].mxu1 }
 0x287   : > { %v1838_v37 = vrot.slane %v1831_v26, %v6039_v23  ;;  %v1846_v38 = vrot.slane %v4157_v27, %v6039_v23  ;;  %v1847_v39 = vcombine.low %v1822_v19, %v1830_v24  ;;  %v1159_v40 = vrot.slane %v1145_v57, %v6039_v23 }
 0x288   : > { %v1382_v41 = vrot.slane %v1375_v32, %v6048_v36  ;;  %v1383_v42 = vcombine.low %v1366_v30, %v1374_v31  ;;  %v1063_v43 = vadd.f32 %v1062_v47, %v6035_v21  ;;  %v976_v44 = vadd.f32 %v975_v48, %v6037_v22 }
 0x289   : > { %v1854_v45 = vrot.slane %v1847_v39, %v6048_v36  ;;  %v1855_v49 = vcombine.low %v1838_v37, %v1846_v38  ;;  %v1065_v46 = vadd.f32 %v1064_v53, %v6041_v25  ;;  %v980_v50 = vadd.f32 %v979_v62, %v6033_v20 }
 0x28a   : > { %v1390_v51 = vrot.slane %v1383_v42, %v6048_v36  ;;  %v1617_v52 = vcombine.high %v1063_v43, %v5446_v33  ;;  %v1624_v54 = vrot.slane %v1063_v43, %v6039_v23  ;;  %v1160_v55 = vcombine.high %v976_v44, %v5446_v33 }
 0x28b   : > { %v1862_v56 = vrot.slane %v1855_v49, %v6048_v36  ;;  %v1167_v47 = vrot.slane %v976_v44, %v6039_v23  ;;  %v1632_v48 = vcombine.high %v1065_v46, %v5446_v33  ;;  %v1639_v57 = vrot.slane %v1065_v46, %v6039_v23 }
 0x28c   : > { %v1391_v58 = vcombine.low %v1382_v41, %v1390_v51  ;;  %v1392_v53 = vcombine.high %v1382_v41, %v1390_v51  ;;  %v1631_v59 = vrot.slane %v1617_v52, %v6039_v23  ;;  %v1174_v60 = vrot.slane %v1160_v55, %v6039_v23 }
 0x28d   : > { %v1863_v61 = vcombine.low %v1854_v45, %v1862_v56  ;;  %v1864_v62 = vcombine.high %v1854_v45, %v1862_v56  ;;  %v1175_v63 = vcombine.low %v1152_v34, %v1167_v47  ;;  %v1176_v0 = vcombine.high %v1152_v34, %v1167_v47 }
 0x28e   : > { %1543 = vst [vmem:[#allocation2] sm:$0xff] %v1391_v58  ;;  %1547 = vst [vmem:[#allocation2 + $0x20] sm:$0xff] %v1392_v53  ;;  %v1191_v1 = vcombine.low %v1159_v40, %v1174_v60  ;;  %v1192_v2 = vcombine.high %v1159_v40, %v1174_v60  ;;  %v1646_v5 = vrot.slane %v1632_v48, %v6039_v23 }
 0x28f   : > { %v1647_v6 = vcombine.low %v1624_v54, %v1639_v57  ;;  %2015 = vst [vmem:[#allocation3] sm:$0xff] %v1863_v61  ;;  %2019 = vst [vmem:[#allocation3 + $0x20] sm:$0xff] %v1864_v62  ;;  %v1183_v7 = vrot.slane %v1175_v63, %v6048_v36  ;;  %v1190_v8 = vrot.slane %v1176_v0, %v6048_v36 }
 0x290   : > { %v1648_v10 = vcombine.high %v1624_v54, %v1639_v57  ;;  %v1211_v11 = vcombine.high %v980_v50, %v5446_v33  ;;  %v1199_v12 = vrot.slane %v1191_v1, %v6048_v36  ;;  %v1206_v13 = vrot.slane %v1192_v2, %v6048_v36 }
 0x291   : > { %v1655_v14 = vrot.slane %v1647_v6, %v6048_v36  ;;  %v1663_v15 = vcombine.low %v1631_v59, %v1646_v5  ;;  %v1393_v16 = vcombine.low %v1183_v7, %v1190_v8  ;;  %v4150_v17 = vcombine.high %v1183_v7, %v1190_v8 }
 0x292   : > { %v1662_v19 = vrot.slane %v1648_v10, %v6048_v36  ;;  %v1664_v24 = vcombine.high %v1631_v59, %v1646_v5  ;;  %v1409_v26 = vcombine.low %v1199_v12, %v1206_v13  ;;  %v4151_v27 = vcombine.high %v1199_v12, %v1206_v13 }
 0x293   : > { %v1671_v30 = vrot.slane %v1663_v15, %v6048_v36  ;;  %v1218_v31 = vrot.slane %v980_v50, %v6039_v23  ;;  %v1400_v32 = vrot.slane %v1393_v16, %v6039_v23  ;;  %v1408_v34 = vrot.slane %v4150_v17, %v6039_v23 }
 0x294   : > { %v1678_v37 = vrot.slane %v1664_v24, %v6048_v36  ;;  %v1865_v38 = vcombine.low %v1655_v14, %v1662_v19  ;;  %v1416_v39 = vrot.slane %v1409_v26, %v6039_v23  ;;  %v1424_v40 = vrot.slane %v4151_v27, %v6039_v23 }
 0x295   : > { %v4158_v41 = vcombine.high %v1655_v14, %v1662_v19  ;;  %v1225_v42 = vrot.slane %v1211_v11, %v6039_v23  ;;  %v1425_v43 = vcombine.low %v1400_v32, %v1408_v34  ;;  %v1069_v51 = vadd.f32 %v6067_v3, %v6035_v21 }
 0x296   : > { %v1872_v44 = vrot.slane %v1865_v38, %v6039_v23  ;;  %v1881_v45 = vcombine.low %v1671_v30, %v1678_v37  ;;  %v4159_v49 = vcombine.high %v1671_v30, %v1678_v37  ;;  %v1433_v46 = vcombine.low %v1416_v39, %v1424_v40 }
 0x297   : > { %v1880_v50 = vrot.slane %v4158_v41, %v6039_v23  ;;  %v982_v52 = vadd.f32 %v6069_v4, %v6037_v22  ;;  %v1432_v54 = vrot.slane %v1425_v43, %v6048_v36  ;;  %v1071_v47 = vadd.f32 %v6073_v9, %v6041_v25 }
 0x298   : > { %v1888_v55 = vrot.slane %v1881_v45, %v6039_v23  ;;  %v1896_v56 = vrot.slane %v4159_v49, %v6039_v23  ;;  %v1440_v48 = vrot.slane %v1433_v46, %v6048_v36  ;;  %v1683_v58 = vcombine.high %v1069_v51, %v5446_v33 }
 0x299   : > { %v1897_v57 = vcombine.low %v1872_v44, %v1880_v50  ;;  %v1690_v53 = vrot.slane %v1069_v51, %v6039_v23  ;;  %v1226_v59 = vcombine.high %v982_v52, %v5446_v33  ;;  %v1233_v4 = vrot.slane %v982_v52, %v6039_v23 }
 0x29a   : > { %v1905_v3 = vcombine.low %v1888_v55, %v1896_v56  ;;  %v1698_v60 = vcombine.high %v1071_v47, %v5446_v33  ;;  %v1441_v61 = vcombine.low %v1432_v54, %v1440_v48  ;;  %v1442_v62 = vcombine.high %v1432_v54, %v1440_v48 }
 0x29b   : > { %v1904_v63 = vrot.slane %v1897_v57, %v6048_v36  ;;  %v1697_v9 = vrot.slane %v1683_v58, %v6039_v23  ;;  %v1240_v1 = vrot.slane %v1226_v59, %v6039_v23  ;;  %v1241_v2 = vcombine.low %v1218_v31, %v1233_v4 }
 0x29c   : > { %v1912_v0 = vrot.slane %v1905_v3, %v6048_v36  ;;  %v1242_v5 = vcombine.high %v1218_v31, %v1233_v4  ;;  %1544 = vst [vmem:[#allocation2 + $0x8] sm:$0xff] %v1441_v61  ;;  %1548 = vst [vmem:[#allocation2 + $0x28] sm:$0xff] %v1442_v62  ;;  %v1705_v6 = vrot.slane %v1071_v47, %v6039_v23 }
 0x29d   : > { %v1712_v7 = vrot.slane %v1698_v60, %v6039_v23  ;;  %v986_v8 = vadd.f32 %v6079_v18, %v6033_v20  ;;  %v1075_v10 = vadd.f32 %v6083_v28, %v6035_v21  ;;  %v1249_v13 = vrot.slane %v1241_v2, %v6048_v36 }
 0x29e   : > { %v1913_v11 = vcombine.low %v1904_v63, %v1912_v0  ;;  %v1914_v12 = vcombine.high %v1904_v63, %v1912_v0  ;;  %v1256_v14 = vrot.slane %v1242_v5, %v6048_v36  ;;  %v1257_v15 = vcombine.low %v1225_v42, %v1240_v1 }
 0x29f   : > { %v1258_v16 = vcombine.high %v1225_v42, %v1240_v1  ;;  %v1713_v17 = vcombine.low %v1690_v53, %v1705_v6  ;;  %v1714_v19 = vcombine.high %v1690_v53, %v1705_v6  ;;  %v1729_v27 = vcombine.low %v1697_v9, %v1712_v7 }
 0x2a0   : > { %2016 = vst [vmem:[#allocation3 + $0x8] sm:$0xff] %v1913_v11  ;;  %2020 = vst [vmem:[#allocation3 + $0x28] sm:$0xff] %v1914_v12  ;;  %v1443_v24 = vcombine.low %v1249_v13, %v1256_v14  ;;  %v4152_v26 = vcombine.high %v1249_v13, %v1256_v14  ;;  %v1730_v30 = vcombine.high %v1697_v9, %v1712_v7 }
 0x2a1   : > { %v1265_v20 = vrot.slane %v1257_v15, %v6048_v36  ;;  %v1272_v21 = vrot.slane %v1258_v16, %v6048_v36  ;;  %v1721_v18 = vrot.slane %v1713_v17, %v6048_v36  ;;  %v1728_v28 = vrot.slane %v1714_v19, %v6048_v36 }
 0x2a2   : > { %v1450_v31 = vrot.slane %v1443_v24, %v6039_v23  ;;  %v1458_v32 = vrot.slane %v4152_v26, %v6039_v23  ;;  %v1737_v34 = vrot.slane %v1729_v27, %v6048_v36  ;;  %v1744_v37 = vrot.slane %v1730_v30, %v6048_v36 }
 0x2a3   : > { %v1459_v38 = vcombine.low %v1265_v20, %v1272_v21  ;;  %v4153_v39 = vcombine.high %v1265_v20, %v1272_v21  ;;  %v1915_v40 = vcombine.low %v1721_v18, %v1728_v28  ;;  %v4160_v41 = vcombine.high %v1721_v18, %v1728_v28 }
 0x2a4   : > { %v1475_v42 = vcombine.low %v1450_v31, %v1458_v32  ;;  %v1931_v43 = vcombine.low %v1737_v34, %v1744_v37  ;;  %v4161_v44 = vcombine.high %v1737_v34, %v1744_v37  ;;  %v1277_v45 = vcombine.high %v986_v8, %v5446_v33 }
 0x2a5   : > { %v1466_v49 = vrot.slane %v1459_v38, %v6039_v23  ;;  %v1474_v46 = vrot.slane %v4153_v39, %v6039_v23  ;;  %v1922_v50 = vrot.slane %v1915_v40, %v6039_v23  ;;  %v1930_v51 = vrot.slane %v4160_v41, %v6039_v23 }
 0x2a6   : > { %v1938_v52 = vrot.slane %v1931_v43, %v6039_v23  ;;  %v1946_v54 = vrot.slane %v4161_v44, %v6039_v23  ;;  %v1482_v55 = vrot.slane %v1475_v42, %v6048_v36  ;;  %v1749_v48 = vcombine.high %v1075_v10, %v5446_v33 }
 0x2a7   : > { %v1483_v56 = vcombine.low %v1466_v49, %v1474_v46  ;;  %v1947_v47 = vcombine.low %v1922_v50, %v1930_v51  ;;  %v1284_v58 = vrot.slane %v986_v8, %v6039_v23  ;;  %v988_v53 = vadd.f32 %v6085_v29, %v6037_v22 }
 0x2a8   : > { %v1955_v57 = vcombine.low %v1938_v52, %v1946_v54  ;;  %v1077_v3 = vadd.f32 %v6090_v35, %v6041_v25  ;;  %v1291_v60 = vrot.slane %v1277_v45, %v6039_v23  ;;  %v1756_v61 = vrot.slane %v1075_v10, %v6039_v23 }
 0x2a9   : > { %v1490_v59 = vrot.slane %v1483_v56, %v6048_v36  ;;  %v1954_v4 = vrot.slane %v1947_v47, %v6048_v36  ;;  %v1292_v63 = vcombine.high %v988_v53, %v5446_v33  ;;  %v1299_v9 = vrot.slane %v988_v53, %v6039_v23 }
 0x2aa   : > { %v1962_v62 = vrot.slane %v1955_v57, %v6048_v36  ;;  %v1764_v0 = vcombine.high %v1077_v3, %v5446_v33  ;;  %v1763_v25 = vrot.slane %v1749_v48, %v6039_v23  ;;  %v1771_v35 = vrot.slane %v1077_v3, %v6039_v23 }
 0x2ab   : > { %v1491_v22 = vcombine.low %v1482_v55, %v1490_v59  ;;  %v1492_v29 = vcombine.high %v1482_v55, %v1490_v59  ;;  %v1306_v5 = vrot.slane %v1292_v63, %v6039_v23  ;;  %v1307_v6 = vcombine.low %v1284_v58, %v1299_v9 }
 0x2ac   : > { %v1963_v1 = vcombine.low %v1954_v4, %v1962_v62  ;;  %v1964_v2 = vcombine.high %v1954_v4, %v1962_v62  ;;  %v1308_v7 = vcombine.high %v1284_v58, %v1299_v9  ;;  %v1778_v8 = vrot.slane %v1764_v0, %v6039_v23 }
 0x2ad   : > { %1545 = vst [vmem:[#allocation2 + $0x10] sm:$0xff] %v1491_v22  ;;  %1549 = vst [vmem:[#allocation2 + $0x30] sm:$0xff] %v1492_v29  ;;  %v1779_v10 = vcombine.low %v1756_v61, %v1771_v35  ;;  %v1780_v11 = vcombine.high %v1756_v61, %v1771_v35  ;;  %v1315_v33 = vrot.slane %v1307_v6, %v6048_v36 }
 0x2ae   : > { %2017 = vst [vmem:[#allocation3 + $0x10] sm:$0xff] %v1963_v1  ;;  %2021 = vst [vmem:[#allocation3 + $0x30] sm:$0xff] %v1964_v2  ;;  %v1323_v12 = vcombine.low %v1291_v60, %v1306_v5  ;;  %v1324_v13 = vcombine.high %v1291_v60, %v1306_v5  ;;  %v1322_v14 = vrot.slane %v1308_v7, %v6048_v36 }
 0x2af   : > { %v1787_v15 = vrot.slane %v1779_v10, %v6048_v36  ;;  %v1794_v16 = vrot.slane %v1780_v11, %v6048_v36  ;;  %v1795_v17 = vcombine.low %v1763_v25, %v1778_v8  ;;  %v1796_v26 = vcombine.high %v1763_v25, %v1778_v8 }
 0x2b0   : > { %v1331_v19 = vrot.slane %v1323_v12, %v6048_v36  ;;  %v1338_v24 = vrot.slane %v1324_v13, %v6048_v36  ;;  %v1493_v27 = vcombine.low %v1315_v33, %v1322_v14  ;;  %v4154_v30 = vcombine.high %v1315_v33, %v1322_v14 }
 0x2b1   : > { %v1803_v20 = vrot.slane %v1795_v17, %v6048_v36  ;;  %v1965_v21 = vcombine.low %v1787_v15, %v1794_v16  ;;  %v1810_v31 = vrot.slane %v1796_v26, %v6048_v36  ;;  %v4162_v32 = vcombine.high %v1787_v15, %v1794_v16 }
 0x2b2   : > { %v1509_v18 = vcombine.low %v1331_v19, %v1338_v24  ;;  %v4155_v28 = vcombine.high %v1331_v19, %v1338_v24  ;;  %v1500_v34 = vrot.slane %v1493_v27, %v6039_v23  ;;  %v1508_v37 = vrot.slane %v4154_v30, %v6039_v23 }
 0x2b3   : > { %v1972_v38 = vrot.slane %v1965_v21, %v6039_v23  ;;  %v1980_v41 = vrot.slane %v4162_v32, %v6039_v23  ;;  %v1981_v42 = vcombine.low %v1803_v20, %v1810_v31  ;;  %v4163_v44 = vcombine.high %v1803_v20, %v1810_v31 }
 0x2b4   : > { %v1516_v39 = vrot.slane %v1509_v18, %v6039_v23  ;;  %v1524_v40 = vrot.slane %v4155_v28, %v6039_v23  ;;  %v1525_v43 = vcombine.low %v1500_v34, %v1508_v37 }
 0x2b5   : > { %v1988_v49 = vrot.slane %v1981_v42, %v6039_v23  ;;  %v1997_v46 = vcombine.low %v1972_v38, %v1980_v41  ;;  %v1996_v50 = vrot.slane %v4163_v44, %v6039_v23 }
 0x2b6   : > { %v1533_v45 = vcombine.low %v1516_v39, %v1524_v40  ;;  %v1532_v51 = vrot.slane %v1525_v43, %v6048_v36 }
 0x2b7   : > { %v2005_v54 = vcombine.low %v1988_v49, %v1996_v50  ;;  %v2004_v47 = vrot.slane %v1997_v46, %v6048_v36 }
 0x2b8   : > { %v1540_v52 = vrot.slane %v1533_v45, %v6048_v36 }
 0x2b9   : > { %v2012_v48 = vrot.slane %v2005_v54, %v6048_v36 }
 0x2ba   : > { %v1541_v55 = vcombine.low %v1532_v51, %v1540_v52  ;;  %v1542_v56 = vcombine.high %v1532_v51, %v1540_v52 }
 0x2bb   : > { %v2013_v57 = vcombine.low %v2004_v47, %v2012_v48  ;;  %v2014_v58 = vcombine.high %v2004_v47, %v2012_v48 }
 0x2bc   : > { %1546 = vst [vmem:[#allocation2 + $0x18] sm:$0xff] %v1541_v55  ;;  %1550 = vst [vmem:[#allocation2 + $0x38] sm:$0xff] %v1542_v56 }
 0x2bd   : > { %2018 = vst [vmem:[#allocation3 + $0x18] sm:$0xff] %v2013_v57  ;;  %2022 = vst [vmem:[#allocation3 + $0x38] sm:$0xff] %v2014_v58 }
 0x2be PF: > { %v2028_v53 = vld [vmem:[#allocation10 + $0x8] sm:$0xff]  ;;  %v2030_v23 = vld [vmem:[#allocation10 + $0x18] sm:$0xff]  ;;  %v2027_v3 = vld [vmem:[#allocation10] sm:$0xff]  ;;  %s6653_s13 = sld [smem:[#allocation40_spill]]  ;;  %vm2572_vm0 = vcmask 261120   ;;  %s6654_s1 = sld [smem:[#allocation44_spill]] }
 0x2bf   : > { %v4383_v59 = vpack.c.bf16 %v2030_v23, %v2028_v53  ;;  %v2029_v4 = vld [vmem:[#allocation10 + $0x10] sm:$0xff]  ;;  %v2032_v60 = vld [vmem:[#allocation10 + $0x28] sm:$0xff]  ;;  %v2034_v61 = vld [vmem:[#allocation10 + $0x38] sm:$0xff]  ;;  %s6655_s28 = sld [smem:[#allocation45_spill]]  ;;  %s6657_s16 = sld [smem:[#allocation48_spill]] }
 0x2c0   : > { %v4385_v62 = vpack.c.bf16 %v2029_v4, %v2027_v3  ;;  %v4387_v63 = vpack.c.bf16 %v2034_v61, %v2032_v60  ;;  %v2031_v9 = vld [vmem:[#allocation10 + $0x20] sm:$0xff]  ;;  %v2033_v0 = vld [vmem:[#allocation10 + $0x30] sm:$0xff]  ;;  %v2036_v22 = vld [vmem:[#allocation10 + $0x48] sm:$0xff]  ;;  %s6658_s19 = sld [smem:[#allocation50_spill]]  ;;  %s6660_s6 = sld [smem:[#allocation30_spill]] }
 0x2c1   : > { %4384 = vmatprep.subr.bf16.mxu1 %v4383_v59  ;;  %v2038_v36 = vld [vmem:[#allocation10 + $0x58] sm:$0xff]  ;;  %v4389_v29 = vpack.c.bf16 %v2033_v0, %v2031_v9  ;;  %v2035_v35 = vld [vmem:[#allocation10 + $0x40] sm:$0xff]  ;;  %v2037_v1 = vld [vmem:[#allocation10 + $0x50] sm:$0xff]  ;;  %s6661_s9 = sld [smem:[#allocation51_spill]]  ;;  %s6662_s4 = sld [smem:[#allocation52_spill]] }
 0x2c2   : > { %4386 = vmatpush1.bf16.msra.mxu1 %v4385_v62  ;;  %v4391_v25 = vpack.c.bf16 %v2038_v36, %v2036_v22  ;;  %v2040_v2 = vld [vmem:[#allocation10 + $0x68] sm:$0xff]  ;;  %v2042_v5 = vld [vmem:[#allocation10 + $0x78] sm:$0xff]  ;;  %v4393_v6 = vpack.c.bf16 %v2037_v1, %v2035_v35  ;;  %v2039_v8 = vld [vmem:[#allocation10 + $0x60] sm:$0xff]  ;;  %s3920_s10 = scalar_lea.sflag [#allocation6], %s5981_s11  ;;  %p6665_p4 = scmp.ne.s32.totalorder %s6622_s8, 0 }
 0x2c3   : > { %4388 = vmatprep.subr.bf16.mxu1 %v4387_v63  ;;  %v4395_v7 = vpack.c.bf16 %v2042_v5, %v2040_v2  ;;  %v2041_v10 = vld [vmem:[#allocation10 + $0x70] sm:$0xff]  ;;  %v2044_v11 = vld [vmem:[#allocation10 + $0x88] sm:$0xff]  ;;  %v2046_v33 = vld [vmem:[#allocation10 + $0x98] sm:$0xff] }
 0x2c4   : > { %v4397_v12 = vpack.c.bf16 %v2041_v10, %v2039_v8  ;;  %v4399_v13 = vpack.c.bf16 %v2046_v33, %v2044_v11  ;;  %v2043_v14 = vld [vmem:[#allocation10 + $0x80] sm:$0xff]  ;;  %v2045_v15 = vld [vmem:[#allocation10 + $0x90] sm:$0xff]  ;;  %v2048_v16 = vld [vmem:[#allocation10 + $0xa8] sm:$0xff] }
 0x2c5   : > { %v2050_v17 = vld [vmem:[#allocation10 + $0xb8] sm:$0xff]  ;;  %v4401_v19 = vpack.c.bf16 %v2045_v15, %v2043_v14  ;;  %v2047_v26 = vld [vmem:[#allocation10 + $0xa0] sm:$0xff]  ;;  %v2049_v27 = vld [vmem:[#allocation10 + $0xb0] sm:$0xff] }
 0x2c6   : > { %4390 = vmatpush1.bf16.msra.mxu1 %v4389_v29  ;;  %v4403_v24 = vpack.c.bf16 %v2050_v17, %v2048_v16  ;;  %v2052_v30 = vld [vmem:[#allocation10 + $0xc8] sm:$0xff]  ;;  %v2054_v20 = vld [vmem:[#allocation10 + $0xd8] sm:$0xff]  ;;  %v4405_v21 = vpack.c.bf16 %v2049_v27, %v2047_v26  ;;  %v2051_v28 = vld [vmem:[#allocation10 + $0xc0] sm:$0xff] }
 0x2c7   : > { %4392 = vmatprep.subr.bf16.mxu1 %v4391_v25  ;;  %v4407_v18 = vpack.c.bf16 %v2054_v20, %v2052_v30  ;;  %v2053_v31 = vld [vmem:[#allocation10 + $0xd0] sm:$0xff]  ;;  %v6211_v32 = vld [vmem:[%s5985_s25 + $0x8] sm:$0xff]  ;;  %v2058_v37 = vld [vmem:[#allocation10 + $0xf8] sm:$0xff] }
 0x2c8   : > { %v2056_v34 = vld [vmem:[#allocation10 + $0xe8] sm:$0xff]  ;;  %2167 = vmatprep.mubr.f32.mxu1 %v6211_v32  ;;  %v4409_v38 = vpack.c.bf16 %v2053_v31, %v2051_v28  ;;  %v2055_v40 = vld [vmem:[#allocation10 + $0xe0] sm:$0xff]  ;;  %v2057_v41 = vld [vmem:[#allocation10 + $0xf0] sm:$0xff] }
 0x2c9   : > { %v4411_v39 = vpack.c.bf16 %v2058_v37, %v2056_v34  ;;  %v2060_v42 = vld [vmem:[#allocation10 + $0x108] sm:$0xff]  ;;  %v2062_v43 = vld [vmem:[#allocation10 + $0x118] sm:$0xff]  ;;  %v4413_v44 = vpack.c.bf16 %v2057_v41, %v2055_v40  ;;  %v2059_v49 = vld [vmem:[#allocation10 + $0x100] sm:$0xff] }
 0x2ca   : > { %4394 = vmatpush1.bf16.msra.mxu1 %v4393_v6  ;;  %v4415_v45 = vpack.c.bf16 %v2062_v43, %v2060_v42  ;;  %v2061_v46 = vld [vmem:[#allocation10 + $0x110] sm:$0xff]  ;;  %v2064_v50 = vld [vmem:[#allocation10 + $0x128] sm:$0xff]  ;;  %v2066_v51 = vld [vmem:[#allocation10 + $0x138] sm:$0xff]  ;;  %v2093_v43 = vlaneseq }
 0x2cb   : > { %4396 = vmatprep.subr.bf16.mxu1 %v4395_v7  ;;  %v4417_v52 = vpack.c.bf16 %v2061_v46, %v2059_v49  ;;  %v4419_v54 = vpack.c.bf16 %v2066_v51, %v2064_v50  ;;  %v2063_v55 = vld [vmem:[#allocation10 + $0x120] sm:$0xff]  ;;  %v2065_v56 = vld [vmem:[#allocation10 + $0x130] sm:$0xff]  ;;  %v2068_v47 = vld [vmem:[#allocation10 + $0x148] sm:$0xff] }
 0x2cc   : > { %v2070_v48 = vld [vmem:[#allocation10 + $0x158] sm:$0xff]  ;;  %v4421_v57 = vpack.c.bf16 %v2065_v56, %v2063_v55  ;;  %v2067_v53 = vld [vmem:[#allocation10 + $0x140] sm:$0xff]  ;;  %v2069_v23 = vld [vmem:[#allocation10 + $0x150] sm:$0xff] }
 0x2cd   : > { %v4423_v58 = vpack.c.bf16 %v2070_v48, %v2068_v47  ;;  %v2072_v3 = vld [vmem:[#allocation10 + $0x168] sm:$0xff]  ;;  %v2074_v59 = vld [vmem:[#allocation10 + $0x178] sm:$0xff]  ;;  %v4425_v4 = vpack.c.bf16 %v2069_v23, %v2067_v53  ;;  %v2071_v61 = vld [vmem:[#allocation10 + $0x160] sm:$0xff] }
 0x2ce   : > { %4398 = vmatpush1.bf16.msra.mxu1 %v4397_v12  ;;  %v4427_v60 = vpack.c.bf16 %v2074_v59, %v2072_v3  ;;  %v2073_v62 = vld [vmem:[#allocation10 + $0x170] sm:$0xff]  ;;  %v2076_v63 = vld [vmem:[#allocation10 + $0x188] sm:$0xff]  ;;  %v2078_v9 = vld [vmem:[#allocation10 + $0x198] sm:$0xff]  ;;  %v5449_v59 = vmov 0.0  }
 0x2cf   : > { %4400 = vmatprep.subr.bf16.mxu1 %v4399_v13  ;;  %v4429_v0 = vpack.c.bf16 %v2073_v62, %v2071_v61  ;;  %v4431_v22 = vpack.c.bf16 %v2078_v9, %v2076_v63  ;;  %v2075_v36 = vld [vmem:[#allocation10 + $0x180] sm:$0xff]  ;;  %v2077_v29 = vld [vmem:[#allocation10 + $0x190] sm:$0xff]  ;;  %v2080_v25 = vld [vmem:[#allocation10 + $0x1a8] sm:$0xff] }
 0x2d0   : > { %v2082_v35 = vld [vmem:[#allocation10 + $0x1b8] sm:$0xff]  ;;  %v4433_v1 = vpack.c.bf16 %v2077_v29, %v2075_v36  ;;  %v2079_v5 = vld [vmem:[#allocation10 + $0x1a0] sm:$0xff]  ;;  %v2081_v6 = vld [vmem:[#allocation10 + $0x1b0] sm:$0xff] }
 0x2d1   : > { %v4435_v2 = vpack.c.bf16 %v2082_v35, %v2080_v25  ;;  %v2084_v7 = vld [vmem:[#allocation10 + $0x1c8] sm:$0xff]  ;;  %v2086_v8 = vld [vmem:[#allocation10 + $0x1d8] sm:$0xff]  ;;  %v4437_v10 = vpack.c.bf16 %v2081_v6, %v2079_v5  ;;  %v2083_v33 = vld [vmem:[#allocation10 + $0x1c0] sm:$0xff] }
 0x2d2   : > { %4402 = vmatpush1.bf16.msra.mxu1 %v4401_v19  ;;  %v4439_v11 = vpack.c.bf16 %v2086_v8, %v2084_v7  ;;  %v2085_v12 = vld [vmem:[#allocation10 + $0x1d0] sm:$0xff]  ;;  %v2088_v13 = vld [vmem:[#allocation10 + $0x1e8] sm:$0xff]  ;;  %v2090_v14 = vld [vmem:[#allocation10 + $0x1f8] sm:$0xff] }
 0x2d3   : > { %4404 = vmatprep.subr.bf16.mxu1 %v4403_v24  ;;  %v4441_v15 = vpack.c.bf16 %v2085_v12, %v2083_v33  ;;  %v4443_v16 = vpack.c.bf16 %v2090_v14, %v2088_v13  ;;  %v2087_v17 = vld [vmem:[#allocation10 + $0x1e0] sm:$0xff]  ;;  %v2089_v19 = vld [vmem:[#allocation10 + $0x1f0] sm:$0xff]  ;;  %v6218_v27 = vld [vmem:[%s5985_s25 + $0x18] sm:$0xff] }
 0x2d4   : > { %v4445_v24 = vpack.c.bf16 %v2089_v19, %v2087_v17  ;;  %v6215_v26 = vld [vmem:[%s5985_s25] sm:$0xff]  ;;  %v6223_v30 = vld [vmem:[%s5985_s25 + $0x10] sm:$0xff]  ;;  %v2417_v31 = vld [vmem:[#allocation2 + $0x28] sm:$0xff] }
 0x2d5   : > { %v2412_v20 = vld [vmem:[#allocation2] sm:$0xff]  ;;  %v2414_v37 = vld [vmem:[#allocation2 + $0x10] sm:$0xff]  ;;  %v2419_v41 = vld [vmem:[#allocation2 + $0x38] sm:$0xff] }
 0x2d6   : > { %4406 = vmatpush1.bf16.msra.mxu1 %v4405_v21  ;;  %v2413_v21 = vld [vmem:[#allocation2 + $0x8] sm:$0xff]  ;;  %v2091_v50 = vld [vmem:[%s6653_s13] sm:$0x3]  ;;  %s6659_s13 = sld [smem:[#allocation29_spill]] }
 0x2d7   : > { %4408 = vmatprep.subr.bf16.mxu1 %v4407_v18  ;;  %v2416_v18 = vld [vmem:[#allocation2 + $0x20] sm:$0xff]  ;;  %v4447_v28 = vpack.c.bf16 %v2413_v21, %v2412_v20 }
 0x2d8   : > { %v4455_v34 = vpack.c.bf16 %v2417_v31, %v2416_v18 }
 0x2d9   : > { %4448 = vmatprep.subr.bf16.mxu0 %v4447_v28 }
 0x2da   : > { %4410 = vmatpush1.bf16.msra.mxu1 %v4409_v38  ;;  %4450 = vmatpush3.bf16.xpose.msra.mxu0 %v4447_v28  ;;  %v2415_v38 = vld [vmem:[#allocation2 + $0x18] sm:$0xff] }
 0x2db   : > { %4412 = vmatprep.subr.bf16.mxu1 %v4411_v39  ;;  %v2418_v39 = vld [vmem:[#allocation2 + $0x30] sm:$0xff]  ;;  %v4451_v40 = vpack.c.bf16 %v2415_v38, %v2414_v37 }
 0x2dc   : > { %v4459_v42 = vpack.c.bf16 %v2419_v41, %v2418_v39  ;;  %s4186_s2 = sshll.u32 %s6659_s13, 2 }
 0x2dd   : > { %4452 = vmatprep.subr.bf16.mxu0 %v4451_v40 }
 0x2de   : > { %4414 = vmatpush1.bf16.msra.mxu1 %v4413_v44  ;;  %v6226_v44 = vshrl.u32 %v2093_v43, 7 }
 0x2df   : > { %4416 = vmatprep.subr.bf16.mxu1 %v4415_v45  ;;  %v5447_v45 = vmov 1983009808  }
 0x2e0   : > { %v2182_v49 = vunpack.c.l.s4 %v5447_v45  ;;  %v6229_v46 = vsub.s32 0, %v6226_v44  ;;  %v6235_v51 = vsub.s32 1, %v6226_v44 }
 0x2e2   : > { %4418 = vmatpush1.bf16.msra.mxu1 %v4417_v52  ;;  %4454 = vmatpush3.bf16.xpose.msra.mxu0 %v4451_v40  ;;  %v2183_v52 = vunpack.c.0.s8 %v2182_v49  ;;  %v2096_v56 = vrot.slane %v2091_v50, %v6229_v46  ;;  %v2100_v47 = vrot.slane %v2091_v50, %v6235_v51 }
 0x2e3   : > { %4420 = vmatprep.subr.bf16.mxu1 %v4419_v54  ;;  %v5448_v54 = vmov 1934713408  }
 0x2e4   : > { %v2213_v55 = vunpack.c.l.s4 %v5448_v54  ;;  %v6240_v48 = vsub.s32 %v2183_v52, %v6226_v44 }
 0x2e6   : > { %4422 = vmatpush1.bf16.msra.mxu1 %v4421_v57 }
 0x2e7   : > { %4424 = vmatprep.subr.bf16.mxu1 %v4423_v58  ;;  %v2214_v58 = vunpack.c.0.s8 %v2213_v55 }
 0x2e9   : > { %v6245_v61 = vsub.s32 %v2214_v58, %v6226_v44 }
 0x2ea   : > { %4426 = vmatpush1.bf16.msra.mxu1 %v4425_v4 }
 0x2eb   : > { %4428 = vmatprep.subr.bf16.mxu1 %v4427_v60 }
 0x2ee   : > { %4430 = vmatpush1.bf16.msra.mxu1 %v4429_v0 }
 0x2ef   : > { %4432 = vmatprep.subr.bf16.mxu1 %v4431_v22 }
 0x2f2   : > { %4434 = vmatpush1.bf16.msra.mxu1 %v4433_v1 }
 0x2f3   : > { %4436 = vmatprep.subr.bf16.mxu1 %v4435_v2 }
 0x2f6   : > { %4438 = vmatpush1.bf16.msra.mxu1 %v4437_v10 }
 0x2f7   : > { %4440 = vmatprep.subr.bf16.mxu1 %v4439_v11 }
 0x2fa   : > { %4442 = vmatpush1.bf16.msra.mxu1 %v4441_v15 }
 0x2fb   : > { %4444 = vmatprep.subr.bf16.mxu1 %v4443_v16 }
 0x2fe   : > { %4446 = vmatpush1.bf16.msra.mxu1 %v4445_v24 }
 0x2ff   : > { %4456 = vmatprep.subr.bf16.mxu1 %v4455_v34 }
 0x301   : > { %2168 = vmatmul.mubr.f32.vlgmr.msra.gmra.mrb[0].mxu1 %v6215_v26 }
 0x302   : > { %2173 = vmatprep.mubr.f32.mxu1 %v6218_v27 }
 0x305   : > { %2174 = vmatmul.mubr.f32.gmra.mrb[2].mxu1 %v6223_v30 }
 0x307   : > { %4458 = vmatpush3.bf16.xpose.msra.mxu1 %v4455_v34 }
 0x308   : > { %4460 = vmatprep.subr.bf16.mxu1 %v4459_v42 }
 0x30f   : > { %4462 = vmatpush3.bf16.xpose.msra.mxu1 %v4459_v42 }
 0x3d4   : > { %v2169_v57 = vpop.f32.mrb[0].mxu1 }
 0x3d5   : > { %v2170_v53 = vadd.f32 %v2169_v57, %v2096_v56  ;;  %v2171_v23 = vpop.f32.mrb[1].mxu1 }
 0x3d6   : > { %v2172_v3 = vadd.f32 %v2171_v23, %v2100_v47 }
 0x3d7   : > { %v2180_v4 = vcombine.high %v2170_v53, %v5449_v59  ;;  %v2187_v60 = vrot.slane %v2170_v53, %v6240_v48 }
 0x3d8   : > { %v2195_v62 = vcombine.high %v2172_v3, %v5449_v59  ;;  %v2202_v63 = vrot.slane %v2172_v3, %v6240_v48  ;;  %v2175_v9 = vpop.f32.mrb[2].mxu1 }
 0x3d9   : > { %v2194_v0 = vrot.slane %v2180_v4, %v6240_v48  ;;  %v2176_v22 = vadd.f32 %v2175_v9, %v2096_v56  ;;  %v2177_v36 = vpop.f32.mrb[3].mxu1 }
 0x3da   : > { %v2209_v29 = vrot.slane %v2195_v62, %v6240_v48  ;;  %v2210_v25 = vcombine.low %v2187_v60, %v2202_v63  ;;  %v2211_v35 = vcombine.high %v2187_v60, %v2202_v63  ;;  %v2178_v1 = vadd.f32 %v2177_v36, %v2100_v47  ;;  %v2420_v36 = vld [vmem:[%s655_s12] sm:$0xff] }
 0x3db   : > { %v2246_v2 = vcombine.high %v2176_v22, %v5449_v59  ;;  %v2253_v5 = vrot.slane %v2176_v22, %v6240_v48  ;;  %v2421_v22 = vld [vmem:[%s655_s12 + $0x8] sm:$0xff]  ;;  %s6656_s12 = sld [smem:[#allocation46_spill]] }
 0x3dc   : > { %v2218_v6 = vrot.slane %v2210_v25, %v6245_v61  ;;  %v2225_v7 = vrot.slane %v2211_v35, %v6245_v61  ;;  %v2226_v8 = vcombine.low %v2194_v0, %v2209_v29  ;;  %v2227_v10 = vcombine.high %v2194_v0, %v2209_v29 }
 0x3dd   : > { %v2260_v11 = vrot.slane %v2246_v2, %v6240_v48  ;;  %v2261_v33 = vcombine.high %v2178_v1, %v5449_v59  ;;  %v2268_v12 = vrot.slane %v2178_v1, %v6240_v48 }
 0x3de   : > { %v2234_v13 = vrot.slane %v2226_v8, %v6245_v61  ;;  %v2241_v14 = vrot.slane %v2227_v10, %v6245_v61  ;;  %v2312_v15 = vcombine.low %v2218_v6, %v2225_v7  ;;  %v4164_v16 = vcombine.high %v2218_v6, %v2225_v7 }
 0x3df   : > { %v2275_v17 = vrot.slane %v2261_v33, %v6240_v48  ;;  %v2276_v19 = vcombine.low %v2253_v5, %v2268_v12  ;;  %v2277_v24 = vcombine.high %v2253_v5, %v2268_v12 }
 0x3e0   : > { %v2319_v20 = vrot.slane %v2312_v15, %v6240_v48  ;;  %v2327_v21 = vrot.slane %v4164_v16, %v6240_v48  ;;  %v2328_v18 = vcombine.low %v2234_v13, %v2241_v14  ;;  %v4165_v28 = vcombine.high %v2234_v13, %v2241_v14 }
 0x3e1   : > { %v2284_v31 = vrot.slane %v2276_v19, %v6245_v61  ;;  %v2291_v34 = vrot.slane %v2277_v24, %v6245_v61  ;;  %v2292_v37 = vcombine.low %v2260_v11, %v2275_v17  ;;  %v2293_v38 = vcombine.high %v2260_v11, %v2275_v17 }
 0x3e2   : > { %v2335_v39 = vrot.slane %v2328_v18, %v6240_v48  ;;  %v2343_v40 = vrot.slane %v4165_v28, %v6240_v48  ;;  %v2344_v41 = vcombine.low %v2319_v20, %v2327_v21 }
 0x3e3   : > { %v2300_v42 = vrot.slane %v2292_v37, %v6245_v61  ;;  %v2307_v43 = vrot.slane %v2293_v38, %v6245_v61  ;;  %v2362_v45 = vcombine.low %v2284_v31, %v2291_v34  ;;  %v4166_v49 = vcombine.high %v2284_v31, %v2291_v34 }
 0x3e4   : > { %v2352_v50 = vcombine.low %v2335_v39, %v2343_v40  ;;  %v2351_v47 = vrot.slane %v2344_v41, %v6245_v61 }
 0x3e5   : > { %v2378_v52 = vcombine.low %v2300_v42, %v2307_v43  ;;  %v4167_v54 = vcombine.high %v2300_v42, %v2307_v43  ;;  %v2369_v55 = vrot.slane %v2362_v45, %v6240_v48  ;;  %v2377_v56 = vrot.slane %v4166_v49, %v6240_v48  ;;  %v2617_v43 = vld [vmem:[#allocation3] sm:$0xff]  ;;  %v2618_v45 = vld [vmem:[#allocation3 + $0x8] sm:$0xff] }
 0x3e6   : > { %v2359_v57 = vrot.slane %v2352_v50, %v6245_v61  ;;  %v4463_v49 = vpack.c.bf16 %v2618_v45, %v2617_v43  ;;  %v2619_v50 = vld [vmem:[#allocation3 + $0x10] sm:$0xff]  ;;  %v3042_v43 = vld [vmem:[#allocation13 + $0xb8] sm:$0xff] }
 0x3e7   : > { %v2385_v58 = vrot.slane %v2378_v52, %v6240_v48  ;;  %v2393_v53 = vrot.slane %v4167_v54, %v6240_v48  ;;  %v2394_v23 = vcombine.low %v2369_v55, %v2377_v56  ;;  %v2620_v52 = vld [vmem:[#allocation3 + $0x18] sm:$0xff]  ;;  %v2621_v54 = vld [vmem:[#allocation3 + $0x20] sm:$0xff]  ;;  %v2622_v56 = vld [vmem:[#allocation3 + $0x28] sm:$0xff] }
 0x3e8   : > { %v2360_v3 = vcombine.low %v2351_v47, %v2359_v57  ;;  %v2361_v4 = vcombine.high %v2351_v47, %v2359_v57  ;;  %4464 = vmatprep.subr.bf16.mxu0 %v4463_v49  ;;  %v4467_v55 = vpack.c.bf16 %v2620_v52, %v2619_v50  ;;  %v4471_v47 = vpack.c.bf16 %v2622_v56, %v2621_v54  ;;  %v2623_v57 = vld [vmem:[#allocation3 + $0x30] sm:$0xff]  ;;  %v3039_v50 = vld [vmem:[#allocation13 + $0xa0] sm:$0xff]  ;;  %v3044_v54 = vld [vmem:[#allocation13 + $0xc8] sm:$0xff] }
 0x3e9   : > { %v2402_v60 = vcombine.low %v2385_v58, %v2393_v53  ;;  %v2401_v62 = vrot.slane %v2394_v23, %v6245_v61  ;;  %v2624_v58 = vld [vmem:[#allocation3 + $0x38] sm:$0xff]  ;;  %v3020_v23 = vld [vmem:[#allocation13 + $0x8] sm:$0xff]  ;;  %v3041_v52 = vld [vmem:[#allocation13 + $0xb0] sm:$0xff] }
 0x3ea   : > { %4219 = vmatprep.mubr.f32.mxu0 %v2360_v3  ;;  %4230 = vmatprep.mubr.f32.mxu1 %v2361_v4  ;;  %v4475_v53 = vpack.c.bf16 %v2624_v58, %v2623_v57  ;;  %v3022_v3 = vld [vmem:[#allocation13 + $0x18] sm:$0xff]  ;;  %v4501_v56 = vpack.c.bf16 %v3041_v52, %v3039_v50  ;;  %v3043_v57 = vld [vmem:[#allocation13 + $0xc0] sm:$0xff]  ;;  %v3045_v58 = vld [vmem:[#allocation13 + $0xd0] sm:$0xff] }
 0x3eb   : > { %v2409_v63 = vrot.slane %v2402_v60, %v6245_v61  ;;  %4472 = vmatprep.subr.bf16.mxu1 %v4471_v47  ;;  %v4479_v4 = vpack.c.bf16 %v3022_v3, %v3020_v23  ;;  %v3050_v23 = vld [vmem:[#allocation13 + $0xf8] sm:$0xff]  ;;  %v4505_v3 = vpack.c.bf16 %v3045_v58, %v3043_v57  ;;  %v3077_v52 = vld [vmem:[#allocation13 + $0x1d0] sm:$0xff]  ;;  %v3079_v57 = vld [vmem:[#allocation13 + $0x1e0] sm:$0xff] }
 0x3ec   : > { %v3081_v58 = vld [vmem:[#allocation13 + $0x1f0] sm:$0xff] }
 0x3ed   : > { %v2410_v9 = vcombine.low %v2401_v62, %v2409_v63  ;;  %v2411_v0 = vcombine.high %v2401_v62, %v2409_v63 }
 0x3ef   : > { %4220 = vmatmul.mubr.f32.vlgmr.msra.gmra.mrb[0].mxu0 %v2410_v9  ;;  %4231 = vmatmul.mubr.f32.vlgmr.msra.gmra.mrb[4].mxu1 %v2411_v0 }
 0x3f0   : > { %4466 = vmatpush3.bf16.msra.mxu0 %v4463_v49  ;;  %4474 = vmatpush3.bf16.msra.mxu1 %v4471_v47 }
 0x3f1   : > { %4468 = vmatprep.subr.bf16.mxu0 %v4467_v55  ;;  %4476 = vmatprep.subr.bf16.mxu1 %v4475_v53 }
 0x3f4   : > { %4470 = vmatpush3.bf16.msra.mxu0 %v4467_v55  ;;  %4478 = vmatpush3.bf16.msra.mxu1 %v4475_v53  ;;  %v3046_v55 = vld [vmem:[#allocation13 + $0xd8] sm:$0xff]  ;;  %v3048_v53 = vld [vmem:[#allocation13 + $0xe8] sm:$0xff] }
 0x3f5   : > { %4480 = vmatprep.subr.bf16.mxu1 %v4479_v4  ;;  %v4503_v47 = vpack.c.bf16 %v3046_v55, %v3044_v54  ;;  %v4507_v4 = vpack.c.bf16 %v3050_v23, %v3048_v53  ;;  %v3080_v54 = vld [vmem:[#allocation13 + $0x1e8] sm:$0xff]  ;;  %v3082_v55 = vld [vmem:[#allocation13 + $0x1f8] sm:$0xff]  ;;  %v4541_v53 = vpack.c.bf16 %v3081_v58, %v3079_v57 }
 0x4c2   : > { %v4221_v29 = vpop.f32.mrb[0].mxu0  ;;  %v4232_v25 = vpop.f32.mrb[4].mxu1 }
 0x4c3   : > { %v2494_v35 = vadd.f32 %v4221_v29, %v2421_v22  ;;  %v2488_v1 = vpop.f32.mrb[1].mxu0  ;;  %v2563_v2 = vpop.f32.mrb[5].mxu1  ;;  %v2569_v6 = vadd.f32 %v4232_v25, %v2421_v22 }
 0x4c4   : > { %v2489_v5 = vadd.f32 %v2488_v1, %v2420_v36  ;;  %v2564_v8 = vadd.f32 %v2563_v2, %v2420_v36  ;;  %v3021_v1 = vld [vmem:[#allocation13 + $0x10] sm:$0xff] }
 0x4c5   : > { %v2576_v7 = vsel %vm2572_vm0, %v2494_v35, -inf  ;;  %v2582_v11 = vsel %vm2572_vm0, %v2569_v6, -inf }
 0x4c6   : > { %2577 = vmax.xlane.f32.xlu1 %v2576_v7  ;;  %v2573_v10 = vsel %vm2572_vm0, %v2489_v5, -inf  ;;  %v2579_v33 = vsel %vm2572_vm0, %v2564_v8, -inf }
 0x4c7   : > { %2574 = vmax.xlane.f32.xlu0 %v2573_v10 }
 0x4ca   : > { %2583 = vmax.xlane.f32.xlu1 %v2582_v11 }
 0x4cb   : > { %2580 = vmax.xlane.f32.xlu0 %v2579_v33  ;;  %v3023_v33 = vld [vmem:[#allocation13 + $0x20] sm:$0xff] }
 0x553   : > { %v2578_v12 = vpop.xlane.xlu1 %2577 }
 0x554   : > { %v2586_v13 = vsub.f32 %v2494_v35, %v2578_v12  ;;  %v2575_v14 = vpop.xlane.xlu0 %2574  ;;  %v3019_v35 = vld [vmem:[#allocation13] sm:$0xff]  ;;  %v3025_v12 = vld [vmem:[#allocation13 + $0x30] sm:$0xff] }
 0x555   : > { %v2585_v15 = vsub.f32 %v2489_v5, %v2575_v14  ;;  %v3024_v5 = vld [vmem:[#allocation13 + $0x28] sm:$0xff]  ;;  %v3030_v14 = vld [vmem:[#allocation13 + $0x58] sm:$0xff] }
 0x556   : > { %v2591_v16 = vmul.f32 1.442695, %v2586_v13  ;;  %v3028_v13 = vld [vmem:[#allocation13 + $0x48] sm:$0xff] }
 0x557   : > { %v2589_v17 = vmul.f32 1.442695, %v2585_v15  ;;  %v2584_v19 = vpop.xlane.xlu1 %2583  ;;  %v4485_v15 = vpack.c.bf16 %v3025_v12, %v3023_v33  ;;  %v3059_v33 = vld [vmem:[#allocation13 + $0x140] sm:$0xff]  ;;  %v3061_v12 = vld [vmem:[#allocation13 + $0x150] sm:$0xff] }
 0x558   : > { %v2588_v24 = vsub.f32 %v2569_v6, %v2584_v19  ;;  %v2581_v20 = vpop.xlane.xlu0 %2580  ;;  %v3026_v6 = vld [vmem:[#allocation13 + $0x38] sm:$0xff]  ;;  %v3029_v19 = vld [vmem:[#allocation13 + $0x50] sm:$0xff] }
 0x559   : > { %5008 = vpow2.f32 %v2589_v17  ;;  %v2587_v21 = vsub.f32 %v2564_v8, %v2581_v20  ;;  %v4481_v8 = vpack.c.bf16 %v3021_v1, %v3019_v35  ;;  %v4483_v11 = vpack.c.bf16 %v3026_v6, %v3024_v5  ;;  %v3027_v17 = vld [vmem:[#allocation13 + $0x40] sm:$0xff]  ;;  %v3034_v20 = vld [vmem:[#allocation13 + $0x78] sm:$0xff]  ;;  %v3057_v6 = vld [vmem:[#allocation13 + $0x130] sm:$0xff] }
 0x55a   : > { %5010 = vpow2.f32 %v2591_v16  ;;  %v2595_v18 = vmul.f32 1.442695, %v2588_v24  ;;  %v4487_v16 = vpack.c.bf16 %v3030_v14, %v3028_v13  ;;  %v3032_v24 = vld [vmem:[#allocation13 + $0x68] sm:$0xff]  ;;  %v3058_v35 = vld [vmem:[#allocation13 + $0x138] sm:$0xff]  ;;  %v3055_v5 = vld [vmem:[#allocation13 + $0x120] sm:$0xff]  ;;  %v4521_v13 = vpack.c.bf16 %v3061_v12, %v3059_v33 }
 0x55b   : > { %v2593_v28 = vmul.f32 1.442695, %v2587_v21  ;;  %v4489_v21 = vpack.c.bf16 %v3029_v19, %v3027_v17  ;;  %v3064_v14 = vld [vmem:[#allocation13 + $0x168] sm:$0xff]  ;;  %v3063_v17 = vld [vmem:[#allocation13 + $0x160] sm:$0xff]  ;;  %v3065_v19 = vld [vmem:[#allocation13 + $0x170] sm:$0xff] }
 0x55d   : > { %5012 = vpow2.f32 %v2593_v28  ;;  %v3031_v28 = vld [vmem:[#allocation13 + $0x60] sm:$0xff] }
 0x55e   : > { %5014 = vpow2.f32 %v2595_v18  ;;  %v4491_v18 = vpack.c.bf16 %v3034_v20, %v3032_v24  ;;  %v4525_v24 = vpack.c.bf16 %v3065_v19, %v3063_v17  ;;  %v3068_v20 = vld [vmem:[#allocation13 + $0x188] sm:$0xff] }
 0x563   : > { %v5009_v31 = vpop.eup %5008 }
 0x564   : > { %v2597_v34 = vsel %vm2572_vm0, %v5009_v31, 0.0  ;;  %v5011_v37 = vpop.eup %5010 }
 0x565   : > { %2598 = vadd.xlane.f32.xlu0 %v2597_v34  ;;  %v2600_v39 = vsel %vm2572_vm0, %v5011_v37, 0.0  ;;  %v3036_v34 = vld [vmem:[#allocation13 + $0x88] sm:$0xff] }
 0x567   : > { %v5013_v38 = vpop.eup %5012 }
 0x568   : > { %v2603_v40 = vsel %vm2572_vm0, %v5013_v38, 0.0  ;;  %v5015_v41 = vpop.eup %5014 }
 0x569   : > { %2601 = vadd.xlane.f32.xlu0 %v2600_v39  ;;  %2604 = vadd.xlane.f32.xlu1 %v2603_v40  ;;  %v2606_v42 = vsel %vm2572_vm0, %v5015_v41, 0.0  ;;  %v3035_v40 = vld [vmem:[#allocation13 + $0x80] sm:$0xff] }
 0x56d   : > { %2607 = vadd.xlane.f32.xlu1 %v2606_v42  ;;  %v3040_v42 = vld [vmem:[#allocation13 + $0xa8] sm:$0xff] }
 0x56e   : > { %v4499_v49 = vpack.c.bf16 %v3042_v43, %v3040_v42  ;;  %v3076_v43 = vld [vmem:[#allocation13 + $0x1c8] sm:$0xff] }
 0x5f2   : > { %v2599_v60 = vpop.xlane.xlu0 %2598 }
 0x5f3   : > { %5016 = vrcp.f32 %v2599_v60  ;;  %v3047_v60 = vld [vmem:[#allocation13 + $0xe0] sm:$0xff] }
 0x5f6   : > { %v2605_v62 = vpop.xlane.xlu1 %2604  ;;  %v2602_v63 = vpop.xlane.xlu0 %2601 }
 0x5f7   : > { %5018 = vrcp.f32 %v2605_v62  ;;  %v3049_v62 = vld [vmem:[#allocation13 + $0xf0] sm:$0xff] }
 0x5f8   : > { %5020 = vrcp.f32 %v2602_v63  ;;  %v3052_v63 = vld [vmem:[#allocation13 + $0x108] sm:$0xff] }
 0x5fa   : > { %v2608_v9 = vpop.xlane.xlu1 %2607 }
 0x5fb   : > { %5022 = vrcp.f32 %v2608_v9  ;;  %v3054_v9 = vld [vmem:[#allocation13 + $0x118] sm:$0xff] }
 0x5fd   : > { %v5017_v0 = vpop.eup %5016 }
 0x5fe   : > { %v2613_v22 = vmul.f32 %v5017_v0, %v5009_v31  ;;  %v3033_v31 = vld [vmem:[#allocation13 + $0x70] sm:$0xff]  ;;  %v4509_v0 = vpack.c.bf16 %v3049_v62, %v3047_v60 }
 0x600   : > { %4241 = vmatprep.mubr.msk.f32.mxu0 %vm2572_vm0, %v2613_v22  ;;  %v4511_v22 = vpack.c.bf16 %v3054_v9, %v3052_v63 }
 0x601   : > { %v5019_v36 = vpop.eup %5018 }
 0x602   : > { %v5021_v29 = vpop.eup %5020  ;;  %v2615_v25 = vmul.f32 %v5019_v36, %v5013_v38  ;;  %v4493_v38 = vpack.c.bf16 %v3033_v31, %v3031_v28  ;;  %v3051_v36 = vld [vmem:[#allocation13 + $0x100] sm:$0xff]  ;;  %v3069_v31 = vld [vmem:[#allocation13 + $0x190] sm:$0xff] }
 0x603   : > { %v2614_v2 = vmul.f32 %v5021_v29, %v5011_v37  ;;  %v3038_v37 = vld [vmem:[#allocation13 + $0x98] sm:$0xff]  ;;  %v3053_v29 = vld [vmem:[#allocation13 + $0x110] sm:$0xff]  ;;  %v3067_v28 = vld [vmem:[#allocation13 + $0x180] sm:$0xff] }
 0x604   : > { %4252 = vmatprep.mubr.msk.f32.mxu1 %vm2572_vm0, %v2615_v25  ;;  %v4495_v39 = vpack.c.bf16 %v3038_v37, %v3036_v34  ;;  %v3056_v25 = vld [vmem:[#allocation13 + $0x128] sm:$0xff]  ;;  %v4513_v1 = vpack.c.bf16 %v3053_v29, %v3051_v36  ;;  %v4529_v34 = vpack.c.bf16 %v3069_v31, %v3067_v28 }
 0x605   : > { %v5023_v7 = vpop.eup %5022  ;;  %4242 = vmatmul.mubr.msk.f32.vlgmr.msra.gmra.mrb[2].mxu0 %vm2572_vm0, %v2614_v2  ;;  %v4515_v2 = vpack.c.bf16 %v3058_v35, %v3056_v25  ;;  %v3072_v37 = vld [vmem:[#allocation13 + $0x1a8] sm:$0xff] }
 0x606   : > { %v2616_v10 = vmul.f32 %v5023_v7, %v5015_v41  ;;  %v3037_v41 = vld [vmem:[#allocation13 + $0x90] sm:$0xff]  ;;  %v4517_v7 = vpack.c.bf16 %v3057_v6, %v3055_v5 }
 0x607   : > { %v4497_v45 = vpack.c.bf16 %v3037_v41, %v3035_v40  ;;  %v3071_v40 = vld [vmem:[#allocation13 + $0x1a0] sm:$0xff]  ;;  %v3073_v41 = vld [vmem:[#allocation13 + $0x1b0] sm:$0xff] }
 0x608   : > { %4253 = vmatmul.mubr.msk.f32.vlgmr.msra.gmra.mrb[6].mxu1 %vm2572_vm0, %v2616_v10  ;;  %v3062_v10 = vld [vmem:[#allocation13 + $0x158] sm:$0xff]  ;;  %v4533_v42 = vpack.c.bf16 %v3073_v41, %v3071_v40 }
 0x609   : > { %4482 = vmatpush1.bf16.msra.mxu1 %v4481_v8  ;;  %v3060_v8 = vld [vmem:[#allocation13 + $0x148] sm:$0xff] }
 0x60a   : > { %4484 = vmatprep.subr.bf16.mxu1 %v4483_v11  ;;  %v4519_v11 = vpack.c.bf16 %v3062_v10, %v3060_v8 }
 0x60d   : > { %4486 = vmatpush1.bf16.msra.mxu1 %v4485_v15  ;;  %v3066_v15 = vld [vmem:[#allocation13 + $0x178] sm:$0xff] }
 0x60e   : > { %4488 = vmatprep.subr.bf16.mxu1 %v4487_v16  ;;  %v4523_v16 = vpack.c.bf16 %v3066_v15, %v3064_v14 }
 0x611   : > { %4490 = vmatpush1.bf16.msra.mxu1 %v4489_v21  ;;  %v3070_v21 = vld [vmem:[#allocation13 + $0x198] sm:$0xff] }
 0x612   : > { %4492 = vmatprep.subr.bf16.mxu1 %v4491_v18  ;;  %v4527_v18 = vpack.c.bf16 %v3070_v21, %v3068_v20 }
 0x615   : > { %4494 = vmatpush1.bf16.msra.mxu1 %v4493_v38  ;;  %v3074_v38 = vld [vmem:[#allocation13 + $0x1b8] sm:$0xff] }
 0x616   : > { %4496 = vmatprep.subr.bf16.mxu1 %v4495_v39  ;;  %v4531_v39 = vpack.c.bf16 %v3074_v38, %v3072_v37 }
 0x619   : > { %4498 = vmatpush1.bf16.msra.mxu1 %v4497_v45  ;;  %v3078_v45 = vld [vmem:[#allocation13 + $0x1d8] sm:$0xff] }
 0x61a   : > { %4500 = vmatprep.subr.bf16.mxu1 %v4499_v49  ;;  %v3075_v49 = vld [vmem:[#allocation13 + $0x1c0] sm:$0xff]  ;;  %v4535_v50 = vpack.c.bf16 %v3078_v45, %v3076_v43 }
 0x61d   : > { %4502 = vmatpush1.bf16.msra.mxu1 %v4501_v56  ;;  %v4537_v56 = vpack.c.bf16 %v3077_v52, %v3075_v49 }
 0x61e   : > { %4504 = vmatprep.subr.bf16.mxu1 %v4503_v47  ;;  %v4539_v47 = vpack.c.bf16 %v3082_v55, %v3080_v54 }
 0x621   : > { %4506 = vmatpush1.bf16.msra.mxu1 %v4505_v3 }
 0x622   : > { %4508 = vmatprep.subr.bf16.mxu1 %v4507_v4 }
 0x625   : > { %4510 = vmatpush1.bf16.msra.mxu1 %v4509_v0 }
 0x626   : > { %4512 = vmatprep.subr.bf16.mxu1 %v4511_v22 }
 0x629   : > { %4514 = vmatpush1.bf16.msra.mxu1 %v4513_v1 }
 0x62a   : > { %4516 = vmatprep.subr.bf16.mxu1 %v4515_v2 }
 0x62d   : > { %4518 = vmatpush1.bf16.msra.mxu1 %v4517_v7 }
 0x62e   : > { %4520 = vmatprep.subr.bf16.mxu1 %v4519_v11 }
 0x631   : > { %4522 = vmatpush1.bf16.msra.mxu1 %v4521_v13 }
 0x632   : > { %4524 = vmatprep.subr.bf16.mxu1 %v4523_v16 }
 0x635   : > { %4526 = vmatpush1.bf16.msra.mxu1 %v4525_v24 }
 0x636   : > { %4528 = vmatprep.subr.bf16.mxu1 %v4527_v18 }
 0x639   : > { %4530 = vmatpush1.bf16.msra.mxu1 %v4529_v34 }
 0x63a   : > { %4532 = vmatprep.subr.bf16.mxu1 %v4531_v39 }
 0x63d   : > { %4534 = vmatpush1.bf16.msra.mxu1 %v4533_v42 }
 0x63e   : > { %4536 = vmatprep.subr.bf16.mxu1 %v4535_v50 }
 0x641   : > { %4538 = vmatpush1.bf16.msra.mxu1 %v4537_v56 }
 0x642   : > { %4540 = vmatprep.subr.bf16.mxu1 %v4539_v47 }
 0x645   : > { %4542 = vmatpush1.bf16.msra.mxu1 %v4541_v53 }
 0x6d8   : > { %v4243_v23 = vpop.f32.mrb[2].mxu0 }
 0x6d9   : > { %v2697_v3 = vpop.f32.mrb[3].mxu0  ;;  %v2853_v4 = vcombine.high %v4243_v23, %v5449_v59  ;;  %v2860_v63 = vrot.slane %v4243_v23, %v6240_v48 }
 0x6da   : > { %v2787_v60 = vcombine.high %v2697_v3, %v5449_v59  ;;  %v2794_v36 = vrot.slane %v2697_v3, %v6240_v48 }
 0x6db   : > { %v4254_v62 = vpop.f32.mrb[6].mxu1  ;;  %v2867_v35 = vrot.slane %v2853_v4, %v6240_v48 }
 0x6dc   : > { %v2868_v9 = vcombine.high %v4254_v62, %v5449_v59  ;;  %v2875_v0 = vrot.slane %v4254_v62, %v6240_v48  ;;  %v2778_v22 = vpop.f32.mrb[7].mxu1  ;;  %v2801_v6 = vrot.slane %v2787_v60, %v6240_v48 }
 0x6dd   : > { %v2802_v29 = vcombine.high %v2778_v22, %v5449_v59  ;;  %v2809_v25 = vrot.slane %v2778_v22, %v6240_v48 }
 0x6de   : > { %v2882_v1 = vrot.slane %v2868_v9, %v6240_v48  ;;  %v2883_v2 = vcombine.low %v2860_v63, %v2875_v0  ;;  %v2884_v5 = vcombine.high %v2860_v63, %v2875_v0 }
 0x6df   : > { %v2816_v7 = vrot.slane %v2802_v29, %v6240_v48  ;;  %v2817_v8 = vcombine.low %v2794_v36, %v2809_v25  ;;  %v2818_v10 = vcombine.high %v2794_v36, %v2809_v25 }
 0x6e0   : > { %v2891_v11 = vrot.slane %v2883_v2, %v6245_v61  ;;  %v2898_v33 = vrot.slane %v2884_v5, %v6245_v61  ;;  %v2899_v12 = vcombine.low %v2867_v35, %v2882_v1  ;;  %v2900_v59 = vcombine.high %v2867_v35, %v2882_v1 }
 0x6e1   : > { %v2825_v13 = vrot.slane %v2817_v8, %v6245_v61  ;;  %v2832_v14 = vrot.slane %v2818_v10, %v6245_v61  ;;  %v2833_v15 = vcombine.low %v2801_v6, %v2816_v7  ;;  %v2834_v16 = vcombine.high %v2801_v6, %v2816_v7  ;;  %v3246_v10 = vld [vmem:[#allocation15 + $0x28] sm:$0xff] }
 0x6e2   : > { %v2907_v17 = vrot.slane %v2899_v12, %v6245_v61  ;;  %v2914_v19 = vrot.slane %v2900_v59, %v6245_v61  ;;  %v2969_v24 = vcombine.low %v2891_v11, %v2898_v33  ;;  %v4174_v20 = vcombine.high %v2891_v11, %v2898_v33  ;;  %v3244_v11 = vld [vmem:[#allocation15 + $0x18] sm:$0xff]  ;;  %v3241_v59 = vld [vmem:[#allocation15] sm:$0xff] }
 0x6e3   : > { %v2841_v21 = vrot.slane %v2833_v15, %v6245_v61  ;;  %v2848_v18 = vrot.slane %v2834_v16, %v6245_v61  ;;  %v2919_v28 = vcombine.low %v2825_v13, %v2832_v14  ;;  %v4172_v31 = vcombine.high %v2825_v13, %v2832_v14  ;;  %v3248_v12 = vld [vmem:[#allocation15 + $0x38] sm:$0xff]  ;;  %v3245_v13 = vld [vmem:[#allocation15 + $0x20] sm:$0xff]  ;;  %v3243_v16 = vld [vmem:[#allocation15 + $0x10] sm:$0xff] }
 0x6e4   : > { %v2976_v34 = vrot.slane %v2969_v24, %v6240_v48  ;;  %v2984_v37 = vrot.slane %v4174_v20, %v6240_v48  ;;  %v2985_v38 = vcombine.low %v2907_v17, %v2914_v19  ;;  %v4175_v39 = vcombine.high %v2907_v17, %v2914_v19  ;;  %v3250_v17 = vld [vmem:[#allocation15 + $0x48] sm:$0xff]  ;;  %v3252_v24 = vld [vmem:[#allocation15 + $0x58] sm:$0xff] }
 0x6e5   : > { %v2926_v40 = vrot.slane %v2919_v28, %v6240_v48  ;;  %v2934_v41 = vrot.slane %v4172_v31, %v6240_v48  ;;  %v2935_v42 = vcombine.low %v2841_v21, %v2848_v18  ;;  %v4173_v43 = vcombine.high %v2841_v21, %v2848_v18  ;;  %v3254_v19 = vld [vmem:[#allocation15 + $0x68] sm:$0xff]  ;;  %v3256_v20 = vld [vmem:[#allocation15 + $0x78] sm:$0xff]  ;;  %v3249_v28 = vld [vmem:[#allocation15 + $0x40] sm:$0xff] }
 0x6e6   : > { %v2992_v45 = vrot.slane %v2985_v38, %v6240_v48  ;;  %v3000_v49 = vrot.slane %v4175_v39, %v6240_v48  ;;  %v3001_v50 = vcombine.low %v2976_v34, %v2984_v37  ;;  %v4607_v14 = vpack.c.bf16 %v3248_v12, %v3244_v11  ;;  %v3253_v31 = vld [vmem:[#allocation15 + $0x60] sm:$0xff]  ;;  %v3251_v34 = vld [vmem:[#allocation15 + $0x50] sm:$0xff]  ;;  %v3258_v39 = vld [vmem:[#allocation15 + $0x88] sm:$0xff] }
 0x6e7   : > { %v2942_v52 = vrot.slane %v2935_v42, %v6240_v48  ;;  %v2950_v54 = vrot.slane %v4173_v43, %v6240_v48  ;;  %v2951_v55 = vcombine.low %v2926_v40, %v2934_v41  ;;  %v3083_v48 = vld [vmem:[%s6654_s1] sm:$0x3]  ;;  %v4545_v15 = vpack.c.bf16 %v3245_v13, %v3241_v59  ;;  %v3255_v38 = vld [vmem:[#allocation15 + $0x70] sm:$0xff]  ;;  %v3262_v40 = vld [vmem:[#allocation15 + $0xa8] sm:$0xff] }
 0x6e8   : > { %v3009_v56 = vcombine.low %v2992_v45, %v3000_v49  ;;  %v3008_v57 = vrot.slane %v3001_v50, %v6245_v61  ;;  %v3088_v63 = vrot.slane %v3083_v48, %v6229_v46  ;;  %v3092_v9 = vrot.slane %v3083_v48, %v6235_v51  ;;  %4608 = vmatprep.subr.bf16.mxu1 %v4607_v14  ;;  %v3260_v43 = vld [vmem:[#allocation15 + $0x98] sm:$0xff]  ;;  %v3257_v49 = vld [vmem:[#allocation15 + $0x80] sm:$0xff]  ;;  %v3267_v48 = vld [vmem:[#allocation15 + $0xd0] sm:$0xff] }
 0x6e9   : > { %v2959_v47 = vcombine.low %v2942_v52, %v2950_v54  ;;  %v2958_v53 = vrot.slane %v2951_v55, %v6245_v61  ;;  %v4547_v21 = vpack.c.bf16 %v3254_v19, %v3250_v17  ;;  %v4611_v18 = vpack.c.bf16 %v3256_v20, %v3252_v24  ;;  %v3264_v45 = vld [vmem:[#allocation15 + $0xb8] sm:$0xff]  ;;  %v3261_v52 = vld [vmem:[#allocation15 + $0xa0] sm:$0xff]  ;;  %v3259_v54 = vld [vmem:[#allocation15 + $0x90] sm:$0xff] }
 0x6ea   : > { %v3016_v58 = vrot.slane %v3009_v56, %v6245_v61  ;;  %v4549_v37 = vpack.c.bf16 %v3253_v31, %v3249_v28  ;;  %v4613_v41 = vpack.c.bf16 %v3255_v38, %v3251_v34  ;;  %v4551_v42 = vpack.c.bf16 %v3262_v40, %v3258_v39  ;;  %v3263_v55 = vld [vmem:[#allocation15 + $0xb0] sm:$0xff]  ;;  %v3286_v11 = vld [vmem:[#allocation15 + $0x168] sm:$0xff]  ;;  %v3288_v12 = vld [vmem:[#allocation15 + $0x178] sm:$0xff] }
 0x6eb   : > { %v2966_v23 = vrot.slane %v2959_v47, %v6245_v61  ;;  %v4615_v50 = vpack.c.bf16 %v3264_v45, %v3260_v43  ;;  %v4553_v56 = vpack.c.bf16 %v3261_v52, %v3257_v49  ;;  %v3266_v47 = vld [vmem:[#allocation15 + $0xc8] sm:$0xff]  ;;  %v3292_v20 = vld [vmem:[#allocation15 + $0x198] sm:$0xff]  ;;  %v3289_v34 = vld [vmem:[#allocation15 + $0x180] sm:$0xff] }
 0x6ec   : > { %v3018_v3 = vcombine.high %v3008_v57, %v3016_v58  ;;  %v3017_v4 = vcombine.low %v3008_v57, %v3016_v58  ;;  %v3270_v57 = vld [vmem:[#allocation15 + $0xe8] sm:$0xff]  ;;  %v3268_v58 = vld [vmem:[#allocation15 + $0xd8] sm:$0xff]  ;;  %v3291_v38 = vld [vmem:[#allocation15 + $0x190] sm:$0xff] }
 0x6ed   : > { %v2968_v60 = vcombine.high %v2958_v53, %v2966_v23  ;;  %v2967_v62 = vcombine.low %v2958_v53, %v2966_v23  ;;  %v4617_v53 = vpack.c.bf16 %v3263_v55, %v3259_v54  ;;  %v4555_v23 = vpack.c.bf16 %v3270_v57, %v3266_v47  ;;  %v3290_v19 = vld [vmem:[#allocation15 + $0x188] sm:$0xff]  ;;  %v3295_v40 = vld [vmem:[#allocation15 + $0x1b0] sm:$0xff]  ;;  %v3300_v43 = vld [vmem:[#allocation15 + $0x1d8] sm:$0xff] }
 0x6ee   : > { %v3294_v24 = vld [vmem:[#allocation15 + $0x1a8] sm:$0xff]  ;;  %v3304_v45 = vld [vmem:[#allocation15 + $0x1f8] sm:$0xff]  ;;  %v3297_v54 = vld [vmem:[#allocation15 + $0x1c0] sm:$0xff] }
 0x6ef   : > { %3159 = vmatprep.mubr.f32.mxu1 %v2968_v60  ;;  %v3269_v60 = vld [vmem:[#allocation15 + $0xe0] sm:$0xff]  ;;  %v4567_v31 = vpack.c.bf16 %v3294_v24, %v3290_v19  ;;  %v4635_v47 = vpack.c.bf16 %v3304_v45, %v3300_v43  ;;  %v3303_v57 = vld [vmem:[#allocation15 + $0x1f0] sm:$0xff] }
 0x6f0   : > { %3160 = vmatmul.mubr.f32.vlgmr.msra.gmra.mrb[8].mxu1 %v2967_v62  ;;  %v3301_v55 = vld [vmem:[#allocation15 + $0x1e0] sm:$0xff]  ;;  %v3323_v24 = vld [vmem:[#allocation15 + $0x290] sm:$0xff] }
 0x6f1   : > { %3165 = vmatprep.mubr.f32.mxu1 %v3018_v3  ;;  %v3272_v3 = vld [vmem:[#allocation15 + $0xf8] sm:$0xff] }
 0x6f2   : > { %v4619_v62 = vpack.c.bf16 %v3272_v3, %v3268_v58  ;;  %v3306_v58 = vld [vmem:[#allocation15 + $0x208] sm:$0xff]  ;;  %v3312_v3 = vld [vmem:[#allocation15 + $0x238] sm:$0xff] }
 0x6f4   : > { %3166 = vmatmul.mubr.f32.gmra.mrb[10].mxu1 %v3017_v4  ;;  %v3265_v4 = vld [vmem:[#allocation15 + $0xc0] sm:$0xff] }
 0x7c3   : > { %v3161_v0 = vpop.f32.mrb[8].mxu1 }
 0x7c4   : > { %v3162_v22 = vadd.f32 %v3161_v0, %v3088_v63  ;;  %v3163_v36 = vpop.f32.mrb[9].mxu1  ;;  %v3278_v0 = vld [vmem:[#allocation15 + $0x128] sm:$0xff] }
 0x7c5   : > { %v3164_v61 = vadd.f32 %v3163_v36, %v3092_v9  ;;  %v3280_v36 = vld [vmem:[#allocation15 + $0x138] sm:$0xff] }
 0x7c6   : > { %v6331_v29 = vadd.f32 %v3162_v22, %v6215_v26  ;;  %v3276_v22 = vld [vmem:[#allocation15 + $0x118] sm:$0xff] }
 0x7c7   : > { %v6334_v25 = vadd.f32 %v3164_v61, %v6211_v32  ;;  %v3167_v35 = vpop.f32.mrb[10].mxu1  ;;  %v3242_v32 = vld [vmem:[#allocation15 + $0x8] sm:$0xff]  ;;  %v4557_v61 = vpack.c.bf16 %v3269_v60, %v3265_v4  ;;  %v4573_v4 = vpack.c.bf16 %v3301_v55, %v3297_v54  ;;  %v3332_v54 = vld [vmem:[#allocation15 + $0x2d8] sm:$0xff] }
 0x7c8   : > { %v3168_v1 = vadd.f32 %v3167_v35, %v3088_v63  ;;  %v3169_v2 = vpop.f32.mrb[11].mxu1  ;;  %v4543_v33 = vpack.c.bf16 %v3246_v10, %v3242_v32  ;;  %v3271_v63 = vld [vmem:[#allocation15 + $0xf0] sm:$0xff]  ;;  %v3282_v10 = vld [vmem:[#allocation15 + $0x148] sm:$0xff] }
 0x7c9   : > { %v3170_v5 = vadd.f32 %v3169_v2, %v3092_v9  ;;  %v3178_v6 = vadd.f32 %v6334_v25, %v6331_v29  ;;  %v3274_v9 = vld [vmem:[#allocation15 + $0x108] sm:$0xff]  ;;  %v4621_v35 = vpack.c.bf16 %v3271_v63, %v3267_v48  ;;  %v3273_v2 = vld [vmem:[#allocation15 + $0x100] sm:$0xff]  ;;  %v3279_v32 = vld [vmem:[#allocation15 + $0x130] sm:$0xff]  ;;  %v4563_v14 = vpack.c.bf16 %v3286_v11, %v3282_v10 }
 0x7ca   : > { %v6339_v7 = vadd.f32 %v3168_v1, %v6223_v30  ;;  %v3247_v30 = vld [vmem:[#allocation15 + $0x30] sm:$0xff]  ;;  %4544 = vmatprep.subr.bf16.mxu0 %v4543_v33  ;;  %v4559_v1 = vpack.c.bf16 %v3278_v0, %v3274_v9  ;;  %v3284_v33 = vld [vmem:[#allocation15 + $0x158] sm:$0xff]  ;;  %v3305_v48 = vld [vmem:[#allocation15 + $0x200] sm:$0xff] }
 0x7cb   : > { %v6342_v8 = vadd.f32 %v3170_v5, %v6218_v27  ;;  %3179 = vadd.xlane.f32.xlu0 %v3178_v6  ;;  %v4609_v27 = vpack.c.bf16 %v3247_v30, %v3243_v16  ;;  %4546 = vmatpush1.bf16.msra.mxu0 %v4545_v15  ;;  %v3277_v5 = vld [vmem:[#allocation15 + $0x120] sm:$0xff]  ;;  %v3275_v6 = vld [vmem:[#allocation15 + $0x110] sm:$0xff]  ;;  %v4627_v17 = vpack.c.bf16 %v3288_v12, %v3284_v33  ;;  %v3322_v12 = vld [vmem:[#allocation15 + $0x288] sm:$0xff] }
 0x7cc   : > { %4548 = vmatprep.subr.bf16.mxu0 %v4547_v21  ;;  %v4561_v59 = vpack.c.bf16 %v3277_v5, %v3273_v2  ;;  %v4625_v13 = vpack.c.bf16 %v3279_v32, %v3275_v6  ;;  %v3281_v15 = vld [vmem:[#allocation15 + $0x140] sm:$0xff]  ;;  %v3283_v30 = vld [vmem:[#allocation15 + $0x150] sm:$0xff]  ;;  %v3296_v21 = vld [vmem:[#allocation15 + $0x1b8] sm:$0xff] }
 0x7cd   : > { %v3181_v26 = vadd.f32 %v6342_v8, %v6339_v7  ;;  %4610 = vmatpush1.bf16.msra.mxu1 %v4609_v27  ;;  %v3285_v16 = vld [vmem:[#allocation15 + $0x160] sm:$0xff]  ;;  %v3287_v27 = vld [vmem:[#allocation15 + $0x170] sm:$0xff]  ;;  %v4631_v39 = vpack.c.bf16 %v3296_v21, %v3292_v20 }
 0x7ce   : > { %4612 = vmatprep.subr.bf16.mxu1 %v4611_v18  ;;  %v4565_v18 = vpack.c.bf16 %v3285_v16, %v3281_v15  ;;  %v4629_v28 = vpack.c.bf16 %v3287_v27, %v3283_v30  ;;  %v3309_v63 = vld [vmem:[#allocation15 + $0x220] sm:$0xff]  ;;  %v3307_v9 = vld [vmem:[#allocation15 + $0x210] sm:$0xff] }
 0x7cf   : > { %3182 = vadd.xlane.f32.xlu1 %v3181_v26  ;;  %4550 = vmatpush1.bf16.msra.mxu0 %v4549_v37  ;;  %v4623_v26 = vpack.c.bf16 %v3280_v36, %v3276_v22  ;;  %v3293_v37 = vld [vmem:[#allocation15 + $0x1a0] sm:$0xff]  ;;  %v3311_v22 = vld [vmem:[#allocation15 + $0x230] sm:$0xff]  ;;  %v3314_v36 = vld [vmem:[#allocation15 + $0x248] sm:$0xff]  ;;  %v4577_v2 = vpack.c.bf16 %v3309_v63, %v3305_v48 }
 0x7d0   : > { %4552 = vmatprep.subr.bf16.mxu0 %v4551_v42  ;;  %v3302_v42 = vld [vmem:[#allocation15 + $0x1e8] sm:$0xff]  ;;  %v4569_v49 = vpack.c.bf16 %v3293_v37, %v3289_v34  ;;  %v4641_v5 = vpack.c.bf16 %v3311_v22, %v3307_v9  ;;  %v3317_v32 = vld [vmem:[#allocation15 + $0x260] sm:$0xff]  ;;  %v3315_v10 = vld [vmem:[#allocation15 + $0x250] sm:$0xff] }
 0x7d1   : > { %4614 = vmatpush1.bf16.msra.mxu1 %v4613_v41  ;;  %v3298_v41 = vld [vmem:[#allocation15 + $0x1c8] sm:$0xff]  ;;  %v3319_v33 = vld [vmem:[#allocation15 + $0x270] sm:$0xff]  ;;  %v3325_v27 = vld [vmem:[#allocation15 + $0x2a0] sm:$0xff] }
 0x7d2   : > { %4616 = vmatprep.subr.bf16.mxu1 %v4615_v50  ;;  %v4633_v50 = vpack.c.bf16 %v3295_v40, %v3291_v38  ;;  %v4571_v52 = vpack.c.bf16 %v3302_v42, %v3298_v41  ;;  %v4645_v16 = vpack.c.bf16 %v3319_v33, %v3315_v10  ;;  %v3327_v20 = vld [vmem:[#allocation15 + $0x2b0] sm:$0xff]  ;;  %v3344_v48 = vld [vmem:[#allocation15 + $0x338] sm:$0xff]  ;;  %v3337_v63 = vld [vmem:[#allocation15 + $0x300] sm:$0xff] }
 0x7d3   : > { %4554 = vmatpush1.bf16.msra.mxu0 %v4553_v56  ;;  %v3299_v56 = vld [vmem:[#allocation15 + $0x1d0] sm:$0xff]  ;;  %v3341_v9 = vld [vmem:[#allocation15 + $0x320] sm:$0xff] }
 0x7d4   : > { %4556 = vmatprep.subr.bf16.mxu0 %v4555_v23  ;;  %v3308_v23 = vld [vmem:[#allocation15 + $0x218] sm:$0xff]  ;;  %v4637_v60 = vpack.c.bf16 %v3303_v57, %v3299_v56  ;;  %v4593_v22 = vpack.c.bf16 %v3341_v9, %v3337_v63  ;;  %v3349_v10 = vld [vmem:[#allocation15 + $0x360] sm:$0xff] }
 0x7d5   : > { %4618 = vmatpush1.bf16.msra.mxu1 %v4617_v53  ;;  %v3310_v53 = vld [vmem:[#allocation15 + $0x228] sm:$0xff]  ;;  %v4639_v0 = vpack.c.bf16 %v3312_v3, %v3308_v23  ;;  %v3336_v56 = vld [vmem:[#allocation15 + $0x2f8] sm:$0xff] }
 0x7d6   : > { %4620 = vmatprep.subr.bf16.mxu1 %v4619_v62  ;;  %v4575_v62 = vpack.c.bf16 %v3310_v53, %v3306_v58  ;;  %v4651_v57 = vpack.c.bf16 %v3336_v56, %v3332_v54  ;;  %v3331_v58 = vld [vmem:[#allocation15 + $0x2d0] sm:$0xff]  ;;  %v3338_v3 = vld [vmem:[#allocation15 + $0x308] sm:$0xff]  ;;  %v3556_v56 = vld [vmem:[#allocation16 + $0x18] sm:$0xff] }
 0x7d7   : > { %4558 = vmatpush1.bf16.msra.mxu0 %v4557_v61  ;;  %v3318_v61 = vld [vmem:[#allocation15 + $0x268] sm:$0xff]  ;;  %v3335_v53 = vld [vmem:[#allocation15 + $0x2f0] sm:$0xff] }
 0x7d8   : > { %4560 = vmatprep.subr.bf16.mxu0 %v4559_v1  ;;  %v3320_v1 = vld [vmem:[#allocation15 + $0x278] sm:$0xff]  ;;  %v4579_v6 = vpack.c.bf16 %v3318_v61, %v3314_v36  ;;  %v4653_v23 = vpack.c.bf16 %v3335_v53, %v3331_v58  ;;  %v3339_v36 = vld [vmem:[#allocation15 + $0x310] sm:$0xff] }
 0x7d9   : > { %4622 = vmatpush1.bf16.msra.mxu1 %v4621_v35  ;;  %v3316_v35 = vld [vmem:[#allocation15 + $0x258] sm:$0xff]  ;;  %v3343_v61 = vld [vmem:[#allocation15 + $0x330] sm:$0xff] }
 0x7da   : > { %4624 = vmatprep.subr.bf16.mxu1 %v4623_v26  ;;  %v3313_v26 = vld [vmem:[#allocation15 + $0x240] sm:$0xff]  ;;  %v4643_v11 = vpack.c.bf16 %v3320_v1, %v3316_v35  ;;  %v4657_v35 = vpack.c.bf16 %v3343_v61, %v3339_v36  ;;  %v3346_v1 = vld [vmem:[#allocation15 + $0x348] sm:$0xff]  ;;  %v3555_v61 = vld [vmem:[#allocation16 + $0x10] sm:$0xff] }
 0x7db   : > { %4562 = vmatpush1.bf16.msra.mxu0 %v4561_v59  ;;  %v3326_v59 = vld [vmem:[#allocation15 + $0x2a8] sm:$0xff]  ;;  %v4581_v15 = vpack.c.bf16 %v3317_v32, %v3313_v26  ;;  %v3352_v26 = vld [vmem:[#allocation15 + $0x378] sm:$0xff]  ;;  %v3345_v32 = vld [vmem:[#allocation15 + $0x340] sm:$0xff] }
 0x7dc   : > { %4564 = vmatprep.subr.bf16.mxu0 %v4563_v14  ;;  %v3328_v14 = vld [vmem:[#allocation15 + $0x2b8] sm:$0xff]  ;;  %v4583_v30 = vpack.c.bf16 %v3326_v59, %v3322_v12  ;;  %v4597_v33 = vpack.c.bf16 %v3349_v10, %v3345_v32  ;;  %v3347_v12 = vld [vmem:[#allocation15 + $0x350] sm:$0xff]  ;;  %v3553_v36 = vld [vmem:[#allocation16] sm:$0xff] }
 0x7dd   : > { %4626 = vmatpush1.bf16.msra.mxu1 %v4625_v13  ;;  %v3324_v13 = vld [vmem:[#allocation15 + $0x298] sm:$0xff]  ;;  %v3351_v59 = vld [vmem:[#allocation15 + $0x370] sm:$0xff] }
 0x7de   : > { %4628 = vmatprep.subr.bf16.mxu1 %v4627_v17  ;;  %v3321_v17 = vld [vmem:[#allocation15 + $0x280] sm:$0xff]  ;;  %v4647_v19 = vpack.c.bf16 %v3328_v14, %v3324_v13  ;;  %v3354_v13 = vld [vmem:[#allocation15 + $0x388] sm:$0xff]  ;;  %v4661_v14 = vpack.c.bf16 %v3351_v59, %v3347_v12  ;;  %v3559_v59 = vld [vmem:[#allocation16 + $0x30] sm:$0xff] }
 0x7df   : > { %4566 = vmatpush1.bf16.msra.mxu0 %v4565_v18  ;;  %v4585_v21 = vpack.c.bf16 %v3325_v27, %v3321_v17  ;;  %v4649_v18 = vpack.c.bf16 %v3327_v20, %v3323_v24  ;;  %v3357_v24 = vld [vmem:[#allocation15 + $0x3a0] sm:$0xff]  ;;  %v3355_v20 = vld [vmem:[#allocation15 + $0x390] sm:$0xff] }
 0x7e0   : > { %4568 = vmatprep.subr.bf16.mxu0 %v4567_v31  ;;  %v3557_v12 = vld [vmem:[#allocation16 + $0x20] sm:$0xff] }
 0x7e1   : > { %4630 = vmatpush1.bf16.msra.mxu1 %v4629_v28 }
 0x7e2   : > { %4632 = vmatprep.subr.bf16.mxu1 %v4631_v39 }
 0x7e3   : > { %4570 = vmatpush1.bf16.msra.mxu0 %v4569_v49 }
 0x7e4   : > { %4572 = vmatprep.subr.bf16.mxu0 %v4571_v52  ;;  %v3334_v52 = vld [vmem:[#allocation15 + $0x2e8] sm:$0xff] }
 0x7e5   : > { %4634 = vmatpush1.bf16.msra.mxu1 %v4633_v50  ;;  %v3330_v50 = vld [vmem:[#allocation15 + $0x2c8] sm:$0xff] }
 0x7e6   : > { %4636 = vmatprep.subr.bf16.mxu1 %v4635_v47  ;;  %v4587_v55 = vpack.c.bf16 %v3334_v52, %v3330_v50  ;;  %v3333_v47 = vld [vmem:[#allocation15 + $0x2e0] sm:$0xff]  ;;  %v3367_v50 = vld [vmem:[#allocation15 + $0x3f0] sm:$0xff] }
 0x7e7   : > { %4574 = vmatpush1.bf16.msra.mxu0 %v4573_v4  ;;  %v3342_v4 = vld [vmem:[#allocation15 + $0x328] sm:$0xff] }
 0x7e8   : > { %4576 = vmatprep.subr.bf16.mxu0 %v4575_v62  ;;  %v4591_v62 = vpack.c.bf16 %v3342_v4, %v3338_v3  ;;  %v3176_v3 = vld [vmem:[%s6655_s28] sm:$0x3] }
 0x7e9   : > { %4638 = vmatpush1.bf16.msra.mxu1 %v4637_v60  ;;  %v3340_v60 = vld [vmem:[#allocation15 + $0x318] sm:$0xff]  ;;  %v3177_v4 = vld [vmem:[%s6656_s12] sm:$0x3]  ;;  %s4179_s12 = sshll.u32 %s6660_s6, 3 }
 0x7ea   : > { %4640 = vmatprep.subr.bf16.mxu1 %v4639_v0  ;;  %v4655_v0 = vpack.c.bf16 %v3344_v48, %v3340_v60  ;;  %v3215_v60 = vrot.slane %v3176_v3, %v6229_v46  ;;  %v3230_v9 = vrot.slane %v3177_v4, %v6229_v46  ;;  %s3933_s5 = sadd.s32 %s4186_s2, %s4179_s12 }
 0x7eb   : > { %4578 = vmatpush1.bf16.msra.mxu0 %v4577_v2  ;;  %v3350_v2 = vld [vmem:[#allocation15 + $0x368] sm:$0xff]  ;;  %s4180_s23 = sshll.u32 %s3933_s5, 7 }
 0x7ec   : > { %4580 = vmatprep.subr.bf16.mxu0 %v4579_v6  ;;  %v4595_v6 = vpack.c.bf16 %v3350_v2, %v3346_v1  ;;  %v3558_v2 = vld [vmem:[#allocation16 + $0x28] sm:$0xff] }
 0x7ed   : > { %4642 = vmatpush1.bf16.msra.mxu1 %v4641_v5  ;;  %v3348_v5 = vld [vmem:[#allocation15 + $0x358] sm:$0xff] }
 0x7ee   : > { %4644 = vmatprep.subr.bf16.mxu1 %v4643_v11  ;;  %v4659_v11 = vpack.c.bf16 %v3352_v26, %v3348_v5  ;;  %v3560_v5 = vld [vmem:[#allocation16 + $0x38] sm:$0xff]  ;;  %v4673_v26 = vpack.c.bf16 %v3555_v61, %v3553_v36  ;;  %v3590_v36 = vld [vmem:[#allocation16 + $0x128] sm:$0xff] }
 0x7ef   : > { %4582 = vmatpush1.bf16.msra.mxu0 %v4581_v15  ;;  %v3358_v15 = vld [vmem:[#allocation15 + $0x3a8] sm:$0xff]  ;;  %v3592_v61 = vld [vmem:[#allocation16 + $0x138] sm:$0xff] }
 0x7f0   : > { %4584 = vmatprep.subr.bf16.mxu0 %v4583_v30  ;;  %v3360_v30 = vld [vmem:[#allocation15 + $0x3b8] sm:$0xff]  ;;  %v4599_v17 = vpack.c.bf16 %v3358_v15, %v3354_v13 }
 0x7f1   : > { %4646 = vmatpush1.bf16.msra.mxu1 %v4645_v16  ;;  %v3356_v16 = vld [vmem:[#allocation15 + $0x398] sm:$0xff] }
 0x7f2   : > { %4648 = vmatprep.subr.bf16.mxu1 %v4647_v19  ;;  %v4663_v27 = vpack.c.bf16 %v3360_v30, %v3356_v16  ;;  %v3353_v19 = vld [vmem:[#allocation15 + $0x380] sm:$0xff]  ;;  %v3564_v15 = vld [vmem:[#allocation16 + $0x58] sm:$0xff] }
 0x7f3   : > { %4586 = vmatpush1.bf16.msra.mxu0 %v4585_v21  ;;  %v4601_v21 = vpack.c.bf16 %v3357_v24, %v3353_v19  ;;  %v3566_v19 = vld [vmem:[#allocation16 + $0x68] sm:$0xff]  ;;  %v3568_v24 = vld [vmem:[#allocation16 + $0x78] sm:$0xff] }
 0x7f4   : > { %4588 = vmatprep.subr.bf16.mxu0 %v4587_v55  ;;  %v3554_v55 = vld [vmem:[#allocation16 + $0x8] sm:$0xff] }
 0x7f5   : > { %4650 = vmatpush1.bf16.msra.mxu1 %v4649_v18  ;;  %v3359_v18 = vld [vmem:[#allocation15 + $0x3b0] sm:$0xff] }
 0x7f6   : > { %4652 = vmatprep.subr.bf16.mxu1 %v4651_v57 }
 0x7f9   : > { %4654 = vmatpush1.bf16.msra.mxu1 %v4653_v23 }
 0x7fa   : > { %4656 = vmatprep.subr.bf16.mxu1 %v4655_v0  ;;  %v3234_v0 = vrot.slane %v3177_v4, %v6235_v51  ;;  %v3581_v4 = vld [vmem:[#allocation16 + $0xe0] sm:$0xff] }
 0x7fd   : > { %4658 = vmatpush1.bf16.msra.mxu1 %v4657_v35 }
 0x7fe   : > { %4660 = vmatprep.subr.bf16.mxu1 %v4659_v11 }
 0x801   : > { %4662 = vmatpush1.bf16.msra.mxu1 %v4661_v14  ;;  %v3562_v14 = vld [vmem:[#allocation16 + $0x48] sm:$0xff] }
 0x802   : > { %4664 = vmatprep.subr.bf16.mxu1 %v4663_v27  ;;  %v4679_v30 = vpack.c.bf16 %v3564_v15, %v3562_v14  ;;  %v3563_v27 = vld [vmem:[#allocation16 + $0x50] sm:$0xff]  ;;  %v3597_v15 = vld [vmem:[#allocation16 + $0x160] sm:$0xff] }
 0x858   : > { %v3180_v28 = vpop.xlane.xlu0 %3179 }
 0x859   : > { %v3185_v31 = vmul.f32 0.00390625, %v3180_v28  ;;  %v3362_v28 = vld [vmem:[#allocation15 + $0x3c8] sm:$0xff] }
 0x85b   : > { %v6347_v34 = vsub.f32 %v6331_v29, %v3185_v31  ;;  %v6350_v37 = vsub.f32 %v6334_v25, %v3185_v31  ;;  %v3366_v31 = vld [vmem:[#allocation15 + $0x3e8] sm:$0xff] }
 0x85c   : > { %v3183_v38 = vpop.xlane.xlu1 %3182 }
 0x85d   : > { %v3186_v39 = vmul.f32 0.00390625, %v3183_v38  ;;  %v3191_v40 = vmul.f32 %v6347_v34, %v6347_v34  ;;  %v3192_v41 = vmul.f32 %v6350_v37, %v6350_v37  ;;  %v4665_v38 = vpack.c.bf16 %v3359_v18, %v3355_v20  ;;  %v3565_v18 = vld [vmem:[#allocation16 + $0x60] sm:$0xff] }
 0x85f   : > { %v6357_v42 = vsub.f32 %v6339_v7, %v3186_v39  ;;  %v6360_v43 = vsub.f32 %v6342_v8, %v3186_v39  ;;  %v3195_v45 = vadd.f32 %v3192_v41, %v3191_v40  ;;  %v3329_v7 = vld [vmem:[#allocation15 + $0x2c0] sm:$0xff]  ;;  %v4603_v39 = vpack.c.bf16 %v3366_v31, %v3362_v28  ;;  %v3364_v40 = vld [vmem:[#allocation15 + $0x3d8] sm:$0xff]  ;;  %4666 = vmatpush1.bf16.msra.mxu1 %v4665_v38  ;;  %v3567_v28 = vld [vmem:[#allocation16 + $0x70] sm:$0xff] }
 0x860   : > { %v4589_v8 = vpack.c.bf16 %v3333_v47, %v3329_v7  ;;  %v3368_v41 = vld [vmem:[#allocation15 + $0x3f8] sm:$0xff]  ;;  %v4671_v7 = vpack.c.bf16 %v3556_v56, %v3554_v55  ;;  %v3570_v31 = vld [vmem:[#allocation16 + $0x88] sm:$0xff] }
 0x861   : > { %3196 = vadd.xlane.f32.xlu0 %v3195_v45  ;;  %v3193_v29 = vmul.f32 %v6357_v42, %v6357_v42  ;;  %v3194_v25 = vmul.f32 %v6360_v43, %v6360_v43  ;;  %v3361_v45 = vld [vmem:[#allocation15 + $0x3c0] sm:$0xff]  ;;  %v3572_v38 = vld [vmem:[#allocation16 + $0x98] sm:$0xff]  ;;  %v3578_v55 = vld [vmem:[#allocation16 + $0xc8] sm:$0xff] }
 0x862   : > { %4590 = vmatpush1.bf16.msra.mxu0 %v4589_v8  ;;  %v3580_v56 = vld [vmem:[#allocation16 + $0xd8] sm:$0xff] }
 0x863   : > { %v3198_v49 = vadd.f32 %v3194_v25, %v3193_v29  ;;  %4592 = vmatprep.subr.bf16.mxu0 %v4591_v62  ;;  %v4667_v29 = vpack.c.bf16 %v3368_v41, %v3364_v40  ;;  %v3365_v25 = vld [vmem:[#allocation15 + $0x3e0] sm:$0xff]  ;;  %v3219_v62 = vrot.slane %v3176_v3, %v6235_v51  ;;  %v4687_v40 = vpack.c.bf16 %v3572_v38, %v3570_v31 }
 0x864   : > { %v4605_v52 = vpack.c.bf16 %v3365_v25, %v3361_v45  ;;  %v3569_v41 = vld [vmem:[#allocation16 + $0x80] sm:$0xff]  ;;  %v3571_v45 = vld [vmem:[#allocation16 + $0x90] sm:$0xff]  ;;  %v3576_v25 = vld [vmem:[#allocation16 + $0xb8] sm:$0xff] }
 0x865   : > { %3199 = vadd.xlane.f32.xlu1 %v3198_v49  ;;  %v3363_v49 = vld [vmem:[#allocation15 + $0x3d0] sm:$0xff]  ;;  %4668 = vmatprep.subr.bf16.mxu1 %v4667_v29  ;;  %v3574_v29 = vld [vmem:[#allocation16 + $0xa8] sm:$0xff]  ;;  %v3605_v38 = vld [vmem:[#allocation16 + $0x1a0] sm:$0xff] }
 0x866   : > { %4594 = vmatpush1.bf16.msra.mxu0 %v4593_v22  ;;  %v4669_v54 = vpack.c.bf16 %v3367_v50, %v3363_v49  ;;  %v4689_v49 = vpack.c.bf16 %v3571_v45, %v3569_v41  ;;  %v4691_v50 = vpack.c.bf16 %v3576_v25, %v3574_v29  ;;  %v3612_v41 = vld [vmem:[#allocation16 + $0x1d8] sm:$0xff]  ;;  %v3609_v25 = vld [vmem:[#allocation16 + $0x1c0] sm:$0xff] }
 0x867   : > { %4596 = vmatprep.subr.bf16.mxu0 %v4595_v6 }
 0x868   : > { %4670 = vmatpush1.bf16.msra.mxu1 %v4669_v54  ;;  %v3575_v54 = vld [vmem:[#allocation16 + $0xb0] sm:$0xff] }
 0x86a   : > { %4598 = vmatpush1.bf16.msra.mxu0 %v4597_v33  ;;  %v4675_v33 = vpack.c.bf16 %v3560_v5, %v3558_v2  ;;  %v3589_v2 = vld [vmem:[#allocation16 + $0x120] sm:$0xff]  ;;  %v3591_v5 = vld [vmem:[#allocation16 + $0x130] sm:$0xff] }
 0x86b   : > { %4600 = vmatprep.subr.bf16.mxu0 %v4599_v17  ;;  %v3561_v17 = vld [vmem:[#allocation16 + $0x40] sm:$0xff] }
 0x86c   : > { %v4681_v20 = vpack.c.bf16 %v3563_v27, %v3561_v17  ;;  %v3604_v17 = vld [vmem:[#allocation16 + $0x198] sm:$0xff] }
 0x86e   : > { %4602 = vmatpush1.bf16.msra.mxu0 %v4601_v21  ;;  %v4683_v21 = vpack.c.bf16 %v3568_v24, %v3566_v19  ;;  %v3601_v24 = vld [vmem:[#allocation16 + $0x180] sm:$0xff] }
 0x86f   : > { %4604 = vmatprep.subr.bf16.mxu0 %v4603_v39  ;;  %v4685_v39 = vpack.c.bf16 %v3567_v28, %v3565_v18  ;;  %v3608_v18 = vld [vmem:[#allocation16 + $0x1b8] sm:$0xff] }
 0x872   : > { %4606 = vmatpush1.bf16.msra.mxu0 %v4605_v52  ;;  %v3573_v52 = vld [vmem:[#allocation16 + $0xa0] sm:$0xff] }
 0x873   : > { %4672 = vmatprep.subr.bf16.mxu0 %v4671_v7  ;;  %v4693_v7 = vpack.c.bf16 %v3575_v54, %v3573_v52  ;;  %v3614_v52 = vld [vmem:[#allocation16 + $0x1e8] sm:$0xff]  ;;  %v3616_v54 = vld [vmem:[#allocation16 + $0x1f8] sm:$0xff] }
 0x8ee   : > { %v3197_v47 = vpop.xlane.xlu0 %3196 }
 0x8ef   : > { %v3201_v57 = vmul.f32 0.00390625, %v3197_v47  ;;  %v4695_v47 = vpack.c.bf16 %v3580_v56, %v3578_v55  ;;  %v4731_v55 = vpack.c.bf16 %v3616_v54, %v3614_v52  ;;  %v3613_v56 = vld [vmem:[#allocation16 + $0x1e0] sm:$0xff]  ;;  %v3635_v52 = vld [vmem:[#allocation16 + $0x290] sm:$0xff]  ;;  %v3638_v54 = vld [vmem:[#allocation16 + $0x2a8] sm:$0xff] }
 0x8f1   : > { %v3203_v8 = vadd.f32 1e-05, %v3201_v57  ;;  %v3577_v57 = vld [vmem:[#allocation16 + $0xc0] sm:$0xff] }
 0x8f2   : > { %v3200_v58 = vpop.xlane.xlu1 %3199 }
 0x8f3   : > { %5024 = vrsqrt.f32 %v3203_v8  ;;  %v3202_v53 = vmul.f32 0.00390625, %v3200_v58  ;;  %v3579_v8 = vld [vmem:[#allocation16 + $0xd0] sm:$0xff]  ;;  %v3582_v58 = vld [vmem:[#allocation16 + $0xe8] sm:$0xff] }
 0x8f5   : > { %v3204_v23 = vadd.f32 1e-05, %v3202_v53  ;;  %v3584_v53 = vld [vmem:[#allocation16 + $0xf8] sm:$0xff] }
 0x8f6   : > { %v4699_v3 = vpack.c.bf16 %v3584_v53, %v3582_v58  ;;  %v6399_v53 = vld [vmem:[%s6657_s16] sm:$0xf]  ;;  %s3936_s16 = sshll.u32 %s6019_s27, 4  ;;  %s6451_s16 = int_to_ptr.vmem [resolvable:$true] %s3936_s16 }
 0x8f7   : > { %5026 = vrsqrt.f32 %v3204_v23  ;;  %v4697_v23 = vpack.c.bf16 %v3579_v8, %v3577_v57  ;;  %v3618_v57 = vld [vmem:[#allocation16 + $0x208] sm:$0xff]  ;;  %v3620_v8 = vld [vmem:[#allocation16 + $0x218] sm:$0xff]  ;;  %s5262_s1 = scalar_lea.vmem %s6451_s16, 512 }
 0x8f8   : > { %v4735_v58 = vpack.c.bf16 %v3620_v8, %v3618_v57  ;;  %v3639_v57 = vld [vmem:[#allocation16 + $0x2b0] sm:$0xff]  ;;  %v3642_v8 = vld [vmem:[#allocation16 + $0x2c8] sm:$0xff]  ;;  %p5263_p2 = scmp.ne.s32.totalorder %s6451_s16, %s5262_s1 }
 0x8fa   : > { %p5264_p13 = pnand %p5263_p2, %p6665_p4 }
 0x8fc   : > { %p5265_p7 = pneg %p5264_p13 }
 0x8fd   : > { %v5025_v48 = vpop.eup %5024 }
 0x8fe   : > { %v3208_v63 = vmul.f32 %v5025_v48, %v6350_v37  ;;  %v3207_v22 = vmul.f32 %v5025_v48, %v6347_v34  ;;  %v3588_v48 = vld [vmem:[#allocation16 + $0x118] sm:$0xff] }
 0x900   : > { %v3223_v35 = vmul.f32 %v3219_v62, %v3208_v63  ;;  %v3222_v1 = vmul.f32 %v3215_v60, %v3207_v22  ;;  %v3587_v22 = vld [vmem:[#allocation16 + $0x110] sm:$0xff] }
 0x901   : > { %v5027_v6 = vpop.eup %5026 }
 0x902   : > { %v6378_v32 = vadd.f32 %v3234_v0, %v3223_v35  ;;  %v6380_v10 = vadd.f32 %v3230_v9, %v3222_v1  ;;  %v3210_v37 = vmul.f32 %v5027_v6, %v6360_v43  ;;  %v3209_v11 = vmul.f32 %v5027_v6, %v6357_v42  ;;  %v3594_v6 = vld [vmem:[#allocation16 + $0x148] sm:$0xff] }
 0x903   : > { %v4677_v42 = vpack.c.bf16 %v3559_v59, %v3557_v12  ;;  %v4707_v1 = vpack.c.bf16 %v3592_v61, %v3590_v36  ;;  %v3595_v12 = vld [vmem:[#allocation16 + $0x150] sm:$0xff]  ;;  %v3598_v59 = vld [vmem:[#allocation16 + $0x168] sm:$0xff] }
 0x904   : > { %3455 = vmatprep.mubr.f32.mxu0 %v6378_v32  ;;  %3532 = vmatprep.mubr.f32.mxu1 %v6378_v32  ;;  %v3225_v34 = vmul.f32 %v3219_v62, %v3210_v37  ;;  %v3224_v13 = vmul.f32 %v3215_v60, %v3209_v11  ;;  %v3583_v60 = vld [vmem:[#allocation16 + $0xf0] sm:$0xff]  ;;  %v3586_v62 = vld [vmem:[#allocation16 + $0x108] sm:$0xff]  ;;  %v4709_v37 = vpack.c.bf16 %v3591_v5, %v3589_v2 }
 0x905   : > { %3456 = vmatmul.mubr.f32.vlgmr.msra.gmra.mrb[4].mxu0 %v6380_v10  ;;  %3533 = vmatmul.mubr.f32.vlgmr.msra.gmra.mrb[12].mxu1 %v6380_v10  ;;  %v4701_v63 = vpack.c.bf16 %v3583_v60, %v3581_v4  ;;  %v3385_v4 = vsub.s32 3, %v6226_v44 }
 0x906   : > { %v6388_v16 = vadd.f32 %v3234_v0, %v3225_v34  ;;  %v6390_v43 = vadd.f32 %v3230_v9, %v3224_v13  ;;  %4674 = vmatpush1.bf16.msra.mxu0 %v4673_v26  ;;  %v4703_v9 = vpack.c.bf16 %v3588_v48, %v3586_v62  ;;  %v3585_v0 = vld [vmem:[#allocation16 + $0x100] sm:$0xff]  ;;  %v3596_v26 = vld [vmem:[#allocation16 + $0x158] sm:$0xff] }
 0x907   : > { %4676 = vmatprep.subr.bf16.mxu0 %v4675_v33  ;;  %v4705_v35 = vpack.c.bf16 %v3587_v22, %v3585_v0  ;;  %v4711_v11 = vpack.c.bf16 %v3596_v26, %v3594_v6  ;;  %v3593_v33 = vld [vmem:[#allocation16 + $0x140] sm:$0xff]  ;;  %v3600_v34 = vld [vmem:[#allocation16 + $0x178] sm:$0xff]  ;;  %v3619_v22 = vld [vmem:[#allocation16 + $0x210] sm:$0xff]  ;;  %v6409_v61 = vrot.slane %v6399_v53, %v3385_v4 }
 0x908   : > { %3461 = vmatprep.mubr.f32.mxu0 %v6388_v16  ;;  %3538 = vmatprep.mubr.f32.mxu1 %v6388_v16  ;;  %v4713_v13 = vpack.c.bf16 %v3595_v12, %v3593_v33  ;;  %v4715_v14 = vpack.c.bf16 %v3600_v34, %v3598_v59  ;;  %v3617_v0 = vld [vmem:[#allocation16 + $0x200] sm:$0xff] }
 0x909   : > { %3462 = vmatmul.mubr.f32.gmra.mrb[6].mxu0 %v6390_v43  ;;  %3539 = vmatmul.mubr.f32.gmra.mrb[14].mxu1 %v6390_v43  ;;  %v4737_v26 = vpack.c.bf16 %v3619_v22, %v3617_v0  ;;  %v3621_v34 = vld [vmem:[#allocation16 + $0x220] sm:$0xff] }
 0x90a   : > { %4678 = vmatpush1.bf16.msra.mxu0 %v4677_v42  ;;  %v3599_v42 = vld [vmem:[#allocation16 + $0x170] sm:$0xff]  ;;  %v3641_v4 = vld [vmem:[#allocation16 + $0x2c0] sm:$0xff] }
 0x90b   : > { %4680 = vmatprep.subr.bf16.mxu0 %v4679_v30  ;;  %v3602_v30 = vld [vmem:[#allocation16 + $0x188] sm:$0xff]  ;;  %v4717_v27 = vpack.c.bf16 %v3599_v42, %v3597_v15  ;;  %v3645_v22 = vld [vmem:[#allocation16 + $0x2e0] sm:$0xff] }
 0x90c   : > { %v4719_v19 = vpack.c.bf16 %v3604_v17, %v3602_v30  ;;  %v3626_v42 = vld [vmem:[#allocation16 + $0x248] sm:$0xff]  ;;  %v3628_v30 = vld [vmem:[#allocation16 + $0x258] sm:$0xff] }
 0x90e   : > { %4682 = vmatpush1.bf16.msra.mxu0 %v4681_v20  ;;  %v3603_v20 = vld [vmem:[#allocation16 + $0x190] sm:$0xff] }
 0x90f   : > { %4684 = vmatprep.subr.bf16.mxu0 %v4683_v21  ;;  %v3606_v21 = vld [vmem:[#allocation16 + $0x1a8] sm:$0xff]  ;;  %v4721_v28 = vpack.c.bf16 %v3603_v20, %v3601_v24  ;;  %v4743_v24 = vpack.c.bf16 %v3628_v30, %v3626_v42  ;;  %v3625_v20 = vld [vmem:[#allocation16 + $0x240] sm:$0xff]  ;;  %v3660_v42 = vld [vmem:[#allocation16 + $0x358] sm:$0xff] }
 0x910   : > { %v4723_v31 = vpack.c.bf16 %v3608_v18, %v3606_v21  ;;  %v3627_v21 = vld [vmem:[#allocation16 + $0x250] sm:$0xff] }
 0x912   : > { %4686 = vmatpush1.bf16.msra.mxu0 %v4685_v39  ;;  %v3607_v39 = vld [vmem:[#allocation16 + $0x1b0] sm:$0xff] }
 0x913   : > { %4688 = vmatprep.subr.bf16.mxu0 %v4687_v40  ;;  %v3610_v40 = vld [vmem:[#allocation16 + $0x1c8] sm:$0xff]  ;;  %v4725_v45 = vpack.c.bf16 %v3607_v39, %v3605_v38  ;;  %v4745_v38 = vpack.c.bf16 %v3627_v21, %v3625_v20  ;;  %v3664_v20 = vld [vmem:[#allocation16 + $0x378] sm:$0xff] }
 0x914   : > { %v4727_v29 = vpack.c.bf16 %v3612_v41, %v3610_v40  ;;  %v3629_v40 = vld [vmem:[#allocation16 + $0x260] sm:$0xff]  ;;  %v3631_v41 = vld [vmem:[#allocation16 + $0x270] sm:$0xff] }
 0x916   : > { %4690 = vmatpush1.bf16.msra.mxu0 %v4689_v49  ;;  %v3611_v49 = vld [vmem:[#allocation16 + $0x1d0] sm:$0xff] }
 0x917   : > { %4692 = vmatprep.subr.bf16.mxu0 %v4691_v50  ;;  %v4729_v50 = vpack.c.bf16 %v3611_v49, %v3609_v25  ;;  %v4749_v25 = vpack.c.bf16 %v3631_v41, %v3629_v40 }
 0x91a   : > { %4694 = vmatpush1.bf16.msra.mxu0 %v4693_v7  ;;  %v3615_v7 = vld [vmem:[#allocation16 + $0x1f0] sm:$0xff] }
 0x91b   : > { %4696 = vmatprep.subr.bf16.mxu0 %v4695_v47  ;;  %v4733_v47 = vpack.c.bf16 %v3615_v7, %v3613_v56 }
 0x91e   : > { %4698 = vmatpush1.bf16.msra.mxu0 %v4697_v23  ;;  %v3374_v23 = vrot.slane %v6399_v53, %v6229_v46 }
 0x91f   : > { %4700 = vmatprep.subr.bf16.mxu0 %v4699_v3  ;;  %v3378_v3 = vrot.slane %v6399_v53, %v6235_v51 }
 0x922   : > { %4702 = vmatpush1.bf16.msra.mxu0 %v4701_v63 }
 0x923   : > { %4704 = vmatprep.subr.bf16.mxu0 %v4703_v9 }
 0x926   : > { %4706 = vmatpush1.bf16.msra.mxu0 %v4705_v35  ;;  %v3622_v35 = vld [vmem:[#allocation16 + $0x228] sm:$0xff] }
 0x927   : > { %4708 = vmatprep.subr.bf16.mxu0 %v4707_v1  ;;  %v3624_v1 = vld [vmem:[#allocation16 + $0x238] sm:$0xff] }
 0x928   : > { %v4739_v59 = vpack.c.bf16 %v3624_v1, %v3622_v35  ;;  %v3650_v35 = vld [vmem:[#allocation16 + $0x308] sm:$0xff]  ;;  %v3652_v1 = vld [vmem:[#allocation16 + $0x318] sm:$0xff] }
 0x92a   : > { %4710 = vmatpush1.bf16.msra.mxu0 %v4709_v37 }
 0x92b   : > { %4712 = vmatprep.subr.bf16.mxu0 %v4711_v11 }
 0x92e   : > { %4714 = vmatpush1.bf16.msra.mxu0 %v4713_v13  ;;  %v3623_v13 = vld [vmem:[#allocation16 + $0x230] sm:$0xff] }
 0x92f   : > { %4716 = vmatprep.subr.bf16.mxu0 %v4715_v14 }
 0x932   : > { %4718 = vmatpush1.bf16.msra.mxu0 %v4717_v27  ;;  %v4741_v27 = vpack.c.bf16 %v3623_v13, %v3621_v34  ;;  %v3653_v13 = vld [vmem:[#allocation16 + $0x320] sm:$0xff] }
 0x933   : > { %4720 = vmatprep.subr.bf16.mxu0 %v4719_v19 }
 0x936   : > { %4722 = vmatpush1.bf16.msra.mxu0 %v4721_v28  ;;  %v3630_v28 = vld [vmem:[#allocation16 + $0x268] sm:$0xff] }
 0x937   : > { %4724 = vmatprep.subr.bf16.mxu0 %v4723_v31  ;;  %v3632_v31 = vld [vmem:[#allocation16 + $0x278] sm:$0xff] }
 0x938   : > { %v4747_v39 = vpack.c.bf16 %v3632_v31, %v3630_v28  ;;  %v3661_v28 = vld [vmem:[#allocation16 + $0x360] sm:$0xff]  ;;  %v3663_v31 = vld [vmem:[#allocation16 + $0x370] sm:$0xff] }
 0x939   : > { %v4781_v40 = vpack.c.bf16 %v3663_v31, %v3661_v28 }
 0x93a   : > { %4726 = vmatpush1.bf16.msra.mxu0 %v4725_v45  ;;  %v3634_v45 = vld [vmem:[#allocation16 + $0x288] sm:$0xff] }
 0x93b   : > { %4728 = vmatprep.subr.bf16.mxu0 %v4727_v29  ;;  %v3636_v29 = vld [vmem:[#allocation16 + $0x298] sm:$0xff] }
 0x93c   : > { %v4751_v49 = vpack.c.bf16 %v3636_v29, %v3634_v45  ;;  %v3665_v45 = vld [vmem:[#allocation16 + $0x380] sm:$0xff]  ;;  %v3667_v29 = vld [vmem:[#allocation16 + $0x390] sm:$0xff] }
 0x93e   : > { %4730 = vmatpush1.bf16.msra.mxu0 %v4729_v50  ;;  %v3633_v50 = vld [vmem:[#allocation16 + $0x280] sm:$0xff] }
 0x93f   : > { %4732 = vmatprep.subr.bf16.mxu0 %v4731_v55  ;;  %v3640_v55 = vld [vmem:[#allocation16 + $0x2b8] sm:$0xff]  ;;  %v4753_v56 = vpack.c.bf16 %v3635_v52, %v3633_v50  ;;  %v4785_v50 = vpack.c.bf16 %v3667_v29, %v3665_v45 }
 0x940   : > { %v4755_v7 = vpack.c.bf16 %v3640_v55, %v3638_v54  ;;  %v3669_v54 = vld [vmem:[#allocation16 + $0x3a0] sm:$0xff]  ;;  %v3671_v55 = vld [vmem:[#allocation16 + $0x3b0] sm:$0xff] }
 0x942   : > { %4734 = vmatpush1.bf16.msra.mxu0 %v4733_v47  ;;  %v3637_v47 = vld [vmem:[#allocation16 + $0x2a0] sm:$0xff] }
 0x943   : > { %4736 = vmatprep.subr.bf16.mxu0 %v4735_v58  ;;  %v3644_v58 = vld [vmem:[#allocation16 + $0x2d8] sm:$0xff] }
 0x9d8   : > { %v3457_v60 = vpop.f32.mrb[4].mxu0  ;;  %v6406_v62 = vpop.f32.mrb[12].mxu1 }
 0x9d9   : > { %v3458_v48 = vadd.f32 %v3457_v60, %v3374_v23  ;;  %v3459_v63 = vpop.f32.mrb[5].mxu0  ;;  %v3536_v9 = vpop.f32.mrb[13].mxu1  ;;  %v3643_v60 = vld [vmem:[#allocation16 + $0x2d0] sm:$0xff] }
 0x9da   : > { %v3460_v36 = vadd.f32 %v3459_v63, %v3378_v3  ;;  %v3537_v14 = vadd.f32 %v3536_v9, %v6409_v61  ;;  %v3648_v63 = vld [vmem:[#allocation16 + $0x2f8] sm:$0xff]  ;;  %v4761_v9 = vpack.c.bf16 %v3643_v60, %v3641_v4 }
 0x9db   : > { %v3545_v37 = vmax.f32 %v3458_v48, 0.0  ;;  %v3646_v48 = vld [vmem:[#allocation16 + $0x2e8] sm:$0xff]  ;;  %v3680_v4 = vld [vmem:[#allocation16 + $0x3f8] sm:$0xff] }
 0x9dc   : > { %v3546_v2 = vmax.f32 %v3460_v36, 0.0  ;;  %v3463_v5 = vpop.f32.mrb[6].mxu0  ;;  %v6411_v6 = vpop.f32.mrb[14].mxu1  ;;  %v3548_v18 = vmax.f32 %v3537_v14, 0.0  ;;  %v4763_v0 = vpack.c.bf16 %v3648_v63, %v3646_v48  ;;  %v3647_v36 = vld [vmem:[#allocation16 + $0x2f0] sm:$0xff] }
 0x9dd   : > { %v3464_v11 = vadd.f32 %v3463_v5, %v3374_v23  ;;  %v3465_v33 = vpop.f32.mrb[7].mxu0  ;;  %v6413_v12 = vpop.f32.mrb[15].mxu1  ;;  %v4757_v23 = vpack.c.bf16 %v3639_v57, %v3637_v47  ;;  %v4767_v5 = vpack.c.bf16 %v3652_v1, %v3650_v35  ;;  %v3655_v14 = vld [vmem:[#allocation16 + $0x330] sm:$0xff]  ;;  %v4789_v47 = vpack.c.bf16 %v3671_v55, %v3669_v54 }
 0x9de   : > { %v3466_v15 = vadd.f32 %v3465_v33, %v3378_v3  ;;  %3757 = vmatprep.mubr.f32.mxu0 %v3546_v2  ;;  %v4759_v3 = vpack.c.bf16 %v3644_v58, %v3642_v8  ;;  %v4765_v2 = vpack.c.bf16 %v3647_v36, %v3645_v22  ;;  %v3656_v33 = vld [vmem:[#allocation16 + $0x338] sm:$0xff]  ;;  %v4773_v30 = vpack.c.bf16 %v3655_v14, %v3653_v13  ;;  %v3673_v58 = vld [vmem:[#allocation16 + $0x3c0] sm:$0xff] }
 0x9df   : > { %3758 = vmatmul.mubr.f32.vlgmr.msra.gmra.mrb[8].mxu0 %v3545_v37  ;;  %v3549_v19 = vmax.f32 %v3464_v11, 0.0  ;;  %v3651_v37 = vld [vmem:[#allocation16 + $0x310] sm:$0xff]  ;;  %v3654_v11 = vld [vmem:[#allocation16 + $0x328] sm:$0xff]  ;;  %v3381_v57 = vsub.s32 2, %v6226_v44  ;;  %v3543_v44 = vadd.f32 %v6413_v12, %v6409_v61 }
 0x9e0   : > { %v3550_v17 = vmax.f32 %v3466_v15, 0.0  ;;  %4738 = vmatpush1.bf16.msra.mxu0 %v4737_v26  ;;  %v3649_v26 = vld [vmem:[#allocation16 + $0x300] sm:$0xff]  ;;  %v4771_v34 = vpack.c.bf16 %v3656_v33, %v3654_v11  ;;  %v3658_v15 = vld [vmem:[#allocation16 + $0x348] sm:$0xff] }
 0x9e1   : > { %4740 = vmatprep.subr.bf16.mxu0 %v4739_v59  ;;  %v4769_v59 = vpack.c.bf16 %v3651_v37, %v3649_v26  ;;  %v3382_v48 = vrot.slane %v6399_v53, %v3381_v57 }
 0x9e2   : > { %3763 = vmatprep.mubr.f32.mxu0 %v3550_v17  ;;  %v4775_v17 = vpack.c.bf16 %v3660_v42, %v3658_v15 }
 0x9e3   : > { %3764 = vmatmul.mubr.f32.gmra.mrb[10].mxu0 %v3549_v19  ;;  %v3659_v19 = vld [vmem:[#allocation16 + $0x350] sm:$0xff]  ;;  %v3535_v36 = vadd.f32 %v6406_v62, %v3382_v48  ;;  %v3541_v1 = vadd.f32 %v6411_v6, %v3382_v48 }
 0x9e4   : > { %4742 = vmatpush1.bf16.msra.mxu0 %v4741_v27  ;;  %3834 = vmatprep.mubr.f32.mxu0 %v3548_v18  ;;  %v3657_v27 = vld [vmem:[#allocation16 + $0x340] sm:$0xff] }
 0x9e5   : > { %4744 = vmatprep.subr.bf16.mxu0 %v4743_v24  ;;  %v3662_v24 = vld [vmem:[#allocation16 + $0x368] sm:$0xff]  ;;  %v4777_v21 = vpack.c.bf16 %v3659_v19, %v3657_v27  ;;  %v3547_v35 = vmax.f32 %v3535_v36, 0.0  ;;  %v3551_v53 = vmax.f32 %v3541_v1, 0.0 }
 0x9e6   : > { %v4779_v18 = vpack.c.bf16 %v3664_v20, %v3662_v24 }
 0x9e8   : > { %4746 = vmatpush1.bf16.msra.mxu0 %v4745_v38  ;;  %v3666_v38 = vld [vmem:[#allocation16 + $0x388] sm:$0xff] }
 0x9e9   : > { %4748 = vmatprep.subr.bf16.mxu0 %v4747_v39  ;;  %v3668_v39 = vld [vmem:[#allocation16 + $0x398] sm:$0xff] }
 0x9ea   : > { %v4783_v41 = vpack.c.bf16 %v3668_v39, %v3666_v38 }
 0x9ec   : > { %4750 = vmatpush1.bf16.msra.mxu0 %v4749_v25  ;;  %v3670_v25 = vld [vmem:[#allocation16 + $0x3a8] sm:$0xff] }
 0x9ed   : > { %4752 = vmatprep.subr.bf16.mxu0 %v4751_v49  ;;  %v3672_v49 = vld [vmem:[#allocation16 + $0x3b8] sm:$0xff] }
 0x9ee   : > { %v4787_v52 = vpack.c.bf16 %v3672_v49, %v3670_v25 }
 0x9f0   : > { %4754 = vmatpush1.bf16.msra.mxu0 %v4753_v56  ;;  %v3674_v56 = vld [vmem:[#allocation16 + $0x3c8] sm:$0xff] }
 0x9f1   : > { %4756 = vmatprep.subr.bf16.mxu0 %v4755_v7  ;;  %v3676_v7 = vld [vmem:[#allocation16 + $0x3d8] sm:$0xff] }
 0x9f2   : > { %v4791_v8 = vpack.c.bf16 %v3676_v7, %v3674_v56 }
 0x9f4   : > { %4758 = vmatpush1.bf16.msra.mxu0 %v4757_v23  ;;  %v3675_v23 = vld [vmem:[#allocation16 + $0x3d0] sm:$0xff] }
 0x9f5   : > { %4760 = vmatprep.subr.bf16.mxu0 %v4759_v3  ;;  %v3678_v3 = vld [vmem:[#allocation16 + $0x3e8] sm:$0xff]  ;;  %v4793_v60 = vpack.c.bf16 %v3675_v23, %v3673_v58 }
 0x9f6   : > { %v4795_v63 = vpack.c.bf16 %v3680_v4, %v3678_v3 }
 0x9f8   : > { %4762 = vmatpush1.bf16.msra.mxu0 %v4761_v9  ;;  %v3677_v9 = vld [vmem:[#allocation16 + $0x3e0] sm:$0xff] }
 0x9f9   : > { %4764 = vmatprep.subr.bf16.mxu0 %v4763_v0  ;;  %v3679_v0 = vld [vmem:[#allocation16 + $0x3f0] sm:$0xff] }
 0x9fa   : > { %v4797_v22 = vpack.c.bf16 %v3679_v0, %v3677_v9 }
 0x9fc   : > { %4766 = vmatpush1.bf16.msra.mxu0 %v4765_v2  ;;  %v3552_v2 = vmax.f32 %v3543_v44, 0.0 }
 0x9fd   : > { %4768 = vmatprep.subr.bf16.mxu0 %v4767_v5  ;;  %v3681_v5 = vld [vmem:[%s6658_s19] sm:$0x3]  ;;  %s6663_s19 = sld [smem:[#allocation53_spill]] }
 0x9fe   : > { %v3686_v26 = vrot.slane %v3681_v5, %v6229_v46  ;;  %v3690_v62 = vrot.slane %v3681_v5, %v6235_v51 }
 0xa00   : > { %4770 = vmatpush1.bf16.msra.mxu0 %v4769_v59 }
 0xa01   : > { %4772 = vmatprep.subr.bf16.mxu0 %v4771_v34 }
 0xa03   : > { %s6664_s13 = smov %s6663_s19  ;;  %s6449_s6 = scalar_lea.hbm %s6663_s19, %s4180_s23 }
 0xa04   : > { %4774 = vmatpush1.bf16.msra.mxu0 %v4773_v30 }
 0xa05   : > { %4776 = vmatprep.subr.bf16.mxu0 %v4775_v17 }
 0xa08   : > { %4778 = vmatpush1.bf16.msra.mxu0 %v4777_v21 }
 0xa09   : > { %4780 = vmatprep.subr.bf16.mxu0 %v4779_v18 }
 0xa0c   : > { %4782 = vmatpush1.bf16.msra.mxu0 %v4781_v40 }
 0xa0d   : > { %4784 = vmatprep.subr.bf16.mxu0 %v4783_v41 }
 0xa10   : > { %4786 = vmatpush1.bf16.msra.mxu0 %v4785_v50  ;;  %v3851_v50 = vld [vmem:[%s6661_s9] sm:$0x3]  ;;  %s5450_s9 = smov [#allocation18]  }
 0xa11   : > { %4788 = vmatprep.subr.bf16.mxu0 %v4787_v52  ;;  %v3852_v52 = vld [vmem:[%s6662_s4] sm:$0x3]  ;;  %v3889_v54 = vrot.slane %v3851_v50, %v6229_v46  ;;  %v3893_v55 = vrot.slane %v3851_v50, %v6235_v51  ;;  %s5266_s14 = sshll.u32 %s5450_s9, 4  ;;  %s5267_s14 = int_to_ptr.vmem [resolvable:$false] %s5266_s14 }
 0xa12   : > { %v3904_v7 = vrot.slane %v3852_v52, %v6229_v46  ;;  %s5268_s28 = scalar_lea.vmem %s5267_s14, 1024  ;;  %p5269_p10 = scmp.lt.s32.totalorder %s6451_s16, %s5267_s14 }
 0xa13   : > { %p5270_p5 = scmp.lt.s32.totalorder %s5268_s28, %s5262_s1 }
 0xa14   : > { %4790 = vmatpush1.bf16.msra.mxu0 %v4789_v47  ;;  %v3908_v47 = vrot.slane %v3852_v52, %v6235_v51 }
 0xa15   : > { %4792 = vmatprep.subr.bf16.mxu0 %v4791_v8  ;;  %p5271_p12 = por %p5270_p5, %p5269_p10 }
 0xa17   : > { %p5272_p9 = pnand %p5271_p12, %p5265_p7 }
 0xa18   : > { %4794 = vmatpush1.bf16.msra.mxu0 %v4793_v60 }
 0xa19   : > { %4796 = vmatprep.subr.bf16.mxu0 %v4795_v63 }
 0xa1c   : > { %4798 = vmatpush1.bf16.msra.mxu0 %v4797_v22 }
 0xa1f   : > { %3835 = vmatmul.mubr.f32.vlgmr.msra.gmra.mrb[8].mxu0 %v3547_v35 }
 0xa20   : > { %3840 = vmatprep.mubr.f32.mxu0 %v3552_v2 }
 0xa23   : > { %3841 = vmatmul.mubr.f32.gmra.mrb[10].mxu0 %v3551_v53 }
 0xaf2   : > { %v3836_v37 = vpop.f32.mrb[8].mxu0 }
 0xaf3   : > { %v4799_v11 = vadd.f32 %v3836_v37, %v3686_v26  ;;  %v3838_v61 = vpop.f32.mrb[9].mxu0 }
 0xaf4   : > { %v4800_v12 = vadd.f32 %v3838_v61, %v3690_v62 }
 0xaf5   : > { %v3847_v33 = vadd.f32 %v4799_v11, %v6380_v10 }
 0xaf6   : > { %v3848_v6 = vadd.f32 %v4800_v12, %v6378_v32  ;;  %v3842_v59 = vpop.f32.mrb[10].mxu0 }
 0xaf7   : > { %v4801_v34 = vadd.f32 %v3842_v59, %v3686_v26  ;;  %v3844_v13 = vpop.f32.mrb[11].mxu0 }
 0xaf8   : > { %v4802_v14 = vadd.f32 %v3844_v13, %v3690_v62  ;;  %v3853_v15 = vadd.f32 %v3848_v6, %v3847_v33 }
 0xaf9   : > { %v3849_v42 = vadd.f32 %v4801_v34, %v6390_v43 }
 0xafa   : > { %v3850_v30 = vadd.f32 %v4802_v14, %v6388_v16  ;;  %3854 = vadd.xlane.f32.xlu0 %v3853_v15 }
 0xafc   : > { %v3856_v17 = vadd.f32 %v3850_v30, %v3849_v42 }
 0xafe   : > { %3857 = vadd.xlane.f32.xlu1 %v3856_v17 }
 0xb87   : > { %v3855_v27 = vpop.xlane.xlu0 %3854 }
 0xb88   : > { %v3859_v19 = vmul.f32 0.00390625, %v3855_v27 }
 0xb8a   : > { %v3861_v24 = vsub.f32 %v3847_v33, %v3859_v19  ;;  %v3862_v20 = vsub.f32 %v3848_v6, %v3859_v19 }
 0xb8b   : > { %v3858_v21 = vpop.xlane.xlu1 %3857 }
 0xb8c   : > { %v3860_v10 = vmul.f32 0.00390625, %v3858_v21  ;;  %v3865_v18 = vmul.f32 %v3861_v24, %v3861_v24  ;;  %v3866_v32 = vmul.f32 %v3862_v20, %v3862_v20 }
 0xb8e   : > { %v3863_v28 = vsub.f32 %v3849_v42, %v3860_v10  ;;  %v3864_v31 = vsub.f32 %v3850_v30, %v3860_v10  ;;  %v3869_v38 = vadd.f32 %v3866_v32, %v3865_v18 }
 0xb90   : > { %3870 = vadd.xlane.f32.xlu0 %v3869_v38  ;;  %v3867_v39 = vmul.f32 %v3863_v28, %v3863_v28  ;;  %v3868_v43 = vmul.f32 %v3864_v31, %v3864_v31 }
 0xb92   : > { %v3872_v16 = vadd.f32 %v3868_v43, %v3867_v39 }
 0xb94   : > { %3873 = vadd.xlane.f32.xlu1 %v3872_v16 }
 0xc1d   : > { %v3871_v40 = vpop.xlane.xlu0 %3870 }
 0xc1e   : > { %v3875_v41 = vmul.f32 0.00390625, %v3871_v40 }
 0xc20   : > { %v3877_v45 = vadd.f32 1e-05, %v3875_v41 }
 0xc21   : > { %v3874_v29 = vpop.xlane.xlu1 %3873 }
 0xc22   : > { %5028 = vrsqrt.f32 %v3877_v45  ;;  %v3876_v25 = vmul.f32 0.00390625, %v3874_v29 }
 0xc24   : > { %v3878_v49 = vadd.f32 1e-05, %v3876_v25 }
 0xc26   : > { %5030 = vrsqrt.f32 %v3878_v49 }
 0xc2c   : > { %v5029_v56 = vpop.eup %5028 }
 0xc2d   : > { %v3881_v57 = vmul.f32 %v5029_v56, %v3861_v24  ;;  %v3882_v8 = vmul.f32 %v5029_v56, %v3862_v20 }
 0xc2f   : > { %v3896_v58 = vmul.f32 %v3889_v54, %v3881_v57  ;;  %v3897_v23 = vmul.f32 %v3893_v55, %v3882_v8 }
 0xc30   : > { %v5031_v3 = vpop.eup %5030 }
 0xc31   : > { %v3911_v4 = vadd.f32 %v3904_v7, %v3896_v58  ;;  %v3912_v60 = vadd.f32 %v3908_v47, %v3897_v23  ;;  %v3883_v48 = vmul.f32 %v5031_v3, %v3863_v28  ;;  %v3884_v63 = vmul.f32 %v5031_v3, %v3864_v31 }
 0xc33   : > { %3915 = vst [vmem:[%s6019_s27] sm:$0xff] %v3911_v4  ;;  %3916 = vst [vmem:[%s6019_s27 + $0x8] sm:$0xff] %v3912_v60  ;;  %v3898_v46 = vmul.f32 %v3889_v54, %v3883_v48  ;;  %v3899_v51 = vmul.f32 %v3893_v55, %v3884_v63 }
 0xc35   : > { %v3913_v9 = vadd.f32 %v3904_v7, %v3898_v46  ;;  %v3914_v0 = vadd.f32 %v3908_v47, %v3899_v51 }
 0xc37   : > { %3917 = vst [vmem:[%s6019_s27 + $0x10] sm:$0xff] %v3913_v9  ;;  %3918 = vst [vmem:[%s6019_s27 + $0x18] sm:$0xff] %v3914_v0 }
 0xc38   : > { %5275 = shalt.err (!%p5272_p9)
}
 0xc39   : > { %s5276_s27 = scalar_lea.hbm %s6449_s6, 512  ;;  %s5280_s12 = scalar_lea.hbm %s6664_s13, 2048 }
 0xc3a   : > { %p5277_p3 = scmp.ne.s32.totalorder %s6449_s6, %s5276_s27  ;;  %p5281_p6 = scmp.lt.u32.totalorder %s6449_s6, %s6664_s13 }
 0xc3b   : > { %p5282_p1 = scmp.lt.u32.totalorder %s5280_s12, %s5276_s27  ;;  %p5284_p2 = scmp.lt.u32.totalorder %s5276_s27, %s6449_s6 }
 0xc3c   : > { %p5278_p8 = pnand %p5277_p3, %p6665_p4 }
 0xc3d   : > { %p5283_p11 = por %p5282_p1, %p5281_p6 }
 0xc3e   : > { %p5279_p0 = pneg %p5278_p8 }
 0xc3f   : > { %p5285_p13 = por %p5284_p2, %p5283_p11 }
 0xc41   : > { %p5286_p7 = pnand %p5285_p13, %p5279_p0 }
 0xc43   : > { %5289 = shalt.err (!%p5286_p7)
}
 0xc44   : > { %s5451_s24 = smov 256   ;;  %s5452_s25 = smov 16  }
 0xc45   : > { %4833 = dma.vmem_to_hbm [thread:$0]  (%p6665_p4), %s6451_s16, 512, %s6449_s6, %s3920_s10, %s5451_s24, %s5451_s24, %s5452_s25  }
 0xc46 PF: > { %p4876_p10 = scmp.ge.s32.totalorder %s5428_s22, 2  ;;  %s3951_s19 = sand.u32 1, %s5400_s0  }
 0xc47   : > { %p6666_p5 = scmp.ne.s32.totalorder %s6623_s7, 0  ;;  %s3952_s1 = scalar_lea.sflag [#allocation6], %s3951_s19 }
 0xc49   : > { %p4862_p12 = pnand %p4876_p10, %p6666_p5 }
 0xc4b   : > { %5371 = dma.done.wait (!%p4862_p12), %s3952_s1, 512  }
 0xc4c   : > { %5373 = vsyncadd (!%p4862_p12), %s3952_s1, 4294966784  ;;  %s39_s22 = sadd.s32 1, %s5428_s22   ;;  %s6668_s24 = sld [smem:[#allocation27_spill]] }
 0xc4d   : > { %p6484_p9 = scmp.ge.s32.totalorder %s39_s22, 6   ;;  %s6669_s27 = sld [smem:[#allocation28_spill]] }
 0xc4e   : > { %s6670_s8 = sld [smem:[#allocation35_spill]]  ;;  %s6671_s7 = sld [smem:[#allocation33_spill]] }
 0xc4f   : > { %s6672_s11 = sld [smem:[#allocation34_spill]]  ;;  %s6673_s25 = smov %s5384_s26 }
 0xc50   : > { %s6674_s26 = smov %s5925_s3  ;;  %s6675_s28 = smov %s5396_s29 }
 0xc51   : > { %s6677_s0 = smov %s5404_s30  ;;  %s6678_s30 = smov %s5408_s18 }
 0xc52   : > { %s6679_s18 = smov %s5869_s15  ;;  %s6680_s19 = smov %s5420_s20 }
 0xc53   : > { %s6681_s1 = smov %s5424_s21  ;;  %38 = sbr.rel (!%p6484_p9) target bundleno = 34 (0x22), region = 181 }
 0xc54   : > { %s6676_s29 = smov %s6670_s8  ;;  %s6682_s20 = smov %s6671_s7 }
 0xc55   : > { %s6683_s21 = smov %s6672_s11 }
 0xc5a   :  { %3957 = vsyncpa [#allocation5], 1 }
 0xc5b   :  { %3959 = vsyncpa [#allocation5 + $0x1], 1 }
 0xc5c   :  { %3960 = vsyncpa [#allocation8], 1 }
 0xc5d   :  { %3962 = vsyncpa [#allocation8 + $0x1], 1 }
 0xc5e   :  { %3963 = vsyncpa [#allocation11], 1 }
 0xc5f   :  { %3964 = vsyncpa [#allocation14], 1 }
 0xc60   :  { %3965 = vsyncpa [#allocation17], 1 }
 0xc61   :  { %3966 = vsyncpa [#allocation6], 1 }
 0xc62   :  { %3968 = vsyncpa [#allocation6 + $0x1], 1 }

</bundles_post_ra>
